<compile_context>
chip_gen: v6e
topology: v6e:2x2x1
jax: 0.10.0
libtpu: 0.0.40
codegen_flags: <defaults>
</compile_context>

<pallas_src>
import jax
import jax.numpy as jnp
from jax.experimental import pallas as pl
from jax.experimental.pallas import tpu as pltpu

EPS = 1e-5


# ------------------------------ small helpers ------------------------------

def _round_up(x, m):
    return (x + m - 1) // m * m


def _pick_tile(dim, align, max_tile):
    """Tile size (multiple of `align`, <= max_tile) minimizing padded extent.
    Returns (tile, padded_dim) with padded_dim % tile == 0."""
    padded = _round_up(dim, align)
    if padded <= max_tile:
        return padded, padded
    best_t = max_tile
    best_p = _round_up(dim, max_tile)
    t = max_tile - align
    while t >= align:
        p = _round_up(dim, t)
        if p < best_p:
            best_t, best_p = t, p
        t -= align
    return best_t, best_p


def _pad2d(x, rows, cols, dtype):
    x = x.astype(dtype)
    r, c = x.shape
    if (r, c) == (rows, cols):
        return x
    return jnp.pad(x, ((0, rows - r), (0, cols - c)))


def _pad_rows(x2d, rows):
    m = x2d.shape[0]
    if m == rows:
        return x2d
    return jnp.pad(x2d, ((0, rows - m), (0, 0)))


# --------------------------- tiled matmul kernels ---------------------------

def _mm_kernel(a_ref, b_ref, o_ref, acc_ref):
    @pl.when(pl.program_id(2) == 0)
    def _():
        acc_ref[...] = jnp.zeros_like(acc_ref)
    acc_ref[...] += jnp.dot(a_ref[...], b_ref[...],
                            preferred_element_type=jnp.float32)

    @pl.when(pl.program_id(2) == pl.num_programs(2) - 1)
    def _():
        o_ref[...] = acc_ref[...]


def _mm_bias_kernel(a_ref, b_ref, bias_ref, o_ref, acc_ref):
    @pl.when(pl.program_id(2) == 0)
    def _():
        acc_ref[...] = jnp.zeros_like(acc_ref)
    acc_ref[...] += jnp.dot(a_ref[...], b_ref[...],
                            preferred_element_type=jnp.float32)

    @pl.when(pl.program_id(2) == pl.num_programs(2) - 1)
    def _():
        o_ref[...] = acc_ref[...] + bias_ref[...]


def tiled_matmul(a, b, bias=None, *, tm_max=256, tn_max=256, tk_max=512):
    """C = A @ B (+ bias).  A:[M,K], B:[K,N] cast to bf16; f32 accumulation.
    Dims are zero-padded to tile multiples and the result is sliced back."""
    M, K = a.shape
    K2, N = b.shape
    assert K == K2
    tm, Mp = _pick_tile(M, 8, tm_max)
    tn, Np = _pick_tile(N, 128, tn_max)
    tk, Kp = _pick_tile(K, 128, tk_max)

    a_p = _pad2d(a, Mp, Kp, jnp.bfloat16)
    b_p = _pad2d(b, Kp, Np, jnp.bfloat16)
    grid = (Mp // tm, Np // tn, Kp // tk)
    cparams = pltpu.CompilerParams(
        dimension_semantics=("parallel", "parallel", "arbitrary"))

    if bias is None:
        out = pl.pallas_call(
            _mm_kernel,
            out_shape=jax.ShapeDtypeStruct((Mp, Np), jnp.float32),
            grid=grid,
            in_specs=[pl.BlockSpec((tm, tk), lambda i, j, k: (i, k)),
                      pl.BlockSpec((tk, tn), lambda i, j, k: (k, j))],
            out_specs=pl.BlockSpec((tm, tn), lambda i, j, k: (i, j)),
            scratch_shapes=[pltpu.VMEM((tm, tn), jnp.float32)],
            compiler_params=cparams,
        )(a_p, b_p)
    else:
        bias_p = _pad2d(bias.reshape(1, N), 1, Np, jnp.float32)
        out = pl.pallas_call(
            _mm_bias_kernel,
            out_shape=jax.ShapeDtypeStruct((Mp, Np), jnp.float32),
            grid=grid,
            in_specs=[pl.BlockSpec((tm, tk), lambda i, j, k: (i, k)),
                      pl.BlockSpec((tk, tn), lambda i, j, k: (k, j)),
                      pl.BlockSpec((1, tn), lambda i, j, k: (0, j))],
            out_specs=pl.BlockSpec((tm, tn), lambda i, j, k: (i, j)),
            scratch_shapes=[pltpu.VMEM((tm, tn), jnp.float32)],
            compiler_params=cparams,
        )(a_p, b_p, bias_p)
    return out[:M, :N]


# ------------------------ BatchNorm (two-pass, tiled) ------------------------

def _stats_kernel(x_ref, sum_ref, ssq_ref):
    @pl.when(pl.program_id(0) == 0)
    def _():
        sum_ref[...] = jnp.zeros_like(sum_ref)
        ssq_ref[...] = jnp.zeros_like(ssq_ref)
    x = x_ref[...]
    sum_ref[...] += jnp.sum(x, axis=0, keepdims=True)
    ssq_ref[...] += jnp.sum(x * x, axis=0, keepdims=True)


def _channel_stats(x2d):
    M, C = x2d.shape
    tm, Mp = _pick_tile(M, 8, 512)
    xp = _pad_rows(x2d, Mp)            # zero rows do not change sum / sumsq
    return pl.pallas_call(
        _stats_kernel,
        out_shape=(jax.ShapeDtypeStruct((1, C), jnp.float32),
                   jax.ShapeDtypeStruct((1, C), jnp.float32)),
        grid=(Mp // tm,),
        in_specs=[pl.BlockSpec((tm, C), lambda i: (i, 0))],
        out_specs=(pl.BlockSpec((1, C), lambda i: (0, 0)),
                   pl.BlockSpec((1, C), lambda i: (0, 0))),
        compiler_params=pltpu.CompilerParams(
            dimension_semantics=("arbitrary",)),
    )(xp)


def _bn_relu_kernel(x_ref, scale_ref, shift_ref, o_ref):
    o_ref[...] = jnp.maximum(x_ref[...] * scale_ref[...] + shift_ref[...], 0.0)


def _bn_res_relu_kernel(x_ref, scale_ref, shift_ref, res_ref, o_ref):
    o_ref[...] = jnp.maximum(
        x_ref[...] * scale_ref[...] + shift_ref[...] + res_ref[...], 0.0)


def batchnorm_relu(x2d, gamma, beta, res2d=None):
    """Training-mode BN (+ optional residual) + ReLU, tiled over rows."""
    M, C = x2d.shape
    s, ssq = _channel_stats(x2d)
    mean = s / float(M)
    var = jnp.maximum(ssq / float(M) - mean * mean, 0.0)   # biased variance
    scale = gamma.reshape(1, C) * jax.lax.rsqrt(var + EPS)
    shift = beta.reshape(1, C) - mean * scale

    tm, Mp = _pick_tile(M, 8, 512)
    xp = _pad_rows(x2d, Mp)
    cparams = pltpu.CompilerParams(dimension_semantics=("parallel",))

    if res2d is None:
        out = pl.pallas_call(
            _bn_relu_kernel,
            out_shape=jax.ShapeDtypeStruct((Mp, C), jnp.float32),
            grid=(Mp // tm,),
            in_specs=[pl.BlockSpec((tm, C), lambda i: (i, 0)),
                      pl.BlockSpec((1, C), lambda i: (0, 0)),
                      pl.BlockSpec((1, C), lambda i: (0, 0))],
            out_specs=pl.BlockSpec((tm, C), lambda i: (i, 0)),
            compiler_params=cparams,
        )(xp, scale, shift)
    else:
        rp = _pad_rows(res2d, Mp)
        out = pl.pallas_call(
            _bn_res_relu_kernel,
            out_shape=jax.ShapeDtypeStruct((Mp, C), jnp.float32),
            grid=(Mp // tm,),
            in_specs=[pl.BlockSpec((tm, C), lambda i: (i, 0)),
                      pl.BlockSpec((1, C), lambda i: (0, 0)),
                      pl.BlockSpec((1, C), lambda i: (0, 0)),
                      pl.BlockSpec((tm, C), lambda i: (i, 0))],
            out_specs=pl.BlockSpec((tm, C), lambda i: (i, 0)),
            compiler_params=cparams,
        )(xp, scale, shift, rp)
    return out[:M]


# -------------------------------- pooling -----------------------------------

def _maxpool_kernel(x_ref, o_ref):
    # x: [9, tm, C] stacked 3x3 window positions -> max over window axis.
    o_ref[...] = jnp.max(x_ref[...], axis=0)


def maxpool_3x3_s2_p1(x_nhwc):
    N, H, W, C = x_nhwc.shape
    Ho = (H + 2 - 3) // 2 + 1
    Wo = (W + 2 - 3) // 2 + 1
    xp = jnp.pad(x_nhwc, ((0, 0), (1, 1), (1, 1), (0, 0)),
                 constant_values=-jnp.inf)
    views = [xp[:, i:i + 2 * Ho:2, j:j + 2 * Wo:2, :]
             for i in range(3) for j in range(3)]
    M = N * Ho * Wo
    stack = jnp.stack(views, axis=0).reshape(9, M, C)
    tm, Mp = _pick_tile(M, 8, 512)
    if Mp != M:
        stack = jnp.pad(stack, ((0, 0), (0, Mp - M), (0, 0)))
    out = pl.pallas_call(
        _maxpool_kernel,
        out_shape=jax.ShapeDtypeStruct((Mp, C), jnp.float32),
        grid=(Mp // tm,),
        in_specs=[pl.BlockSpec((9, tm, C), lambda i: (0, i, 0))],
        out_specs=pl.BlockSpec((tm, C), lambda i: (i, 0)),
        compiler_params=pltpu.CompilerParams(
            dimension_semantics=("parallel",)),
    )(stack)
    return out[:M].reshape(N, Ho, Wo, C)


def _avgpool_kernel(x_ref, o_ref):
    # x: [N, H*W, C] -> mean over spatial axis (adaptive avg pool to 1x1).
    o_ref[...] = jnp.mean(x_ref[...], axis=1)


def adaptive_avgpool_1x1(x_nhwc):
    N, H, W, C = x_nhwc.shape
    x3 = x_nhwc.reshape(N, H * W, C)
    return pl.pallas_call(
        _avgpool_kernel,
        out_shape=jax.ShapeDtypeStruct((N, C), jnp.float32),
        grid=(1,),
        in_specs=[pl.BlockSpec((N, H * W, C), lambda i: (0, 0, 0))],
        out_specs=pl.BlockSpec((N, C), lambda i: (0, 0)),
    )(x3)


# ------------------------------ conv via im2col ------------------------------

def im2col(x_nhwc, kh, kw, stride, pad):
    """Patch extraction (XLA data movement). Output dtype == input dtype."""
    N, H, W, C = x_nhwc.shape
    Ho = (H + 2 * pad - kh) // stride + 1
    Wo = (W + 2 * pad - kw) // stride + 1
    xp = jnp.pad(x_nhwc, ((0, 0), (pad, pad), (pad, pad), (0, 0)))
    cols = []
    for i in range(kh):
        for j in range(kw):
            cols.append(xp[:, i:i + stride * Ho:stride, j:j + stride * Wo:stride, :])
    patches = jnp.stack(cols, axis=3)                      # [N, Ho, Wo, kh*kw, C]
    return patches.reshape(N * Ho * Wo, kh * kw * C), Ho, Wo


def conv2d(x_nhwc, conv, stride, pad, fuse_bias):
    w = conv["w"]                                          # [kh, kw, Cin, Cout]
    kh, kw, cin, cout = w.shape
    N = x_nhwc.shape[0]
    # Build im2col patches already in bf16 (halves HBM traffic for the matmul A).
    a, Ho, Wo = im2col(x_nhwc.astype(jnp.bfloat16), kh, kw, stride, pad)
    bias = conv["b"] if fuse_bias else None   # convs feeding BN: bias cancels
    out = tiled_matmul(a, w.reshape(kh * kw * cin, cout), bias)
    return out.reshape(N, Ho, Wo, cout)


# --------------------------- parameters (synthetic) ---------------------------

def init_conv(key, kh, kw, cin, cout):
    k_w, k_b = jax.random.split(key)
    fan_in = float(kh * kw * cin)
    w = jax.random.normal(k_w, (kh, kw, cin, cout), jnp.float32) / jnp.sqrt(fan_in)
    b = 0.01 * jax.random.normal(k_b, (cout,), jnp.float32)
    return {"w": w, "b": b}


def init_bn(c):
    return {"gamma": jnp.ones((c,), jnp.float32),
            "beta": jnp.zeros((c,), jnp.float32)}


def init_basic(key, cin, cout, use_1x1conv, stride):
    k1, k2, k3 = jax.random.split(key, 3)
    return {"conv1": init_conv(k1, 3, 3, cin, cout),
            "conv2": init_conv(k2, 3, 3, cout, cout),
            # the PyTorch module's "conv3" shortcut is a 3x3 conv (as in the spec)
            "conv3": init_conv(k3, 3, 3, cin, cout) if use_1x1conv else None,
            "bn1": init_bn(cout), "bn2": init_bn(cout),
            "stride": stride}


def init_resnet(key):
    keys = jax.random.split(key, 16)
    params = {"b1_conv": init_conv(keys[0], 7, 7, 1, 64), "b1_bn": init_bn(64)}
    ki = 1

    def make_stage(cin, cout, n_res, first_block):
        nonlocal ki
        stage = []
        for i in range(n_res):
            if i == 0 and not first_block:
                stage.append(init_basic(keys[ki], cin, cout, True, 2))
            else:
                stage.append(init_basic(keys[ki], cout, cout, False, 1))
            ki += 1
        return stage

    params["b2"] = make_stage(64, 64, 2, True)
    params["b3"] = make_stage(64, 128, 2, False)
    params["b4"] = make_stage(128, 256, 2, False)
    params["b5"] = make_stage(256, 512, 2, False)
    k_fw, k_fb = jax.random.split(keys[15])
    params["fc_w"] = jax.random.normal(k_fw, (512, 10), jnp.float32) / jnp.sqrt(512.0)
    params["fc_b"] = 0.01 * jax.random.normal(k_fb, (10,), jnp.float32)
    return params


# ------------------------------- forward pass --------------------------------

def basic_block(x, p):
    N = x.shape[0]
    # conv1 -> BN1 -> ReLU   (no residual: dedicated no-residual BN kernel)
    y = conv2d(x, p["conv1"], p["stride"], 1, fuse_bias=False)
    _, Ho, Wo, C = y.shape
    y = batchnorm_relu(y.reshape(-1, C),
                       p["bn1"]["gamma"], p["bn1"]["beta"]).reshape(N, Ho, Wo, C)
    # conv2 -> BN2 (+ shortcut) -> ReLU
    y2 = conv2d(y, p["conv2"], 1, 1, fuse_bias=False)
    if p["conv3"] is not None:
        # shortcut conv is NOT followed by BN -> keep its bias (fused at last K step)
        sc = conv2d(x, p["conv3"], p["stride"], 1, fuse_bias=True)
    else:
        sc = x
    out = batchnorm_relu(y2.reshape(-1, C),
                         p["bn2"]["gamma"], p["bn2"]["beta"],
                         res2d=sc.reshape(-1, C))
    return out.reshape(N, Ho, Wo, C)


def resnet_forward(params, x_nchw):
    x = jnp.transpose(x_nchw, (0, 2, 3, 1)).astype(jnp.float32)   # NCHW -> NHWC
    N = x.shape[0]

    # b1: conv7x7/2 -> BN -> ReLU -> maxpool3x3/2
    y = conv2d(x, params["b1_conv"], 2, 3, fuse_bias=False)
    _, H, W, C = y.shape
    y = batchnorm_relu(y.reshape(-1, C),
                       params["b1_bn"]["gamma"],
                       params["b1_bn"]["beta"]).reshape(N, H, W, C)
    y = maxpool_3x3_s2_p1(y)

    # b2..b5 residual stages
    for stage in ("b2", "b3", "b4", "b5"):
        for blk in params[stage]:
            y = basic_block(y, blk)

    # adaptive avg pool (1,1) -> flatten -> fc (output cols padded to 128 in-kernel)
    pooled = adaptive_avgpool_1x1(y)                               # [N, 512]
    return tiled_matmul(pooled, params["fc_w"], params["fc_b"])    # [N, 10]


if __name__ == "__main__":
    key = jax.random.PRNGKey(0)
    k_params, k_x = jax.random.split(key)
    params = init_resnet(k_params)
    x = jax.random.normal(k_x, (2, 1, 16, 16), jnp.float32)        # NCHW like PyTorch
    fwd = jax.jit(lambda inp: resnet_forward(params, inp))
    out = jax.block_until_ready(fwd(x))
    assert out.shape == (2, 10) and out.dtype == jnp.float32
    print("KERNEL_OK")
</pallas_src>

<mosaic_0001>
module attributes {stable_mosaic.version = 11 : i64} {
  func.func @_stats_kernel(%arg0: i32, %arg1: memref<128x64xf32, #tpu.memory_space<vmem>>, %arg2: memref<1x64xf32, #tpu.memory_space<vmem>>, %arg3: memref<1x64xf32, #tpu.memory_space<vmem>>) attributes {dimension_semantics = [#tpu.dimension_semantics<arbitrary>], iteration_bounds = array<i64: 1>, scalar_prefetch = 0 : i64, scratch_operands = 0 : i64, tpu.core_type = #tpu.core_type<tc>, window_params = [{transform_indices = @transform_0, window_bounds = array<i64: 128, 64>}, {pipeline_mode = #tpu.pipeline_mode<synchronous>, transform_indices = @transform_1, window_bounds = array<i64: 1, 64>}, {pipeline_mode = #tpu.pipeline_mode<synchronous>, transform_indices = @transform_2, window_bounds = array<i64: 1, 64>}]} {
    %c0_i32 = arith.constant 0 : i32
    %0 = arith.cmpi eq, %arg0, %c0_i32 : i32
    %1 = arith.extui %0 : i1 to i32
    %c0_i32_0 = arith.constant 0 : i32
    %2 = arith.cmpi ne, %1, %c0_i32_0 : i32
    scf.if %2 {
      %cst_11 = arith.constant 0.000000e+00 : f32
      %15 = vector.broadcast %cst_11 : f32 to vector<1x64xf32>
      %c0_12 = arith.constant 0 : index
      %c0_13 = arith.constant 0 : index
      %16 = vector.load %arg2[%c0_12, %c0_13] : memref<1x64xf32, #tpu.memory_space<vmem>>, vector<1x64xf32>
      tpu.vector_store %arg2[%c0_12, %c0_13], %15 {strides = array<i32>} : memref<1x64xf32, #tpu.memory_space<vmem>>, vector<1x64xf32>,
      %cst_14 = arith.constant 0.000000e+00 : f32
      %17 = vector.broadcast %cst_14 : f32 to vector<1x64xf32>
      %c0_15 = arith.constant 0 : index
      %c0_16 = arith.constant 0 : index
      %18 = vector.load %arg3[%c0_15, %c0_16] : memref<1x64xf32, #tpu.memory_space<vmem>>, vector<1x64xf32>
      tpu.vector_store %arg3[%c0_15, %c0_16], %17 {strides = array<i32>} : memref<1x64xf32, #tpu.memory_space<vmem>>, vector<1x64xf32>,
    } else {
    }
    %c0 = arith.constant 0 : index
    %c0_1 = arith.constant 0 : index
    %3 = vector.load %arg1[%c0, %c0_1] : memref<128x64xf32, #tpu.memory_space<vmem>>, vector<128x64xf32>
    %c0_2 = arith.constant 0 : index
    %c0_3 = arith.constant 0 : index
    %4 = vector.load %arg2[%c0_2, %c0_3] : memref<1x64xf32, #tpu.memory_space<vmem>>, vector<1x64xf32>
    %cst = arith.constant dense<0.000000e+00> : vector<64xf32>
    %5 = vector.multi_reduction <add>, %3, %cst [0] : vector<128x64xf32> to vector<64xf32>
    %6 = vector.shape_cast %5 : vector<64xf32> to vector<1x64xf32>
    %7 = arith.addf %4, %6 : vector<1x64xf32>
    %c0_4 = arith.constant 0 : index
    %c0_5 = arith.constant 0 : index
    %8 = vector.load %arg2[%c0_4, %c0_5] : memref<1x64xf32, #tpu.memory_space<vmem>>, vector<1x64xf32>
    tpu.vector_store %arg2[%c0_4, %c0_5], %7 {strides = array<i32>} : memref<1x64xf32, #tpu.memory_space<vmem>>, vector<1x64xf32>,
    %c0_6 = arith.constant 0 : index
    %c0_7 = arith.constant 0 : index
    %9 = vector.load %arg3[%c0_6, %c0_7] : memref<1x64xf32, #tpu.memory_space<vmem>>, vector<1x64xf32>
    %10 = arith.mulf %3, %3 : vector<128x64xf32>
    %cst_8 = arith.constant dense<0.000000e+00> : vector<64xf32>
    %11 = vector.multi_reduction <add>, %10, %cst_8 [0] : vector<128x64xf32> to vector<64xf32>
    %12 = vector.shape_cast %11 : vector<64xf32> to vector<1x64xf32>
    %13 = arith.addf %9, %12 : vector<1x64xf32>
    %c0_9 = arith.constant 0 : index
    %c0_10 = arith.constant 0 : index
    %14 = vector.load %arg3[%c0_9, %c0_10] : memref<1x64xf32, #tpu.memory_space<vmem>>, vector<1x64xf32>
    tpu.vector_store %arg3[%c0_9, %c0_10], %13 {strides = array<i32>} : memref<1x64xf32, #tpu.memory_space<vmem>>, vector<1x64xf32>,
    return
  }
  func.func @transform_0(%arg0: i32) -> (i32, i32) {
    %c0_i32 = arith.constant 0 : i32
    %c0_i32_0 = arith.constant 0 : i32
    return %arg0, %c0_i32 : i32, i32
  }
  func.func @transform_1(%arg0: i32) -> (i32, i32) {
    %c0_i32 = arith.constant 0 : i32
    %c0_i32_0 = arith.constant 0 : i32
    %c0_i32_1 = arith.constant 0 : i32
    return %c0_i32, %c0_i32_0 : i32, i32
  }
  func.func @transform_2(%arg0: i32) -> (i32, i32) {
    %c0_i32 = arith.constant 0 : i32
    %c0_i32_0 = arith.constant 0 : i32
    %c0_i32_1 = arith.constant 0 : i32
    return %c0_i32, %c0_i32_0 : i32, i32
  }
}

module attributes {stable_mosaic.version = 11 : i64} {
  func.func @_mm_kernel(%arg0: i32, %arg1: i32, %arg2: i32, %arg3: memref<128x128xbf16, #tpu.memory_space<vmem>>, %arg4: memref<128x128xbf16, #tpu.memory_space<vmem>>, %arg5: memref<128x128xf32, #tpu.memory_space<vmem>>, %arg6: memref<128x128xf32, #tpu.memory_space<vmem>>) attributes {dimension_semantics = [#tpu.dimension_semantics<parallel>, #tpu.dimension_semantics<parallel>, #tpu.dimension_semantics<arbitrary>], iteration_bounds = array<i64: 1, 1, 1>, scalar_prefetch = 0 : i64, scratch_operands = 1 : i64, tpu.core_type = #tpu.core_type<tc>, window_params = [{transform_indices = @transform_0, window_bounds = array<i64: 128, 128>}, {transform_indices = @transform_1, window_bounds = array<i64: 128, 128>}, {transform_indices = @transform_2, window_bounds = array<i64: 128, 128>}]} {
    %c0_i32 = arith.constant 0 : i32
    %0 = arith.cmpi eq, %arg2, %c0_i32 : i32
    %1 = arith.extui %0 : i1 to i32
    %c0_i32_0 = arith.constant 0 : i32
    %2 = arith.cmpi ne, %1, %c0_i32_0 : i32
    scf.if %2 {
      %cst_10 = arith.constant 0.000000e+00 : f32
      %12 = vector.broadcast %cst_10 : f32 to vector<128x128xf32>
      %c0_11 = arith.constant 0 : index
      %c0_12 = arith.constant 0 : index
      %13 = vector.load %arg6[%c0_11, %c0_12] : memref<128x128xf32, #tpu.memory_space<vmem>>, vector<128x128xf32>
      tpu.vector_store %arg6[%c0_11, %c0_12], %12 {strides = array<i32>} : memref<128x128xf32, #tpu.memory_space<vmem>>, vector<128x128xf32>,
    } else {
    }
    %c0 = arith.constant 0 : index
    %c0_1 = arith.constant 0 : index
    %3 = vector.load %arg6[%c0, %c0_1] : memref<128x128xf32, #tpu.memory_space<vmem>>, vector<128x128xf32>
    %c0_2 = arith.constant 0 : index
    %c0_3 = arith.constant 0 : index
    %4 = vector.load %arg3[%c0_2, %c0_3] : memref<128x128xbf16, #tpu.memory_space<vmem>>, vector<128x128xbf16>
    %c0_4 = arith.constant 0 : index
    %c0_5 = arith.constant 0 : index
    %5 = vector.load %arg4[%c0_4, %c0_5] : memref<128x128xbf16, #tpu.memory_space<vmem>>, vector<128x128xbf16>
    %cst = arith.constant dense<0.000000e+00> : vector<128x128xf32>
    %6 = tpu.matmul %4, %5, %cst {dimension_numbers = #tpu.dot_dimension_numbers<[1], [0], [0], [1], [0, 0, 1, 1], [], []>} : vector<128x128xbf16>, vector<128x128xbf16>, vector<128x128xf32> -> vector<128x128xf32>
    %7 = arith.addf %3, %6 : vector<128x128xf32>
    %c0_6 = arith.constant 0 : index
    %c0_7 = arith.constant 0 : index
    %8 = vector.load %arg6[%c0_6, %c0_7] : memref<128x128xf32, #tpu.memory_space<vmem>>, vector<128x128xf32>
    tpu.vector_store %arg6[%c0_6, %c0_7], %7 {strides = array<i32>} : memref<128x128xf32, #tpu.memory_space<vmem>>, vector<128x128xf32>,
    %c0_i32_8 = arith.constant 0 : i32
    %9 = arith.cmpi eq, %arg2, %c0_i32_8 : i32
    %10 = arith.extui %9 : i1 to i32
    %c0_i32_9 = arith.constant 0 : i32
    %11 = arith.cmpi ne, %10, %c0_i32_9 : i32
    scf.if %11 {
      %c0_10 = arith.constant 0 : index
      %c0_11 = arith.constant 0 : index
      %12 = vector.load %arg6[%c0_10, %c0_11] : memref<128x128xf32, #tpu.memory_space<vmem>>, vector<128x128xf32>
      %c0_12 = arith.constant 0 : index
      %c0_13 = arith.constant 0 : index
      %13 = vector.load %arg5[%c0_12, %c0_13] : memref<128x128xf32, #tpu.memory_space<vmem>>, vector<128x128xf32>
      tpu.vector_store %arg5[%c0_12, %c0_13], %12 {strides = array<i32>} : memref<128x128xf32, #tpu.memory_space<vmem>>, vector<128x128xf32>,
    } else {
    }
    return
  }
  func.func @transform_0(%arg0: i32, %arg1: i32, %arg2: i32) -> (i32, i32) {
    %c0_i32 = arith.constant 0 : i32
    return %arg0, %arg2 : i32, i32
  }
  func.func @transform_1(%arg0: i32, %arg1: i32, %arg2: i32) -> (i32, i32) {
    %c0_i32 = arith.constant 0 : i32
    return %arg2, %arg1 : i32, i32
  }
  func.func @transform_2(%arg0: i32, %arg1: i32, %arg2: i32) -> (i32, i32) {
    %c0_i32 = arith.constant 0 : i32
    return %arg0, %arg1 : i32, i32
  }
}

module attributes {stable_mosaic.version = 11 : i64} {
  func.func @_bn_relu_kernel(%arg0: i32, %arg1: memref<128x64xf32, #tpu.memory_space<vmem>>, %arg2: memref<1x64xf32, #tpu.memory_space<vmem>>, %arg3: memref<1x64xf32, #tpu.memory_space<vmem>>, %arg4: memref<128x64xf32, #tpu.memory_space<vmem>>) attributes {dimension_semantics = [#tpu.dimension_semantics<parallel>], iteration_bounds = array<i64: 1>, scalar_prefetch = 0 : i64, scratch_operands = 0 : i64, tpu.core_type = #tpu.core_type<tc>, window_params = [{transform_indices = @transform_0, window_bounds = array<i64: 128, 64>}, {pipeline_mode = #tpu.pipeline_mode<synchronous>, transform_indices = @transform_1, window_bounds = array<i64: 1, 64>}, {pipeline_mode = #tpu.pipeline_mode<synchronous>, transform_indices = @transform_2, window_bounds = array<i64: 1, 64>}, {transform_indices = @transform_3, window_bounds = array<i64: 128, 64>}]} {
    %c0 = arith.constant 0 : index
    %c0_0 = arith.constant 0 : index
    %0 = vector.load %arg1[%c0, %c0_0] : memref<128x64xf32, #tpu.memory_space<vmem>>, vector<128x64xf32>
    %c0_1 = arith.constant 0 : index
    %c0_2 = arith.constant 0 : index
    %1 = vector.load %arg2[%c0_1, %c0_2] : memref<1x64xf32, #tpu.memory_space<vmem>>, vector<1x64xf32>
    %2 = vector.broadcast %1 : vector<1x64xf32> to vector<128x64xf32>
    %3 = arith.mulf %0, %2 : vector<128x64xf32>
    %c0_3 = arith.constant 0 : index
    %c0_4 = arith.constant 0 : index
    %4 = vector.load %arg3[%c0_3, %c0_4] : memref<1x64xf32, #tpu.memory_space<vmem>>, vector<1x64xf32>
    %5 = vector.broadcast %4 : vector<1x64xf32> to vector<128x64xf32>
    %6 = arith.addf %3, %5 : vector<128x64xf32>
    %cst = arith.constant 0.000000e+00 : f32
    %7 = vector.broadcast %cst : f32 to vector<128x64xf32>
    %8 = arith.maximumf %6, %7 : vector<128x64xf32>
    %c0_5 = arith.constant 0 : index
    %c0_6 = arith.constant 0 : index
    %9 = vector.load %arg4[%c0_5, %c0_6] : memref<128x64xf32, #tpu.memory_space<vmem>>, vector<128x64xf32>
    tpu.vector_store %arg4[%c0_5, %c0_6], %8 {strides = array<i32>} : memref<128x64xf32, #tpu.memory_space<vmem>>, vector<128x64xf32>,
    return
  }
  func.func @transform_0(%arg0: i32) -> (i32, i32) {
    %c0_i32 = arith.constant 0 : i32
    %c0_i32_0 = arith.constant 0 : i32
    return %arg0, %c0_i32 : i32, i32
  }
  func.func @transform_1(%arg0: i32) -> (i32, i32) {
    %c0_i32 = arith.constant 0 : i32
    %c0_i32_0 = arith.constant 0 : i32
    %c0_i32_1 = arith.constant 0 : i32
    return %c0_i32, %c0_i32_0 : i32, i32
  }
  func.func @transform_2(%arg0: i32) -> (i32, i32) {
    %c0_i32 = arith.constant 0 : i32
    %c0_i32_0 = arith.constant 0 : i32
    %c0_i32_1 = arith.constant 0 : i32
    return %c0_i32, %c0_i32_0 : i32, i32
  }
  func.func @transform_3(%arg0: i32) -> (i32, i32) {
    %c0_i32 = arith.constant 0 : i32
    %c0_i32_0 = arith.constant 0 : i32
    return %arg0, %c0_i32 : i32, i32
  }
}

module attributes {stable_mosaic.version = 11 : i64} {
  func.func @_maxpool_kernel(%arg0: i32, %arg1: memref<9x32x64xf32, #tpu.memory_space<vmem>>, %arg2: memref<32x64xf32, #tpu.memory_space<vmem>>) attributes {dimension_semantics = [#tpu.dimension_semantics<parallel>], iteration_bounds = array<i64: 1>, scalar_prefetch = 0 : i64, scratch_operands = 0 : i64, tpu.core_type = #tpu.core_type<tc>, window_params = [{transform_indices = @transform_0, window_bounds = array<i64: 9, 32, 64>}, {transform_indices = @transform_1, window_bounds = array<i64: 32, 64>}]} {
    %c0 = arith.constant 0 : index
    %c0_0 = arith.constant 0 : index
    %c0_1 = arith.constant 0 : index
    %0 = vector.load %arg1[%c0, %c0_0, %c0_1] : memref<9x32x64xf32, #tpu.memory_space<vmem>>, vector<9x32x64xf32>
    %cst = arith.constant dense<0xFF800000> : vector<32x64xf32>
    %1 = vector.multi_reduction <maximumf>, %0, %cst [0] : vector<9x32x64xf32> to vector<32x64xf32>
    %c0_2 = arith.constant 0 : index
    %c0_3 = arith.constant 0 : index
    %2 = vector.load %arg2[%c0_2, %c0_3] : memref<32x64xf32, #tpu.memory_space<vmem>>, vector<32x64xf32>
    tpu.vector_store %arg2[%c0_2, %c0_3], %1 {strides = array<i32>} : memref<32x64xf32, #tpu.memory_space<vmem>>, vector<32x64xf32>,
    return
  }
  func.func @transform_0(%arg0: i32) -> (i32, i32, i32) {
    %c0_i32 = arith.constant 0 : i32
    %c0_i32_0 = arith.constant 0 : i32
    %c0_i32_1 = arith.constant 0 : i32
    return %c0_i32, %arg0, %c0_i32_0 : i32, i32, i32
  }
  func.func @transform_1(%arg0: i32) -> (i32, i32) {
    %c0_i32 = arith.constant 0 : i32
    %c0_i32_0 = arith.constant 0 : i32
    return %arg0, %c0_i32 : i32, i32
  }
}

module attributes {stable_mosaic.version = 11 : i64} {
  func.func @_mm_kernel(%arg0: i32, %arg1: i32, %arg2: i32, %arg3: memref<32x128xbf16, #tpu.memory_space<vmem>>, %arg4: memref<128x128xbf16, #tpu.memory_space<vmem>>, %arg5: memref<32x128xf32, #tpu.memory_space<vmem>>, %arg6: memref<32x128xf32, #tpu.memory_space<vmem>>) attributes {dimension_semantics = [#tpu.dimension_semantics<parallel>, #tpu.dimension_semantics<parallel>, #tpu.dimension_semantics<arbitrary>], iteration_bounds = array<i64: 1, 1, 5>, scalar_prefetch = 0 : i64, scratch_operands = 1 : i64, tpu.core_type = #tpu.core_type<tc>, window_params = [{transform_indices = @transform_0, window_bounds = array<i64: 32, 128>}, {transform_indices = @transform_1, window_bounds = array<i64: 128, 128>}, {transform_indices = @transform_2, window_bounds = array<i64: 32, 128>}]} {
    %c0_i32 = arith.constant 0 : i32
    %0 = arith.cmpi eq, %arg2, %c0_i32 : i32
    %1 = arith.extui %0 : i1 to i32
    %c0_i32_0 = arith.constant 0 : i32
    %2 = arith.cmpi ne, %1, %c0_i32_0 : i32
    scf.if %2 {
      %cst_9 = arith.constant 0.000000e+00 : f32
      %12 = vector.broadcast %cst_9 : f32 to vector<32x128xf32>
      %c0_10 = arith.constant 0 : index
      %c0_11 = arith.constant 0 : index
      %13 = vector.load %arg6[%c0_10, %c0_11] : memref<32x128xf32, #tpu.memory_space<vmem>>, vector<32x128xf32>
      tpu.vector_store %arg6[%c0_10, %c0_11], %12 {strides = array<i32>} : memref<32x128xf32, #tpu.memory_space<vmem>>, vector<32x128xf32>,
    } else {
    }
    %c0 = arith.constant 0 : index
    %c0_1 = arith.constant 0 : index
    %3 = vector.load %arg6[%c0, %c0_1] : memref<32x128xf32, #tpu.memory_space<vmem>>, vector<32x128xf32>
    %c0_2 = arith.constant 0 : index
    %c0_3 = arith.constant 0 : index
    %4 = vector.load %arg3[%c0_2, %c0_3] : memref<32x128xbf16, #tpu.memory_space<vmem>>, vector<32x128xbf16>
    %c0_4 = arith.constant 0 : index
    %c0_5 = arith.constant 0 : index
    %5 = vector.load %arg4[%c0_4, %c0_5] : memref<128x128xbf16, #tpu.memory_space<vmem>>, vector<128x128xbf16>
    %cst = arith.constant dense<0.000000e+00> : vector<32x128xf32>
    %6 = tpu.matmul %4, %5, %cst {dimension_numbers = #tpu.dot_dimension_numbers<[1], [0], [0], [1], [0, 0, 1, 1], [], []>} : vector<32x128xbf16>, vector<128x128xbf16>, vector<32x128xf32> -> vector<32x128xf32>
    %7 = arith.addf %3, %6 : vector<32x128xf32>
    %c0_6 = arith.constant 0 : index
    %c0_7 = arith.constant 0 : index
    %8 = vector.load %arg6[%c0_6, %c0_7] : memref<32x128xf32, #tpu.memory_space<vmem>>, vector<32x128xf32>
    tpu.vector_store %arg6[%c0_6, %c0_7], %7 {strides = array<i32>} : memref<32x128xf32, #tpu.memory_space<vmem>>, vector<32x128xf32>,
    %c4_i32 = arith.constant 4 : i32
    %9 = arith.cmpi eq, %arg2, %c4_i32 : i32
    %10 = arith.extui %9 : i1 to i32
    %c0_i32_8 = arith.constant 0 : i32
    %11 = arith.cmpi ne, %10, %c0_i32_8 : i32
    scf.if %11 {
      %c0_9 = arith.constant 0 : index
      %c0_10 = arith.constant 0 : index
      %12 = vector.load %arg6[%c0_9, %c0_10] : memref<32x128xf32, #tpu.memory_space<vmem>>, vector<32x128xf32>
      %c0_11 = arith.constant 0 : index
      %c0_12 = arith.constant 0 : index
      %13 = vector.load %arg5[%c0_11, %c0_12] : memref<32x128xf32, #tpu.memory_space<vmem>>, vector<32x128xf32>
      tpu.vector_store %arg5[%c0_11, %c0_12], %12 {strides = array<i32>} : memref<32x128xf32, #tpu.memory_space<vmem>>, vector<32x128xf32>,
    } else {
    }
    return
  }
  func.func @transform_0(%arg0: i32, %arg1: i32, %arg2: i32) -> (i32, i32) {
    %c0_i32 = arith.constant 0 : i32
    return %arg0, %arg2 : i32, i32
  }
  func.func @transform_1(%arg0: i32, %arg1: i32, %arg2: i32) -> (i32, i32) {
    %c0_i32 = arith.constant 0 : i32
    return %arg2, %arg1 : i32, i32
  }
  func.func @transform_2(%arg0: i32, %arg1: i32, %arg2: i32) -> (i32, i32) {
    %c0_i32 = arith.constant 0 : i32
    return %arg0, %arg1 : i32, i32
  }
}

module attributes {stable_mosaic.version = 11 : i64} {
  func.func @_stats_kernel(%arg0: i32, %arg1: memref<32x64xf32, #tpu.memory_space<vmem>>, %arg2: memref<1x64xf32, #tpu.memory_space<vmem>>, %arg3: memref<1x64xf32, #tpu.memory_space<vmem>>) attributes {dimension_semantics = [#tpu.dimension_semantics<arbitrary>], iteration_bounds = array<i64: 1>, scalar_prefetch = 0 : i64, scratch_operands = 0 : i64, tpu.core_type = #tpu.core_type<tc>, window_params = [{transform_indices = @transform_0, window_bounds = array<i64: 32, 64>}, {pipeline_mode = #tpu.pipeline_mode<synchronous>, transform_indices = @transform_1, window_bounds = array<i64: 1, 64>}, {pipeline_mode = #tpu.pipeline_mode<synchronous>, transform_indices = @transform_2, window_bounds = array<i64: 1, 64>}]} {
    %c0_i32 = arith.constant 0 : i32
    %0 = arith.cmpi eq, %arg0, %c0_i32 : i32
    %1 = arith.extui %0 : i1 to i32
    %c0_i32_0 = arith.constant 0 : i32
    %2 = arith.cmpi ne, %1, %c0_i32_0 : i32
    scf.if %2 {
      %cst_11 = arith.constant 0.000000e+00 : f32
      %15 = vector.broadcast %cst_11 : f32 to vector<1x64xf32>
      %c0_12 = arith.constant 0 : index
      %c0_13 = arith.constant 0 : index
      %16 = vector.load %arg2[%c0_12, %c0_13] : memref<1x64xf32, #tpu.memory_space<vmem>>, vector<1x64xf32>
      tpu.vector_store %arg2[%c0_12, %c0_13], %15 {strides = array<i32>} : memref<1x64xf32, #tpu.memory_space<vmem>>, vector<1x64xf32>,
      %cst_14 = arith.constant 0.000000e+00 : f32
      %17 = vector.broadcast %cst_14 : f32 to vector<1x64xf32>
      %c0_15 = arith.constant 0 : index
      %c0_16 = arith.constant 0 : index
      %18 = vector.load %arg3[%c0_15, %c0_16] : memref<1x64xf32, #tpu.memory_space<vmem>>, vector<1x64xf32>
      tpu.vector_store %arg3[%c0_15, %c0_16], %17 {strides = array<i32>} : memref<1x64xf32, #tpu.memory_space<vmem>>, vector<1x64xf32>,
    } else {
    }
    %c0 = arith.constant 0 : index
    %c0_1 = arith.constant 0 : index
    %3 = vector.load %arg1[%c0, %c0_1] : memref<32x64xf32, #tpu.memory_space<vmem>>, vector<32x64xf32>
    %c0_2 = arith.constant 0 : index
    %c0_3 = arith.constant 0 : index
    %4 = vector.load %arg2[%c0_2, %c0_3] : memref<1x64xf32, #tpu.memory_space<vmem>>, vector<1x64xf32>
    %cst = arith.constant dense<0.000000e+00> : vector<64xf32>
    %5 = vector.multi_reduction <add>, %3, %cst [0] : vector<32x64xf32> to vector<64xf32>
    %6 = vector.shape_cast %5 : vector<64xf32> to vector<1x64xf32>
    %7 = arith.addf %4, %6 : vector<1x64xf32>
    %c0_4 = arith.constant 0 : index
    %c0_5 = arith.constant 0 : index
    %8 = vector.load %arg2[%c0_4, %c0_5] : memref<1x64xf32, #tpu.memory_space<vmem>>, vector<1x64xf32>
    tpu.vector_store %arg2[%c0_4, %c0_5], %7 {strides = array<i32>} : memref<1x64xf32, #tpu.memory_space<vmem>>, vector<1x64xf32>,
    %c0_6 = arith.constant 0 : index
    %c0_7 = arith.constant 0 : index
    %9 = vector.load %arg3[%c0_6, %c0_7] : memref<1x64xf32, #tpu.memory_space<vmem>>, vector<1x64xf32>
    %10 = arith.mulf %3, %3 : vector<32x64xf32>
    %cst_8 = arith.constant dense<0.000000e+00> : vector<64xf32>
    %11 = vector.multi_reduction <add>, %10, %cst_8 [0] : vector<32x64xf32> to vector<64xf32>
    %12 = vector.shape_cast %11 : vector<64xf32> to vector<1x64xf32>
    %13 = arith.addf %9, %12 : vector<1x64xf32>
    %c0_9 = arith.constant 0 : index
    %c0_10 = arith.constant 0 : index
    %14 = vector.load %arg3[%c0_9, %c0_10] : memref<1x64xf32, #tpu.memory_space<vmem>>, vector<1x64xf32>
    tpu.vector_store %arg3[%c0_9, %c0_10], %13 {strides = array<i32>} : memref<1x64xf32, #tpu.memory_space<vmem>>, vector<1x64xf32>,
    return
  }
  func.func @transform_0(%arg0: i32) -> (i32, i32) {
    %c0_i32 = arith.constant 0 : i32
    %c0_i32_0 = arith.constant 0 : i32
    return %arg0, %c0_i32 : i32, i32
  }
  func.func @transform_1(%arg0: i32) -> (i32, i32) {
    %c0_i32 = arith.constant 0 : i32
    %c0_i32_0 = arith.constant 0 : i32
    %c0_i32_1 = arith.constant 0 : i32
    return %c0_i32, %c0_i32_0 : i32, i32
  }
  func.func @transform_2(%arg0: i32) -> (i32, i32) {
    %c0_i32 = arith.constant 0 : i32
    %c0_i32_0 = arith.constant 0 : i32
    %c0_i32_1 = arith.constant 0 : i32
    return %c0_i32, %c0_i32_0 : i32, i32
  }
}

module attributes {stable_mosaic.version = 11 : i64} {
  func.func @_bn_relu_kernel(%arg0: i32, %arg1: memref<32x64xf32, #tpu.memory_space<vmem>>, %arg2: memref<1x64xf32, #tpu.memory_space<vmem>>, %arg3: memref<1x64xf32, #tpu.memory_space<vmem>>, %arg4: memref<32x64xf32, #tpu.memory_space<vmem>>) attributes {dimension_semantics = [#tpu.dimension_semantics<parallel>], iteration_bounds = array<i64: 1>, scalar_prefetch = 0 : i64, scratch_operands = 0 : i64, tpu.core_type = #tpu.core_type<tc>, window_params = [{transform_indices = @transform_0, window_bounds = array<i64: 32, 64>}, {pipeline_mode = #tpu.pipeline_mode<synchronous>, transform_indices = @transform_1, window_bounds = array<i64: 1, 64>}, {pipeline_mode = #tpu.pipeline_mode<synchronous>, transform_indices = @transform_2, window_bounds = array<i64: 1, 64>}, {transform_indices = @transform_3, window_bounds = array<i64: 32, 64>}]} {
    %c0 = arith.constant 0 : index
    %c0_0 = arith.constant 0 : index
    %0 = vector.load %arg1[%c0, %c0_0] : memref<32x64xf32, #tpu.memory_space<vmem>>, vector<32x64xf32>
    %c0_1 = arith.constant 0 : index
    %c0_2 = arith.constant 0 : index
    %1 = vector.load %arg2[%c0_1, %c0_2] : memref<1x64xf32, #tpu.memory_space<vmem>>, vector<1x64xf32>
    %2 = vector.broadcast %1 : vector<1x64xf32> to vector<32x64xf32>
    %3 = arith.mulf %0, %2 : vector<32x64xf32>
    %c0_3 = arith.constant 0 : index
    %c0_4 = arith.constant 0 : index
    %4 = vector.load %arg3[%c0_3, %c0_4] : memref<1x64xf32, #tpu.memory_space<vmem>>, vector<1x64xf32>
    %5 = vector.broadcast %4 : vector<1x64xf32> to vector<32x64xf32>
    %6 = arith.addf %3, %5 : vector<32x64xf32>
    %cst = arith.constant 0.000000e+00 : f32
    %7 = vector.broadcast %cst : f32 to vector<32x64xf32>
    %8 = arith.maximumf %6, %7 : vector<32x64xf32>
    %c0_5 = arith.constant 0 : index
    %c0_6 = arith.constant 0 : index
    %9 = vector.load %arg4[%c0_5, %c0_6] : memref<32x64xf32, #tpu.memory_space<vmem>>, vector<32x64xf32>
    tpu.vector_store %arg4[%c0_5, %c0_6], %8 {strides = array<i32>} : memref<32x64xf32, #tpu.memory_space<vmem>>, vector<32x64xf32>,
    return
  }
  func.func @transform_0(%arg0: i32) -> (i32, i32) {
    %c0_i32 = arith.constant 0 : i32
    %c0_i32_0 = arith.constant 0 : i32
    return %arg0, %c0_i32 : i32, i32
  }
  func.func @transform_1(%arg0: i32) -> (i32, i32) {
    %c0_i32 = arith.constant 0 : i32
    %c0_i32_0 = arith.constant 0 : i32
    %c0_i32_1 = arith.constant 0 : i32
    return %c0_i32, %c0_i32_0 : i32, i32
  }
  func.func @transform_2(%arg0: i32) -> (i32, i32) {
    %c0_i32 = arith.constant 0 : i32
    %c0_i32_0 = arith.constant 0 : i32
    %c0_i32_1 = arith.constant 0 : i32
    return %c0_i32, %c0_i32_0 : i32, i32
  }
  func.func @transform_3(%arg0: i32) -> (i32, i32) {
    %c0_i32 = arith.constant 0 : i32
    %c0_i32_0 = arith.constant 0 : i32
    return %arg0, %c0_i32 : i32, i32
  }
}

module attributes {stable_mosaic.version = 11 : i64} {
  func.func @_bn_res_relu_kernel(%arg0: i32, %arg1: memref<32x64xf32, #tpu.memory_space<vmem>>, %arg2: memref<1x64xf32, #tpu.memory_space<vmem>>, %arg3: memref<1x64xf32, #tpu.memory_space<vmem>>, %arg4: memref<32x64xf32, #tpu.memory_space<vmem>>, %arg5: memref<32x64xf32, #tpu.memory_space<vmem>>) attributes {dimension_semantics = [#tpu.dimension_semantics<parallel>], iteration_bounds = array<i64: 1>, scalar_prefetch = 0 : i64, scratch_operands = 0 : i64, tpu.core_type = #tpu.core_type<tc>, window_params = [{transform_indices = @transform_0, window_bounds = array<i64: 32, 64>}, {pipeline_mode = #tpu.pipeline_mode<synchronous>, transform_indices = @transform_1, window_bounds = array<i64: 1, 64>}, {pipeline_mode = #tpu.pipeline_mode<synchronous>, transform_indices = @transform_2, window_bounds = array<i64: 1, 64>}, {transform_indices = @transform_3, window_bounds = array<i64: 32, 64>}, {transform_indices = @transform_4, window_bounds = array<i64: 32, 64>}]} {
    %c0 = arith.constant 0 : index
    %c0_0 = arith.constant 0 : index
    %0 = vector.load %arg1[%c0, %c0_0] : memref<32x64xf32, #tpu.memory_space<vmem>>, vector<32x64xf32>
    %c0_1 = arith.constant 0 : index
    %c0_2 = arith.constant 0 : index
    %1 = vector.load %arg2[%c0_1, %c0_2] : memref<1x64xf32, #tpu.memory_space<vmem>>, vector<1x64xf32>
    %2 = vector.broadcast %1 : vector<1x64xf32> to vector<32x64xf32>
    %3 = arith.mulf %0, %2 : vector<32x64xf32>
    %c0_3 = arith.constant 0 : index
    %c0_4 = arith.constant 0 : index
    %4 = vector.load %arg3[%c0_3, %c0_4] : memref<1x64xf32, #tpu.memory_space<vmem>>, vector<1x64xf32>
    %5 = vector.broadcast %4 : vector<1x64xf32> to vector<32x64xf32>
    %6 = arith.addf %3, %5 : vector<32x64xf32>
    %c0_5 = arith.constant 0 : index
    %c0_6 = arith.constant 0 : index
    %7 = vector.load %arg4[%c0_5, %c0_6] : memref<32x64xf32, #tpu.memory_space<vmem>>, vector<32x64xf32>
    %8 = arith.addf %6, %7 : vector<32x64xf32>
    %cst = arith.constant 0.000000e+00 : f32
    %9 = vector.broadcast %cst : f32 to vector<32x64xf32>
    %10 = arith.maximumf %8, %9 : vector<32x64xf32>
    %c0_7 = arith.constant 0 : index
    %c0_8 = arith.constant 0 : index
    %11 = vector.load %arg5[%c0_7, %c0_8] : memref<32x64xf32, #tpu.memory_space<vmem>>, vector<32x64xf32>
    tpu.vector_store %arg5[%c0_7, %c0_8], %10 {strides = array<i32>} : memref<32x64xf32, #tpu.memory_space<vmem>>, vector<32x64xf32>,
    return
  }
  func.func @transform_0(%arg0: i32) -> (i32, i32) {
    %c0_i32 = arith.constant 0 : i32
    %c0_i32_0 = arith.constant 0 : i32
    return %arg0, %c0_i32 : i32, i32
  }
  func.func @transform_1(%arg0: i32) -> (i32, i32) {
    %c0_i32 = arith.constant 0 : i32
    %c0_i32_0 = arith.constant 0 : i32
    %c0_i32_1 = arith.constant 0 : i32
    return %c0_i32, %c0_i32_0 : i32, i32
  }
  func.func @transform_2(%arg0: i32) -> (i32, i32) {
    %c0_i32 = arith.constant 0 : i32
    %c0_i32_0 = arith.constant 0 : i32
    %c0_i32_1 = arith.constant 0 : i32
    return %c0_i32, %c0_i32_0 : i32, i32
  }
  func.func @transform_3(%arg0: i32) -> (i32, i32) {
    %c0_i32 = arith.constant 0 : i32
    %c0_i32_0 = arith.constant 0 : i32
    return %arg0, %c0_i32 : i32, i32
  }
  func.func @transform_4(%arg0: i32) -> (i32, i32) {
    %c0_i32 = arith.constant 0 : i32
    %c0_i32_0 = arith.constant 0 : i32
    return %arg0, %c0_i32 : i32, i32
  }
}

module attributes {stable_mosaic.version = 11 : i64} {
  func.func @_mm_kernel(%arg0: i32, %arg1: i32, %arg2: i32, %arg3: memref<32x128xbf16, #tpu.memory_space<vmem>>, %arg4: memref<128x128xbf16, #tpu.memory_space<vmem>>, %arg5: memref<32x128xf32, #tpu.memory_space<vmem>>, %arg6: memref<32x128xf32, #tpu.memory_space<vmem>>) attributes {dimension_semantics = [#tpu.dimension_semantics<parallel>, #tpu.dimension_semantics<parallel>, #tpu.dimension_semantics<arbitrary>], iteration_bounds = array<i64: 1, 1, 5>, scalar_prefetch = 0 : i64, scratch_operands = 1 : i64, tpu.core_type = #tpu.core_type<tc>, window_params = [{transform_indices = @transform_0, window_bounds = array<i64: 32, 128>}, {transform_indices = @transform_1, window_bounds = array<i64: 128, 128>}, {transform_indices = @transform_2, window_bounds = array<i64: 32, 128>}]} {
    %c0_i32 = arith.constant 0 : i32
    %0 = arith.cmpi eq, %arg2, %c0_i32 : i32
    %1 = arith.extui %0 : i1 to i32
    %c0_i32_0 = arith.constant 0 : i32
    %2 = arith.cmpi ne, %1, %c0_i32_0 : i32
    scf.if %2 {
      %cst_9 = arith.constant 0.000000e+00 : f32
      %12 = vector.broadcast %cst_9 : f32 to vector<32x128xf32>
      %c0_10 = arith.constant 0 : index
      %c0_11 = arith.constant 0 : index
      %13 = vector.load %arg6[%c0_10, %c0_11] : memref<32x128xf32, #tpu.memory_space<vmem>>, vector<32x128xf32>
      tpu.vector_store %arg6[%c0_10, %c0_11], %12 {strides = array<i32>} : memref<32x128xf32, #tpu.memory_space<vmem>>, vector<32x128xf32>,
    } else {
    }
    %c0 = arith.constant 0 : index
    %c0_1 = arith.constant 0 : index
    %3 = vector.load %arg6[%c0, %c0_1] : memref<32x128xf32, #tpu.memory_space<vmem>>, vector<32x128xf32>
    %c0_2 = arith.constant 0 : index
    %c0_3 = arith.constant 0 : index
    %4 = vector.load %arg3[%c0_2, %c0_3] : memref<32x128xbf16, #tpu.memory_space<vmem>>, vector<32x128xbf16>
    %c0_4 = arith.constant 0 : index
    %c0_5 = arith.constant 0 : index
    %5 = vector.load %arg4[%c0_4, %c0_5] : memref<128x128xbf16, #tpu.memory_space<vmem>>, vector<128x128xbf16>
    %cst = arith.constant dense<0.000000e+00> : vector<32x128xf32>
    %6 = tpu.matmul %4, %5, %cst {dimension_numbers = #tpu.dot_dimension_numbers<[1], [0], [0], [1], [0, 0, 1, 1], [], []>} : vector<32x128xbf16>, vector<128x128xbf16>, vector<32x128xf32> -> vector<32x128xf32>
    %7 = arith.addf %3, %6 : vector<32x128xf32>
    %c0_6 = arith.constant 0 : index
    %c0_7 = arith.constant 0 : index
    %8 = vector.load %arg6[%c0_6, %c0_7] : memref<32x128xf32, #tpu.memory_space<vmem>>, vector<32x128xf32>
    tpu.vector_store %arg6[%c0_6, %c0_7], %7 {strides = array<i32>} : memref<32x128xf32, #tpu.memory_space<vmem>>, vector<32x128xf32>,
    %c4_i32 = arith.constant 4 : i32
    %9 = arith.cmpi eq, %arg2, %c4_i32 : i32
    %10 = arith.extui %9 : i1 to i32
    %c0_i32_8 = arith.constant 0 : i32
    %11 = arith.cmpi ne, %10, %c0_i32_8 : i32
    scf.if %11 {
      %c0_9 = arith.constant 0 : index
      %c0_10 = arith.constant 0 : index
      %12 = vector.load %arg6[%c0_9, %c0_10] : memref<32x128xf32, #tpu.memory_space<vmem>>, vector<32x128xf32>
      %c0_11 = arith.constant 0 : index
      %c0_12 = arith.constant 0 : index
      %13 = vector.load %arg5[%c0_11, %c0_12] : memref<32x128xf32, #tpu.memory_space<vmem>>, vector<32x128xf32>
      tpu.vector_store %arg5[%c0_11, %c0_12], %12 {strides = array<i32>} : memref<32x128xf32, #tpu.memory_space<vmem>>, vector<32x128xf32>,
    } else {
    }
    return
  }
  func.func @transform_0(%arg0: i32, %arg1: i32, %arg2: i32) -> (i32, i32) {
    %c0_i32 = arith.constant 0 : i32
    return %arg0, %arg2 : i32, i32
  }
  func.func @transform_1(%arg0: i32, %arg1: i32, %arg2: i32) -> (i32, i32) {
    %c0_i32 = arith.constant 0 : i32
    return %arg2, %arg1 : i32, i32
  }
  func.func @transform_2(%arg0: i32, %arg1: i32, %arg2: i32) -> (i32, i32) {
    %c0_i32 = arith.constant 0 : i32
    return %arg0, %arg1 : i32, i32
  }
}

module attributes {stable_mosaic.version = 11 : i64} {
  func.func @_mm_kernel(%arg0: i32, %arg1: i32, %arg2: i32, %arg3: memref<8x128xbf16, #tpu.memory_space<vmem>>, %arg4: memref<128x128xbf16, #tpu.memory_space<vmem>>, %arg5: memref<8x128xf32, #tpu.memory_space<vmem>>, %arg6: memref<8x128xf32, #tpu.memory_space<vmem>>) attributes {dimension_semantics = [#tpu.dimension_semantics<parallel>, #tpu.dimension_semantics<parallel>, #tpu.dimension_semantics<arbitrary>], iteration_bounds = array<i64: 1, 1, 5>, scalar_prefetch = 0 : i64, scratch_operands = 1 : i64, tpu.core_type = #tpu.core_type<tc>, window_params = [{transform_indices = @transform_0, window_bounds = array<i64: 8, 128>}, {transform_indices = @transform_1, window_bounds = array<i64: 128, 128>}, {transform_indices = @transform_2, window_bounds = array<i64: 8, 128>}]} {
    %c0_i32 = arith.constant 0 : i32
    %0 = arith.cmpi eq, %arg2, %c0_i32 : i32
    %1 = arith.extui %0 : i1 to i32
    %c0_i32_0 = arith.constant 0 : i32
    %2 = arith.cmpi ne, %1, %c0_i32_0 : i32
    scf.if %2 {
      %cst_9 = arith.constant 0.000000e+00 : f32
      %12 = vector.broadcast %cst_9 : f32 to vector<8x128xf32>
      %c0_10 = arith.constant 0 : index
      %c0_11 = arith.constant 0 : index
      %13 = vector.load %arg6[%c0_10, %c0_11] : memref<8x128xf32, #tpu.memory_space<vmem>>, vector<8x128xf32>
      tpu.vector_store %arg6[%c0_10, %c0_11], %12 {strides = array<i32>} : memref<8x128xf32, #tpu.memory_space<vmem>>, vector<8x128xf32>,
    } else {
    }
    %c0 = arith.constant 0 : index
    %c0_1 = arith.constant 0 : index
    %3 = vector.load %arg6[%c0, %c0_1] : memref<8x128xf32, #tpu.memory_space<vmem>>, vector<8x128xf32>
    %c0_2 = arith.constant 0 : index
    %c0_3 = arith.constant 0 : index
    %4 = vector.load %arg3[%c0_2, %c0_3] : memref<8x128xbf16, #tpu.memory_space<vmem>>, vector<8x128xbf16>
    %c0_4 = arith.constant 0 : index
    %c0_5 = arith.constant 0 : index
    %5 = vector.load %arg4[%c0_4, %c0_5] : memref<128x128xbf16, #tpu.memory_space<vmem>>, vector<128x128xbf16>
    %cst = arith.constant dense<0.000000e+00> : vector<8x128xf32>
    %6 = tpu.matmul %4, %5, %cst {dimension_numbers = #tpu.dot_dimension_numbers<[1], [0], [0], [1], [0, 0, 1, 1], [], []>} : vector<8x128xbf16>, vector<128x128xbf16>, vector<8x128xf32> -> vector<8x128xf32>
    %7 = arith.addf %3, %6 : vector<8x128xf32>
    %c0_6 = arith.constant 0 : index
    %c0_7 = arith.constant 0 : index
    %8 = vector.load %arg6[%c0_6, %c0_7] : memref<8x128xf32, #tpu.memory_space<vmem>>, vector<8x128xf32>
    tpu.vector_store %arg6[%c0_6, %c0_7], %7 {strides = array<i32>} : memref<8x128xf32, #tpu.memory_space<vmem>>, vector<8x128xf32>,
    %c4_i32 = arith.constant 4 : i32
    %9 = arith.cmpi eq, %arg2, %c4_i32 : i32
    %10 = arith.extui %9 : i1 to i32
    %c0_i32_8 = arith.constant 0 : i32
    %11 = arith.cmpi ne, %10, %c0_i32_8 : i32
    scf.if %11 {
      %c0_9 = arith.constant 0 : index
      %c0_10 = arith.constant 0 : index
      %12 = vector.load %arg6[%c0_9, %c0_10] : memref<8x128xf32, #tpu.memory_space<vmem>>, vector<8x128xf32>
      %c0_11 = arith.constant 0 : index
      %c0_12 = arith.constant 0 : index
      %13 = vector.load %arg5[%c0_11, %c0_12] : memref<8x128xf32, #tpu.memory_space<vmem>>, vector<8x128xf32>
      tpu.vector_store %arg5[%c0_11, %c0_12], %12 {strides = array<i32>} : memref<8x128xf32, #tpu.memory_space<vmem>>, vector<8x128xf32>,
    } else {
    }
    return
  }
  func.func @transform_0(%arg0: i32, %arg1: i32, %arg2: i32) -> (i32, i32) {
    %c0_i32 = arith.constant 0 : i32
    return %arg0, %arg2 : i32, i32
  }
  func.func @transform_1(%arg0: i32, %arg1: i32, %arg2: i32) -> (i32, i32) {
    %c0_i32 = arith.constant 0 : i32
    return %arg2, %arg1 : i32, i32
  }
  func.func @transform_2(%arg0: i32, %arg1: i32, %arg2: i32) -> (i32, i32) {
    %c0_i32 = arith.constant 0 : i32
    return %arg0, %arg1 : i32, i32
  }
}

module attributes {stable_mosaic.version = 11 : i64} {
  func.func @_stats_kernel(%arg0: i32, %arg1: memref<8x128xf32, #tpu.memory_space<vmem>>, %arg2: memref<1x128xf32, #tpu.memory_space<vmem>>, %arg3: memref<1x128xf32, #tpu.memory_space<vmem>>) attributes {dimension_semantics = [#tpu.dimension_semantics<arbitrary>], iteration_bounds = array<i64: 1>, scalar_prefetch = 0 : i64, scratch_operands = 0 : i64, tpu.core_type = #tpu.core_type<tc>, window_params = [{transform_indices = @transform_0, window_bounds = array<i64: 8, 128>}, {pipeline_mode = #tpu.pipeline_mode<synchronous>, transform_indices = @transform_1, window_bounds = array<i64: 1, 128>}, {pipeline_mode = #tpu.pipeline_mode<synchronous>, transform_indices = @transform_2, window_bounds = array<i64: 1, 128>}]} {
    %c0_i32 = arith.constant 0 : i32
    %0 = arith.cmpi eq, %arg0, %c0_i32 : i32
    %1 = arith.extui %0 : i1 to i32
    %c0_i32_0 = arith.constant 0 : i32
    %2 = arith.cmpi ne, %1, %c0_i32_0 : i32
    scf.if %2 {
      %cst_11 = arith.constant 0.000000e+00 : f32
      %15 = vector.broadcast %cst_11 : f32 to vector<1x128xf32>
      %c0_12 = arith.constant 0 : index
      %c0_13 = arith.constant 0 : index
      %16 = vector.load %arg2[%c0_12, %c0_13] : memref<1x128xf32, #tpu.memory_space<vmem>>, vector<1x128xf32>
      tpu.vector_store %arg2[%c0_12, %c0_13], %15 {strides = array<i32>} : memref<1x128xf32, #tpu.memory_space<vmem>>, vector<1x128xf32>,
      %cst_14 = arith.constant 0.000000e+00 : f32
      %17 = vector.broadcast %cst_14 : f32 to vector<1x128xf32>
      %c0_15 = arith.constant 0 : index
      %c0_16 = arith.constant 0 : index
      %18 = vector.load %arg3[%c0_15, %c0_16] : memref<1x128xf32, #tpu.memory_space<vmem>>, vector<1x128xf32>
      tpu.vector_store %arg3[%c0_15, %c0_16], %17 {strides = array<i32>} : memref<1x128xf32, #tpu.memory_space<vmem>>, vector<1x128xf32>,
    } else {
    }
    %c0 = arith.constant 0 : index
    %c0_1 = arith.constant 0 : index
    %3 = vector.load %arg1[%c0, %c0_1] : memref<8x128xf32, #tpu.memory_space<vmem>>, vector<8x128xf32>
    %c0_2 = arith.constant 0 : index
    %c0_3 = arith.constant 0 : index
    %4 = vector.load %arg2[%c0_2, %c0_3] : memref<1x128xf32, #tpu.memory_space<vmem>>, vector<1x128xf32>
    %cst = arith.constant dense<0.000000e+00> : vector<128xf32>
    %5 = vector.multi_reduction <add>, %3, %cst [0] : vector<8x128xf32> to vector<128xf32>
    %6 = vector.shape_cast %5 : vector<128xf32> to vector<1x128xf32>
    %7 = arith.addf %4, %6 : vector<1x128xf32>
    %c0_4 = arith.constant 0 : index
    %c0_5 = arith.constant 0 : index
    %8 = vector.load %arg2[%c0_4, %c0_5] : memref<1x128xf32, #tpu.memory_space<vmem>>, vector<1x128xf32>
    tpu.vector_store %arg2[%c0_4, %c0_5], %7 {strides = array<i32>} : memref<1x128xf32, #tpu.memory_space<vmem>>, vector<1x128xf32>,
    %c0_6 = arith.constant 0 : index
    %c0_7 = arith.constant 0 : index
    %9 = vector.load %arg3[%c0_6, %c0_7] : memref<1x128xf32, #tpu.memory_space<vmem>>, vector<1x128xf32>
    %10 = arith.mulf %3, %3 : vector<8x128xf32>
    %cst_8 = arith.constant dense<0.000000e+00> : vector<128xf32>
    %11 = vector.multi_reduction <add>, %10, %cst_8 [0] : vector<8x128xf32> to vector<128xf32>
    %12 = vector.shape_cast %11 : vector<128xf32> to vector<1x128xf32>
    %13 = arith.addf %9, %12 : vector<1x128xf32>
    %c0_9 = arith.constant 0 : index
    %c0_10 = arith.constant 0 : index
    %14 = vector.load %arg3[%c0_9, %c0_10] : memref<1x128xf32, #tpu.memory_space<vmem>>, vector<1x128xf32>
    tpu.vector_store %arg3[%c0_9, %c0_10], %13 {strides = array<i32>} : memref<1x128xf32, #tpu.memory_space<vmem>>, vector<1x128xf32>,
    return
  }
  func.func @transform_0(%arg0: i32) -> (i32, i32) {
    %c0_i32 = arith.constant 0 : i32
    %c0_i32_0 = arith.constant 0 : i32
    return %arg0, %c0_i32 : i32, i32
  }
  func.func @transform_1(%arg0: i32) -> (i32, i32) {
    %c0_i32 = arith.constant 0 : i32
    %c0_i32_0 = arith.constant 0 : i32
    %c0_i32_1 = arith.constant 0 : i32
    return %c0_i32, %c0_i32_0 : i32, i32
  }
  func.func @transform_2(%arg0: i32) -> (i32, i32) {
    %c0_i32 = arith.constant 0 : i32
    %c0_i32_0 = arith.constant 0 : i32
    %c0_i32_1 = arith.constant 0 : i32
    return %c0_i32, %c0_i32_0 : i32, i32
  }
}

module attributes {stable_mosaic.version = 11 : i64} {
  func.func @_bn_relu_kernel(%arg0: i32, %arg1: memref<8x128xf32, #tpu.memory_space<vmem>>, %arg2: memref<1x128xf32, #tpu.memory_space<vmem>>, %arg3: memref<1x128xf32, #tpu.memory_space<vmem>>, %arg4: memref<8x128xf32, #tpu.memory_space<vmem>>) attributes {dimension_semantics = [#tpu.dimension_semantics<parallel>], iteration_bounds = array<i64: 1>, scalar_prefetch = 0 : i64, scratch_operands = 0 : i64, tpu.core_type = #tpu.core_type<tc>, window_params = [{transform_indices = @transform_0, window_bounds = array<i64: 8, 128>}, {pipeline_mode = #tpu.pipeline_mode<synchronous>, transform_indices = @transform_1, window_bounds = array<i64: 1, 128>}, {pipeline_mode = #tpu.pipeline_mode<synchronous>, transform_indices = @transform_2, window_bounds = array<i64: 1, 128>}, {transform_indices = @transform_3, window_bounds = array<i64: 8, 128>}]} {
    %c0 = arith.constant 0 : index
    %c0_0 = arith.constant 0 : index
    %0 = vector.load %arg1[%c0, %c0_0] : memref<8x128xf32, #tpu.memory_space<vmem>>, vector<8x128xf32>
    %c0_1 = arith.constant 0 : index
    %c0_2 = arith.constant 0 : index
    %1 = vector.load %arg2[%c0_1, %c0_2] : memref<1x128xf32, #tpu.memory_space<vmem>>, vector<1x128xf32>
    %2 = vector.broadcast %1 : vector<1x128xf32> to vector<8x128xf32>
    %3 = arith.mulf %0, %2 : vector<8x128xf32>
    %c0_3 = arith.constant 0 : index
    %c0_4 = arith.constant 0 : index
    %4 = vector.load %arg3[%c0_3, %c0_4] : memref<1x128xf32, #tpu.memory_space<vmem>>, vector<1x128xf32>
    %5 = vector.broadcast %4 : vector<1x128xf32> to vector<8x128xf32>
    %6 = arith.addf %3, %5 : vector<8x128xf32>
    %cst = arith.constant 0.000000e+00 : f32
    %7 = vector.broadcast %cst : f32 to vector<8x128xf32>
    %8 = arith.maximumf %6, %7 : vector<8x128xf32>
    %c0_5 = arith.constant 0 : index
    %c0_6 = arith.constant 0 : index
    %9 = vector.load %arg4[%c0_5, %c0_6] : memref<8x128xf32, #tpu.memory_space<vmem>>, vector<8x128xf32>
    tpu.vector_store %arg4[%c0_5, %c0_6], %8 {strides = array<i32>} : memref<8x128xf32, #tpu.memory_space<vmem>>, vector<8x128xf32>,
    return
  }
  func.func @transform_0(%arg0: i32) -> (i32, i32) {
    %c0_i32 = arith.constant 0 : i32
    %c0_i32_0 = arith.constant 0 : i32
    return %arg0, %c0_i32 : i32, i32
  }
  func.func @transform_1(%arg0: i32) -> (i32, i32) {
    %c0_i32 = arith.constant 0 : i32
    %c0_i32_0 = arith.constant 0 : i32
    %c0_i32_1 = arith.constant 0 : i32
    return %c0_i32, %c0_i32_0 : i32, i32
  }
  func.func @transform_2(%arg0: i32) -> (i32, i32) {
    %c0_i32 = arith.constant 0 : i32
    %c0_i32_0 = arith.constant 0 : i32
    %c0_i32_1 = arith.constant 0 : i32
    return %c0_i32, %c0_i32_0 : i32, i32
  }
  func.func @transform_3(%arg0: i32) -> (i32, i32) {
    %c0_i32 = arith.constant 0 : i32
    %c0_i32_0 = arith.constant 0 : i32
    return %arg0, %c0_i32 : i32, i32
  }
}

module attributes {stable_mosaic.version = 11 : i64} {
  func.func @_bn_res_relu_kernel(%arg0: i32, %arg1: memref<8x128xf32, #tpu.memory_space<vmem>>, %arg2: memref<1x128xf32, #tpu.memory_space<vmem>>, %arg3: memref<1x128xf32, #tpu.memory_space<vmem>>, %arg4: memref<8x128xf32, #tpu.memory_space<vmem>>, %arg5: memref<8x128xf32, #tpu.memory_space<vmem>>) attributes {dimension_semantics = [#tpu.dimension_semantics<parallel>], iteration_bounds = array<i64: 1>, scalar_prefetch = 0 : i64, scratch_operands = 0 : i64, tpu.core_type = #tpu.core_type<tc>, window_params = [{transform_indices = @transform_0, window_bounds = array<i64: 8, 128>}, {pipeline_mode = #tpu.pipeline_mode<synchronous>, transform_indices = @transform_1, window_bounds = array<i64: 1, 128>}, {pipeline_mode = #tpu.pipeline_mode<synchronous>, transform_indices = @transform_2, window_bounds = array<i64: 1, 128>}, {transform_indices = @transform_3, window_bounds = array<i64: 8, 128>}, {transform_indices = @transform_4, window_bounds = array<i64: 8, 128>}]} {
    %c0 = arith.constant 0 : index
    %c0_0 = arith.constant 0 : index
    %0 = vector.load %arg1[%c0, %c0_0] : memref<8x128xf32, #tpu.memory_space<vmem>>, vector<8x128xf32>
    %c0_1 = arith.constant 0 : index
    %c0_2 = arith.constant 0 : index
    %1 = vector.load %arg2[%c0_1, %c0_2] : memref<1x128xf32, #tpu.memory_space<vmem>>, vector<1x128xf32>
    %2 = vector.broadcast %1 : vector<1x128xf32> to vector<8x128xf32>
    %3 = arith.mulf %0, %2 : vector<8x128xf32>
    %c0_3 = arith.constant 0 : index
    %c0_4 = arith.constant 0 : index
    %4 = vector.load %arg3[%c0_3, %c0_4] : memref<1x128xf32, #tpu.memory_space<vmem>>, vector<1x128xf32>
    %5 = vector.broadcast %4 : vector<1x128xf32> to vector<8x128xf32>
    %6 = arith.addf %3, %5 : vector<8x128xf32>
    %c0_5 = arith.constant 0 : index
    %c0_6 = arith.constant 0 : index
    %7 = vector.load %arg4[%c0_5, %c0_6] : memref<8x128xf32, #tpu.memory_space<vmem>>, vector<8x128xf32>
    %8 = arith.addf %6, %7 : vector<8x128xf32>
    %cst = arith.constant 0.000000e+00 : f32
    %9 = vector.broadcast %cst : f32 to vector<8x128xf32>
    %10 = arith.maximumf %8, %9 : vector<8x128xf32>
    %c0_7 = arith.constant 0 : index
    %c0_8 = arith.constant 0 : index
    %11 = vector.load %arg5[%c0_7, %c0_8] : memref<8x128xf32, #tpu.memory_space<vmem>>, vector<8x128xf32>
    tpu.vector_store %arg5[%c0_7, %c0_8], %10 {strides = array<i32>} : memref<8x128xf32, #tpu.memory_space<vmem>>, vector<8x128xf32>,
    return
  }
  func.func @transform_0(%arg0: i32) -> (i32, i32) {
    %c0_i32 = arith.constant 0 : i32
    %c0_i32_0 = arith.constant 0 : i32
    return %arg0, %c0_i32 : i32, i32
  }
  func.func @transform_1(%arg0: i32) -> (i32, i32) {
    %c0_i32 = arith.constant 0 : i32
    %c0_i32_0 = arith.constant 0 : i32
    %c0_i32_1 = arith.constant 0 : i32
    return %c0_i32, %c0_i32_0 : i32, i32
  }
  func.func @transform_2(%arg0: i32) -> (i32, i32) {
    %c0_i32 = arith.constant 0 : i32
    %c0_i32_0 = arith.constant 0 : i32
    %c0_i32_1 = arith.constant 0 : i32
    return %c0_i32, %c0_i32_0 : i32, i32
  }
  func.func @transform_3(%arg0: i32) -> (i32, i32) {
    %c0_i32 = arith.constant 0 : i32
    %c0_i32_0 = arith.constant 0 : i32
    return %arg0, %c0_i32 : i32, i32
  }
  func.func @transform_4(%arg0: i32) -> (i32, i32) {
    %c0_i32 = arith.constant 0 : i32
    %c0_i32_0 = arith.constant 0 : i32
    return %arg0, %c0_i32 : i32, i32
  }
}

module attributes {stable_mosaic.version = 11 : i64} {
  func.func @_mm_bias_kernel(%arg0: i32, %arg1: i32, %arg2: i32, %arg3: memref<8x128xbf16, #tpu.memory_space<vmem>>, %arg4: memref<128x128xbf16, #tpu.memory_space<vmem>>, %arg5: memref<1x128xf32, #tpu.memory_space<vmem>>, %arg6: memref<8x128xf32, #tpu.memory_space<vmem>>, %arg7: memref<8x128xf32, #tpu.memory_space<vmem>>) attributes {dimension_semantics = [#tpu.dimension_semantics<parallel>, #tpu.dimension_semantics<parallel>, #tpu.dimension_semantics<arbitrary>], iteration_bounds = array<i64: 1, 1, 5>, scalar_prefetch = 0 : i64, scratch_operands = 1 : i64, tpu.core_type = #tpu.core_type<tc>, window_params = [{transform_indices = @transform_0, window_bounds = array<i64: 8, 128>}, {transform_indices = @transform_1, window_bounds = array<i64: 128, 128>}, {transform_indices = @transform_2, window_bounds = array<i64: 1, 128>}, {transform_indices = @transform_3, window_bounds = array<i64: 8, 128>}]} {
    %c0_i32 = arith.constant 0 : i32
    %0 = arith.cmpi eq, %arg2, %c0_i32 : i32
    %1 = arith.extui %0 : i1 to i32
    %c0_i32_0 = arith.constant 0 : i32
    %2 = arith.cmpi ne, %1, %c0_i32_0 : i32
    scf.if %2 {
      %cst_9 = arith.constant 0.000000e+00 : f32
      %12 = vector.broadcast %cst_9 : f32 to vector<8x128xf32>
      %c0_10 = arith.constant 0 : index
      %c0_11 = arith.constant 0 : index
      %13 = vector.load %arg7[%c0_10, %c0_11] : memref<8x128xf32, #tpu.memory_space<vmem>>, vector<8x128xf32>
      tpu.vector_store %arg7[%c0_10, %c0_11], %12 {strides = array<i32>} : memref<8x128xf32, #tpu.memory_space<vmem>>, vector<8x128xf32>,
    } else {
    }
    %c0 = arith.constant 0 : index
    %c0_1 = arith.constant 0 : index
    %3 = vector.load %arg7[%c0, %c0_1] : memref<8x128xf32, #tpu.memory_space<vmem>>, vector<8x128xf32>
    %c0_2 = arith.constant 0 : index
    %c0_3 = arith.constant 0 : index
    %4 = vector.load %arg3[%c0_2, %c0_3] : memref<8x128xbf16, #tpu.memory_space<vmem>>, vector<8x128xbf16>
    %c0_4 = arith.constant 0 : index
    %c0_5 = arith.constant 0 : index
    %5 = vector.load %arg4[%c0_4, %c0_5] : memref<128x128xbf16, #tpu.memory_space<vmem>>, vector<128x128xbf16>
    %cst = arith.constant dense<0.000000e+00> : vector<8x128xf32>
    %6 = tpu.matmul %4, %5, %cst {dimension_numbers = #tpu.dot_dimension_numbers<[1], [0], [0], [1], [0, 0, 1, 1], [], []>} : vector<8x128xbf16>, vector<128x128xbf16>, vector<8x128xf32> -> vector<8x128xf32>
    %7 = arith.addf %3, %6 : vector<8x128xf32>
    %c0_6 = arith.constant 0 : index
    %c0_7 = arith.constant 0 : index
    %8 = vector.load %arg7[%c0_6, %c0_7] : memref<8x128xf32, #tpu.memory_space<vmem>>, vector<8x128xf32>
    tpu.vector_store %arg7[%c0_6, %c0_7], %7 {strides = array<i32>} : memref<8x128xf32, #tpu.memory_space<vmem>>, vector<8x128xf32>,
    %c4_i32 = arith.constant 4 : i32
    %9 = arith.cmpi eq, %arg2, %c4_i32 : i32
    %10 = arith.extui %9 : i1 to i32
    %c0_i32_8 = arith.constant 0 : i32
    %11 = arith.cmpi ne, %10, %c0_i32_8 : i32
    scf.if %11 {
      %c0_9 = arith.constant 0 : index
      %c0_10 = arith.constant 0 : index
      %12 = vector.load %arg7[%c0_9, %c0_10] : memref<8x128xf32, #tpu.memory_space<vmem>>, vector<8x128xf32>
      %c0_11 = arith.constant 0 : index
      %c0_12 = arith.constant 0 : index
      %13 = vector.load %arg5[%c0_11, %c0_12] : memref<1x128xf32, #tpu.memory_space<vmem>>, vector<1x128xf32>
      %14 = vector.broadcast %13 : vector<1x128xf32> to vector<8x128xf32>
      %15 = arith.addf %12, %14 : vector<8x128xf32>
      %c0_13 = arith.constant 0 : index
      %c0_14 = arith.constant 0 : index
      %16 = vector.load %arg6[%c0_13, %c0_14] : memref<8x128xf32, #tpu.memory_space<vmem>>, vector<8x128xf32>
      tpu.vector_store %arg6[%c0_13, %c0_14], %15 {strides = array<i32>} : memref<8x128xf32, #tpu.memory_space<vmem>>, vector<8x128xf32>,
    } else {
    }
    return
  }
  func.func @transform_0(%arg0: i32, %arg1: i32, %arg2: i32) -> (i32, i32) {
    %c0_i32 = arith.constant 0 : i32
    return %arg0, %arg2 : i32, i32
  }
  func.func @transform_1(%arg0: i32, %arg1: i32, %arg2: i32) -> (i32, i32) {
    %c0_i32 = arith.constant 0 : i32
    return %arg2, %arg1 : i32, i32
  }
  func.func @transform_2(%arg0: i32, %arg1: i32, %arg2: i32) -> (i32, i32) {
    %c0_i32 = arith.constant 0 : i32
    %c0_i32_0 = arith.constant 0 : i32
    return %c0_i32, %arg1 : i32, i32
  }
  func.func @transform_3(%arg0: i32, %arg1: i32, %arg2: i32) -> (i32, i32) {
    %c0_i32 = arith.constant 0 : i32
    return %arg0, %arg1 : i32, i32
  }
}

module attributes {stable_mosaic.version = 11 : i64} {
  func.func @_mm_kernel(%arg0: i32, %arg1: i32, %arg2: i32, %arg3: memref<8x384xbf16, #tpu.memory_space<vmem>>, %arg4: memref<384x128xbf16, #tpu.memory_space<vmem>>, %arg5: memref<8x128xf32, #tpu.memory_space<vmem>>, %arg6: memref<8x128xf32, #tpu.memory_space<vmem>>) attributes {dimension_semantics = [#tpu.dimension_semantics<parallel>, #tpu.dimension_semantics<parallel>, #tpu.dimension_semantics<arbitrary>], iteration_bounds = array<i64: 1, 1, 3>, scalar_prefetch = 0 : i64, scratch_operands = 1 : i64, tpu.core_type = #tpu.core_type<tc>, window_params = [{transform_indices = @transform_0, window_bounds = array<i64: 8, 384>}, {transform_indices = @transform_1, window_bounds = array<i64: 384, 128>}, {transform_indices = @transform_2, window_bounds = array<i64: 8, 128>}]} {
    %c0_i32 = arith.constant 0 : i32
    %0 = arith.cmpi eq, %arg2, %c0_i32 : i32
    %1 = arith.extui %0 : i1 to i32
    %c0_i32_0 = arith.constant 0 : i32
    %2 = arith.cmpi ne, %1, %c0_i32_0 : i32
    scf.if %2 {
      %cst_9 = arith.constant 0.000000e+00 : f32
      %12 = vector.broadcast %cst_9 : f32 to vector<8x128xf32>
      %c0_10 = arith.constant 0 : index
      %c0_11 = arith.constant 0 : index
      %13 = vector.load %arg6[%c0_10, %c0_11] : memref<8x128xf32, #tpu.memory_space<vmem>>, vector<8x128xf32>
      tpu.vector_store %arg6[%c0_10, %c0_11], %12 {strides = array<i32>} : memref<8x128xf32, #tpu.memory_space<vmem>>, vector<8x128xf32>,
    } else {
    }
    %c0 = arith.constant 0 : index
    %c0_1 = arith.constant 0 : index
    %3 = vector.load %arg6[%c0, %c0_1] : memref<8x128xf32, #tpu.memory_space<vmem>>, vector<8x128xf32>
    %c0_2 = arith.constant 0 : index
    %c0_3 = arith.constant 0 : index
    %4 = vector.load %arg3[%c0_2, %c0_3] : memref<8x384xbf16, #tpu.memory_space<vmem>>, vector<8x384xbf16>
    %c0_4 = arith.constant 0 : index
    %c0_5 = arith.constant 0 : index
    %5 = vector.load %arg4[%c0_4, %c0_5] : memref<384x128xbf16, #tpu.memory_space<vmem>>, vector<384x128xbf16>
    %cst = arith.constant dense<0.000000e+00> : vector<8x128xf32>
    %6 = tpu.matmul %4, %5, %cst {dimension_numbers = #tpu.dot_dimension_numbers<[1], [0], [0], [1], [0, 0, 1, 1], [], []>} : vector<8x384xbf16>, vector<384x128xbf16>, vector<8x128xf32> -> vector<8x128xf32>
    %7 = arith.addf %3, %6 : vector<8x128xf32>
    %c0_6 = arith.constant 0 : index
    %c0_7 = arith.constant 0 : index
    %8 = vector.load %arg6[%c0_6, %c0_7] : memref<8x128xf32, #tpu.memory_space<vmem>>, vector<8x128xf32>
    tpu.vector_store %arg6[%c0_6, %c0_7], %7 {strides = array<i32>} : memref<8x128xf32, #tpu.memory_space<vmem>>, vector<8x128xf32>,
    %c2_i32 = arith.constant 2 : i32
    %9 = arith.cmpi eq, %arg2, %c2_i32 : i32
    %10 = arith.extui %9 : i1 to i32
    %c0_i32_8 = arith.constant 0 : i32
    %11 = arith.cmpi ne, %10, %c0_i32_8 : i32
    scf.if %11 {
      %c0_9 = arith.constant 0 : index
      %c0_10 = arith.constant 0 : index
      %12 = vector.load %arg6[%c0_9, %c0_10] : memref<8x128xf32, #tpu.memory_space<vmem>>, vector<8x128xf32>
      %c0_11 = arith.constant 0 : index
      %c0_12 = arith.constant 0 : index
      %13 = vector.load %arg5[%c0_11, %c0_12] : memref<8x128xf32, #tpu.memory_space<vmem>>, vector<8x128xf32>
      tpu.vector_store %arg5[%c0_11, %c0_12], %12 {strides = array<i32>} : memref<8x128xf32, #tpu.memory_space<vmem>>, vector<8x128xf32>,
    } else {
    }
    return
  }
  func.func @transform_0(%arg0: i32, %arg1: i32, %arg2: i32) -> (i32, i32) {
    %c0_i32 = arith.constant 0 : i32
    return %arg0, %arg2 : i32, i32
  }
  func.func @transform_1(%arg0: i32, %arg1: i32, %arg2: i32) -> (i32, i32) {
    %c0_i32 = arith.constant 0 : i32
    return %arg2, %arg1 : i32, i32
  }
  func.func @transform_2(%arg0: i32, %arg1: i32, %arg2: i32) -> (i32, i32) {
    %c0_i32 = arith.constant 0 : i32
    return %arg0, %arg1 : i32, i32
  }
}

module attributes {stable_mosaic.version = 11 : i64} {
  func.func @_mm_kernel(%arg0: i32, %arg1: i32, %arg2: i32, %arg3: memref<8x384xbf16, #tpu.memory_space<vmem>>, %arg4: memref<384x256xbf16, #tpu.memory_space<vmem>>, %arg5: memref<8x256xf32, #tpu.memory_space<vmem>>, %arg6: memref<8x256xf32, #tpu.memory_space<vmem>>) attributes {dimension_semantics = [#tpu.dimension_semantics<parallel>, #tpu.dimension_semantics<parallel>, #tpu.dimension_semantics<arbitrary>], iteration_bounds = array<i64: 1, 1, 3>, scalar_prefetch = 0 : i64, scratch_operands = 1 : i64, tpu.core_type = #tpu.core_type<tc>, window_params = [{transform_indices = @transform_0, window_bounds = array<i64: 8, 384>}, {transform_indices = @transform_1, window_bounds = array<i64: 384, 256>}, {transform_indices = @transform_2, window_bounds = array<i64: 8, 256>}]} {
    %c0_i32 = arith.constant 0 : i32
    %0 = arith.cmpi eq, %arg2, %c0_i32 : i32
    %1 = arith.extui %0 : i1 to i32
    %c0_i32_0 = arith.constant 0 : i32
    %2 = arith.cmpi ne, %1, %c0_i32_0 : i32
    scf.if %2 {
      %cst_9 = arith.constant 0.000000e+00 : f32
      %12 = vector.broadcast %cst_9 : f32 to vector<8x256xf32>
      %c0_10 = arith.constant 0 : index
      %c0_11 = arith.constant 0 : index
      %13 = vector.load %arg6[%c0_10, %c0_11] : memref<8x256xf32, #tpu.memory_space<vmem>>, vector<8x256xf32>
      tpu.vector_store %arg6[%c0_10, %c0_11], %12 {strides = array<i32>} : memref<8x256xf32, #tpu.memory_space<vmem>>, vector<8x256xf32>,
    } else {
    }
    %c0 = arith.constant 0 : index
    %c0_1 = arith.constant 0 : index
    %3 = vector.load %arg6[%c0, %c0_1] : memref<8x256xf32, #tpu.memory_space<vmem>>, vector<8x256xf32>
    %c0_2 = arith.constant 0 : index
    %c0_3 = arith.constant 0 : index
    %4 = vector.load %arg3[%c0_2, %c0_3] : memref<8x384xbf16, #tpu.memory_space<vmem>>, vector<8x384xbf16>
    %c0_4 = arith.constant 0 : index
    %c0_5 = arith.constant 0 : index
    %5 = vector.load %arg4[%c0_4, %c0_5] : memref<384x256xbf16, #tpu.memory_space<vmem>>, vector<384x256xbf16>
    %cst = arith.constant dense<0.000000e+00> : vector<8x256xf32>
    %6 = tpu.matmul %4, %5, %cst {dimension_numbers = #tpu.dot_dimension_numbers<[1], [0], [0], [1], [0, 0, 1, 1], [], []>} : vector<8x384xbf16>, vector<384x256xbf16>, vector<8x256xf32> -> vector<8x256xf32>
    %7 = arith.addf %3, %6 : vector<8x256xf32>
    %c0_6 = arith.constant 0 : index
    %c0_7 = arith.constant 0 : index
    %8 = vector.load %arg6[%c0_6, %c0_7] : memref<8x256xf32, #tpu.memory_space<vmem>>, vector<8x256xf32>
    tpu.vector_store %arg6[%c0_6, %c0_7], %7 {strides = array<i32>} : memref<8x256xf32, #tpu.memory_space<vmem>>, vector<8x256xf32>,
    %c2_i32 = arith.constant 2 : i32
    %9 = arith.cmpi eq, %arg2, %c2_i32 : i32
    %10 = arith.extui %9 : i1 to i32
    %c0_i32_8 = arith.constant 0 : i32
    %11 = arith.cmpi ne, %10, %c0_i32_8 : i32
    scf.if %11 {
      %c0_9 = arith.constant 0 : index
      %c0_10 = arith.constant 0 : index
      %12 = vector.load %arg6[%c0_9, %c0_10] : memref<8x256xf32, #tpu.memory_space<vmem>>, vector<8x256xf32>
      %c0_11 = arith.constant 0 : index
      %c0_12 = arith.constant 0 : index
      %13 = vector.load %arg5[%c0_11, %c0_12] : memref<8x256xf32, #tpu.memory_space<vmem>>, vector<8x256xf32>
      tpu.vector_store %arg5[%c0_11, %c0_12], %12 {strides = array<i32>} : memref<8x256xf32, #tpu.memory_space<vmem>>, vector<8x256xf32>,
    } else {
    }
    return
  }
  func.func @transform_0(%arg0: i32, %arg1: i32, %arg2: i32) -> (i32, i32) {
    %c0_i32 = arith.constant 0 : i32
    return %arg0, %arg2 : i32, i32
  }
  func.func @transform_1(%arg0: i32, %arg1: i32, %arg2: i32) -> (i32, i32) {
    %c0_i32 = arith.constant 0 : i32
    return %arg2, %arg1 : i32, i32
  }
  func.func @transform_2(%arg0: i32, %arg1: i32, %arg2: i32) -> (i32, i32) {
    %c0_i32 = arith.constant 0 : i32
    return %arg0, %arg1 : i32, i32
  }
}

module attributes {stable_mosaic.version = 11 : i64} {
  func.func @_stats_kernel(%arg0: i32, %arg1: memref<8x256xf32, #tpu.memory_space<vmem>>, %arg2: memref<1x256xf32, #tpu.memory_space<vmem>>, %arg3: memref<1x256xf32, #tpu.memory_space<vmem>>) attributes {dimension_semantics = [#tpu.dimension_semantics<arbitrary>], iteration_bounds = array<i64: 1>, scalar_prefetch = 0 : i64, scratch_operands = 0 : i64, tpu.core_type = #tpu.core_type<tc>, window_params = [{transform_indices = @transform_0, window_bounds = array<i64: 8, 256>}, {pipeline_mode = #tpu.pipeline_mode<synchronous>, transform_indices = @transform_1, window_bounds = array<i64: 1, 256>}, {pipeline_mode = #tpu.pipeline_mode<synchronous>, transform_indices = @transform_2, window_bounds = array<i64: 1, 256>}]} {
    %c0_i32 = arith.constant 0 : i32
    %0 = arith.cmpi eq, %arg0, %c0_i32 : i32
    %1 = arith.extui %0 : i1 to i32
    %c0_i32_0 = arith.constant 0 : i32
    %2 = arith.cmpi ne, %1, %c0_i32_0 : i32
    scf.if %2 {
      %cst_11 = arith.constant 0.000000e+00 : f32
      %15 = vector.broadcast %cst_11 : f32 to vector<1x256xf32>
      %c0_12 = arith.constant 0 : index
      %c0_13 = arith.constant 0 : index
      %16 = vector.load %arg2[%c0_12, %c0_13] : memref<1x256xf32, #tpu.memory_space<vmem>>, vector<1x256xf32>
      tpu.vector_store %arg2[%c0_12, %c0_13], %15 {strides = array<i32>} : memref<1x256xf32, #tpu.memory_space<vmem>>, vector<1x256xf32>,
      %cst_14 = arith.constant 0.000000e+00 : f32
      %17 = vector.broadcast %cst_14 : f32 to vector<1x256xf32>
      %c0_15 = arith.constant 0 : index
      %c0_16 = arith.constant 0 : index
      %18 = vector.load %arg3[%c0_15, %c0_16] : memref<1x256xf32, #tpu.memory_space<vmem>>, vector<1x256xf32>
      tpu.vector_store %arg3[%c0_15, %c0_16], %17 {strides = array<i32>} : memref<1x256xf32, #tpu.memory_space<vmem>>, vector<1x256xf32>,
    } else {
    }
    %c0 = arith.constant 0 : index
    %c0_1 = arith.constant 0 : index
    %3 = vector.load %arg1[%c0, %c0_1] : memref<8x256xf32, #tpu.memory_space<vmem>>, vector<8x256xf32>
    %c0_2 = arith.constant 0 : index
    %c0_3 = arith.constant 0 : index
    %4 = vector.load %arg2[%c0_2, %c0_3] : memref<1x256xf32, #tpu.memory_space<vmem>>, vector<1x256xf32>
    %cst = arith.constant dense<0.000000e+00> : vector<256xf32>
    %5 = vector.multi_reduction <add>, %3, %cst [0] : vector<8x256xf32> to vector<256xf32>
    %6 = vector.shape_cast %5 : vector<256xf32> to vector<1x256xf32>
    %7 = arith.addf %4, %6 : vector<1x256xf32>
    %c0_4 = arith.constant 0 : index
    %c0_5 = arith.constant 0 : index
    %8 = vector.load %arg2[%c0_4, %c0_5] : memref<1x256xf32, #tpu.memory_space<vmem>>, vector<1x256xf32>
    tpu.vector_store %arg2[%c0_4, %c0_5], %7 {strides = array<i32>} : memref<1x256xf32, #tpu.memory_space<vmem>>, vector<1x256xf32>,
    %c0_6 = arith.constant 0 : index
    %c0_7 = arith.constant 0 : index
    %9 = vector.load %arg3[%c0_6, %c0_7] : memref<1x256xf32, #tpu.memory_space<vmem>>, vector<1x256xf32>
    %10 = arith.mulf %3, %3 : vector<8x256xf32>
    %cst_8 = arith.constant dense<0.000000e+00> : vector<256xf32>
    %11 = vector.multi_reduction <add>, %10, %cst_8 [0] : vector<8x256xf32> to vector<256xf32>
    %12 = vector.shape_cast %11 : vector<256xf32> to vector<1x256xf32>
    %13 = arith.addf %9, %12 : vector<1x256xf32>
    %c0_9 = arith.constant 0 : index
    %c0_10 = arith.constant 0 : index
    %14 = vector.load %arg3[%c0_9, %c0_10] : memref<1x256xf32, #tpu.memory_space<vmem>>, vector<1x256xf32>
    tpu.vector_store %arg3[%c0_9, %c0_10], %13 {strides = array<i32>} : memref<1x256xf32, #tpu.memory_space<vmem>>, vector<1x256xf32>,
    return
  }
  func.func @transform_0(%arg0: i32) -> (i32, i32) {
    %c0_i32 = arith.constant 0 : i32
    %c0_i32_0 = arith.constant 0 : i32
    return %arg0, %c0_i32 : i32, i32
  }
  func.func @transform_1(%arg0: i32) -> (i32, i32) {
    %c0_i32 = arith.constant 0 : i32
    %c0_i32_0 = arith.constant 0 : i32
    %c0_i32_1 = arith.constant 0 : i32
    return %c0_i32, %c0_i32_0 : i32, i32
  }
  func.func @transform_2(%arg0: i32) -> (i32, i32) {
    %c0_i32 = arith.constant 0 : i32
    %c0_i32_0 = arith.constant 0 : i32
    %c0_i32_1 = arith.constant 0 : i32
    return %c0_i32, %c0_i32_0 : i32, i32
  }
}

module attributes {stable_mosaic.version = 11 : i64} {
  func.func @_bn_relu_kernel(%arg0: i32, %arg1: memref<8x256xf32, #tpu.memory_space<vmem>>, %arg2: memref<1x256xf32, #tpu.memory_space<vmem>>, %arg3: memref<1x256xf32, #tpu.memory_space<vmem>>, %arg4: memref<8x256xf32, #tpu.memory_space<vmem>>) attributes {dimension_semantics = [#tpu.dimension_semantics<parallel>], iteration_bounds = array<i64: 1>, scalar_prefetch = 0 : i64, scratch_operands = 0 : i64, tpu.core_type = #tpu.core_type<tc>, window_params = [{transform_indices = @transform_0, window_bounds = array<i64: 8, 256>}, {pipeline_mode = #tpu.pipeline_mode<synchronous>, transform_indices = @transform_1, window_bounds = array<i64: 1, 256>}, {pipeline_mode = #tpu.pipeline_mode<synchronous>, transform_indices = @transform_2, window_bounds = array<i64: 1, 256>}, {transform_indices = @transform_3, window_bounds = array<i64: 8, 256>}]} {
    %c0 = arith.constant 0 : index
    %c0_0 = arith.constant 0 : index
    %0 = vector.load %arg1[%c0, %c0_0] : memref<8x256xf32, #tpu.memory_space<vmem>>, vector<8x256xf32>
    %c0_1 = arith.constant 0 : index
    %c0_2 = arith.constant 0 : index
    %1 = vector.load %arg2[%c0_1, %c0_2] : memref<1x256xf32, #tpu.memory_space<vmem>>, vector<1x256xf32>
    %2 = vector.broadcast %1 : vector<1x256xf32> to vector<8x256xf32>
    %3 = arith.mulf %0, %2 : vector<8x256xf32>
    %c0_3 = arith.constant 0 : index
    %c0_4 = arith.constant 0 : index
    %4 = vector.load %arg3[%c0_3, %c0_4] : memref<1x256xf32, #tpu.memory_space<vmem>>, vector<1x256xf32>
    %5 = vector.broadcast %4 : vector<1x256xf32> to vector<8x256xf32>
    %6 = arith.addf %3, %5 : vector<8x256xf32>
    %cst = arith.constant 0.000000e+00 : f32
    %7 = vector.broadcast %cst : f32 to vector<8x256xf32>
    %8 = arith.maximumf %6, %7 : vector<8x256xf32>
    %c0_5 = arith.constant 0 : index
    %c0_6 = arith.constant 0 : index
    %9 = vector.load %arg4[%c0_5, %c0_6] : memref<8x256xf32, #tpu.memory_space<vmem>>, vector<8x256xf32>
    tpu.vector_store %arg4[%c0_5, %c0_6], %8 {strides = array<i32>} : memref<8x256xf32, #tpu.memory_space<vmem>>, vector<8x256xf32>,
    return
  }
  func.func @transform_0(%arg0: i32) -> (i32, i32) {
    %c0_i32 = arith.constant 0 : i32
    %c0_i32_0 = arith.constant 0 : i32
    return %arg0, %c0_i32 : i32, i32
  }
  func.func @transform_1(%arg0: i32) -> (i32, i32) {
    %c0_i32 = arith.constant 0 : i32
    %c0_i32_0 = arith.constant 0 : i32
    %c0_i32_1 = arith.constant 0 : i32
    return %c0_i32, %c0_i32_0 : i32, i32
  }
  func.func @transform_2(%arg0: i32) -> (i32, i32) {
    %c0_i32 = arith.constant 0 : i32
    %c0_i32_0 = arith.constant 0 : i32
    %c0_i32_1 = arith.constant 0 : i32
    return %c0_i32, %c0_i32_0 : i32, i32
  }
  func.func @transform_3(%arg0: i32) -> (i32, i32) {
    %c0_i32 = arith.constant 0 : i32
    %c0_i32_0 = arith.constant 0 : i32
    return %arg0, %c0_i32 : i32, i32
  }
}

module attributes {stable_mosaic.version = 11 : i64} {
  func.func @_bn_res_relu_kernel(%arg0: i32, %arg1: memref<8x256xf32, #tpu.memory_space<vmem>>, %arg2: memref<1x256xf32, #tpu.memory_space<vmem>>, %arg3: memref<1x256xf32, #tpu.memory_space<vmem>>, %arg4: memref<8x256xf32, #tpu.memory_space<vmem>>, %arg5: memref<8x256xf32, #tpu.memory_space<vmem>>) attributes {dimension_semantics = [#tpu.dimension_semantics<parallel>], iteration_bounds = array<i64: 1>, scalar_prefetch = 0 : i64, scratch_operands = 0 : i64, tpu.core_type = #tpu.core_type<tc>, window_params = [{transform_indices = @transform_0, window_bounds = array<i64: 8, 256>}, {pipeline_mode = #tpu.pipeline_mode<synchronous>, transform_indices = @transform_1, window_bounds = array<i64: 1, 256>}, {pipeline_mode = #tpu.pipeline_mode<synchronous>, transform_indices = @transform_2, window_bounds = array<i64: 1, 256>}, {transform_indices = @transform_3, window_bounds = array<i64: 8, 256>}, {transform_indices = @transform_4, window_bounds = array<i64: 8, 256>}]} {
    %c0 = arith.constant 0 : index
    %c0_0 = arith.constant 0 : index
    %0 = vector.load %arg1[%c0, %c0_0] : memref<8x256xf32, #tpu.memory_space<vmem>>, vector<8x256xf32>
    %c0_1 = arith.constant 0 : index
    %c0_2 = arith.constant 0 : index
    %1 = vector.load %arg2[%c0_1, %c0_2] : memref<1x256xf32, #tpu.memory_space<vmem>>, vector<1x256xf32>
    %2 = vector.broadcast %1 : vector<1x256xf32> to vector<8x256xf32>
    %3 = arith.mulf %0, %2 : vector<8x256xf32>
    %c0_3 = arith.constant 0 : index
    %c0_4 = arith.constant 0 : index
    %4 = vector.load %arg3[%c0_3, %c0_4] : memref<1x256xf32, #tpu.memory_space<vmem>>, vector<1x256xf32>
    %5 = vector.broadcast %4 : vector<1x256xf32> to vector<8x256xf32>
    %6 = arith.addf %3, %5 : vector<8x256xf32>
    %c0_5 = arith.constant 0 : index
    %c0_6 = arith.constant 0 : index
    %7 = vector.load %arg4[%c0_5, %c0_6] : memref<8x256xf32, #tpu.memory_space<vmem>>, vector<8x256xf32>
    %8 = arith.addf %6, %7 : vector<8x256xf32>
    %cst = arith.constant 0.000000e+00 : f32
    %9 = vector.broadcast %cst : f32 to vector<8x256xf32>
    %10 = arith.maximumf %8, %9 : vector<8x256xf32>
    %c0_7 = arith.constant 0 : index
    %c0_8 = arith.constant 0 : index
    %11 = vector.load %arg5[%c0_7, %c0_8] : memref<8x256xf32, #tpu.memory_space<vmem>>, vector<8x256xf32>
    tpu.vector_store %arg5[%c0_7, %c0_8], %10 {strides = array<i32>} : memref<8x256xf32, #tpu.memory_space<vmem>>, vector<8x256xf32>,
    return
  }
  func.func @transform_0(%arg0: i32) -> (i32, i32) {
    %c0_i32 = arith.constant 0 : i32
    %c0_i32_0 = arith.constant 0 : i32
    return %arg0, %c0_i32 : i32, i32
  }
  func.func @transform_1(%arg0: i32) -> (i32, i32) {
    %c0_i32 = arith.constant 0 : i32
    %c0_i32_0 = arith.constant 0 : i32
    %c0_i32_1 = arith.constant 0 : i32
    return %c0_i32, %c0_i32_0 : i32, i32
  }
  func.func @transform_2(%arg0: i32) -> (i32, i32) {
    %c0_i32 = arith.constant 0 : i32
    %c0_i32_0 = arith.constant 0 : i32
    %c0_i32_1 = arith.constant 0 : i32
    return %c0_i32, %c0_i32_0 : i32, i32
  }
  func.func @transform_3(%arg0: i32) -> (i32, i32) {
    %c0_i32 = arith.constant 0 : i32
    %c0_i32_0 = arith.constant 0 : i32
    return %arg0, %c0_i32 : i32, i32
  }
  func.func @transform_4(%arg0: i32) -> (i32, i32) {
    %c0_i32 = arith.constant 0 : i32
    %c0_i32_0 = arith.constant 0 : i32
    return %arg0, %c0_i32 : i32, i32
  }
}

module attributes {stable_mosaic.version = 11 : i64} {
  func.func @_mm_kernel(%arg0: i32, %arg1: i32, %arg2: i32, %arg3: memref<8x384xbf16, #tpu.memory_space<vmem>>, %arg4: memref<384x256xbf16, #tpu.memory_space<vmem>>, %arg5: memref<8x256xf32, #tpu.memory_space<vmem>>, %arg6: memref<8x256xf32, #tpu.memory_space<vmem>>) attributes {dimension_semantics = [#tpu.dimension_semantics<parallel>, #tpu.dimension_semantics<parallel>, #tpu.dimension_semantics<arbitrary>], iteration_bounds = array<i64: 1, 1, 6>, scalar_prefetch = 0 : i64, scratch_operands = 1 : i64, tpu.core_type = #tpu.core_type<tc>, window_params = [{transform_indices = @transform_0, window_bounds = array<i64: 8, 384>}, {transform_indices = @transform_1, window_bounds = array<i64: 384, 256>}, {transform_indices = @transform_2, window_bounds = array<i64: 8, 256>}]} {
    %c0_i32 = arith.constant 0 : i32
    %0 = arith.cmpi eq, %arg2, %c0_i32 : i32
    %1 = arith.extui %0 : i1 to i32
    %c0_i32_0 = arith.constant 0 : i32
    %2 = arith.cmpi ne, %1, %c0_i32_0 : i32
    scf.if %2 {
      %cst_9 = arith.constant 0.000000e+00 : f32
      %12 = vector.broadcast %cst_9 : f32 to vector<8x256xf32>
      %c0_10 = arith.constant 0 : index
      %c0_11 = arith.constant 0 : index
      %13 = vector.load %arg6[%c0_10, %c0_11] : memref<8x256xf32, #tpu.memory_space<vmem>>, vector<8x256xf32>
      tpu.vector_store %arg6[%c0_10, %c0_11], %12 {strides = array<i32>} : memref<8x256xf32, #tpu.memory_space<vmem>>, vector<8x256xf32>,
    } else {
    }
    %c0 = arith.constant 0 : index
    %c0_1 = arith.constant 0 : index
    %3 = vector.load %arg6[%c0, %c0_1] : memref<8x256xf32, #tpu.memory_space<vmem>>, vector<8x256xf32>
    %c0_2 = arith.constant 0 : index
    %c0_3 = arith.constant 0 : index
    %4 = vector.load %arg3[%c0_2, %c0_3] : memref<8x384xbf16, #tpu.memory_space<vmem>>, vector<8x384xbf16>
    %c0_4 = arith.constant 0 : index
    %c0_5 = arith.constant 0 : index
    %5 = vector.load %arg4[%c0_4, %c0_5] : memref<384x256xbf16, #tpu.memory_space<vmem>>, vector<384x256xbf16>
    %cst = arith.constant dense<0.000000e+00> : vector<8x256xf32>
    %6 = tpu.matmul %4, %5, %cst {dimension_numbers = #tpu.dot_dimension_numbers<[1], [0], [0], [1], [0, 0, 1, 1], [], []>} : vector<8x384xbf16>, vector<384x256xbf16>, vector<8x256xf32> -> vector<8x256xf32>
    %7 = arith.addf %3, %6 : vector<8x256xf32>
    %c0_6 = arith.constant 0 : index
    %c0_7 = arith.constant 0 : index
    %8 = vector.load %arg6[%c0_6, %c0_7] : memref<8x256xf32, #tpu.memory_space<vmem>>, vector<8x256xf32>
    tpu.vector_store %arg6[%c0_6, %c0_7], %7 {strides = array<i32>} : memref<8x256xf32, #tpu.memory_space<vmem>>, vector<8x256xf32>,
    %c5_i32 = arith.constant 5 : i32
    %9 = arith.cmpi eq, %arg2, %c5_i32 : i32
    %10 = arith.extui %9 : i1 to i32
    %c0_i32_8 = arith.constant 0 : i32
    %11 = arith.cmpi ne, %10, %c0_i32_8 : i32
    scf.if %11 {
      %c0_9 = arith.constant 0 : index
      %c0_10 = arith.constant 0 : index
      %12 = vector.load %arg6[%c0_9, %c0_10] : memref<8x256xf32, #tpu.memory_space<vmem>>, vector<8x256xf32>
      %c0_11 = arith.constant 0 : index
      %c0_12 = arith.constant 0 : index
      %13 = vector.load %arg5[%c0_11, %c0_12] : memref<8x256xf32, #tpu.memory_space<vmem>>, vector<8x256xf32>
      tpu.vector_store %arg5[%c0_11, %c0_12], %12 {strides = array<i32>} : memref<8x256xf32, #tpu.memory_space<vmem>>, vector<8x256xf32>,
    } else {
    }
    return
  }
  func.func @transform_0(%arg0: i32, %arg1: i32, %arg2: i32) -> (i32, i32) {
    %c0_i32 = arith.constant 0 : i32
    return %arg0, %arg2 : i32, i32
  }
  func.func @transform_1(%arg0: i32, %arg1: i32, %arg2: i32) -> (i32, i32) {
    %c0_i32 = arith.constant 0 : i32
    return %arg2, %arg1 : i32, i32
  }
  func.func @transform_2(%arg0: i32, %arg1: i32, %arg2: i32) -> (i32, i32) {
    %c0_i32 = arith.constant 0 : i32
    return %arg0, %arg1 : i32, i32
  }
}

module attributes {stable_mosaic.version = 11 : i64} {
  func.func @_mm_bias_kernel(%arg0: i32, %arg1: i32, %arg2: i32, %arg3: memref<8x384xbf16, #tpu.memory_space<vmem>>, %arg4: memref<384x256xbf16, #tpu.memory_space<vmem>>, %arg5: memref<1x256xf32, #tpu.memory_space<vmem>>, %arg6: memref<8x256xf32, #tpu.memory_space<vmem>>, %arg7: memref<8x256xf32, #tpu.memory_space<vmem>>) attributes {dimension_semantics = [#tpu.dimension_semantics<parallel>, #tpu.dimension_semantics<parallel>, #tpu.dimension_semantics<arbitrary>], iteration_bounds = array<i64: 1, 1, 3>, scalar_prefetch = 0 : i64, scratch_operands = 1 : i64, tpu.core_type = #tpu.core_type<tc>, window_params = [{transform_indices = @transform_0, window_bounds = array<i64: 8, 384>}, {transform_indices = @transform_1, window_bounds = array<i64: 384, 256>}, {transform_indices = @transform_2, window_bounds = array<i64: 1, 256>}, {transform_indices = @transform_3, window_bounds = array<i64: 8, 256>}]} {
    %c0_i32 = arith.constant 0 : i32
    %0 = arith.cmpi eq, %arg2, %c0_i32 : i32
    %1 = arith.extui %0 : i1 to i32
    %c0_i32_0 = arith.constant 0 : i32
    %2 = arith.cmpi ne, %1, %c0_i32_0 : i32
    scf.if %2 {
      %cst_9 = arith.constant 0.000000e+00 : f32
      %12 = vector.broadcast %cst_9 : f32 to vector<8x256xf32>
      %c0_10 = arith.constant 0 : index
      %c0_11 = arith.constant 0 : index
      %13 = vector.load %arg7[%c0_10, %c0_11] : memref<8x256xf32, #tpu.memory_space<vmem>>, vector<8x256xf32>
      tpu.vector_store %arg7[%c0_10, %c0_11], %12 {strides = array<i32>} : memref<8x256xf32, #tpu.memory_space<vmem>>, vector<8x256xf32>,
    } else {
    }
    %c0 = arith.constant 0 : index
    %c0_1 = arith.constant 0 : index
    %3 = vector.load %arg7[%c0, %c0_1] : memref<8x256xf32, #tpu.memory_space<vmem>>, vector<8x256xf32>
    %c0_2 = arith.constant 0 : index
    %c0_3 = arith.constant 0 : index
    %4 = vector.load %arg3[%c0_2, %c0_3] : memref<8x384xbf16, #tpu.memory_space<vmem>>, vector<8x384xbf16>
    %c0_4 = arith.constant 0 : index
    %c0_5 = arith.constant 0 : index
    %5 = vector.load %arg4[%c0_4, %c0_5] : memref<384x256xbf16, #tpu.memory_space<vmem>>, vector<384x256xbf16>
    %cst = arith.constant dense<0.000000e+00> : vector<8x256xf32>
    %6 = tpu.matmul %4, %5, %cst {dimension_numbers = #tpu.dot_dimension_numbers<[1], [0], [0], [1], [0, 0, 1, 1], [], []>} : vector<8x384xbf16>, vector<384x256xbf16>, vector<8x256xf32> -> vector<8x256xf32>
    %7 = arith.addf %3, %6 : vector<8x256xf32>
    %c0_6 = arith.constant 0 : index
    %c0_7 = arith.constant 0 : index
    %8 = vector.load %arg7[%c0_6, %c0_7] : memref<8x256xf32, #tpu.memory_space<vmem>>, vector<8x256xf32>
    tpu.vector_store %arg7[%c0_6, %c0_7], %7 {strides = array<i32>} : memref<8x256xf32, #tpu.memory_space<vmem>>, vector<8x256xf32>,
    %c2_i32 = arith.constant 2 : i32
    %9 = arith.cmpi eq, %arg2, %c2_i32 : i32
    %10 = arith.extui %9 : i1 to i32
    %c0_i32_8 = arith.constant 0 : i32
    %11 = arith.cmpi ne, %10, %c0_i32_8 : i32
    scf.if %11 {
      %c0_9 = arith.constant 0 : index
      %c0_10 = arith.constant 0 : index
      %12 = vector.load %arg7[%c0_9, %c0_10] : memref<8x256xf32, #tpu.memory_space<vmem>>, vector<8x256xf32>
      %c0_11 = arith.constant 0 : index
      %c0_12 = arith.constant 0 : index
      %13 = vector.load %arg5[%c0_11, %c0_12] : memref<1x256xf32, #tpu.memory_space<vmem>>, vector<1x256xf32>
      %14 = vector.broadcast %13 : vector<1x256xf32> to vector<8x256xf32>
      %15 = arith.addf %12, %14 : vector<8x256xf32>
      %c0_13 = arith.constant 0 : index
      %c0_14 = arith.constant 0 : index
      %16 = vector.load %arg6[%c0_13, %c0_14] : memref<8x256xf32, #tpu.memory_space<vmem>>, vector<8x256xf32>
      tpu.vector_store %arg6[%c0_13, %c0_14], %15 {strides = array<i32>} : memref<8x256xf32, #tpu.memory_space<vmem>>, vector<8x256xf32>,
    } else {
    }
    return
  }
  func.func @transform_0(%arg0: i32, %arg1: i32, %arg2: i32) -> (i32, i32) {
    %c0_i32 = arith.constant 0 : i32
    return %arg0, %arg2 : i32, i32
  }
  func.func @transform_1(%arg0: i32, %arg1: i32, %arg2: i32) -> (i32, i32) {
    %c0_i32 = arith.constant 0 : i32
    return %arg2, %arg1 : i32, i32
  }
  func.func @transform_2(%arg0: i32, %arg1: i32, %arg2: i32) -> (i32, i32) {
    %c0_i32 = arith.constant 0 : i32
    %c0_i32_0 = arith.constant 0 : i32
    return %c0_i32, %arg1 : i32, i32
  }
  func.func @transform_3(%arg0: i32, %arg1: i32, %arg2: i32) -> (i32, i32) {
    %c0_i32 = arith.constant 0 : i32
    return %arg0, %arg1 : i32, i32
  }
}

module attributes {stable_mosaic.version = 11 : i64} {
  func.func @_mm_kernel(%arg0: i32, %arg1: i32, %arg2: i32, %arg3: memref<8x384xbf16, #tpu.memory_space<vmem>>, %arg4: memref<384x256xbf16, #tpu.memory_space<vmem>>, %arg5: memref<8x256xf32, #tpu.memory_space<vmem>>, %arg6: memref<8x256xf32, #tpu.memory_space<vmem>>) attributes {dimension_semantics = [#tpu.dimension_semantics<parallel>, #tpu.dimension_semantics<parallel>, #tpu.dimension_semantics<arbitrary>], iteration_bounds = array<i64: 1, 2, 6>, scalar_prefetch = 0 : i64, scratch_operands = 1 : i64, tpu.core_type = #tpu.core_type<tc>, window_params = [{transform_indices = @transform_0, window_bounds = array<i64: 8, 384>}, {transform_indices = @transform_1, window_bounds = array<i64: 384, 256>}, {transform_indices = @transform_2, window_bounds = array<i64: 8, 256>}]} {
    %c0_i32 = arith.constant 0 : i32
    %0 = arith.cmpi eq, %arg2, %c0_i32 : i32
    %1 = arith.extui %0 : i1 to i32
    %c0_i32_0 = arith.constant 0 : i32
    %2 = arith.cmpi ne, %1, %c0_i32_0 : i32
    scf.if %2 {
      %cst_9 = arith.constant 0.000000e+00 : f32
      %12 = vector.broadcast %cst_9 : f32 to vector<8x256xf32>
      %c0_10 = arith.constant 0 : index
      %c0_11 = arith.constant 0 : index
      %13 = vector.load %arg6[%c0_10, %c0_11] : memref<8x256xf32, #tpu.memory_space<vmem>>, vector<8x256xf32>
      tpu.vector_store %arg6[%c0_10, %c0_11], %12 {strides = array<i32>} : memref<8x256xf32, #tpu.memory_space<vmem>>, vector<8x256xf32>,
    } else {
    }
    %c0 = arith.constant 0 : index
    %c0_1 = arith.constant 0 : index
    %3 = vector.load %arg6[%c0, %c0_1] : memref<8x256xf32, #tpu.memory_space<vmem>>, vector<8x256xf32>
    %c0_2 = arith.constant 0 : index
    %c0_3 = arith.constant 0 : index
    %4 = vector.load %arg3[%c0_2, %c0_3] : memref<8x384xbf16, #tpu.memory_space<vmem>>, vector<8x384xbf16>
    %c0_4 = arith.constant 0 : index
    %c0_5 = arith.constant 0 : index
    %5 = vector.load %arg4[%c0_4, %c0_5] : memref<384x256xbf16, #tpu.memory_space<vmem>>, vector<384x256xbf16>
    %cst = arith.constant dense<0.000000e+00> : vector<8x256xf32>
    %6 = tpu.matmul %4, %5, %cst {dimension_numbers = #tpu.dot_dimension_numbers<[1], [0], [0], [1], [0, 0, 1, 1], [], []>} : vector<8x384xbf16>, vector<384x256xbf16>, vector<8x256xf32> -> vector<8x256xf32>
    %7 = arith.addf %3, %6 : vector<8x256xf32>
    %c0_6 = arith.constant 0 : index
    %c0_7 = arith.constant 0 : index
    %8 = vector.load %arg6[%c0_6, %c0_7] : memref<8x256xf32, #tpu.memory_space<vmem>>, vector<8x256xf32>
    tpu.vector_store %arg6[%c0_6, %c0_7], %7 {strides = array<i32>} : memref<8x256xf32, #tpu.memory_space<vmem>>, vector<8x256xf32>,
    %c5_i32 = arith.constant 5 : i32
    %9 = arith.cmpi eq, %arg2, %c5_i32 : i32
    %10 = arith.extui %9 : i1 to i32
    %c0_i32_8 = arith.constant 0 : i32
    %11 = arith.cmpi ne, %10, %c0_i32_8 : i32
    scf.if %11 {
      %c0_9 = arith.constant 0 : index
      %c0_10 = arith.constant 0 : index
      %12 = vector.load %arg6[%c0_9, %c0_10] : memref<8x256xf32, #tpu.memory_space<vmem>>, vector<8x256xf32>
      %c0_11 = arith.constant 0 : index
      %c0_12 = arith.constant 0 : index
      %13 = vector.load %arg5[%c0_11, %c0_12] : memref<8x256xf32, #tpu.memory_space<vmem>>, vector<8x256xf32>
      tpu.vector_store %arg5[%c0_11, %c0_12], %12 {strides = array<i32>} : memref<8x256xf32, #tpu.memory_space<vmem>>, vector<8x256xf32>,
    } else {
    }
    return
  }
  func.func @transform_0(%arg0: i32, %arg1: i32, %arg2: i32) -> (i32, i32) {
    %c0_i32 = arith.constant 0 : i32
    return %arg0, %arg2 : i32, i32
  }
  func.func @transform_1(%arg0: i32, %arg1: i32, %arg2: i32) -> (i32, i32) {
    %c0_i32 = arith.constant 0 : i32
    return %arg2, %arg1 : i32, i32
  }
  func.func @transform_2(%arg0: i32, %arg1: i32, %arg2: i32) -> (i32, i32) {
    %c0_i32 = arith.constant 0 : i32
    return %arg0, %arg1 : i32, i32
  }
}

module attributes {stable_mosaic.version = 11 : i64} {
  func.func @_stats_kernel(%arg0: i32, %arg1: memref<8x512xf32, #tpu.memory_space<vmem>>, %arg2: memref<1x512xf32, #tpu.memory_space<vmem>>, %arg3: memref<1x512xf32, #tpu.memory_space<vmem>>) attributes {dimension_semantics = [#tpu.dimension_semantics<arbitrary>], iteration_bounds = array<i64: 1>, scalar_prefetch = 0 : i64, scratch_operands = 0 : i64, tpu.core_type = #tpu.core_type<tc>, window_params = [{transform_indices = @transform_0, window_bounds = array<i64: 8, 512>}, {pipeline_mode = #tpu.pipeline_mode<synchronous>, transform_indices = @transform_1, window_bounds = array<i64: 1, 512>}, {pipeline_mode = #tpu.pipeline_mode<synchronous>, transform_indices = @transform_2, window_bounds = array<i64: 1, 512>}]} {
    %c0_i32 = arith.constant 0 : i32
    %0 = arith.cmpi eq, %arg0, %c0_i32 : i32
    %1 = arith.extui %0 : i1 to i32
    %c0_i32_0 = arith.constant 0 : i32
    %2 = arith.cmpi ne, %1, %c0_i32_0 : i32
    scf.if %2 {
      %cst_11 = arith.constant 0.000000e+00 : f32
      %15 = vector.broadcast %cst_11 : f32 to vector<1x512xf32>
      %c0_12 = arith.constant 0 : index
      %c0_13 = arith.constant 0 : index
      %16 = vector.load %arg2[%c0_12, %c0_13] : memref<1x512xf32, #tpu.memory_space<vmem>>, vector<1x512xf32>
      tpu.vector_store %arg2[%c0_12, %c0_13], %15 {strides = array<i32>} : memref<1x512xf32, #tpu.memory_space<vmem>>, vector<1x512xf32>,
      %cst_14 = arith.constant 0.000000e+00 : f32
      %17 = vector.broadcast %cst_14 : f32 to vector<1x512xf32>
      %c0_15 = arith.constant 0 : index
      %c0_16 = arith.constant 0 : index
      %18 = vector.load %arg3[%c0_15, %c0_16] : memref<1x512xf32, #tpu.memory_space<vmem>>, vector<1x512xf32>
      tpu.vector_store %arg3[%c0_15, %c0_16], %17 {strides = array<i32>} : memref<1x512xf32, #tpu.memory_space<vmem>>, vector<1x512xf32>,
    } else {
    }
    %c0 = arith.constant 0 : index
    %c0_1 = arith.constant 0 : index
    %3 = vector.load %arg1[%c0, %c0_1] : memref<8x512xf32, #tpu.memory_space<vmem>>, vector<8x512xf32>
    %c0_2 = arith.constant 0 : index
    %c0_3 = arith.constant 0 : index
    %4 = vector.load %arg2[%c0_2, %c0_3] : memref<1x512xf32, #tpu.memory_space<vmem>>, vector<1x512xf32>
    %cst = arith.constant dense<0.000000e+00> : vector<512xf32>
    %5 = vector.multi_reduction <add>, %3, %cst [0] : vector<8x512xf32> to vector<512xf32>
    %6 = vector.shape_cast %5 : vector<512xf32> to vector<1x512xf32>
    %7 = arith.addf %4, %6 : vector<1x512xf32>
    %c0_4 = arith.constant 0 : index
    %c0_5 = arith.constant 0 : index
    %8 = vector.load %arg2[%c0_4, %c0_5] : memref<1x512xf32, #tpu.memory_space<vmem>>, vector<1x512xf32>
    tpu.vector_store %arg2[%c0_4, %c0_5], %7 {strides = array<i32>} : memref<1x512xf32, #tpu.memory_space<vmem>>, vector<1x512xf32>,
    %c0_6 = arith.constant 0 : index
    %c0_7 = arith.constant 0 : index
    %9 = vector.load %arg3[%c0_6, %c0_7] : memref<1x512xf32, #tpu.memory_space<vmem>>, vector<1x512xf32>
    %10 = arith.mulf %3, %3 : vector<8x512xf32>
    %cst_8 = arith.constant dense<0.000000e+00> : vector<512xf32>
    %11 = vector.multi_reduction <add>, %10, %cst_8 [0] : vector<8x512xf32> to vector<512xf32>
    %12 = vector.shape_cast %11 : vector<512xf32> to vector<1x512xf32>
    %13 = arith.addf %9, %12 : vector<1x512xf32>
    %c0_9 = arith.constant 0 : index
    %c0_10 = arith.constant 0 : index
    %14 = vector.load %arg3[%c0_9, %c0_10] : memref<1x512xf32, #tpu.memory_space<vmem>>, vector<1x512xf32>
    tpu.vector_store %arg3[%c0_9, %c0_10], %13 {strides = array<i32>} : memref<1x512xf32, #tpu.memory_space<vmem>>, vector<1x512xf32>,
    return
  }
  func.func @transform_0(%arg0: i32) -> (i32, i32) {
    %c0_i32 = arith.constant 0 : i32
    %c0_i32_0 = arith.constant 0 : i32
    return %arg0, %c0_i32 : i32, i32
  }
  func.func @transform_1(%arg0: i32) -> (i32, i32) {
    %c0_i32 = arith.constant 0 : i32
    %c0_i32_0 = arith.constant 0 : i32
    %c0_i32_1 = arith.constant 0 : i32
    return %c0_i32, %c0_i32_0 : i32, i32
  }
  func.func @transform_2(%arg0: i32) -> (i32, i32) {
    %c0_i32 = arith.constant 0 : i32
    %c0_i32_0 = arith.constant 0 : i32
    %c0_i32_1 = arith.constant 0 : i32
    return %c0_i32, %c0_i32_0 : i32, i32
  }
}

module attributes {stable_mosaic.version = 11 : i64} {
  func.func @_bn_relu_kernel(%arg0: i32, %arg1: memref<8x512xf32, #tpu.memory_space<vmem>>, %arg2: memref<1x512xf32, #tpu.memory_space<vmem>>, %arg3: memref<1x512xf32, #tpu.memory_space<vmem>>, %arg4: memref<8x512xf32, #tpu.memory_space<vmem>>) attributes {dimension_semantics = [#tpu.dimension_semantics<parallel>], iteration_bounds = array<i64: 1>, scalar_prefetch = 0 : i64, scratch_operands = 0 : i64, tpu.core_type = #tpu.core_type<tc>, window_params = [{transform_indices = @transform_0, window_bounds = array<i64: 8, 512>}, {pipeline_mode = #tpu.pipeline_mode<synchronous>, transform_indices = @transform_1, window_bounds = array<i64: 1, 512>}, {pipeline_mode = #tpu.pipeline_mode<synchronous>, transform_indices = @transform_2, window_bounds = array<i64: 1, 512>}, {transform_indices = @transform_3, window_bounds = array<i64: 8, 512>}]} {
    %c0 = arith.constant 0 : index
    %c0_0 = arith.constant 0 : index
    %0 = vector.load %arg1[%c0, %c0_0] : memref<8x512xf32, #tpu.memory_space<vmem>>, vector<8x512xf32>
    %c0_1 = arith.constant 0 : index
    %c0_2 = arith.constant 0 : index
    %1 = vector.load %arg2[%c0_1, %c0_2] : memref<1x512xf32, #tpu.memory_space<vmem>>, vector<1x512xf32>
    %2 = vector.broadcast %1 : vector<1x512xf32> to vector<8x512xf32>
    %3 = arith.mulf %0, %2 : vector<8x512xf32>
    %c0_3 = arith.constant 0 : index
    %c0_4 = arith.constant 0 : index
    %4 = vector.load %arg3[%c0_3, %c0_4] : memref<1x512xf32, #tpu.memory_space<vmem>>, vector<1x512xf32>
    %5 = vector.broadcast %4 : vector<1x512xf32> to vector<8x512xf32>
    %6 = arith.addf %3, %5 : vector<8x512xf32>
    %cst = arith.constant 0.000000e+00 : f32
    %7 = vector.broadcast %cst : f32 to vector<8x512xf32>
    %8 = arith.maximumf %6, %7 : vector<8x512xf32>
    %c0_5 = arith.constant 0 : index
    %c0_6 = arith.constant 0 : index
    %9 = vector.load %arg4[%c0_5, %c0_6] : memref<8x512xf32, #tpu.memory_space<vmem>>, vector<8x512xf32>
    tpu.vector_store %arg4[%c0_5, %c0_6], %8 {strides = array<i32>} : memref<8x512xf32, #tpu.memory_space<vmem>>, vector<8x512xf32>,
    return
  }
  func.func @transform_0(%arg0: i32) -> (i32, i32) {
    %c0_i32 = arith.constant 0 : i32
    %c0_i32_0 = arith.constant 0 : i32
    return %arg0, %c0_i32 : i32, i32
  }
  func.func @transform_1(%arg0: i32) -> (i32, i32) {
    %c0_i32 = arith.constant 0 : i32
    %c0_i32_0 = arith.constant 0 : i32
    %c0_i32_1 = arith.constant 0 : i32
    return %c0_i32, %c0_i32_0 : i32, i32
  }
  func.func @transform_2(%arg0: i32) -> (i32, i32) {
    %c0_i32 = arith.constant 0 : i32
    %c0_i32_0 = arith.constant 0 : i32
    %c0_i32_1 = arith.constant 0 : i32
    return %c0_i32, %c0_i32_0 : i32, i32
  }
  func.func @transform_3(%arg0: i32) -> (i32, i32) {
    %c0_i32 = arith.constant 0 : i32
    %c0_i32_0 = arith.constant 0 : i32
    return %arg0, %c0_i32 : i32, i32
  }
}

module attributes {stable_mosaic.version = 11 : i64} {
  func.func @_mm_kernel(%arg0: i32, %arg1: i32, %arg2: i32, %arg3: memref<8x512xbf16, #tpu.memory_space<vmem>>, %arg4: memref<512x256xbf16, #tpu.memory_space<vmem>>, %arg5: memref<8x256xf32, #tpu.memory_space<vmem>>, %arg6: memref<8x256xf32, #tpu.memory_space<vmem>>) attributes {dimension_semantics = [#tpu.dimension_semantics<parallel>, #tpu.dimension_semantics<parallel>, #tpu.dimension_semantics<arbitrary>], iteration_bounds = array<i64: 1, 2, 9>, scalar_prefetch = 0 : i64, scratch_operands = 1 : i64, tpu.core_type = #tpu.core_type<tc>, window_params = [{transform_indices = @transform_0, window_bounds = array<i64: 8, 512>}, {transform_indices = @transform_1, window_bounds = array<i64: 512, 256>}, {transform_indices = @transform_2, window_bounds = array<i64: 8, 256>}]} {
    %c0_i32 = arith.constant 0 : i32
    %0 = arith.cmpi eq, %arg2, %c0_i32 : i32
    %1 = arith.extui %0 : i1 to i32
    %c0_i32_0 = arith.constant 0 : i32
    %2 = arith.cmpi ne, %1, %c0_i32_0 : i32
    scf.if %2 {
      %cst_9 = arith.constant 0.000000e+00 : f32
      %12 = vector.broadcast %cst_9 : f32 to vector<8x256xf32>
      %c0_10 = arith.constant 0 : index
      %c0_11 = arith.constant 0 : index
      %13 = vector.load %arg6[%c0_10, %c0_11] : memref<8x256xf32, #tpu.memory_space<vmem>>, vector<8x256xf32>
      tpu.vector_store %arg6[%c0_10, %c0_11], %12 {strides = array<i32>} : memref<8x256xf32, #tpu.memory_space<vmem>>, vector<8x256xf32>,
    } else {
    }
    %c0 = arith.constant 0 : index
    %c0_1 = arith.constant 0 : index
    %3 = vector.load %arg6[%c0, %c0_1] : memref<8x256xf32, #tpu.memory_space<vmem>>, vector<8x256xf32>
    %c0_2 = arith.constant 0 : index
    %c0_3 = arith.constant 0 : index
    %4 = vector.load %arg3[%c0_2, %c0_3] : memref<8x512xbf16, #tpu.memory_space<vmem>>, vector<8x512xbf16>
    %c0_4 = arith.constant 0 : index
    %c0_5 = arith.constant 0 : index
    %5 = vector.load %arg4[%c0_4, %c0_5] : memref<512x256xbf16, #tpu.memory_space<vmem>>, vector<512x256xbf16>
    %cst = arith.constant dense<0.000000e+00> : vector<8x256xf32>
    %6 = tpu.matmul %4, %5, %cst {dimension_numbers = #tpu.dot_dimension_numbers<[1], [0], [0], [1], [0, 0, 1, 1], [], []>} : vector<8x512xbf16>, vector<512x256xbf16>, vector<8x256xf32> -> vector<8x256xf32>
    %7 = arith.addf %3, %6 : vector<8x256xf32>
    %c0_6 = arith.constant 0 : index
    %c0_7 = arith.constant 0 : index
    %8 = vector.load %arg6[%c0_6, %c0_7] : memref<8x256xf32, #tpu.memory_space<vmem>>, vector<8x256xf32>
    tpu.vector_store %arg6[%c0_6, %c0_7], %7 {strides = array<i32>} : memref<8x256xf32, #tpu.memory_space<vmem>>, vector<8x256xf32>,
    %c8_i32 = arith.constant 8 : i32
    %9 = arith.cmpi eq, %arg2, %c8_i32 : i32
    %10 = arith.extui %9 : i1 to i32
    %c0_i32_8 = arith.constant 0 : i32
    %11 = arith.cmpi ne, %10, %c0_i32_8 : i32
    scf.if %11 {
      %c0_9 = arith.constant 0 : index
      %c0_10 = arith.constant 0 : index
      %12 = vector.load %arg6[%c0_9, %c0_10] : memref<8x256xf32, #tpu.memory_space<vmem>>, vector<8x256xf32>
      %c0_11 = arith.constant 0 : index
      %c0_12 = arith.constant 0 : index
      %13 = vector.load %arg5[%c0_11, %c0_12] : memref<8x256xf32, #tpu.memory_space<vmem>>, vector<8x256xf32>
      tpu.vector_store %arg5[%c0_11, %c0_12], %12 {strides = array<i32>} : memref<8x256xf32, #tpu.memory_space<vmem>>, vector<8x256xf32>,
    } else {
    }
    return
  }
  func.func @transform_0(%arg0: i32, %arg1: i32, %arg2: i32) -> (i32, i32) {
    %c0_i32 = arith.constant 0 : i32
    return %arg0, %arg2 : i32, i32
  }
  func.func @transform_1(%arg0: i32, %arg1: i32, %arg2: i32) -> (i32, i32) {
    %c0_i32 = arith.constant 0 : i32
    return %arg2, %arg1 : i32, i32
  }
  func.func @transform_2(%arg0: i32, %arg1: i32, %arg2: i32) -> (i32, i32) {
    %c0_i32 = arith.constant 0 : i32
    return %arg0, %arg1 : i32, i32
  }
}

module attributes {stable_mosaic.version = 11 : i64} {
  func.func @_mm_bias_kernel(%arg0: i32, %arg1: i32, %arg2: i32, %arg3: memref<8x384xbf16, #tpu.memory_space<vmem>>, %arg4: memref<384x256xbf16, #tpu.memory_space<vmem>>, %arg5: memref<1x256xf32, #tpu.memory_space<vmem>>, %arg6: memref<8x256xf32, #tpu.memory_space<vmem>>, %arg7: memref<8x256xf32, #tpu.memory_space<vmem>>) attributes {dimension_semantics = [#tpu.dimension_semantics<parallel>, #tpu.dimension_semantics<parallel>, #tpu.dimension_semantics<arbitrary>], iteration_bounds = array<i64: 1, 2, 6>, scalar_prefetch = 0 : i64, scratch_operands = 1 : i64, tpu.core_type = #tpu.core_type<tc>, window_params = [{transform_indices = @transform_0, window_bounds = array<i64: 8, 384>}, {transform_indices = @transform_1, window_bounds = array<i64: 384, 256>}, {transform_indices = @transform_2, window_bounds = array<i64: 1, 256>}, {transform_indices = @transform_3, window_bounds = array<i64: 8, 256>}]} {
    %c0_i32 = arith.constant 0 : i32
    %0 = arith.cmpi eq, %arg2, %c0_i32 : i32
    %1 = arith.extui %0 : i1 to i32
    %c0_i32_0 = arith.constant 0 : i32
    %2 = arith.cmpi ne, %1, %c0_i32_0 : i32
    scf.if %2 {
      %cst_9 = arith.constant 0.000000e+00 : f32
      %12 = vector.broadcast %cst_9 : f32 to vector<8x256xf32>
      %c0_10 = arith.constant 0 : index
      %c0_11 = arith.constant 0 : index
      %13 = vector.load %arg7[%c0_10, %c0_11] : memref<8x256xf32, #tpu.memory_space<vmem>>, vector<8x256xf32>
      tpu.vector_store %arg7[%c0_10, %c0_11], %12 {strides = array<i32>} : memref<8x256xf32, #tpu.memory_space<vmem>>, vector<8x256xf32>,
    } else {
    }
    %c0 = arith.constant 0 : index
    %c0_1 = arith.constant 0 : index
    %3 = vector.load %arg7[%c0, %c0_1] : memref<8x256xf32, #tpu.memory_space<vmem>>, vector<8x256xf32>
    %c0_2 = arith.constant 0 : index
    %c0_3 = arith.constant 0 : index
    %4 = vector.load %arg3[%c0_2, %c0_3] : memref<8x384xbf16, #tpu.memory_space<vmem>>, vector<8x384xbf16>
    %c0_4 = arith.constant 0 : index
    %c0_5 = arith.constant 0 : index
    %5 = vector.load %arg4[%c0_4, %c0_5] : memref<384x256xbf16, #tpu.memory_space<vmem>>, vector<384x256xbf16>
    %cst = arith.constant dense<0.000000e+00> : vector<8x256xf32>
    %6 = tpu.matmul %4, %5, %cst {dimension_numbers = #tpu.dot_dimension_numbers<[1], [0], [0], [1], [0, 0, 1, 1], [], []>} : vector<8x384xbf16>, vector<384x256xbf16>, vector<8x256xf32> -> vector<8x256xf32>
    %7 = arith.addf %3, %6 : vector<8x256xf32>
    %c0_6 = arith.constant 0 : index
    %c0_7 = arith.constant 0 : index
    %8 = vector.load %arg7[%c0_6, %c0_7] : memref<8x256xf32, #tpu.memory_space<vmem>>, vector<8x256xf32>
    tpu.vector_store %arg7[%c0_6, %c0_7], %7 {strides = array<i32>} : memref<8x256xf32, #tpu.memory_space<vmem>>, vector<8x256xf32>,
    %c5_i32 = arith.constant 5 : i32
    %9 = arith.cmpi eq, %arg2, %c5_i32 : i32
    %10 = arith.extui %9 : i1 to i32
    %c0_i32_8 = arith.constant 0 : i32
    %11 = arith.cmpi ne, %10, %c0_i32_8 : i32
    scf.if %11 {
      %c0_9 = arith.constant 0 : index
      %c0_10 = arith.constant 0 : index
      %12 = vector.load %arg7[%c0_9, %c0_10] : memref<8x256xf32, #tpu.memory_space<vmem>>, vector<8x256xf32>
      %c0_11 = arith.constant 0 : index
      %c0_12 = arith.constant 0 : index
      %13 = vector.load %arg5[%c0_11, %c0_12] : memref<1x256xf32, #tpu.memory_space<vmem>>, vector<1x256xf32>
      %14 = vector.broadcast %13 : vector<1x256xf32> to vector<8x256xf32>
      %15 = arith.addf %12, %14 : vector<8x256xf32>
      %c0_13 = arith.constant 0 : index
      %c0_14 = arith.constant 0 : index
      %16 = vector.load %arg6[%c0_13, %c0_14] : memref<8x256xf32, #tpu.memory_space<vmem>>, vector<8x256xf32>
      tpu.vector_store %arg6[%c0_13, %c0_14], %15 {strides = array<i32>} : memref<8x256xf32, #tpu.memory_space<vmem>>, vector<8x256xf32>,
    } else {
    }
    return
  }
  func.func @transform_0(%arg0: i32, %arg1: i32, %arg2: i32) -> (i32, i32) {
    %c0_i32 = arith.constant 0 : i32
    return %arg0, %arg2 : i32, i32
  }
  func.func @transform_1(%arg0: i32, %arg1: i32, %arg2: i32) -> (i32, i32) {
    %c0_i32 = arith.constant 0 : i32
    return %arg2, %arg1 : i32, i32
  }
  func.func @transform_2(%arg0: i32, %arg1: i32, %arg2: i32) -> (i32, i32) {
    %c0_i32 = arith.constant 0 : i32
    %c0_i32_0 = arith.constant 0 : i32
    return %c0_i32, %arg1 : i32, i32
  }
  func.func @transform_3(%arg0: i32, %arg1: i32, %arg2: i32) -> (i32, i32) {
    %c0_i32 = arith.constant 0 : i32
    return %arg0, %arg1 : i32, i32
  }
}

module attributes {stable_mosaic.version = 11 : i64} {
  func.func @_bn_res_relu_kernel(%arg0: i32, %arg1: memref<8x512xf32, #tpu.memory_space<vmem>>, %arg2: memref<1x512xf32, #tpu.memory_space<vmem>>, %arg3: memref<1x512xf32, #tpu.memory_space<vmem>>, %arg4: memref<8x512xf32, #tpu.memory_space<vmem>>, %arg5: memref<8x512xf32, #tpu.memory_space<vmem>>) attributes {dimension_semantics = [#tpu.dimension_semantics<parallel>], iteration_bounds = array<i64: 1>, scalar_prefetch = 0 : i64, scratch_operands = 0 : i64, tpu.core_type = #tpu.core_type<tc>, window_params = [{transform_indices = @transform_0, window_bounds = array<i64: 8, 512>}, {pipeline_mode = #tpu.pipeline_mode<synchronous>, transform_indices = @transform_1, window_bounds = array<i64: 1, 512>}, {pipeline_mode = #tpu.pipeline_mode<synchronous>, transform_indices = @transform_2, window_bounds = array<i64: 1, 512>}, {transform_indices = @transform_3, window_bounds = array<i64: 8, 512>}, {transform_indices = @transform_4, window_bounds = array<i64: 8, 512>}]} {
    %c0 = arith.constant 0 : index
    %c0_0 = arith.constant 0 : index
    %0 = vector.load %arg1[%c0, %c0_0] : memref<8x512xf32, #tpu.memory_space<vmem>>, vector<8x512xf32>
    %c0_1 = arith.constant 0 : index
    %c0_2 = arith.constant 0 : index
    %1 = vector.load %arg2[%c0_1, %c0_2] : memref<1x512xf32, #tpu.memory_space<vmem>>, vector<1x512xf32>
    %2 = vector.broadcast %1 : vector<1x512xf32> to vector<8x512xf32>
    %3 = arith.mulf %0, %2 : vector<8x512xf32>
    %c0_3 = arith.constant 0 : index
    %c0_4 = arith.constant 0 : index
    %4 = vector.load %arg3[%c0_3, %c0_4] : memref<1x512xf32, #tpu.memory_space<vmem>>, vector<1x512xf32>
    %5 = vector.broadcast %4 : vector<1x512xf32> to vector<8x512xf32>
    %6 = arith.addf %3, %5 : vector<8x512xf32>
    %c0_5 = arith.constant 0 : index
    %c0_6 = arith.constant 0 : index
    %7 = vector.load %arg4[%c0_5, %c0_6] : memref<8x512xf32, #tpu.memory_space<vmem>>, vector<8x512xf32>
    %8 = arith.addf %6, %7 : vector<8x512xf32>
    %cst = arith.constant 0.000000e+00 : f32
    %9 = vector.broadcast %cst : f32 to vector<8x512xf32>
    %10 = arith.maximumf %8, %9 : vector<8x512xf32>
    %c0_7 = arith.constant 0 : index
    %c0_8 = arith.constant 0 : index
    %11 = vector.load %arg5[%c0_7, %c0_8] : memref<8x512xf32, #tpu.memory_space<vmem>>, vector<8x512xf32>
    tpu.vector_store %arg5[%c0_7, %c0_8], %10 {strides = array<i32>} : memref<8x512xf32, #tpu.memory_space<vmem>>, vector<8x512xf32>,
    return
  }
  func.func @transform_0(%arg0: i32) -> (i32, i32) {
    %c0_i32 = arith.constant 0 : i32
    %c0_i32_0 = arith.constant 0 : i32
    return %arg0, %c0_i32 : i32, i32
  }
  func.func @transform_1(%arg0: i32) -> (i32, i32) {
    %c0_i32 = arith.constant 0 : i32
    %c0_i32_0 = arith.constant 0 : i32
    %c0_i32_1 = arith.constant 0 : i32
    return %c0_i32, %c0_i32_0 : i32, i32
  }
  func.func @transform_2(%arg0: i32) -> (i32, i32) {
    %c0_i32 = arith.constant 0 : i32
    %c0_i32_0 = arith.constant 0 : i32
    %c0_i32_1 = arith.constant 0 : i32
    return %c0_i32, %c0_i32_0 : i32, i32
  }
  func.func @transform_3(%arg0: i32) -> (i32, i32) {
    %c0_i32 = arith.constant 0 : i32
    %c0_i32_0 = arith.constant 0 : i32
    return %arg0, %c0_i32 : i32, i32
  }
  func.func @transform_4(%arg0: i32) -> (i32, i32) {
    %c0_i32 = arith.constant 0 : i32
    %c0_i32_0 = arith.constant 0 : i32
    return %arg0, %c0_i32 : i32, i32
  }
}

module attributes {stable_mosaic.version = 11 : i64} {
  func.func @_avgpool_kernel(%arg0: i32, %arg1: memref<2x1x512xf32, #tpu.memory_space<vmem>>, %arg2: memref<2x512xf32, #tpu.memory_space<vmem>>) attributes {dimension_semantics = [#tpu.dimension_semantics<arbitrary>], iteration_bounds = array<i64: 1>, scalar_prefetch = 0 : i64, scratch_operands = 0 : i64, tpu.core_type = #tpu.core_type<tc>, window_params = [{pipeline_mode = #tpu.pipeline_mode<synchronous>, transform_indices = @transform_0, window_bounds = array<i64: 2, 1, 512>}, {pipeline_mode = #tpu.pipeline_mode<synchronous>, transform_indices = @transform_1, window_bounds = array<i64: 2, 512>}]} {
    %c0 = arith.constant 0 : index
    %c0_0 = arith.constant 0 : index
    %c0_1 = arith.constant 0 : index
    %0 = vector.load %arg1[%c0, %c0_0, %c0_1] : memref<2x1x512xf32, #tpu.memory_space<vmem>>, vector<2x1x512xf32>
    %cst = arith.constant dense<0.000000e+00> : vector<2x512xf32>
    %1 = vector.multi_reduction <add>, %0, %cst [1] : vector<2x1x512xf32> to vector<2x512xf32>
    %cst_2 = arith.constant 1.000000e+00 : f32
    %2 = vector.broadcast %cst_2 : f32 to vector<2x512xf32>
    %3 = arith.divf %1, %2 : vector<2x512xf32>
    %c0_3 = arith.constant 0 : index
    %c0_4 = arith.constant 0 : index
    %4 = vector.load %arg2[%c0_3, %c0_4] : memref<2x512xf32, #tpu.memory_space<vmem>>, vector<2x512xf32>
    tpu.vector_store %arg2[%c0_3, %c0_4], %3 {strides = array<i32>} : memref<2x512xf32, #tpu.memory_space<vmem>>, vector<2x512xf32>,
    return
  }
  func.func @transform_0(%arg0: i32) -> (i32, i32, i32) {
    %c0_i32 = arith.constant 0 : i32
    %c0_i32_0 = arith.constant 0 : i32
    %c0_i32_1 = arith.constant 0 : i32
    %c0_i32_2 = arith.constant 0 : i32
    return %c0_i32, %c0_i32_0, %c0_i32_1 : i32, i32, i32
  }
  func.func @transform_1(%arg0: i32) -> (i32, i32) {
    %c0_i32 = arith.constant 0 : i32
    %c0_i32_0 = arith.constant 0 : i32
    %c0_i32_1 = arith.constant 0 : i32
    return %c0_i32, %c0_i32_0 : i32, i32
  }
}

module attributes {stable_mosaic.version = 11 : i64} {
  func.func @_mm_bias_kernel(%arg0: i32, %arg1: i32, %arg2: i32, %arg3: memref<8x512xbf16, #tpu.memory_space<vmem>>, %arg4: memref<512x128xbf16, #tpu.memory_space<vmem>>, %arg5: memref<1x128xf32, #tpu.memory_space<vmem>>, %arg6: memref<8x128xf32, #tpu.memory_space<vmem>>, %arg7: memref<8x128xf32, #tpu.memory_space<vmem>>) attributes {dimension_semantics = [#tpu.dimension_semantics<parallel>, #tpu.dimension_semantics<parallel>, #tpu.dimension_semantics<arbitrary>], iteration_bounds = array<i64: 1, 1, 1>, scalar_prefetch = 0 : i64, scratch_operands = 1 : i64, tpu.core_type = #tpu.core_type<tc>, window_params = [{transform_indices = @transform_0, window_bounds = array<i64: 8, 512>}, {transform_indices = @transform_1, window_bounds = array<i64: 512, 128>}, {transform_indices = @transform_2, window_bounds = array<i64: 1, 128>}, {transform_indices = @transform_3, window_bounds = array<i64: 8, 128>}]} {
    %c0_i32 = arith.constant 0 : i32
    %0 = arith.cmpi eq, %arg2, %c0_i32 : i32
    %1 = arith.extui %0 : i1 to i32
    %c0_i32_0 = arith.constant 0 : i32
    %2 = arith.cmpi ne, %1, %c0_i32_0 : i32
    scf.if %2 {
      %cst_10 = arith.constant 0.000000e+00 : f32
      %12 = vector.broadcast %cst_10 : f32 to vector<8x128xf32>
      %c0_11 = arith.constant 0 : index
      %c0_12 = arith.constant 0 : index
      %13 = vector.load %arg7[%c0_11, %c0_12] : memref<8x128xf32, #tpu.memory_space<vmem>>, vector<8x128xf32>
      tpu.vector_store %arg7[%c0_11, %c0_12], %12 {strides = array<i32>} : memref<8x128xf32, #tpu.memory_space<vmem>>, vector<8x128xf32>,
    } else {
    }
    %c0 = arith.constant 0 : index
    %c0_1 = arith.constant 0 : index
    %3 = vector.load %arg7[%c0, %c0_1] : memref<8x128xf32, #tpu.memory_space<vmem>>, vector<8x128xf32>
    %c0_2 = arith.constant 0 : index
    %c0_3 = arith.constant 0 : index
    %4 = vector.load %arg3[%c0_2, %c0_3] : memref<8x512xbf16, #tpu.memory_space<vmem>>, vector<8x512xbf16>
    %c0_4 = arith.constant 0 : index
    %c0_5 = arith.constant 0 : index
    %5 = vector.load %arg4[%c0_4, %c0_5] : memref<512x128xbf16, #tpu.memory_space<vmem>>, vector<512x128xbf16>
    %cst = arith.constant dense<0.000000e+00> : vector<8x128xf32>
    %6 = tpu.matmul %4, %5, %cst {dimension_numbers = #tpu.dot_dimension_numbers<[1], [0], [0], [1], [0, 0, 1, 1], [], []>} : vector<8x512xbf16>, vector<512x128xbf16>, vector<8x128xf32> -> vector<8x128xf32>
    %7 = arith.addf %3, %6 : vector<8x128xf32>
    %c0_6 = arith.constant 0 : index
    %c0_7 = arith.constant 0 : index
    %8 = vector.load %arg7[%c0_6, %c0_7] : memref<8x128xf32, #tpu.memory_space<vmem>>, vector<8x128xf32>
    tpu.vector_store %arg7[%c0_6, %c0_7], %7 {strides = array<i32>} : memref<8x128xf32, #tpu.memory_space<vmem>>, vector<8x128xf32>,
    %c0_i32_8 = arith.constant 0 : i32
    %9 = arith.cmpi eq, %arg2, %c0_i32_8 : i32
    %10 = arith.extui %9 : i1 to i32
    %c0_i32_9 = arith.constant 0 : i32
    %11 = arith.cmpi ne, %10, %c0_i32_9 : i32
    scf.if %11 {
      %c0_10 = arith.constant 0 : index
      %c0_11 = arith.constant 0 : index
      %12 = vector.load %arg7[%c0_10, %c0_11] : memref<8x128xf32, #tpu.memory_space<vmem>>, vector<8x128xf32>
      %c0_12 = arith.constant 0 : index
      %c0_13 = arith.constant 0 : index
      %13 = vector.load %arg5[%c0_12, %c0_13] : memref<1x128xf32, #tpu.memory_space<vmem>>, vector<1x128xf32>
      %14 = vector.broadcast %13 : vector<1x128xf32> to vector<8x128xf32>
      %15 = arith.addf %12, %14 : vector<8x128xf32>
      %c0_14 = arith.constant 0 : index
      %c0_15 = arith.constant 0 : index
      %16 = vector.load %arg6[%c0_14, %c0_15] : memref<8x128xf32, #tpu.memory_space<vmem>>, vector<8x128xf32>
      tpu.vector_store %arg6[%c0_14, %c0_15], %15 {strides = array<i32>} : memref<8x128xf32, #tpu.memory_space<vmem>>, vector<8x128xf32>,
    } else {
    }
    return
  }
  func.func @transform_0(%arg0: i32, %arg1: i32, %arg2: i32) -> (i32, i32) {
    %c0_i32 = arith.constant 0 : i32
    return %arg0, %arg2 : i32, i32
  }
  func.func @transform_1(%arg0: i32, %arg1: i32, %arg2: i32) -> (i32, i32) {
    %c0_i32 = arith.constant 0 : i32
    return %arg2, %arg1 : i32, i32
  }
  func.func @transform_2(%arg0: i32, %arg1: i32, %arg2: i32) -> (i32, i32) {
    %c0_i32 = arith.constant 0 : i32
    %c0_i32_0 = arith.constant 0 : i32
    return %c0_i32, %arg1 : i32, i32
  }
  func.func @transform_3(%arg0: i32, %arg1: i32, %arg2: i32) -> (i32, i32) {
    %c0_i32 = arith.constant 0 : i32
    return %arg0, %arg1 : i32, i32
  }
}

</mosaic_0001>

<bundles_post_ra>
// kernel: _lambda_.59
= control target key start
LH: loop header
LB: loop body
LE: loop exit
PB: predicated region body
PF: predicated region fallthrough
CT: control target
= control target key end

     0   :  { %vm92_vm0 = vcmask 523264   ;;  %s271_s0 = inlined_call_operand.vmem [shape: f32[128,64], index: 0, kind: input, shape index: {}]   ;;  %s272_s1 = inlined_call_operand.vmem [shape: f32[1,64], index: 1, kind: input, shape index: {}]   ;;  %s273_s2 = inlined_call_operand.vmem [shape: f32[1,64], index: 2, kind: input, shape index: {}]   ;;  %s274_s3 = inlined_call_operand.vmem [shape: f32[128,64], index: 3, kind: output, shape index: {}]  }
   0x1   :  { %v14_v0 = vld [vmem:[%s271_s0] sm:$0xff]  ;;  %v15_v4 = vld [vmem:[%s271_s0 + $0x8] sm:$0xff]  ;;  %v16_v5 = vld [vmem:[%s271_s0 + $0x10] sm:$0xff] }
   0x2   :  { %v113_v1 = vld [vmem:[%s272_s1] ss:$0 sm:$0xff]  ;;  %v17_v6 = vld [vmem:[%s271_s0 + $0x18] sm:$0xff]  ;;  %v19_v11 = vld [vmem:[%s271_s0 + $0x28] sm:$0xff] }
   0x3   :  { %v144_v2 = vld [vmem:[%s273_s2] ss:$0 sm:$0xff]  ;;  %v37_v3 = vmul.f32 %v113_v1, %v14_v0  ;;  %v38_v7 = vmul.f32 %v113_v1, %v15_v4  ;;  %v39_v8 = vmul.f32 %v113_v1, %v16_v5  ;;  %v40_v9 = vmul.f32 %v113_v1, %v17_v6  ;;  %v20_v12 = vld [vmem:[%s271_s0 + $0x30] sm:$0xff]  ;;  %v21_v17 = vld [vmem:[%s271_s0 + $0x38] sm:$0xff] }
   0x4   :  { %v18_v10 = vld [vmem:[%s271_s0 + $0x20] sm:$0xff]  ;;  %v42_v15 = vmul.f32 %v113_v1, %v19_v11  ;;  %v43_v16 = vmul.f32 %v113_v1, %v20_v12  ;;  %v44_v21 = vmul.f32 %v113_v1, %v21_v17  ;;  %v23_v27 = vld [vmem:[%s271_s0 + $0x48] sm:$0xff]  ;;  %v24_v28 = vld [vmem:[%s271_s0 + $0x50] sm:$0xff] }
   0x5   :  { %v60_v13 = vadd.f32 %v144_v2, %v37_v3  ;;  %v41_v14 = vmul.f32 %v113_v1, %v18_v10  ;;  %v61_v18 = vadd.f32 %v144_v2, %v38_v7  ;;  %v62_v19 = vadd.f32 %v144_v2, %v39_v8  ;;  %v22_v22 = vld [vmem:[%s271_s0 + $0x40] sm:$0xff]  ;;  %v25_v29 = vld [vmem:[%s271_s0 + $0x58] sm:$0xff]  ;;  %v27_v35 = vld [vmem:[%s271_s0 + $0x68] sm:$0xff] }
   0x6   :  { %v63_v20 = vadd.f32 %v144_v2, %v40_v9  ;;  %v65_v25 = vadd.f32 %v144_v2, %v42_v15  ;;  %v66_v26 = vadd.f32 %v144_v2, %v43_v16  ;;  %v67_v33 = vadd.f32 %v144_v2, %v44_v21  ;;  %v26_v34 = vld [vmem:[%s271_s0 + $0x60] sm:$0xff]  ;;  %v28_v36 = vld [vmem:[%s271_s0 + $0x70] sm:$0xff]  ;;  %v29_v41 = vld [vmem:[%s271_s0 + $0x78] sm:$0xff] }
   0x7   :  { %v76_v23 = vmax.f32 %v60_v13, 0.0  ;;  %v64_v24 = vadd.f32 %v144_v2, %v41_v14  ;;  %v77_v30 = vmax.f32 %v61_v18, 0.0  ;;  %v78_v31 = vmax.f32 %v62_v19, 0.0 }
   0x8   :  { %v79_v32 = vmax.f32 %v63_v20, 0.0  ;;  %v81_v38 = vmax.f32 %v65_v25, 0.0  ;;  %v82_v39 = vmax.f32 %v66_v26, 0.0  ;;  %v45_v40 = vmul.f32 %v113_v1, %v22_v22 }
   0x9   :  { %93 = vst.msk [vmem:[%s274_s3] sm:$0xff] %vm92_vm0, %v76_v23  ;;  %v80_v37 = vmax.f32 %v64_v24, 0.0  ;;  %94 = vst.msk [vmem:[%s274_s3 + $0x8] sm:$0xff] %vm92_vm0, %v77_v30  ;;  %v83_v42 = vmax.f32 %v67_v33, 0.0  ;;  %v46_v43 = vmul.f32 %v113_v1, %v23_v27  ;;  %v47_v44 = vmul.f32 %v113_v1, %v24_v28 }
   0xa   :  { %95 = vst.msk [vmem:[%s274_s3 + $0x10] sm:$0xff] %vm92_vm0, %v78_v31  ;;  %96 = vst.msk [vmem:[%s274_s3 + $0x18] sm:$0xff] %vm92_vm0, %v79_v32  ;;  %v48_v45 = vmul.f32 %v113_v1, %v25_v29  ;;  %v68_v46 = vadd.f32 %v144_v2, %v45_v40  ;;  %v49_v47 = vmul.f32 %v113_v1, %v26_v34 }
   0xb   :  { %97 = vst.msk [vmem:[%s274_s3 + $0x20] sm:$0xff] %vm92_vm0, %v80_v37  ;;  %98 = vst.msk [vmem:[%s274_s3 + $0x28] sm:$0xff] %vm92_vm0, %v81_v38  ;;  %v50_v48 = vmul.f32 %v113_v1, %v27_v35  ;;  %v51_v49 = vmul.f32 %v113_v1, %v28_v36  ;;  %v69_v50 = vadd.f32 %v144_v2, %v46_v43 }
   0xc   :  { %99 = vst.msk [vmem:[%s274_s3 + $0x30] sm:$0xff] %vm92_vm0, %v82_v39  ;;  %100 = vst.msk [vmem:[%s274_s3 + $0x38] sm:$0xff] %vm92_vm0, %v83_v42  ;;  %v70_v51 = vadd.f32 %v144_v2, %v47_v44  ;;  %v71_v52 = vadd.f32 %v144_v2, %v48_v45  ;;  %v52_v53 = vmul.f32 %v113_v1, %v29_v41  ;;  %v84_v54 = vmax.f32 %v68_v46, 0.0 }
   0xd   :  { %v72_v55 = vadd.f32 %v144_v2, %v49_v47  ;;  %v73_v56 = vadd.f32 %v144_v2, %v50_v48  ;;  %v74_v57 = vadd.f32 %v144_v2, %v51_v49  ;;  %v85_v58 = vmax.f32 %v69_v50, 0.0 }
   0xe   :  { %v86_v59 = vmax.f32 %v70_v51, 0.0  ;;  %v87_v60 = vmax.f32 %v71_v52, 0.0  ;;  %v75_v61 = vadd.f32 %v144_v2, %v52_v53  ;;  %101 = vst.msk [vmem:[%s274_s3 + $0x40] sm:$0xff] %vm92_vm0, %v84_v54 }
   0xf   :  { %v88_v62 = vmax.f32 %v72_v55, 0.0  ;;  %v89_v63 = vmax.f32 %v73_v56, 0.0  ;;  %v90_v0 = vmax.f32 %v74_v57, 0.0  ;;  %102 = vst.msk [vmem:[%s274_s3 + $0x48] sm:$0xff] %vm92_vm0, %v85_v58 }
  0x10   :  { %103 = vst.msk [vmem:[%s274_s3 + $0x50] sm:$0xff] %vm92_vm0, %v86_v59  ;;  %104 = vst.msk [vmem:[%s274_s3 + $0x58] sm:$0xff] %vm92_vm0, %v87_v60  ;;  %v91_v1 = vmax.f32 %v75_v61, 0.0 }
  0x11   :  { %105 = vst.msk [vmem:[%s274_s3 + $0x60] sm:$0xff] %vm92_vm0, %v88_v62  ;;  %106 = vst.msk [vmem:[%s274_s3 + $0x68] sm:$0xff] %vm92_vm0, %v89_v63 }
  0x12   :  { %107 = vst.msk [vmem:[%s274_s3 + $0x70] sm:$0xff] %vm92_vm0, %v90_v0  ;;  %108 = vst.msk [vmem:[%s274_s3 + $0x78] sm:$0xff] %vm92_vm0, %v91_v1 }

// kernel: _lambda_.58
= control target key start
LH: loop header
LB: loop body
LE: loop exit
PB: predicated region body
PF: predicated region fallthrough
CT: control target
= control target key end

     0   :  { %vm14_vm0 = vcmask 516096   ;;  %vm34_vm1 = vcmask 523264   ;;  %v140_v0 = vmov 0.0   ;;  %s258_s0 = inlined_call_operand.vmem [shape: f32[128,64], index: 0, kind: input, shape index: {}]   ;;  %s259_s1 = inlined_call_operand.vmem [shape: f32[1,64], index: 1, kind: output, shape index: {0}]   ;;  %s260_s2 = inlined_call_operand.vmem [shape: f32[1,64], index: 2, kind: output, shape index: {1}]  }
   0x1   :  { %15 = vst.msk [vmem:[%s259_s1] sm:$0x1] %vm14_vm0, %v140_v0  ;;  %v17_v1 = vld [vmem:[%s258_s0] sm:$0xff]  ;;  %v18_v2 = vld [vmem:[%s258_s0 + $0x8] sm:$0xff]  ;;  %v19_v3 = vld [vmem:[%s258_s0 + $0x10] sm:$0xff] }
   0x2   :  { %16 = vst.msk [vmem:[%s260_s2] sm:$0x1] %vm14_vm0, %v140_v0  ;;  %v35_v4 = vsel %vm34_vm1, %v17_v1, 0.0  ;;  %v36_v5 = vsel %vm34_vm1, %v18_v2, 0.0  ;;  %v38_v6 = vsel %vm34_vm1, %v19_v3, 0.0  ;;  %v20_v7 = vld [vmem:[%s258_s0 + $0x18] sm:$0xff]  ;;  %v76_v15 = vmul.f32 %v17_v1, %v17_v1 }
   0x3   :  { %v37_v8 = vadd.f32 %v36_v5, %v35_v4  ;;  %v40_v9 = vsel %vm34_vm1, %v20_v7, 0.0  ;;  %v21_v10 = vld [vmem:[%s258_s0 + $0x20] sm:$0xff]  ;;  %v22_v13 = vld [vmem:[%s258_s0 + $0x28] sm:$0xff]  ;;  %v77_v16 = vmul.f32 %v18_v2, %v18_v2  ;;  %v78_v17 = vmul.f32 %v19_v3, %v19_v3  ;;  %v23_v19 = vld [vmem:[%s258_s0 + $0x30] sm:$0xff] }
   0x4   :  { %v42_v12 = vsel %vm34_vm1, %v21_v10, 0.0  ;;  %v44_v18 = vsel %vm34_vm1, %v22_v13, 0.0  ;;  %v79_v21 = vmul.f32 %v20_v7, %v20_v7  ;;  %v46_v22 = vsel %vm34_vm1, %v23_v19, 0.0  ;;  %v24_v24 = vld [vmem:[%s258_s0 + $0x38] sm:$0xff]  ;;  %v25_v31 = vld [vmem:[%s258_s0 + $0x40] sm:$0xff]  ;;  %v26_v37 = vld [vmem:[%s258_s0 + $0x48] sm:$0xff] }
   0x5   :  { %v39_v11 = vadd.f32 %v38_v6, %v37_v8  ;;  %v80_v23 = vmul.f32 %v21_v10, %v21_v10  ;;  %v92_v26 = vsel %vm34_vm1, %v76_v15, 0.0  ;;  %v93_v27 = vsel %vm34_vm1, %v77_v16, 0.0  ;;  %v27_v43 = vld [vmem:[%s258_s0 + $0x50] sm:$0xff]  ;;  %v28_v49 = vld [vmem:[%s258_s0 + $0x58] sm:$0xff]  ;;  %v29_v55 = vld [vmem:[%s258_s0 + $0x60] sm:$0xff] }
   0x6   :  { %v95_v28 = vsel %vm34_vm1, %v78_v17, 0.0  ;;  %v48_v29 = vsel %vm34_vm1, %v24_v24, 0.0  ;;  %v94_v30 = vadd.f32 %v93_v27, %v92_v26  ;;  %v81_v33 = vmul.f32 %v22_v13, %v22_v13  ;;  %v30_v61 = vld [vmem:[%s258_s0 + $0x68] sm:$0xff]  ;;  %v31_v3 = vld [vmem:[%s258_s0 + $0x70] sm:$0xff] }
   0x7   :  { %v41_v14 = vadd.f32 %v40_v9, %v39_v11  ;;  %v97_v34 = vsel %vm34_vm1, %v79_v21, 0.0  ;;  %v50_v35 = vsel %vm34_vm1, %v25_v31, 0.0  ;;  %v82_v39 = vmul.f32 %v23_v19, %v23_v19  ;;  %v32_v9 = vld [vmem:[%s258_s0 + $0x78] sm:$0xff] }
   0x8   :  { %v96_v36 = vadd.f32 %v95_v28, %v94_v30  ;;  %v99_v40 = vsel %vm34_vm1, %v80_v23, 0.0  ;;  %v52_v41 = vsel %vm34_vm1, %v26_v37, 0.0  ;;  %v83_v45 = vmul.f32 %v24_v24, %v24_v24 }
   0x9   :  { %v43_v20 = vadd.f32 %v42_v12, %v41_v14  ;;  %v101_v46 = vsel %vm34_vm1, %v81_v33, 0.0  ;;  %v54_v47 = vsel %vm34_vm1, %v27_v43, 0.0  ;;  %v84_v51 = vmul.f32 %v25_v31, %v25_v31 }
   0xa   :  { %v98_v42 = vadd.f32 %v97_v34, %v96_v36  ;;  %v103_v52 = vsel %vm34_vm1, %v82_v39, 0.0  ;;  %v56_v53 = vsel %vm34_vm1, %v28_v49, 0.0  ;;  %v85_v57 = vmul.f32 %v26_v37, %v26_v37  ;;  %v33_v36 = vld [vmem:[%s259_s1] sm:$0x1] }
   0xb   :  { %v45_v25 = vadd.f32 %v44_v18, %v43_v20  ;;  %v105_v58 = vsel %vm34_vm1, %v83_v45, 0.0  ;;  %v58_v59 = vsel %vm34_vm1, %v29_v55, 0.0  ;;  %v86_v63 = vmul.f32 %v27_v43, %v27_v43 }
   0xc   :  { %v100_v48 = vadd.f32 %v99_v40, %v98_v42  ;;  %v107_v0 = vsel %vm34_vm1, %v84_v51, 0.0  ;;  %v60_v1 = vsel %vm34_vm1, %v30_v61, 0.0  ;;  %v87_v5 = vmul.f32 %v28_v49, %v28_v49 }
   0xd   :  { %v47_v32 = vadd.f32 %v46_v22, %v45_v25  ;;  %v109_v6 = vsel %vm34_vm1, %v85_v57, 0.0  ;;  %v62_v7 = vsel %vm34_vm1, %v31_v3, 0.0  ;;  %v88_v11 = vmul.f32 %v29_v55, %v29_v55 }
   0xe   :  { %v102_v54 = vadd.f32 %v101_v46, %v100_v48  ;;  %v111_v12 = vsel %vm34_vm1, %v86_v63, 0.0  ;;  %v64_v13 = vsel %vm34_vm1, %v32_v9, 0.0  ;;  %v89_v16 = vmul.f32 %v30_v61, %v30_v61 }
   0xf   :  { %v49_v38 = vadd.f32 %v48_v29, %v47_v32  ;;  %v113_v17 = vsel %vm34_vm1, %v87_v5, 0.0  ;;  %v90_v20 = vmul.f32 %v31_v3, %v31_v3  ;;  %v115_v21 = vsel %vm34_vm1, %v88_v11, 0.0 }
  0x10   :  { %v104_v60 = vadd.f32 %v103_v52, %v102_v54  ;;  %v91_v24 = vmul.f32 %v32_v9, %v32_v9  ;;  %v117_v25 = vsel %vm34_vm1, %v89_v16, 0.0 }
  0x11   :  { %v51_v44 = vadd.f32 %v50_v35, %v49_v38  ;;  %v119_v28 = vsel %vm34_vm1, %v90_v20, 0.0 }
  0x12   :  { %v106_v2 = vadd.f32 %v105_v58, %v104_v60  ;;  %v121_v31 = vsel %vm34_vm1, %v91_v24, 0.0 }
  0x13   :  { %v53_v50 = vadd.f32 %v52_v41, %v51_v44  ;;  %v75_v44 = vld [vmem:[%s260_s2] sm:$0x1] }
  0x14   :  { %v108_v8 = vadd.f32 %v107_v0, %v106_v2 }
  0x15   :  { %v55_v56 = vadd.f32 %v54_v47, %v53_v50 }
  0x16   :  { %v110_v14 = vadd.f32 %v109_v6, %v108_v8 }
  0x17   :  { %v57_v62 = vadd.f32 %v56_v53, %v55_v56 }
  0x18   :  { %v112_v18 = vadd.f32 %v111_v12, %v110_v14 }
  0x19   :  { %v59_v4 = vadd.f32 %v58_v59, %v57_v62 }
  0x1a   :  { %v114_v22 = vadd.f32 %v113_v17, %v112_v18 }
  0x1b   :  { %v61_v10 = vadd.f32 %v60_v1, %v59_v4 }
  0x1c   :  { %v116_v26 = vadd.f32 %v115_v21, %v114_v22 }
  0x1d   :  { %v63_v15 = vadd.f32 %v62_v7, %v61_v10 }
  0x1e   :  { %v118_v29 = vadd.f32 %v117_v25, %v116_v26 }
  0x1f   :  { %v65_v19 = vadd.f32 %v64_v13, %v63_v15 }
  0x20   :  { %v120_v32 = vadd.f32 %v119_v28, %v118_v29 }
  0x21   :  { %v66_v23 = vrot.slane %v65_v19, 4 }
  0x22   :  { %v122_v34 = vadd.f32 %v121_v31, %v120_v32 }
  0x23   :  { %v67_v27 = vadd.f32 %v66_v23, %v65_v19 }
  0x24   :  { %v123_v37 = vrot.slane %v122_v34, 4 }
  0x25   :  { %v68_v30 = vrot.slane %v67_v27, 2 }
  0x26   :  { %v124_v39 = vadd.f32 %v123_v37, %v122_v34 }
  0x27   :  { %v69_v33 = vadd.f32 %v68_v30, %v67_v27 }
  0x28   :  { %v125_v41 = vrot.slane %v124_v39, 2 }
  0x29   :  { %v70_v35 = vrot.slane %v69_v33, 1 }
  0x2a   :  { %v126_v42 = vadd.f32 %v125_v41, %v124_v39 }
  0x2b   :  { %v71_v38 = vadd.f32 %v70_v35, %v69_v33 }
  0x2c   :  { %v127_v43 = vrot.slane %v126_v42, 1 }
  0x2d   :  { %v72_v40 = vadd.f32 %v71_v38, %v33_v36 }
  0x2e   :  { %v128_v45 = vadd.f32 %v127_v43, %v126_v42 }
  0x2f   :  { %74 = vst.msk [vmem:[%s259_s1] sm:$0x1] %vm14_vm0, %v72_v40 }
  0x30   :  { %v129_v46 = vadd.f32 %v128_v45, %v75_v44 }
  0x32   :  { %130 = vst.msk [vmem:[%s260_s2] sm:$0x1] %vm14_vm0, %v129_v46 }

// kernel: _lambda_.57
= control target key start
LH: loop header
LB: loop body
LE: loop exit
PB: predicated region body
PF: predicated region fallthrough
CT: control target
= control target key end

     0   :  { %7 = vsyncpa [#allocation4], 0  ;;  %s480_s9 = smov [#allocation3]   ;;  %s573_s0 = inlined_call_operand.vmem [shape: bf16[128,128], index: 0, kind: input, shape index: {}]   ;;  %s574_s1 = inlined_call_operand.hbm [shape: bf16[128,128], index: 1, kind: input, shape index: {}]   ;;  %s575_s2 = inlined_call_operand.vmem [shape: f32[128,128], index: 2, kind: output, shape index: {}]  }
   0x1   :  { %s15_s10 = sshll.u32 %s480_s9, 4  ;;  %s16_s10 = int_to_ptr.vmem [resolvable:$true] %s15_s10 }
   0x2   :  { %s466_s11 = scalar_lea.vmem %s16_s10, 1024  ;;  %p471_p1 = scmp.lt.s32.totalorder %s16_s10, %s16_s10 }
   0x3   :  { %p467_p0 = scmp.ne.s32.totalorder %s16_s10, %s466_s11  ;;  %p472_p2 = scmp.lt.s32.totalorder %s466_s11, %s466_s11 }
   0x5   :  { %p473_p3 = por %p472_p2, %p471_p1 }
   0x7   :  { %p474_p4 = pnand %p473_p3, %p467_p0 }
   0x9   :  { %477 = shalt.err (!%p474_p4)
}
   0xa   :  { %s481_s12 = smov 64   ;;  %s482_s13 = smov 4  }
   0xb   :  { %21 = dma.hbm_to_vmem [thread:$0]  %s574_s1, 1024, %s16_s10, [#allocation4], %s481_s12, %s481_s12, %s482_s13  }
   0xc   :  { %478 = dma.done.wait [#allocation4], 1024  }
   0xd   :  { %479 = vsyncadd [#allocation4], 4294966272  ;;  %v442_v0 = vld [vmem:[#allocation3 + $0x38] sm:$0xff]   ;;  %v443_v1 = vld [vmem:[#allocation3 + $0x30] sm:$0xff]  }
   0xe   :  { %391 = vmatprep.subr.bf16.mxu0 %v442_v0  ;;  %423 = vmatprep.subr.bf16.mxu1 %v442_v0  ;;  %v444_v2 = vld [vmem:[#allocation3 + $0x28] sm:$0xff]   ;;  %v445_v3 = vld [vmem:[#allocation3 + $0x20] sm:$0xff]   ;;  %v446_v6 = vld [vmem:[#allocation3 + $0x18] sm:$0xff]  }
   0xf   :  { %392 = vmatpush3.bf16.msra.mxu0 %v442_v0  ;;  %431 = vmatpush3.bf16.msra.mxu1 %v442_v0  ;;  %v450_v4 = vld [vmem:[%s573_s0] sm:$0xff]   ;;  %v447_v7 = vld [vmem:[#allocation3 + $0x10] sm:$0xff]   ;;  %v448_v8 = vld [vmem:[#allocation3 + $0x8] sm:$0xff]  }
  0x10   :  { %393 = vmatprep.subr.bf16.mxu0 %v443_v1  ;;  %424 = vmatprep.subr.bf16.mxu1 %v443_v1  ;;  %v451_v5 = vld [vmem:[%s573_s0 + $0x20] sm:$0xff]   ;;  %v452_v10 = vld [vmem:[%s573_s0 + $0x8] sm:$0xff]   ;;  %v454_v12 = vld [vmem:[%s573_s0 + $0x10] sm:$0xff]  }
  0x11   :  { %407 = vmatprep.mubr.bf16.mxu0 %v450_v4  ;;  %415 = vmatprep.mubr.bf16.mxu1 %v451_v5  ;;  %v449_v9 = vld [vmem:[#allocation3] sm:$0xff]   ;;  %v453_v11 = vld [vmem:[%s573_s0 + $0x28] sm:$0xff]   ;;  %v455_v13 = vld [vmem:[%s573_s0 + $0x30] sm:$0xff]  }
  0x12   :  { %v456_v14 = vld [vmem:[%s573_s0 + $0x18] sm:$0xff]  }
  0x13   :  { %394 = vmatpush3.bf16.msra.mxu0 %v443_v1  ;;  %432 = vmatpush3.bf16.msra.mxu1 %v443_v1  ;;  %v457_v15 = vld [vmem:[%s573_s0 + $0x38] sm:$0xff]  }
  0x14   :  { %395 = vmatprep.subr.bf16.mxu0 %v444_v2  ;;  %425 = vmatprep.subr.bf16.mxu1 %v444_v2 }
  0x17   :  { %396 = vmatpush3.bf16.msra.mxu0 %v444_v2  ;;  %433 = vmatpush3.bf16.msra.mxu1 %v444_v2 }
  0x18   :  { %397 = vmatprep.subr.bf16.mxu0 %v445_v3  ;;  %426 = vmatprep.subr.bf16.mxu1 %v445_v3 }
  0x1b   :  { %398 = vmatpush3.bf16.msra.mxu0 %v445_v3  ;;  %434 = vmatpush3.bf16.msra.mxu1 %v445_v3 }
  0x1c   :  { %399 = vmatprep.subr.bf16.mxu0 %v446_v6  ;;  %427 = vmatprep.subr.bf16.mxu1 %v446_v6 }
  0x1f   :  { %400 = vmatpush3.bf16.msra.mxu0 %v446_v6  ;;  %435 = vmatpush3.bf16.msra.mxu1 %v446_v6 }
  0x20   :  { %401 = vmatprep.subr.bf16.mxu0 %v447_v7  ;;  %428 = vmatprep.subr.bf16.mxu1 %v447_v7 }
  0x23   :  { %402 = vmatpush3.bf16.msra.mxu0 %v447_v7  ;;  %436 = vmatpush3.bf16.msra.mxu1 %v447_v7 }
  0x24   :  { %403 = vmatprep.subr.bf16.mxu0 %v448_v8  ;;  %429 = vmatprep.subr.bf16.mxu1 %v448_v8 }
  0x27   :  { %404 = vmatpush3.bf16.msra.mxu0 %v448_v8  ;;  %437 = vmatpush3.bf16.msra.mxu1 %v448_v8 }
  0x28   :  { %405 = vmatprep.subr.bf16.mxu0 %v449_v9  ;;  %430 = vmatprep.subr.bf16.mxu1 %v449_v9 }
  0x2b   :  { %406 = vmatpush3.bf16.msra.mxu0 %v449_v9  ;;  %438 = vmatpush3.bf16.msra.mxu1 %v449_v9 }
  0x2e   :  { %408 = vmatmul.mubr.bf16.vlgmr.msra.gmra.mxu0 %v452_v10  ;;  %416 = vmatmul.mubr.bf16.vlgmr.msra.gmra.mxu1 %v453_v11 }
  0x2f   :  { %411 = vmatprep.mubr.bf16.mxu0 %v454_v12  ;;  %419 = vmatprep.mubr.bf16.mxu1 %v455_v13 }
  0x36   :  { %412 = vmatmul.mubr.bf16.gmra.mxu0 %v456_v14  ;;  %420 = vmatmul.mubr.bf16.gmra.mxu1 %v457_v15 }
  0xee   :  { %v409_v16 = vpop.f32.mrf.mxu0  ;;  %v417_v17 = vpop.f32.mrf.mxu1 }
  0xef   :  { %340 = vst [vmem:[%s575_s2 + $0x10] sm:$0xff] %v409_v16  ;;  %348 = vst [vmem:[%s575_s2 + $0x50] sm:$0xff] %v417_v17 }
  0xf0   :  { %v224_v18 = vpop.f32.mrf.mxu0  ;;  %v256_v19 = vpop.f32.mrf.mxu1 }
  0xf1   :  { %338 = vst [vmem:[%s575_s2] sm:$0xff] %v224_v18  ;;  %346 = vst [vmem:[%s575_s2 + $0x40] sm:$0xff] %v256_v19 }
  0xf2   :  { %v410_v20 = vpop.f32.mrf.mxu0  ;;  %v418_v21 = vpop.f32.mrf.mxu1 }
  0xf3   :  { %341 = vst [vmem:[%s575_s2 + $0x18] sm:$0xff] %v410_v20  ;;  %349 = vst [vmem:[%s575_s2 + $0x58] sm:$0xff] %v418_v21 }
  0xf4   :  { %v227_v22 = vpop.f32.mrf.mxu0  ;;  %v259_v23 = vpop.f32.mrf.mxu1 }
  0xf5   :  { %339 = vst [vmem:[%s575_s2 + $0x8] sm:$0xff] %v227_v22  ;;  %347 = vst [vmem:[%s575_s2 + $0x48] sm:$0xff] %v259_v23 }
  0xf6   :  { %v413_v24 = vpop.f32.mrf.mxu0  ;;  %v421_v25 = vpop.f32.mrf.mxu1 }
  0xf7   :  { %344 = vst [vmem:[%s575_s2 + $0x30] sm:$0xff] %v413_v24  ;;  %352 = vst [vmem:[%s575_s2 + $0x70] sm:$0xff] %v421_v25 }
  0xf8   :  { %v240_v26 = vpop.f32.mrf.mxu0  ;;  %v272_v27 = vpop.f32.mrf.mxu1 }
  0xf9   :  { %342 = vst [vmem:[%s575_s2 + $0x20] sm:$0xff] %v240_v26  ;;  %350 = vst [vmem:[%s575_s2 + $0x60] sm:$0xff] %v272_v27 }
  0xfa   :  { %v414_v28 = vpop.f32.mrf.mxu0  ;;  %v422_v29 = vpop.f32.mrf.mxu1 }
  0xfb   :  { %345 = vst [vmem:[%s575_s2 + $0x38] sm:$0xff] %v414_v28  ;;  %353 = vst [vmem:[%s575_s2 + $0x78] sm:$0xff] %v422_v29 }
  0xfc   :  { %v243_v30 = vpop.f32.mrf.mxu0  ;;  %v275_v31 = vpop.f32.mrf.mxu1 }
  0xfd   :  { %343 = vst [vmem:[%s575_s2 + $0x28] sm:$0xff] %v243_v30  ;;  %351 = vst [vmem:[%s575_s2 + $0x68] sm:$0xff] %v275_v31 }
  0xfe   :  { %358 = vsyncpa [#allocation4], 1 }

// kernel: _lambda_.60
= control target key start
LH: loop header
LB: loop body
LE: loop exit
PB: predicated region body
PF: predicated region fallthrough
CT: control target
= control target key end

     0   :  { %vm44_vm0 = vcmask 523264   ;;  %s291_s0 = inlined_call_operand.vmem [shape: f32[9,32,64], index: 0, kind: input, shape index: {}]   ;;  %s292_s1 = inlined_call_operand.vmem [shape: f32[32,64], index: 1, kind: output, shape index: {}]  }
   0x1   :  { %v8_v0 = vld [vmem:[%s291_s0] sm:$0xff]  ;;  %v9_v11 = vld [vmem:[%s291_s0 + $0x8] sm:$0xff]  ;;  %v10_v27 = vld [vmem:[%s291_s0 + $0x10] sm:$0xff] }
   0x2   :  { %v12_v1 = vld [vmem:[%s291_s0 + $0x20] sm:$0xff]  ;;  %v45_v4 = vsel %vm44_vm0, %v8_v0, -inf  ;;  %v13_v12 = vld [vmem:[%s291_s0 + $0x28] sm:$0xff]  ;;  %v62_v16 = vsel %vm44_vm0, %v9_v11, -inf  ;;  %v14_v28 = vld [vmem:[%s291_s0 + $0x30] sm:$0xff]  ;;  %v79_v33 = vsel %vm44_vm0, %v10_v27, -inf }
   0x3   :  { %v16_v2 = vld [vmem:[%s291_s0 + $0x40] sm:$0xff]  ;;  %v46_v5 = vsel %vm44_vm0, %v12_v1, -inf  ;;  %v17_v13 = vld [vmem:[%s291_s0 + $0x48] sm:$0xff]  ;;  %v63_v17 = vsel %vm44_vm0, %v13_v12, -inf  ;;  %v18_v29 = vld [vmem:[%s291_s0 + $0x50] sm:$0xff]  ;;  %v80_v34 = vsel %vm44_vm0, %v14_v28, -inf }
   0x4   :  { %v20_v3 = vld [vmem:[%s291_s0 + $0x60] sm:$0xff]  ;;  %v48_v6 = vsel %vm44_vm0, %v16_v2, -inf  ;;  %v47_v9 = vmax.f32 %v45_v4, %v46_v5  ;;  %v21_v15 = vld [vmem:[%s291_s0 + $0x68] sm:$0xff]  ;;  %v65_v18 = vsel %vm44_vm0, %v17_v13, -inf  ;;  %v64_v23 = vmax.f32 %v62_v16, %v63_v17  ;;  %v22_v32 = vld [vmem:[%s291_s0 + $0x70] sm:$0xff] }
   0x5   :  { %v24_v7 = vld [vmem:[%s291_s0 + $0x80] sm:$0xff]  ;;  %v50_v10 = vsel %vm44_vm0, %v20_v3, -inf  ;;  %v25_v22 = vld [vmem:[%s291_s0 + $0x88] sm:$0xff]  ;;  %v67_v26 = vsel %vm44_vm0, %v21_v15, -inf  ;;  %v82_v35 = vsel %vm44_vm0, %v18_v29, -inf  ;;  %v26_v39 = vld [vmem:[%s291_s0 + $0x90] sm:$0xff]  ;;  %v81_v40 = vmax.f32 %v79_v33, %v80_v34 }
   0x6   :  { %v28_v8 = vld [vmem:[%s291_s0 + $0xa0] sm:$0xff]  ;;  %v49_v14 = vmax.f32 %v47_v9, %v48_v6  ;;  %v52_v21 = vsel %vm44_vm0, %v24_v7, -inf  ;;  %v29_v30 = vld [vmem:[%s291_s0 + $0xa8] sm:$0xff]  ;;  %v66_v31 = vmax.f32 %v64_v23, %v65_v18  ;;  %v69_v38 = vsel %vm44_vm0, %v25_v22, -inf  ;;  %v11_v45 = vld [vmem:[%s291_s0 + $0x18] sm:$0xff] }
   0x7   :  { %v32_v19 = vld [vmem:[%s291_s0 + $0xc0] sm:$0xff]  ;;  %v54_v25 = vsel %vm44_vm0, %v28_v8, -inf  ;;  %v33_v37 = vld [vmem:[%s291_s0 + $0xc8] sm:$0xff]  ;;  %v84_v44 = vsel %vm44_vm0, %v22_v32, -inf  ;;  %v15_v46 = vld [vmem:[%s291_s0 + $0x38] sm:$0xff]  ;;  %v71_v50 = vsel %vm44_vm0, %v29_v30, -inf  ;;  %v83_v52 = vmax.f32 %v81_v40, %v82_v35 }
   0x8   :  { %v36_v20 = vld [vmem:[%s291_s0 + $0xe0] sm:$0xff]  ;;  %v51_v24 = vmax.f32 %v49_v14, %v50_v10  ;;  %v56_v41 = vsel %vm44_vm0, %v32_v19, -inf  ;;  %v68_v43 = vmax.f32 %v66_v31, %v67_v26  ;;  %v19_v47 = vld [vmem:[%s291_s0 + $0x58] sm:$0xff]  ;;  %v30_v51 = vld [vmem:[%s291_s0 + $0xb0] sm:$0xff]  ;;  %v96_v54 = vsel %vm44_vm0, %v11_v45, -inf }
   0x9   :  { %v58_v42 = vsel %vm44_vm0, %v36_v20, -inf  ;;  %v40_v48 = vld [vmem:[%s291_s0 + $0x100] sm:$0xff]  ;;  %v23_v53 = vld [vmem:[%s291_s0 + $0x78] sm:$0xff]  ;;  %v37_v55 = vld [vmem:[%s291_s0 + $0xe8] sm:$0xff]  ;;  %v86_v57 = vsel %vm44_vm0, %v26_v39, -inf  ;;  %v97_v58 = vsel %vm44_vm0, %v15_v46, -inf  ;;  %v85_v63 = vmax.f32 %v83_v52, %v84_v44 }
   0xa   :  { %v53_v36 = vmax.f32 %v51_v24, %v52_v21  ;;  %v70_v56 = vmax.f32 %v68_v43, %v69_v38  ;;  %v99_v59 = vsel %vm44_vm0, %v19_v47, -inf  ;;  %v73_v61 = vsel %vm44_vm0, %v33_v37, -inf  ;;  %v34_v62 = vld [vmem:[%s291_s0 + $0xd0] sm:$0xff]  ;;  %v27_v0 = vld [vmem:[%s291_s0 + $0x98] sm:$0xff]  ;;  %v41_v3 = vld [vmem:[%s291_s0 + $0x108] sm:$0xff] }
   0xb   :  { %v98_v1 = vmax.f32 %v96_v54, %v97_v58  ;;  %v60_v2 = vsel %vm44_vm0, %v40_v48, -inf  ;;  %v88_v5 = vsel %vm44_vm0, %v30_v51, -inf  ;;  %v101_v6 = vsel %vm44_vm0, %v23_v53, -inf  ;;  %v38_v9 = vld [vmem:[%s291_s0 + $0xf0] sm:$0xff]  ;;  %v31_v11 = vld [vmem:[%s291_s0 + $0xb8] sm:$0xff] }
   0xc   :  { %v55_v49 = vmax.f32 %v53_v36, %v54_v25  ;;  %v72_v4 = vmax.f32 %v70_v56, %v71_v50  ;;  %v75_v8 = vsel %vm44_vm0, %v37_v55, -inf  ;;  %v87_v10 = vmax.f32 %v85_v63, %v86_v57  ;;  %v42_v18 = vld [vmem:[%s291_s0 + $0x110] sm:$0xff]  ;;  %v35_v20 = vld [vmem:[%s291_s0 + $0xd8] sm:$0xff] }
   0xd   :  { %v100_v12 = vmax.f32 %v98_v1, %v99_v59  ;;  %v90_v14 = vsel %vm44_vm0, %v34_v62, -inf  ;;  %v103_v15 = vsel %vm44_vm0, %v27_v0, -inf  ;;  %v77_v17 = vsel %vm44_vm0, %v41_v3, -inf  ;;  %v39_v26 = vld [vmem:[%s291_s0 + $0xf8] sm:$0xff] }
   0xe   :  { %v57_v60 = vmax.f32 %v55_v49, %v56_v41  ;;  %v74_v13 = vmax.f32 %v72_v4, %v73_v61  ;;  %v89_v19 = vmax.f32 %v87_v10, %v88_v5  ;;  %v92_v23 = vsel %vm44_vm0, %v38_v9, -inf  ;;  %v43_v32 = vld [vmem:[%s291_s0 + $0x118] sm:$0xff] }
   0xf   :  { %v102_v21 = vmax.f32 %v100_v12, %v101_v6  ;;  %v105_v24 = vsel %vm44_vm0, %v31_v11, -inf  ;;  %v94_v29 = vsel %vm44_vm0, %v42_v18, -inf  ;;  %v107_v30 = vsel %vm44_vm0, %v35_v20, -inf }
  0x10   :  { %v59_v7 = vmax.f32 %v57_v60, %v58_v42  ;;  %v76_v22 = vmax.f32 %v74_v13, %v75_v8  ;;  %v91_v25 = vmax.f32 %v89_v19, %v90_v14  ;;  %v109_v34 = vsel %vm44_vm0, %v39_v26, -inf }
  0x11   :  { %v104_v27 = vmax.f32 %v102_v21, %v103_v15  ;;  %v111_v37 = vsel %vm44_vm0, %v43_v32, -inf }
  0x12   :  { %v61_v16 = vmax.f32 %v59_v7, %v60_v2  ;;  %v78_v28 = vmax.f32 %v76_v22, %v77_v17  ;;  %v93_v31 = vmax.f32 %v91_v25, %v92_v23 }
  0x13   :  { %v106_v33 = vmax.f32 %v104_v27, %v105_v24 }
  0x14   :  { %113 = vst.msk [vmem:[%s292_s1] sm:$0xff] %vm44_vm0, %v61_v16  ;;  %114 = vst.msk [vmem:[%s292_s1 + $0x8] sm:$0xff] %vm44_vm0, %v78_v28  ;;  %v95_v35 = vmax.f32 %v93_v31, %v94_v29 }
  0x15   :  { %v108_v36 = vmax.f32 %v106_v33, %v107_v30 }
  0x16   :  { %115 = vst.msk [vmem:[%s292_s1 + $0x10] sm:$0xff] %vm44_vm0, %v95_v35 }
  0x17   :  { %v110_v38 = vmax.f32 %v108_v36, %v109_v34 }
  0x19   :  { %v112_v39 = vmax.f32 %v110_v38, %v111_v37 }
  0x1b   :  { %116 = vst.msk [vmem:[%s292_s1 + $0x18] sm:$0xff] %vm44_vm0, %v112_v39 }

// kernel: _lambda_.61
= control target key start
LH: loop header
LB: loop body
LE: loop exit
PB: predicated region body
PF: predicated region fallthrough
CT: control target
= control target key end

     0   :  { %7 = vsyncpa [#allocation5], 0  ;;  %s885_s0 = inlined_call_operand.vmem [shape: bf16[32,640], index: 0, kind: input, shape index: {}]   ;;  %s886_s1 = inlined_call_operand.hbm [shape: bf16[640,128], index: 1, kind: input, shape index: {}]   ;;  %s887_s2 = inlined_call_operand.vmem [shape: f32[32,128], index: 2, kind: output, shape index: {}]  }
   0x1   :  { %9 = vsyncpa [#allocation5 + $0x1], 0  ;;  %s765_s9 = smov 0   ;;  %s767_s10 = smov 0  }
   0x2   :  { %s769_s11 = smov 0   ;;  %s771_s12 = smov 0  }
   0x3   :  { %s773_s13 = smov 0   ;;  %s775_s14 = smov 0  }
   0x4 LB: > { %s547_s15 = sadd.s32 4294967295, %s744_s14   ;;  %s27_s16 = sadd.s32 1, %s740_s13  ;;  %s744_s14 = sphi %s775_s14, %s15_s14   ;;  %s740_s13 = sphi %s773_s13, %s894_s13   ;;  %s736_s12 = sphi %s771_s12, %s893_s12   ;;  %s732_s11 = sphi %s769_s11, %s892_s11   ;;  %s728_s10 = sphi %s767_s10, %s891_s10   ;;  %s724_s9 = sphi %s765_s9, %s890_s9  }
   0x5   : > { %p28_p0 = scmp.ge.s32.totalorder %s27_s16, 5  ;;  %s43_s17 = sadd.s32 1, %s732_s11 }
   0x6   : > { %p50_p1 = scmp.ne.s32.totalorder %s732_s11, %s728_s10  ;;  %p51_p2 = scmp.eq.s32.totalorder %s744_s14, 0 }
   0x7   : > { %s896_s16 = smov (%p28_p0, %s27_s16), 0  ;;  %p84_p4 = scmp.ne.s32.totalorder %s728_s10, %s724_s9 }
   0x8   : > { %p801_p3 = por %p51_p2, %p50_p1  ;;  %s39_s19 = ssub.s32 %s740_s13, %s896_s16 }
   0x9   : > { %p85_p5 = scmp.eq.s32.totalorder %s547_s15, 0  ;;  %p41_p6 = scmp.eq.s32.totalorder %s39_s19, 0 }
   0xa   : > { %p549_p8 = scmp.ge.s32.totalorder %s744_s14, 5 }
   0xb   : > { %p808_p7 = por %p85_p5, %p84_p4 }
   0xc   : > { %s813_s21 = scalar_select %p41_p6, %s732_s11, %s43_s17  }
   0xd   : > { %132 = sbr.rel (%p549_p8) target bundleno = 40 (0x28), region = 16 }
  0x12   : > { %135 = sbr.rel (!%p801_p3) target bundleno = 24 (0x18), region = 20  ;;  %s137_s22 = sand.u32 (%p801_p3), 1, %s732_s11  }
  0x13   : > { %s551_s23 = sshll.u32 (%p801_p3), %s740_s13, 2  ;;  %s550_s24 = sshll.u32 (%p801_p3), %s137_s22, 4 }
  0x14   : > { %s144_s27 = scalar_lea.vmem (%p801_p3), %s885_s0, %s551_s23  ;;  %s139_s28 = scalar_lea.vmem (%p801_p3), [#allocation3], %s550_s24 }
  0x15   : > { %v161_v0 = vld [vmem:[%s144_s27] sm:$0xf] (%p801_p3)  ;;  %v163_v1 = vld [vmem:[%s144_s27 + $0x14] sm:$0xf] (%p801_p3)  ;;  %v165_v2 = vld [vmem:[%s144_s27 + $0x28] sm:$0xf] (%p801_p3) }
  0x16   : > { %162 = vst [vmem:[%s139_s28] sm:$0xf] (%p801_p3), %v161_v0  ;;  %164 = vst [vmem:[%s139_s28 + $0x4] sm:$0xf] (%p801_p3), %v163_v1  ;;  %v167_v3 = vld [vmem:[%s144_s27 + $0x3c] sm:$0xf] (%p801_p3) }
  0x17   : > { %166 = vst [vmem:[%s139_s28 + $0x8] sm:$0xf] %v165_v2  ;;  %168 = vst [vmem:[%s139_s28 + $0xc] sm:$0xf] %v167_v3 }
  0x18 PF: > { %s201_s29 = sand.u32 1, %s732_s11   ;;  %s574_s30 = sshll.u32 %s740_s13, 10 }
  0x19   : > { %s552_s3 = sshll.u32 %s201_s29, 6  ;;  %s212_s6 = scalar_lea.hbm %s886_s1, %s574_s30 }
  0x1a   : > { %s205_s7 = scalar_lea.vmem [#allocation4], %s552_s3  ;;  %s202_s9 = scalar_lea.sflag [#allocation5], %s201_s29 }
  0x1b   : > { %s213_s8 = sshll.u32 %s205_s7, 4  ;;  %s746_s17 = smov [#allocation4]   ;;  %s214_s8 = int_to_ptr.vmem [resolvable:$true] %s213_s8 }
  0x1c   : > { %s680_s15 = scalar_lea.vmem %s214_s8, 1024  ;;  %s684_s19 = sshll.u32 %s746_s17, 4  ;;  %s685_s19 = int_to_ptr.vmem [resolvable:$false] %s684_s19 }
  0x1d   : > { %p681_p9 = scmp.ne.s32.totalorder %s214_s8, %s680_s15  ;;  %s686_s22 = scalar_lea.vmem %s685_s19, 2048 }
  0x1e   : > { %p687_p12 = scmp.lt.s32.totalorder %s214_s8, %s685_s19  ;;  %p688_p13 = scmp.lt.s32.totalorder %s686_s22, %s680_s15 }
  0x1f   : > { %p682_p10 = pnand %p681_p9, %p801_p3 }
  0x20   : > { %p689_p0 = por %p688_p13, %p687_p12 }
  0x21   : > { %p683_p11 = pneg %p682_p10 }
  0x23   : > { %p690_p1 = pnand %p689_p0, %p683_p11 }
  0x25   : > { %693 = shalt.err (!%p690_p1)
}
  0x26   : > { %s747_s23 = smov 64   ;;  %s748_s24 = smov 4  }
  0x27   : > { %605 = dma.hbm_to_vmem [thread:$0]  (%p801_p3), %s212_s6, 1024, %s214_s8, %s202_s9, %s747_s23, %s747_s23, %s748_s24  }
  0x28 PF: > { %p555_p2 = scmp.ge.s32.totalorder %s744_s14, 1  ;;  %p221_p4 = scmp.lt.s32.totalorder %s744_s14, 6 }
  0x2a   : > { %p222_p5 = pnand %p555_p2, %p221_p4 }
  0x2b   : > { %s228_s25 = sand.u32 (!%p222_p5), 1, %s728_s10  }
  0x2c   : > { %225 = sbr.rel (%p222_p5) target bundleno = 303 (0x12f), region = 65  ;;  %s556_s26 = sshll.u32 (!%p222_p5), %s228_s25, 4 }
  0x2d   : > { %s557_s27 = sshll.u32 (!%p222_p5), %s228_s25, 6  ;;  %s835_s28 = scalar_lea.vmem (!%p222_p5), [#allocation3], %s556_s26 }
  0x2e   : > { %s235_s29 = scalar_lea.sflag (!%p222_p5), [#allocation5], %s228_s25  ;;  %s837_s30 = scalar_lea.vmem (!%p222_p5), [#allocation4], %s557_s27 }
  0x31   : > { %719 = dma.done.wait (%p808_p7), %s235_s29, 1024  }
  0x32   : > { %721 = vsyncadd (%p808_p7), %s235_s29, 4294966272  ;;  %p558_p3 = scmp.ne.s32.totalorder %s736_s12, 0 }
  0x34   : > { %281 = sbr.rel (%p558_p3) target bundleno = 60 (0x3c), region = 77 }
  0x39   : > { %v749_v4 = vmov 0.0  }
  0x3a   : > { %282 = vst [vmem:[#allocation2 + $0x10] sm:$0xff] %v749_v4  ;;  %283 = vst [vmem:[#allocation2] sm:$0xff] %v749_v4 }
  0x3b   : > { %284 = vst [vmem:[#allocation2 + $0x18] sm:$0xff] %v749_v4  ;;  %285 = vst [vmem:[#allocation2 + $0x8] sm:$0xff] %v749_v4 }
  0x3c PF: > { %v658_v5 = vld [vmem:[%s837_s30 + $0x38] sm:$0xff]   ;;  %v659_v6 = vld [vmem:[%s837_s30 + $0x30] sm:$0xff]   ;;  %v660_v7 = vld [vmem:[%s837_s30 + $0x28] sm:$0xff]   ;;  %p569_p6 = scmp.ne.s32.totalorder %s736_s12, 4 }
  0x3d   : > { %585 = vmatprep.subr.bf16.mxu0 %v658_v5  ;;  %v661_v8 = vld [vmem:[%s837_s30 + $0x20] sm:$0xff]   ;;  %v662_v10 = vld [vmem:[%s837_s30 + $0x18] sm:$0xff]   ;;  %v663_v11 = vld [vmem:[%s837_s30 + $0x10] sm:$0xff]  }
  0x3e   : > { %586 = vmatpush3.bf16.msra.mxu0 %v658_v5  ;;  %v666_v9 = vld [vmem:[%s835_s28] sm:$0xff]   ;;  %v664_v12 = vld [vmem:[%s837_s30 + $0x8] sm:$0xff]  }
  0x3f   : > { %587 = vmatprep.subr.bf16.mxu0 %v659_v6  ;;  %601 = vmatprep.mubr.bf16.mxu0 %v666_v9  ;;  %v665_v13 = vld [vmem:[%s837_s30] sm:$0xff]   ;;  %v667_v14 = vld [vmem:[%s835_s28 + $0x8] sm:$0xff]  }
  0x41   : > { %v286_v17 = vld [vmem:[#allocation2 + $0x10] sm:$0xff]  ;;  %v287_v23 = vld [vmem:[#allocation2] sm:$0xff] }
  0x42   : > { %588 = vmatpush3.bf16.msra.mxu0 %v659_v6  ;;  %v288_v15 = vld [vmem:[#allocation2 + $0x18] sm:$0xff]  ;;  %v289_v20 = vld [vmem:[#allocation2 + $0x8] sm:$0xff] }
  0x43   : > { %589 = vmatprep.subr.bf16.mxu0 %v660_v7 }
  0x46   : > { %590 = vmatpush3.bf16.msra.mxu0 %v660_v7 }
  0x47   : > { %591 = vmatprep.subr.bf16.mxu0 %v661_v8 }
  0x4a   : > { %592 = vmatpush3.bf16.msra.mxu0 %v661_v8 }
  0x4b   : > { %593 = vmatprep.subr.bf16.mxu0 %v662_v10 }
  0x4e   : > { %594 = vmatpush3.bf16.msra.mxu0 %v662_v10 }
  0x4f   : > { %595 = vmatprep.subr.bf16.mxu0 %v663_v11 }
  0x52   : > { %596 = vmatpush3.bf16.msra.mxu0 %v663_v11 }
  0x53   : > { %597 = vmatprep.subr.bf16.mxu0 %v664_v12 }
  0x56   : > { %598 = vmatpush3.bf16.msra.mxu0 %v664_v12 }
  0x57   : > { %599 = vmatprep.subr.bf16.mxu0 %v665_v13 }
  0x5a   : > { %600 = vmatpush3.bf16.msra.mxu0 %v665_v13 }
  0x5d   : > { %602 = vmatmul.mubr.bf16.vlgmr.msra.gmra.mxu0 %v667_v14 }
 0x11d   : > { %v603_v16 = vpop.f32.mrf.mxu0 }
 0x11e   : > { %v421_v18 = vadd.f32 %v603_v16, %v288_v15 }
 0x11f   : > { %v404_v19 = vpop.f32.mrf.mxu0 }
 0x120   : > { %425 = vst [vmem:[#allocation2 + $0x18] sm:$0xff] %v421_v18  ;;  %v419_v21 = vadd.f32 %v404_v19, %v286_v17 }
 0x121   : > { %v604_v22 = vpop.f32.mrf.mxu0 }
 0x122   : > { %423 = vst [vmem:[#allocation2 + $0x10] sm:$0xff] %v419_v21  ;;  %v422_v24 = vadd.f32 %v604_v22, %v289_v20  ;;  %430 = sbr.rel (%p569_p6) target bundleno = 303 (0x12f), region = 81 }
 0x123   : > { %v407_v25 = vpop.f32.mrf.mxu0 }
 0x124   : > { %426 = vst [vmem:[#allocation2 + $0x8] sm:$0xff] %v422_v24  ;;  %v420_v26 = vadd.f32 %v407_v25, %v287_v23 }
 0x126   : > { %424 = vst [vmem:[#allocation2] sm:$0xff] %v420_v26 }
 0x127   : > { %v433_v29 = vld [vmem:[#allocation2 + $0x18] sm:$0xff] }
 0x128   : > { %437 = vst [vmem:[%s887_s2 + $0x10] sm:$0xff] %v433_v29 }
 0x129   : > { %v431_v27 = vld [vmem:[#allocation2 + $0x10] sm:$0xff] }
 0x12a   : > { %435 = vst [vmem:[%s887_s2] sm:$0xff] %v431_v27 }
 0x12b   : > { %v434_v30 = vld [vmem:[#allocation2 + $0x8] sm:$0xff] }
 0x12c   : > { %438 = vst [vmem:[%s887_s2 + $0x18] sm:$0xff] %v434_v30 }
 0x12d   : > { %v432_v28 = vld [vmem:[#allocation2] sm:$0xff] }
 0x12e   : > { %436 = vst [vmem:[%s887_s2 + $0x8] sm:$0xff] %v432_v28 }
 0x12f PF: > { %s15_s14 = sadd.s32 1, %s744_s14   ;;  %s890_s9 = smov %s728_s10 }
 0x130   : > { %p12_p7 = scmp.ge.s32.totalorder %s15_s14, 7   ;;  %s891_s10 = smov %s732_s11 }
 0x131   : > { %s892_s11 = smov %s813_s21  ;;  %s893_s12 = smov %s740_s13 }
 0x132   : > { %s894_s13 = smov %s896_s16  ;;  %14 = sbr.rel (!%p12_p7) target bundleno = 4 (0x4), region = 125 }
 0x137   :  { %467 = vsyncpa [#allocation5], 1 }
 0x138   :  { %469 = vsyncpa [#allocation5 + $0x1], 1 }

// kernel: _lambda_.62
= control target key start
LH: loop header
LB: loop body
LE: loop exit
PB: predicated region body
PF: predicated region fallthrough
CT: control target
= control target key end

     0   :  { %vm14_vm0 = vcmask 516096   ;;  %vm22_vm1 = vcmask 523264   ;;  %v68_v0 = vmov 0.0   ;;  %s126_s0 = inlined_call_operand.vmem [shape: f32[32,64], index: 0, kind: input, shape index: {}]   ;;  %s127_s1 = inlined_call_operand.vmem [shape: f32[1,64], index: 1, kind: output, shape index: {0}]   ;;  %s128_s2 = inlined_call_operand.vmem [shape: f32[1,64], index: 2, kind: output, shape index: {1}]  }
   0x1   :  { %15 = vst.msk [vmem:[%s127_s1] sm:$0x1] %vm14_vm0, %v68_v0  ;;  %v17_v1 = vld [vmem:[%s126_s0] sm:$0xff]  ;;  %v18_v2 = vld [vmem:[%s126_s0 + $0x8] sm:$0xff]  ;;  %v19_v3 = vld [vmem:[%s126_s0 + $0x10] sm:$0xff] }
   0x2   :  { %16 = vst.msk [vmem:[%s128_s2] sm:$0x1] %vm14_vm0, %v68_v0  ;;  %v20_v4 = vld [vmem:[%s126_s0 + $0x18] sm:$0xff]  ;;  %v23_v5 = vsel %vm22_vm1, %v17_v1, 0.0  ;;  %v24_v6 = vsel %vm22_vm1, %v18_v2, 0.0  ;;  %v26_v7 = vsel %vm22_vm1, %v19_v3, 0.0  ;;  %v40_v8 = vmul.f32 %v17_v1, %v17_v1 }
   0x3   :  { %v25_v9 = vadd.f32 %v24_v6, %v23_v5  ;;  %v41_v10 = vmul.f32 %v18_v2, %v18_v2  ;;  %v42_v11 = vmul.f32 %v19_v3, %v19_v3  ;;  %v28_v12 = vsel %vm22_vm1, %v20_v4, 0.0 }
   0x4   :  { %v43_v13 = vmul.f32 %v20_v4, %v20_v4  ;;  %v44_v14 = vsel %vm22_vm1, %v40_v8, 0.0 }
   0x5   :  { %v27_v15 = vadd.f32 %v26_v7, %v25_v9  ;;  %v45_v16 = vsel %vm22_vm1, %v41_v10, 0.0  ;;  %v47_v17 = vsel %vm22_vm1, %v42_v11, 0.0 }
   0x6   :  { %v46_v18 = vadd.f32 %v45_v16, %v44_v14  ;;  %v49_v20 = vsel %vm22_vm1, %v43_v13, 0.0 }
   0x7   :  { %v29_v19 = vadd.f32 %v28_v12, %v27_v15 }
   0x8   :  { %v48_v21 = vadd.f32 %v47_v17, %v46_v18  ;;  %v21_v31 = vld [vmem:[%s127_s1] sm:$0x1] }
   0x9   :  { %v30_v22 = vrot.slane %v29_v19, 4  ;;  %v39_v36 = vld [vmem:[%s128_s2] sm:$0x1] }
   0xa   :  { %v50_v23 = vadd.f32 %v49_v20, %v48_v21 }
   0xb   :  { %v31_v24 = vadd.f32 %v30_v22, %v29_v19 }
   0xc   :  { %v51_v25 = vrot.slane %v50_v23, 4 }
   0xd   :  { %v32_v26 = vrot.slane %v31_v24, 2 }
   0xe   :  { %v52_v27 = vadd.f32 %v51_v25, %v50_v23 }
   0xf   :  { %v33_v28 = vadd.f32 %v32_v26, %v31_v24 }
  0x10   :  { %v53_v29 = vrot.slane %v52_v27, 2 }
  0x11   :  { %v34_v30 = vrot.slane %v33_v28, 1 }
  0x12   :  { %v54_v32 = vadd.f32 %v53_v29, %v52_v27 }
  0x13   :  { %v35_v33 = vadd.f32 %v34_v30, %v33_v28 }
  0x14   :  { %v55_v34 = vrot.slane %v54_v32, 1 }
  0x15   :  { %v36_v35 = vadd.f32 %v35_v33, %v21_v31 }
  0x16   :  { %v56_v37 = vadd.f32 %v55_v34, %v54_v32 }
  0x17   :  { %38 = vst.msk [vmem:[%s127_s1] sm:$0x1] %vm14_vm0, %v36_v35 }
  0x18   :  { %v57_v38 = vadd.f32 %v56_v37, %v39_v36 }
  0x1a   :  { %58 = vst.msk [vmem:[%s128_s2] sm:$0x1] %vm14_vm0, %v57_v38 }

// kernel: _lambda_.66
= control target key start
LH: loop header
LB: loop body
LE: loop exit
PB: predicated region body
PF: predicated region fallthrough
CT: control target
= control target key end

     0   :  { %vm55_vm0 = vcmask 523264   ;;  %s133_s0 = inlined_call_operand.vmem [shape: f32[32,64], index: 0, kind: input, shape index: {}]   ;;  %s134_s1 = inlined_call_operand.vmem [shape: f32[1,64], index: 1, kind: input, shape index: {}]   ;;  %s135_s2 = inlined_call_operand.vmem [shape: f32[1,64], index: 2, kind: input, shape index: {}]   ;;  %s136_s3 = inlined_call_operand.vmem [shape: f32[32,64], index: 3, kind: input, shape index: {}]   ;;  %s137_s4 = inlined_call_operand.vmem [shape: f32[32,64], index: 4, kind: output, shape index: {}]  }
   0x1   :  { %v17_v0 = vld [vmem:[%s133_s0] sm:$0xff]  ;;  %v18_v4 = vld [vmem:[%s133_s0 + $0x8] sm:$0xff]  ;;  %v19_v7 = vld [vmem:[%s133_s0 + $0x10] sm:$0xff] }
   0x2   :  { %v64_v1 = vld [vmem:[%s134_s1] ss:$0 sm:$0xff]  ;;  %v20_v8 = vld [vmem:[%s133_s0 + $0x18] sm:$0xff]  ;;  %v44_v10 = vld [vmem:[%s136_s3 + $0x8] sm:$0xff] }
   0x3   :  { %v65_v2 = vld [vmem:[%s135_s2] ss:$0 sm:$0xff]  ;;  %v28_v3 = vmul.f32 %v64_v1, %v17_v0  ;;  %v29_v6 = vmul.f32 %v64_v1, %v18_v4  ;;  %v30_v11 = vmul.f32 %v64_v1, %v19_v7  ;;  %v31_v12 = vmul.f32 %v64_v1, %v20_v8  ;;  %v45_v14 = vld [vmem:[%s136_s3 + $0x10] sm:$0xff]  ;;  %v46_v15 = vld [vmem:[%s136_s3 + $0x18] sm:$0xff] }
   0x4   :  { %v43_v5 = vld [vmem:[%s136_s3] sm:$0xff] }
   0x5   :  { %v39_v9 = vadd.f32 %v65_v2, %v28_v3  ;;  %v40_v13 = vadd.f32 %v65_v2, %v29_v6  ;;  %v41_v17 = vadd.f32 %v65_v2, %v30_v11  ;;  %v42_v18 = vadd.f32 %v65_v2, %v31_v12 }
   0x7   :  { %v47_v16 = vadd.f32 %v43_v5, %v39_v9  ;;  %v48_v19 = vadd.f32 %v44_v10, %v40_v13  ;;  %v49_v21 = vadd.f32 %v45_v14, %v41_v17  ;;  %v50_v22 = vadd.f32 %v46_v15, %v42_v18 }
   0x9   :  { %v51_v20 = vmax.f32 %v47_v16, 0.0  ;;  %v52_v23 = vmax.f32 %v48_v19, 0.0  ;;  %v53_v24 = vmax.f32 %v49_v21, 0.0  ;;  %v54_v25 = vmax.f32 %v50_v22, 0.0 }
   0xb   :  { %56 = vst.msk [vmem:[%s137_s4] sm:$0xff] %vm55_vm0, %v51_v20  ;;  %57 = vst.msk [vmem:[%s137_s4 + $0x8] sm:$0xff] %vm55_vm0, %v52_v23 }
   0xc   :  { %58 = vst.msk [vmem:[%s137_s4 + $0x10] sm:$0xff] %vm55_vm0, %v53_v24  ;;  %59 = vst.msk [vmem:[%s137_s4 + $0x18] sm:$0xff] %vm55_vm0, %v54_v25 }

// kernel: _lambda_.63
= control target key start
LH: loop header
LB: loop body
LE: loop exit
PB: predicated region body
PF: predicated region fallthrough
CT: control target
= control target key end

     0   :  { %vm44_vm0 = vcmask 523264   ;;  %s105_s0 = inlined_call_operand.vmem [shape: f32[32,64], index: 0, kind: input, shape index: {}]   ;;  %s106_s1 = inlined_call_operand.vmem [shape: f32[1,64], index: 1, kind: input, shape index: {}]   ;;  %s107_s2 = inlined_call_operand.vmem [shape: f32[1,64], index: 2, kind: input, shape index: {}]   ;;  %s108_s3 = inlined_call_operand.vmem [shape: f32[32,64], index: 3, kind: output, shape index: {}]  }
   0x1   :  { %v14_v0 = vld [vmem:[%s105_s0] sm:$0xff]  ;;  %v15_v4 = vld [vmem:[%s105_s0 + $0x8] sm:$0xff]  ;;  %v16_v5 = vld [vmem:[%s105_s0 + $0x10] sm:$0xff] }
   0x2   :  { %v53_v1 = vld [vmem:[%s106_s1] ss:$0 sm:$0xff]  ;;  %v17_v6 = vld [vmem:[%s105_s0 + $0x18] sm:$0xff] }
   0x3   :  { %v54_v2 = vld [vmem:[%s107_s2] ss:$0 sm:$0xff]  ;;  %v25_v3 = vmul.f32 %v53_v1, %v14_v0  ;;  %v26_v7 = vmul.f32 %v53_v1, %v15_v4  ;;  %v27_v8 = vmul.f32 %v53_v1, %v16_v5  ;;  %v28_v9 = vmul.f32 %v53_v1, %v17_v6 }
   0x5   :  { %v36_v10 = vadd.f32 %v54_v2, %v25_v3  ;;  %v37_v11 = vadd.f32 %v54_v2, %v26_v7  ;;  %v38_v12 = vadd.f32 %v54_v2, %v27_v8  ;;  %v39_v13 = vadd.f32 %v54_v2, %v28_v9 }
   0x7   :  { %v40_v14 = vmax.f32 %v36_v10, 0.0  ;;  %v41_v15 = vmax.f32 %v37_v11, 0.0  ;;  %v42_v16 = vmax.f32 %v38_v12, 0.0  ;;  %v43_v17 = vmax.f32 %v39_v13, 0.0 }
   0x9   :  { %45 = vst.msk [vmem:[%s108_s3] sm:$0xff] %vm44_vm0, %v40_v14  ;;  %46 = vst.msk [vmem:[%s108_s3 + $0x8] sm:$0xff] %vm44_vm0, %v41_v15 }
   0xa   :  { %47 = vst.msk [vmem:[%s108_s3 + $0x10] sm:$0xff] %vm44_vm0, %v42_v16  ;;  %48 = vst.msk [vmem:[%s108_s3 + $0x18] sm:$0xff] %vm44_vm0, %v43_v17 }

// kernel: _lambda_.67
= control target key start
LH: loop header
LB: loop body
LE: loop exit
PB: predicated region body
PF: predicated region fallthrough
CT: control target
= control target key end

     0   :  { %s688_s9 = smov 0   ;;  %s690_s10 = smov 0   ;;  %s784_s0 = inlined_call_operand.vmem [shape: bf16[32,640], index: 0, kind: input, shape index: {}]   ;;  %s785_s1 = inlined_call_operand.vmem [shape: bf16[640,128], index: 1, kind: input, shape index: {}]   ;;  %s786_s2 = inlined_call_operand.vmem [shape: f32[32,128], index: 2, kind: output, shape index: {}]  }
   0x1   :  { %s692_s11 = smov 0   ;;  %s694_s12 = smov 0  }
   0x2   :  { %s696_s13 = smov 0  }
   0x3 LB: > { %s24_s14 = sadd.s32 1, %s666_s12  ;;  %p47_p1 = scmp.ne.s32.totalorder %s658_s10, %s654_s9  ;;  %s670_s13 = sphi %s696_s13, %s12_s13   ;;  %s666_s12 = sphi %s694_s12, %s790_s12   ;;  %s662_s11 = sphi %s692_s11, %s789_s11   ;;  %s658_s10 = sphi %s690_s10, %s788_s10   ;;  %s654_s9 = sphi %s688_s9, %s787_s9  }
   0x4   : > { %p25_p0 = scmp.ge.s32.totalorder %s24_s14, 5  ;;  %p48_p2 = scmp.eq.s32.totalorder %s670_s13, 0 }
   0x5   : > { %s40_s16 = sadd.s32 1, %s658_s10  ;;  %p528_p5 = scmp.ge.s32.totalorder %s670_s13, 5 }
   0x6   : > { %s792_s14 = smov (%p25_p0, %s24_s14), 0  ;;  %p49_p3 = por %p48_p2, %p47_p1 }
   0x7   : > { %s36_s15 = ssub.s32 %s666_s12, %s792_s14  ;;  %129 = sbr.rel (%p528_p5) target bundleno = 18 (0x12), region = 16 }
   0x8   : > { %p38_p4 = scmp.eq.s32.totalorder %s36_s15, 0 }
   0xa   : > { %s723_s17 = scalar_select %p38_p4, %s658_s10, %s40_s16  }
   0xc   : > { %132 = sbr.rel (!%p49_p3) target bundleno = 18 (0x12), region = 20  ;;  %s134_s18 = sand.u32 (%p49_p3), 1, %s658_s10  }
   0xd   : > { %s530_s19 = sshll.u32 (%p49_p3), %s666_s12, 2  ;;  %s529_s20 = sshll.u32 (%p49_p3), %s134_s18, 4 }
   0xe   : > { %s141_s23 = scalar_lea.vmem (%p49_p3), %s784_s0, %s530_s19  ;;  %s136_s24 = scalar_lea.vmem (%p49_p3), [#allocation3], %s529_s20 }
   0xf   : > { %v158_v0 = vld [vmem:[%s141_s23] sm:$0xf] (%p49_p3)  ;;  %v160_v1 = vld [vmem:[%s141_s23 + $0x14] sm:$0xf] (%p49_p3)  ;;  %v162_v2 = vld [vmem:[%s141_s23 + $0x28] sm:$0xf] (%p49_p3) }
  0x10   : > { %159 = vst [vmem:[%s136_s24] sm:$0xf] (%p49_p3), %v158_v0  ;;  %161 = vst [vmem:[%s136_s24 + $0x4] sm:$0xf] (%p49_p3), %v160_v1  ;;  %v164_v3 = vld [vmem:[%s141_s23 + $0x3c] sm:$0xf] (%p49_p3) }
  0x11   : > { %163 = vst [vmem:[%s136_s24 + $0x8] sm:$0xf] %v162_v2  ;;  %165 = vst [vmem:[%s136_s24 + $0xc] sm:$0xf] %v164_v3 }
  0x12 PF: > { %p531_p6 = scmp.ge.s32.totalorder %s670_s13, 1  ;;  %p208_p7 = scmp.lt.s32.totalorder %s670_s13, 6 }
  0x14   : > { %p209_p8 = pnand %p531_p6, %p208_p7 }
  0x15   : > { %s215_s25 = sand.u32 (!%p209_p8), 1, %s654_s9   ;;  %s533_s26 = sshll.u32 (!%p209_p8), %s662_s11, 4 }
  0x16   : > { %212 = sbr.rel (%p209_p8) target bundleno = 278 (0x116), region = 65  ;;  %s735_s27 = sshll.u32 (!%p209_p8), %s215_s25, 4 }
  0x17   : > { %p249_p9 = scmp.lt.s32.totalorder (!%p209_p8), %s533_s26, 79  ;;  %s217_s4 = scalar_lea.vmem (!%p209_p8), [#allocation3], %s735_s27 }
  0x18   : > { %p535_p10 = scmp.ne.s32.totalorder (!%p209_p8), %s662_s11, 0 }
  0x1b   : > { %s794_s26 = smov (!%p249_p9, %s533_s26), 79  ;;  %270 = sbr.rel (%p535_p10) target bundleno = 35 (0x23), region = 73 }
  0x1c   : > { %s534_s28 = sshll.u32 %s794_s26, 2 }
  0x1d   : > { %s740_s3 = scalar_lea.vmem %s785_s1, %s534_s28 }
  0x20   : > { %v672_v4 = vmov 0.0  }
  0x21   : > { %271 = vst [vmem:[#allocation2 + $0x10] sm:$0xff] %v672_v4  ;;  %272 = vst [vmem:[#allocation2] sm:$0xff] %v672_v4 }
  0x22   : > { %273 = vst [vmem:[#allocation2 + $0x18] sm:$0xff] %v672_v4  ;;  %274 = vst [vmem:[#allocation2 + $0x8] sm:$0xff] %v672_v4 }
  0x23 PF: > { %v622_v5 = vld [vmem:[%s740_s3 + $0x38] sm:$0xff]   ;;  %v623_v6 = vld [vmem:[%s740_s3 + $0x30] sm:$0xff]   ;;  %v624_v7 = vld [vmem:[%s740_s3 + $0x28] sm:$0xff]   ;;  %p546_p11 = scmp.ne.s32.totalorder %s662_s11, 4 }
  0x24   : > { %561 = vmatprep.subr.bf16.mxu0 %v622_v5  ;;  %v625_v8 = vld [vmem:[%s740_s3 + $0x20] sm:$0xff]   ;;  %v626_v10 = vld [vmem:[%s740_s3 + $0x18] sm:$0xff]   ;;  %v627_v11 = vld [vmem:[%s740_s3 + $0x10] sm:$0xff]  }
  0x25   : > { %562 = vmatpush3.bf16.msra.mxu0 %v622_v5  ;;  %v630_v9 = vld [vmem:[%s217_s4] sm:$0xff]   ;;  %v628_v12 = vld [vmem:[%s740_s3 + $0x8] sm:$0xff]  }
  0x26   : > { %563 = vmatprep.subr.bf16.mxu0 %v623_v6  ;;  %577 = vmatprep.mubr.bf16.mxu0 %v630_v9  ;;  %v629_v13 = vld [vmem:[%s740_s3] sm:$0xff]   ;;  %v631_v14 = vld [vmem:[%s217_s4 + $0x8] sm:$0xff]  }
  0x28   : > { %v275_v17 = vld [vmem:[#allocation2 + $0x10] sm:$0xff]  ;;  %v276_v23 = vld [vmem:[#allocation2] sm:$0xff] }
  0x29   : > { %564 = vmatpush3.bf16.msra.mxu0 %v623_v6  ;;  %v277_v15 = vld [vmem:[#allocation2 + $0x18] sm:$0xff]  ;;  %v278_v20 = vld [vmem:[#allocation2 + $0x8] sm:$0xff] }
  0x2a   : > { %565 = vmatprep.subr.bf16.mxu0 %v624_v7 }
  0x2d   : > { %566 = vmatpush3.bf16.msra.mxu0 %v624_v7 }
  0x2e   : > { %567 = vmatprep.subr.bf16.mxu0 %v625_v8 }
  0x31   : > { %568 = vmatpush3.bf16.msra.mxu0 %v625_v8 }
  0x32   : > { %569 = vmatprep.subr.bf16.mxu0 %v626_v10 }
  0x35   : > { %570 = vmatpush3.bf16.msra.mxu0 %v626_v10 }
  0x36   : > { %571 = vmatprep.subr.bf16.mxu0 %v627_v11 }
  0x39   : > { %572 = vmatpush3.bf16.msra.mxu0 %v627_v11 }
  0x3a   : > { %573 = vmatprep.subr.bf16.mxu0 %v628_v12 }
  0x3d   : > { %574 = vmatpush3.bf16.msra.mxu0 %v628_v12 }
  0x3e   : > { %575 = vmatprep.subr.bf16.mxu0 %v629_v13 }
  0x41   : > { %576 = vmatpush3.bf16.msra.mxu0 %v629_v13 }
  0x44   : > { %578 = vmatmul.mubr.bf16.vlgmr.msra.gmra.mxu0 %v631_v14 }
 0x104   : > { %v579_v16 = vpop.f32.mrf.mxu0 }
 0x105   : > { %v410_v18 = vadd.f32 %v579_v16, %v277_v15 }
 0x106   : > { %v393_v19 = vpop.f32.mrf.mxu0 }
 0x107   : > { %414 = vst [vmem:[#allocation2 + $0x18] sm:$0xff] %v410_v18  ;;  %v408_v21 = vadd.f32 %v393_v19, %v275_v17 }
 0x108   : > { %v580_v22 = vpop.f32.mrf.mxu0 }
 0x109   : > { %412 = vst [vmem:[#allocation2 + $0x10] sm:$0xff] %v408_v21  ;;  %v411_v24 = vadd.f32 %v580_v22, %v278_v20  ;;  %419 = sbr.rel (%p546_p11) target bundleno = 278 (0x116), region = 77 }
 0x10a   : > { %v396_v25 = vpop.f32.mrf.mxu0 }
 0x10b   : > { %415 = vst [vmem:[#allocation2 + $0x8] sm:$0xff] %v411_v24  ;;  %v409_v26 = vadd.f32 %v396_v25, %v276_v23 }
 0x10d   : > { %413 = vst [vmem:[#allocation2] sm:$0xff] %v409_v26 }
 0x10e   : > { %v422_v29 = vld [vmem:[#allocation2 + $0x18] sm:$0xff] }
 0x10f   : > { %426 = vst [vmem:[%s786_s2 + $0x10] sm:$0xff] %v422_v29 }
 0x110   : > { %v420_v27 = vld [vmem:[#allocation2 + $0x10] sm:$0xff] }
 0x111   : > { %424 = vst [vmem:[%s786_s2] sm:$0xff] %v420_v27 }
 0x112   : > { %v423_v30 = vld [vmem:[#allocation2 + $0x8] sm:$0xff] }
 0x113   : > { %427 = vst [vmem:[%s786_s2 + $0x18] sm:$0xff] %v423_v30 }
 0x114   : > { %v421_v28 = vld [vmem:[#allocation2] sm:$0xff] }
 0x115   : > { %425 = vst [vmem:[%s786_s2 + $0x8] sm:$0xff] %v421_v28 }
 0x116 PF: > { %s12_s13 = sadd.s32 1, %s670_s13   ;;  %s787_s9 = smov %s658_s10 }
 0x117   : > { %p9_p12 = scmp.ge.s32.totalorder %s12_s13, 7   ;;  %s788_s10 = smov %s723_s17 }
 0x118   : > { %s789_s11 = smov %s666_s12  ;;  %s790_s12 = smov %s792_s14 }
 0x119   :  { %11 = sbr.rel (!%p9_p12) target bundleno = 3 (0x3), region = 115 }

// kernel: _lambda_.73
= control target key start
LH: loop header
LB: loop body
LE: loop exit
PB: predicated region body
PF: predicated region fallthrough
CT: control target
= control target key end

     0   :  { %s552_s9 = smov 0   ;;  %s554_s10 = smov 0   ;;  %s598_s0 = inlined_call_operand.vmem [shape: bf16[8,640], index: 0, kind: input, shape index: {}]   ;;  %s599_s1 = inlined_call_operand.vmem [shape: bf16[640,128], index: 1, kind: input, shape index: {}]   ;;  %s600_s2 = inlined_call_operand.vmem [shape: f32[8,128], index: 2, kind: output, shape index: {}]  }
   0x1   :  { %s556_s11 = smov 0  }
   0x2 LB: > { %s24_s12 = sadd.s32 1, %s528_s10  ;;  %p429_p0 = scmp.ge.s32.totalorder %s532_s11, 1  ;;  %s532_s11 = sphi %s556_s11, %s12_s11   ;;  %s528_s10 = sphi %s554_s10, %s602_s10   ;;  %s524_s9 = sphi %s552_s9, %s601_s9  }
   0x3   : > { %p25_p1 = scmp.ge.s32.totalorder %s24_s12, 5  ;;  %p154_p2 = scmp.lt.s32.totalorder %s532_s11, 6 }
   0x5   : > { %s604_s12 = smov (%p25_p1, %s24_s12), 0  ;;  %p155_p3 = pnand %p429_p0, %p154_p2 }
   0x6   : > { %p191_p4 = scmp.lt.s32.totalorder (!%p155_p3), %s524_s9, 4  ;;  %s431_s13 = sshll.u32 (!%p155_p3), %s524_s9, 4 }
   0x7   : > { %158 = sbr.rel (%p155_p3) target bundleno = 257 (0x101), region = 28  ;;  %p198_p5 = scmp.lt.s32.totalorder (!%p155_p3), %s431_s13, 79 }
   0x8   : > { %p433_p6 = scmp.ne.s32.totalorder (!%p155_p3), %s524_s9, 0 }
   0xc   : > { %s192_s14 = scalar_select %p191_p4, %s524_s9, 4 }
   0xd   : > { %s606_s13 = smov (!%p198_p5, %s431_s13), 79  ;;  %217 = sbr.rel (%p433_p6) target bundleno = 20 (0x14), region = 32 }
   0xe   : > { %s430_s15 = sshll.u32 %s192_s14, 2  ;;  %s432_s19 = sshll.u32 %s606_s13, 2 }
   0xf   : > { %s578_s18 = scalar_lea.vmem %s598_s0, %s430_s15  ;;  %s204_s22 = scalar_lea.vmem %s599_s1, %s432_s19 }
  0x12   : > { %v534_v0 = vmov 0.0  }
  0x13   : > { %218 = vst [vmem:[#allocation2] sm:$0xff] %v534_v0 }
  0x14 PF: > { %v502_v1 = vld [vmem:[%s204_s22 + $0x38] sm:$0xff]   ;;  %v535_v2 = vmov 0.0   ;;  %v503_v3 = vld [vmem:[%s204_s22 + $0x30] sm:$0xff]   ;;  %vm536_vm0 = vmmov 0   ;;  %v504_v4 = vld [vmem:[%s204_s22 + $0x28] sm:$0xff]   ;;  %p442_p7 = scmp.ne.s32.totalorder %s524_s9, 4 }
  0x15   : > { %455 = vmatprep.subr.bf16.mxu0 %v535_v2  ;;  %471 = vmatprep.mubr.msk.bf16.mxu0 %vm536_vm0, %v535_v2  ;;  %v505_v5 = vld [vmem:[%s204_s22 + $0x20] sm:$0xff]   ;;  %v506_v6 = vld [vmem:[%s204_s22 + $0x18] sm:$0xff]   ;;  %v507_v7 = vld [vmem:[%s204_s22 + $0x10] sm:$0xff]  }
  0x16   : > { %456 = vmatpush3.bf16.msra.mxu0 %v502_v1  ;;  %v508_v8 = vld [vmem:[%s204_s22 + $0x8] sm:$0xff]   ;;  %v509_v9 = vld [vmem:[%s204_s22] sm:$0xff]  }
  0x17   : > { %457 = vmatprep.subr.bf16.mxu0 %v535_v2  ;;  %v220_v10 = vld [vmem:[%s578_s18] sm:$0xf] }
  0x1a   : > { %458 = vmatpush3.bf16.msra.mxu0 %v503_v3  ;;  %v219_v11 = vld [vmem:[#allocation2] sm:$0xff] }
  0x1b   : > { %459 = vmatprep.subr.bf16.mxu0 %v535_v2 }
  0x1e   : > { %460 = vmatpush3.bf16.msra.mxu0 %v504_v4 }
  0x1f   : > { %461 = vmatprep.subr.bf16.mxu0 %v535_v2 }
  0x22   : > { %462 = vmatpush3.bf16.msra.mxu0 %v505_v5 }
  0x23   : > { %463 = vmatprep.subr.bf16.mxu0 %v535_v2 }
  0x26   : > { %464 = vmatpush3.bf16.msra.mxu0 %v506_v6 }
  0x27   : > { %465 = vmatprep.subr.bf16.mxu0 %v535_v2 }
  0x2a   : > { %466 = vmatpush3.bf16.msra.mxu0 %v507_v7 }
  0x2b   : > { %467 = vmatprep.subr.bf16.mxu0 %v535_v2 }
  0x2e   : > { %468 = vmatpush3.bf16.msra.mxu0 %v508_v8 }
  0x2f   : > { %469 = vmatprep.subr.bf16.mxu0 %v535_v2 }
  0x32   : > { %470 = vmatpush3.bf16.msra.mxu0 %v509_v9 }
  0x35   : > { %472 = vmatmul.mubr.bf16.vlgmr.msra.gmra.mxu0 %v220_v10 }
  0xf5   : > { %v319_v12 = vpop.f32.mrf.mxu0 }
  0xf6   : > { %v325_v13 = vadd.f32 %v319_v12, %v219_v11 }
  0xf7   : > { %v473_v14 = vpop.f32.mrf.mxu0  ;;  %330 = sbr.rel (%p442_p7) target bundleno = 257 (0x101), region = 36 }
  0xf8   : > { %326 = vst [vmem:[#allocation2] sm:$0xff] %v325_v13 }
  0xf9   : > { %v322_v15 = vpop.f32.mrf.mxu0 }
  0xfb   : > { %v474_v16 = vpop.f32.mrf.mxu0 }
  0xff   : > { %v331_v17 = vld [vmem:[#allocation2] sm:$0xff] }
 0x100   : > { %332 = vst [vmem:[%s600_s2] sm:$0xff] %v331_v17 }
 0x101 PF: > { %s12_s11 = sadd.s32 1, %s532_s11   ;;  %s601_s9 = smov %s528_s10 }
 0x102   : > { %p9_p8 = scmp.ge.s32.totalorder %s12_s11, 7   ;;  %s602_s10 = smov %s604_s12 }
 0x104   :  { %11 = sbr.rel (!%p9_p8) target bundleno = 2 (0x2), region = 69 }

// kernel: _lambda_.75
= control target key start
LH: loop header
LB: loop body
LE: loop exit
PB: predicated region body
PF: predicated region fallthrough
CT: control target
= control target key end

     0   :  { %s71_s0 = inlined_call_operand.vmem [shape: f32[8,128], index: 0, kind: input, shape index: {}]   ;;  %s72_s1 = inlined_call_operand.vmem [shape: f32[1,128], index: 1, kind: input, shape index: {}]   ;;  %s73_s2 = inlined_call_operand.vmem [shape: f32[1,128], index: 2, kind: input, shape index: {}]   ;;  %s74_s3 = inlined_call_operand.vmem [shape: f32[8,128], index: 3, kind: output, shape index: {}]  }
   0x1   :  { %v14_v0 = vld [vmem:[%s71_s0] sm:$0xff] }
   0x2   :  { %v37_v1 = vld [vmem:[%s72_s1] ss:$0 sm:$0xff] }
   0x3   :  { %v38_v2 = vld [vmem:[%s73_s2] ss:$0 sm:$0xff]  ;;  %v22_v3 = vmul.f32 %v37_v1, %v14_v0 }
   0x5   :  { %v30_v4 = vadd.f32 %v38_v2, %v22_v3 }
   0x7   :  { %v31_v5 = vmax.f32 %v30_v4, 0.0 }
   0x9   :  { %32 = vst [vmem:[%s74_s3] sm:$0xff] %v31_v5 }

// kernel: _lambda_.74
= control target key start
LH: loop header
LB: loop body
LE: loop exit
PB: predicated region body
PF: predicated region fallthrough
CT: control target
= control target key end

     0   :  { %v45_v0 = vmov 0.0   ;;  %s82_s1 = inlined_call_operand.vmem [shape: f32[1,128], index: 1, kind: output, shape index: {0}]   ;;  %s83_s2 = inlined_call_operand.vmem [shape: f32[1,128], index: 2, kind: output, shape index: {1}]   ;;  %s84_s0 = inlined_call_operand.vmem [shape: f32[8,128], index: 0, kind: input, shape index: {}]  }
   0x1   :  { %14 = vst [vmem:[%s82_s1] sm:$0x1] %v45_v0  ;;  %15 = vst [vmem:[%s83_s2] sm:$0x1] %v45_v0  ;;  %v16_v1 = vld [vmem:[%s84_s0] sm:$0xff] }
   0x2   :  { %v18_v2 = vrot.slane %v16_v1, 4  ;;  %v27_v3 = vmul.f32 %v16_v1, %v16_v1 }
   0x4   :  { %v19_v4 = vadd.f32 %v18_v2, %v16_v1  ;;  %v28_v5 = vrot.slane %v27_v3, 4 }
   0x6   :  { %v20_v6 = vrot.slane %v19_v4, 2  ;;  %v29_v7 = vadd.f32 %v28_v5, %v27_v3 }
   0x8   :  { %v21_v8 = vadd.f32 %v20_v6, %v19_v4  ;;  %v30_v9 = vrot.slane %v29_v7, 2  ;;  %v17_v12 = vld [vmem:[%s82_s1] sm:$0x1] }
   0x9   :  { %v26_v15 = vld [vmem:[%s83_s2] sm:$0x1] }
   0xa   :  { %v22_v10 = vrot.slane %v21_v8, 1  ;;  %v31_v11 = vadd.f32 %v30_v9, %v29_v7 }
   0xc   :  { %v23_v13 = vadd.f32 %v22_v10, %v21_v8  ;;  %v32_v14 = vrot.slane %v31_v11, 1 }
   0xe   :  { %v24_v16 = vadd.f32 %v23_v13, %v17_v12  ;;  %v33_v17 = vadd.f32 %v32_v14, %v31_v11 }
  0x10   :  { %25 = vst [vmem:[%s82_s1] sm:$0x1] %v24_v16  ;;  %v34_v18 = vadd.f32 %v33_v17, %v26_v15 }
  0x12   :  { %35 = vst [vmem:[%s83_s2] sm:$0x1] %v34_v18 }

// kernel: _lambda_.79
= control target key start
LH: loop header
LB: loop body
LE: loop exit
PB: predicated region body
PF: predicated region fallthrough
CT: control target
= control target key end

     0   :  { %s84_s0 = inlined_call_operand.vmem [shape: f32[8,128], index: 0, kind: input, shape index: {}]   ;;  %s85_s1 = inlined_call_operand.vmem [shape: f32[1,128], index: 1, kind: input, shape index: {}]   ;;  %s86_s2 = inlined_call_operand.vmem [shape: f32[1,128], index: 2, kind: input, shape index: {}]   ;;  %s87_s3 = inlined_call_operand.vmem [shape: f32[8,128], index: 3, kind: input, shape index: {}]   ;;  %s88_s4 = inlined_call_operand.vmem [shape: f32[8,128], index: 4, kind: output, shape index: {}]  }
   0x1   :  { %v17_v0 = vld [vmem:[%s84_s0] sm:$0xff] }
   0x2   :  { %v42_v1 = vld [vmem:[%s85_s1] ss:$0 sm:$0xff] }
   0x3   :  { %v43_v2 = vld [vmem:[%s86_s2] ss:$0 sm:$0xff]  ;;  %v25_v3 = vmul.f32 %v42_v1, %v17_v0 }
   0x4   :  { %v34_v4 = vld [vmem:[%s87_s3] sm:$0xff] }
   0x5   :  { %v33_v5 = vadd.f32 %v43_v2, %v25_v3 }
   0x7   :  { %v35_v6 = vadd.f32 %v34_v4, %v33_v5 }
   0x9   :  { %v36_v7 = vmax.f32 %v35_v6, 0.0 }
   0xb   :  { %37 = vst [vmem:[%s88_s4] sm:$0xff] %v36_v7 }

// kernel: _lambda_.77
= control target key start
LH: loop header
LB: loop body
LE: loop exit
PB: predicated region body
PF: predicated region fallthrough
CT: control target
= control target key end

     0   :  { %s620_s12 = smov 0   ;;  %s622_s13 = smov 0   ;;  %s669_s0 = inlined_call_operand.vmem [shape: bf16[8,640], index: 0, kind: input, shape index: {}]   ;;  %s670_s1 = inlined_call_operand.vmem [shape: bf16[640,128], index: 1, kind: input, shape index: {}]   ;;  %s671_s2 = inlined_call_operand.vmem [shape: f32[1,128], index: 2, kind: input, shape index: {}]   ;;  %s672_s3 = inlined_call_operand.vmem [shape: f32[8,128], index: 3, kind: output, shape index: {}]  }
   0x1   :  { %s624_s14 = smov 0  }
   0x2 LB: > { %s25_s15 = sadd.s32 1, %s591_s13  ;;  %p491_p0 = scmp.ge.s32.totalorder %s595_s14, 1  ;;  %s595_s14 = sphi %s624_s14, %s13_s14   ;;  %s591_s13 = sphi %s622_s13, %s674_s13   ;;  %s587_s12 = sphi %s620_s12, %s673_s12  }
   0x3   : > { %p26_p1 = scmp.ge.s32.totalorder %s25_s15, 5  ;;  %p187_p2 = scmp.lt.s32.totalorder %s595_s14, 6 }
   0x5   : > { %s676_s15 = smov (%p26_p1, %s25_s15), 0  ;;  %p188_p3 = pnand %p491_p0, %p187_p2 }
   0x6   : > { %p229_p4 = scmp.lt.s32.totalorder (!%p188_p3), %s587_s12, 4  ;;  %s493_s16 = sshll.u32 (!%p188_p3), %s587_s12, 4 }
   0x7   : > { %191 = sbr.rel (%p188_p3) target bundleno = 259 (0x103), region = 32  ;;  %p236_p5 = scmp.lt.s32.totalorder (!%p188_p3), %s493_s16, 79 }
   0x8   : > { %p495_p6 = scmp.ne.s32.totalorder (!%p188_p3), %s587_s12, 0 }
   0xc   : > { %s230_s17 = scalar_select %p229_p4, %s587_s12, 4 }
   0xd   : > { %s678_s16 = smov (!%p236_p5, %s493_s16), 79  ;;  %258 = sbr.rel (%p495_p6) target bundleno = 20 (0x14), region = 36 }
   0xe   : > { %s492_s18 = sshll.u32 %s230_s17, 2  ;;  %s494_s22 = sshll.u32 %s678_s16, 2 }
   0xf   : > { %s646_s21 = scalar_lea.vmem %s669_s0, %s492_s18  ;;  %s242_s25 = scalar_lea.vmem %s670_s1, %s494_s22 }
  0x12   : > { %v597_v0 = vmov 0.0  }
  0x13   : > { %259 = vst [vmem:[#allocation2] sm:$0xff] %v597_v0 }
  0x14 PF: > { %v565_v1 = vld [vmem:[%s242_s25 + $0x38] sm:$0xff]   ;;  %v598_v2 = vmov 0.0   ;;  %v566_v3 = vld [vmem:[%s242_s25 + $0x30] sm:$0xff]   ;;  %vm599_vm0 = vmmov 0   ;;  %v567_v4 = vld [vmem:[%s242_s25 + $0x28] sm:$0xff]   ;;  %p504_p7 = scmp.ne.s32.totalorder %s587_s12, 4 }
  0x15   : > { %518 = vmatprep.subr.bf16.mxu0 %v598_v2  ;;  %534 = vmatprep.mubr.msk.bf16.mxu0 %vm599_vm0, %v598_v2  ;;  %v568_v5 = vld [vmem:[%s242_s25 + $0x20] sm:$0xff]   ;;  %v569_v6 = vld [vmem:[%s242_s25 + $0x18] sm:$0xff]   ;;  %v570_v7 = vld [vmem:[%s242_s25 + $0x10] sm:$0xff]  }
  0x16   : > { %519 = vmatpush3.bf16.msra.mxu0 %v565_v1  ;;  %v571_v8 = vld [vmem:[%s242_s25 + $0x8] sm:$0xff]   ;;  %v572_v9 = vld [vmem:[%s242_s25] sm:$0xff]  }
  0x17   : > { %520 = vmatprep.subr.bf16.mxu0 %v598_v2  ;;  %v261_v10 = vld [vmem:[%s646_s21] sm:$0xf] }
  0x1a   : > { %521 = vmatpush3.bf16.msra.mxu0 %v566_v3  ;;  %v260_v11 = vld [vmem:[#allocation2] sm:$0xff] }
  0x1b   : > { %522 = vmatprep.subr.bf16.mxu0 %v598_v2 }
  0x1e   : > { %523 = vmatpush3.bf16.msra.mxu0 %v567_v4 }
  0x1f   : > { %524 = vmatprep.subr.bf16.mxu0 %v598_v2 }
  0x22   : > { %525 = vmatpush3.bf16.msra.mxu0 %v568_v5 }
  0x23   : > { %526 = vmatprep.subr.bf16.mxu0 %v598_v2 }
  0x26   : > { %527 = vmatpush3.bf16.msra.mxu0 %v569_v6 }
  0x27   : > { %528 = vmatprep.subr.bf16.mxu0 %v598_v2 }
  0x2a   : > { %529 = vmatpush3.bf16.msra.mxu0 %v570_v7 }
  0x2b   : > { %530 = vmatprep.subr.bf16.mxu0 %v598_v2 }
  0x2e   : > { %531 = vmatpush3.bf16.msra.mxu0 %v571_v8 }
  0x2f   : > { %532 = vmatprep.subr.bf16.mxu0 %v598_v2 }
  0x32   : > { %533 = vmatpush3.bf16.msra.mxu0 %v572_v9 }
  0x35   : > { %535 = vmatmul.mubr.bf16.vlgmr.msra.gmra.mxu0 %v261_v10 }
  0xf5   : > { %v360_v12 = vpop.f32.mrf.mxu0 }
  0xf6   : > { %v366_v13 = vadd.f32 %v360_v12, %v260_v11 }
  0xf7   : > { %v536_v14 = vpop.f32.mrf.mxu0  ;;  %371 = sbr.rel (%p504_p7) target bundleno = 259 (0x103), region = 40 }
  0xf8   : > { %367 = vst [vmem:[#allocation2] sm:$0xff] %v366_v13 }
  0xf9   : > { %v363_v15 = vpop.f32.mrf.mxu0 }
  0xfb   : > { %v537_v16 = vpop.f32.mrf.mxu0 }
  0xfc   : > { %v505_v18 = vld [vmem:[%s671_s2] ss:$0 sm:$0xff] }
  0xff   : > { %v372_v17 = vld [vmem:[#allocation2] sm:$0xff] }
 0x100   : > { %v380_v19 = vadd.f32 %v505_v18, %v372_v17 }
 0x102   : > { %381 = vst [vmem:[%s672_s3] sm:$0xff] %v380_v19 }
 0x103 PF: > { %s13_s14 = sadd.s32 1, %s595_s14   ;;  %s673_s12 = smov %s591_s13 }
 0x104   : > { %p10_p8 = scmp.ge.s32.totalorder %s13_s14, 7   ;;  %s674_s13 = smov %s676_s15 }
 0x106   :  { %12 = sbr.rel (!%p10_p8) target bundleno = 2 (0x2), region = 76 }

// kernel: _lambda_.76
= control target key start
LH: loop header
LB: loop body
LE: loop exit
PB: predicated region body
PF: predicated region fallthrough
CT: control target
= control target key end

     0   :  { %s796_s9 = smov 0   ;;  %s798_s10 = smov 0   ;;  %s868_s0 = inlined_call_operand.vmem [shape: bf16[8,1152], index: 0, kind: input, shape index: {}]   ;;  %s869_s1 = inlined_call_operand.vmem [shape: bf16[1152,128], index: 1, kind: input, shape index: {}]   ;;  %s870_s2 = inlined_call_operand.vmem [shape: f32[8,128], index: 2, kind: output, shape index: {}]  }
   0x1   :  { %s800_s11 = smov 0  }
   0x2 LB: > { %s24_s12 = sadd.s32 1, %s772_s10  ;;  %p614_p0 = scmp.ge.s32.totalorder %s776_s11, 1  ;;  %s776_s11 = sphi %s800_s11, %s12_s11   ;;  %s772_s10 = sphi %s798_s10, %s872_s10   ;;  %s768_s9 = sphi %s796_s9, %s871_s9  }
   0x3   : > { %p25_p1 = scmp.ge.s32.totalorder %s24_s12, 3  ;;  %p156_p2 = scmp.lt.s32.totalorder %s776_s11, 4 }
   0x5   : > { %s874_s12 = smov (%p25_p1, %s24_s12), 0  ;;  %p157_p3 = pnand %p614_p0, %p156_p2 }
   0x6   : > { %s192_s13 = smul.u32 (!%p157_p3), 3, %s768_s9  ;;  %p617_p6 = scmp.ne.s32.totalorder (!%p157_p3), %s768_s9, 0 }
   0x7   : > { %160 = sbr.rel (%p157_p3) target bundleno = 266 (0x10a), region = 28 }
   0x8   : > { %s202_s14 = smul.u32 (!%p157_p3), 48, %s768_s9  ;;  %p195_p4 = scmp.lt.s32.totalorder (!%p157_p3), %s192_s13, 8 }
   0xa   : > { %p203_p5 = scmp.lt.s32.totalorder (!%p157_p3), %s202_s14, 143 }
   0xc   : > { %s876_s13 = smov (!%p195_p4, %s192_s13), 8  ;;  %s878_s14 = smov (!%p203_p5, %s202_s14), 143 }
   0xd   : > { %s615_s15 = sshll.u32 %s876_s13, 2  ;;  %s616_s19 = sshll.u32 %s878_s14, 2 }
   0xe   : > { %s821_s18 = scalar_lea.vmem %s868_s0, %s615_s15  ;;  %s826_s22 = scalar_lea.vmem %s869_s1, %s616_s19 }
   0xf   : > { %222 = sbr.rel (%p617_p6) target bundleno = 22 (0x16), region = 32 }
  0x14   : > { %v778_v0 = vmov 0.0  }
  0x15   : > { %223 = vst [vmem:[#allocation2] sm:$0xff] %v778_v0 }
  0x16 PF: > { %v727_v1 = vld [vmem:[%s826_s22 + $0x78] sm:$0xff]   ;;  %v779_v2 = vmov 0.0   ;;  %vm780_vm0 = vmmov 0   ;;  %v730_v5 = vld [vmem:[%s826_s22 + $0x70] sm:$0xff]   ;;  %v733_v8 = vld [vmem:[%s826_s22 + $0x68] sm:$0xff]   ;;  %p645_p7 = scmp.ne.s32.totalorder %s768_s9, 2 }
  0x17   : > { %680 = vmatprep.subr.bf16.mxu1 %v779_v2  ;;  %v728_v3 = vld [vmem:[%s826_s22 + $0xb8] sm:$0xff]   ;;  %649 = vmatprep.subr.bf16.mxu0 %v727_v1  ;;  %v731_v6 = vld [vmem:[%s826_s22 + $0xb0] sm:$0xff]   ;;  %v734_v9 = vld [vmem:[%s826_s22 + $0xa8] sm:$0xff]  }
  0x18   : > { %v729_v4 = vld [vmem:[%s826_s22 + $0x38] sm:$0xff]   ;;  %696 = vmatprep.mubr.msk.bf16.mxu1 %vm780_vm0, %v779_v2  ;;  %681 = vmatpush3.bf16.msra.mxu1 %v728_v3  ;;  %v732_v7 = vld [vmem:[%s826_s22 + $0x30] sm:$0xff]   ;;  %v735_v10 = vld [vmem:[%s826_s22 + $0x28] sm:$0xff]  }
  0x19   : > { %650 = vmatpush3.bf16.msra.mxu0 %v729_v4  ;;  %682 = vmatprep.subr.bf16.mxu1 %v779_v2  ;;  %v736_v11 = vld [vmem:[%s826_s22 + $0x60] sm:$0xff]   ;;  %v739_v14 = vld [vmem:[%s826_s22 + $0x58] sm:$0xff]   ;;  %v742_v17 = vld [vmem:[%s826_s22 + $0x50] sm:$0xff]  }
  0x1a   : > { %651 = vmatprep.subr.bf16.mxu0 %v730_v5  ;;  %v737_v12 = vld [vmem:[%s826_s22 + $0xa0] sm:$0xff]   ;;  %v740_v15 = vld [vmem:[%s826_s22 + $0x98] sm:$0xff]   ;;  %v743_v18 = vld [vmem:[%s826_s22 + $0x90] sm:$0xff]  }
  0x1b   : > { %v738_v13 = vld [vmem:[%s826_s22 + $0x20] sm:$0xff]   ;;  %v741_v16 = vld [vmem:[%s826_s22 + $0x18] sm:$0xff]   ;;  %v744_v19 = vld [vmem:[%s826_s22 + $0x10] sm:$0xff]  }
  0x1c   : > { %683 = vmatpush3.bf16.msra.mxu1 %v731_v6  ;;  %v745_v20 = vld [vmem:[%s826_s22 + $0x48] sm:$0xff]   ;;  %v225_v23 = vld [vmem:[%s821_s18] sm:$0xff] }
  0x1d   : > { %652 = vmatpush3.bf16.msra.mxu0 %v732_v7  ;;  %684 = vmatprep.subr.bf16.mxu1 %v779_v2  ;;  %v746_v21 = vld [vmem:[%s826_s22 + $0x88] sm:$0xff]   ;;  %v748_v24 = vld [vmem:[%s826_s22 + $0x40] sm:$0xff]   ;;  %v619_v25 = vcombine.high %v225_v23, %v225_v23  ;;  %v618_v29 = vcombine.low %v225_v23, %v225_v23 }
  0x1e   : > { %653 = vmatprep.subr.bf16.mxu0 %v733_v8  ;;  %v747_v22 = vld [vmem:[%s826_s22 + $0x8] sm:$0xff]   ;;  %v749_v26 = vld [vmem:[%s826_s22 + $0x80] sm:$0xff]  }
  0x1f   : > { %462 = vmatprep.mubr.bf16.mxu0 %v619_v25  ;;  %v750_v27 = vld [vmem:[%s826_s22] sm:$0xff]   ;;  %v753_v28 = vld [vmem:[%s821_s18 + $0x8] ss:$0 sps:$4 sm:$0xff]  }
  0x20   : > { %685 = vmatpush3.bf16.msra.mxu1 %v734_v9  ;;  %v224_v36 = vld [vmem:[#allocation2] sm:$0xff] }
  0x21   : > { %654 = vmatpush3.bf16.msra.mxu0 %v735_v10  ;;  %686 = vmatprep.subr.bf16.mxu1 %v779_v2 }
  0x22   : > { %655 = vmatprep.subr.bf16.mxu0 %v736_v11 }
  0x24   : > { %687 = vmatpush3.bf16.msra.mxu1 %v737_v12 }
  0x25   : > { %656 = vmatpush3.bf16.msra.mxu0 %v738_v13  ;;  %688 = vmatprep.subr.bf16.mxu1 %v779_v2 }
  0x26   : > { %657 = vmatprep.subr.bf16.mxu0 %v739_v14 }
  0x28   : > { %689 = vmatpush3.bf16.msra.mxu1 %v740_v15 }
  0x29   : > { %658 = vmatpush3.bf16.msra.mxu0 %v741_v16  ;;  %690 = vmatprep.subr.bf16.mxu1 %v779_v2 }
  0x2a   : > { %659 = vmatprep.subr.bf16.mxu0 %v742_v17 }
  0x2c   : > { %691 = vmatpush3.bf16.msra.mxu1 %v743_v18 }
  0x2d   : > { %660 = vmatpush3.bf16.msra.mxu0 %v744_v19  ;;  %692 = vmatprep.subr.bf16.mxu1 %v779_v2 }
  0x2e   : > { %661 = vmatprep.subr.bf16.mxu0 %v745_v20 }
  0x30   : > { %693 = vmatpush3.bf16.msra.mxu1 %v746_v21 }
  0x31   : > { %662 = vmatpush3.bf16.msra.mxu0 %v747_v22  ;;  %694 = vmatprep.subr.bf16.mxu1 %v779_v2 }
  0x32   : > { %663 = vmatprep.subr.bf16.mxu0 %v748_v24 }
  0x34   : > { %695 = vmatpush3.bf16.msra.mxu1 %v749_v26 }
  0x35   : > { %664 = vmatpush3.bf16.msra.mxu0 %v750_v27 }
  0x37   : > { %697 = vmatmul.mubr.bf16.vlgmr.msra.gmra.mxu1 %v753_v28 }
  0x38   : > { %463 = vmatmul.mubr.bf16.vlgmr.msra.gmra.mxu0 %v618_v29 }
  0xf7   : > { %v504_v30 = vpop.f32.mrf.mxu1 }
  0xf8   : > { %v665_v31 = vpop.f32.mrf.mxu0 }
  0xf9   : > { %v698_v32 = vpop.f32.mrf.mxu1 }
  0xfa   : > { %v666_v33 = vpop.f32.mrf.mxu0 }
  0xfb   : > { %v667_v34 = vadd.f32 %v666_v33, %v665_v31  ;;  %v507_v35 = vpop.f32.mrf.mxu1 }
  0xfc   : > { %v668_v37 = vpop.f32.mrf.mxu0 }
  0xfd   : > { %v505_v38 = vadd.f32 %v667_v34, %v504_v30  ;;  %v699_v39 = vpop.f32.mrf.mxu1  ;;  %515 = sbr.rel (%p645_p7) target bundleno = 266 (0x10a), region = 36 }
  0xfe   : > { %v669_v40 = vpop.f32.mrf.mxu0 }
  0xff   : > { %v510_v41 = vadd.f32 %v505_v38, %v224_v36 }
 0x101   : > { %511 = vst [vmem:[#allocation2] sm:$0xff] %v510_v41 }
 0x108   : > { %v516_v42 = vld [vmem:[#allocation2] sm:$0xff] }
 0x109   : > { %517 = vst [vmem:[%s870_s2] sm:$0xff] %v516_v42 }
 0x10a PF: > { %s12_s11 = sadd.s32 1, %s776_s11   ;;  %s871_s9 = smov %s772_s10 }
 0x10b   : > { %p9_p8 = scmp.ge.s32.totalorder %s12_s11, 5   ;;  %s872_s10 = smov %s874_s12 }
 0x10d   :  { %11 = sbr.rel (!%p9_p8) target bundleno = 2 (0x2), region = 69 }

// kernel: _lambda_.86
= control target key start
LH: loop header
LB: loop body
LE: loop exit
PB: predicated region body
PF: predicated region fallthrough
CT: control target
= control target key end

     0   :  { %s947_s9 = smov 0   ;;  %s949_s10 = smov 0   ;;  %s1046_s0 = inlined_call_operand.vmem [shape: bf16[8,1152], index: 0, kind: input, shape index: {}]   ;;  %s1047_s1 = inlined_call_operand.vmem [shape: bf16[1152,256], index: 1, kind: input, shape index: {}]   ;;  %s1048_s2 = inlined_call_operand.vmem [shape: f32[8,256], index: 2, kind: output, shape index: {}]  }
   0x1   :  { %s951_s11 = smov 0  }
   0x2 LB: > { %s24_s12 = sadd.s32 1, %s924_s10  ;;  %p743_p0 = scmp.ge.s32.totalorder %s928_s11, 1  ;;  %s928_s11 = sphi %s951_s11, %s12_s11   ;;  %s924_s10 = sphi %s949_s10, %s1050_s10   ;;  %s920_s9 = sphi %s947_s9, %s1049_s9  }
   0x3   : > { %p25_p1 = scmp.ge.s32.totalorder %s24_s12, 3  ;;  %p159_p2 = scmp.lt.s32.totalorder %s928_s11, 4 }
   0x5   : > { %s1052_s12 = smov (%p25_p1, %s24_s12), 0  ;;  %p160_p3 = pnand %p743_p0, %p159_p2 }
   0x6   : > { %s199_s13 = smul.u32 (!%p160_p3), 3, %s920_s9  ;;  %p747_p6 = scmp.ne.s32.totalorder (!%p160_p3), %s920_s9, 0 }
   0x7   : > { %163 = sbr.rel (%p160_p3) target bundleno = 295 (0x127), region = 28 }
   0x8   : > { %s209_s14 = smul.u32 (!%p160_p3), 48, %s920_s9  ;;  %p202_p4 = scmp.lt.s32.totalorder (!%p160_p3), %s199_s13, 8 }
   0xa   : > { %p211_p5 = scmp.lt.s32.totalorder (!%p160_p3), %s209_s14, 143 }
   0xc   : > { %s1054_s13 = smov (!%p202_p4, %s199_s13), 8  ;;  %s1056_s14 = smov (!%p211_p5, %s209_s14), 143 }
   0xd   : > { %s744_s15 = sshll.u32 %s1054_s13, 2  ;;  %s804_s19 = sshll.u32 %s1056_s14, 3 }
   0xe   : > { %s972_s18 = scalar_lea.vmem %s1046_s0, %s744_s15  ;;  %s977_s22 = scalar_lea.vmem %s1047_s1, %s804_s19 }
   0xf   : > { %235 = sbr.rel (%p747_p6) target bundleno = 22 (0x16), region = 32 }
  0x14   : > { %v930_v0 = vmov 0.0  }
  0x15   : > { %236 = vst [vmem:[#allocation2] sm:$0xff] %v930_v0  ;;  %237 = vst [vmem:[#allocation2 + $0x8] sm:$0xff] %v930_v0 }
  0x16 PF: > { %v831_v1 = vld [vmem:[%s977_s22 + $0x74] ss:$8 sps:$4 sm:$0xff]   ;;  %v833_v2 = vld [vmem:[%s977_s22 + $0x70] ss:$8 sps:$4 sm:$0xff]   ;;  %v931_v3 = vmov 0   ;;  %v240_v34 = vld [vmem:[%s972_s18] sm:$0xff] }
  0x17   : > { %614 = vmatprep.mubr.bf16.mxu1 %v931_v3  ;;  %541 = vmatprep.subr.bf16.mxu0 %v831_v1  ;;  %v834_v4 = vld [vmem:[%s977_s22 + $0x64] ss:$8 sps:$4 sm:$0xff]   ;;  %v836_v5 = vld [vmem:[%s977_s22 + $0x60] ss:$8 sps:$4 sm:$0xff]   ;;  %v837_v6 = vld [vmem:[%s977_s22 + $0x54] ss:$8 sps:$4 sm:$0xff]   ;;  %v749_v36 = vcombine.high %v240_v34, %v240_v34  ;;  %v748_v53 = vcombine.low %v240_v34, %v240_v34 }
  0x18   : > { %542 = vmatpush1.bf16.msra.mxu0 %v833_v2  ;;  %v839_v7 = vld [vmem:[%s977_s22 + $0x50] ss:$8 sps:$4 sm:$0xff]   ;;  %v840_v8 = vld [vmem:[%s977_s22 + $0x44] ss:$8 sps:$4 sm:$0xff]   ;;  %v852_v9 = vld [vmem:[%s977_s22 + $0x174] ss:$8 sps:$4 sm:$0xff]  }
  0x19   : > { %543 = vmatprep.subr.bf16.mxu0 %v834_v4  ;;  %v854_v10 = vld [vmem:[%s977_s22 + $0x170] ss:$8 sps:$4 sm:$0xff]   ;;  %v842_v11 = vld [vmem:[%s977_s22 + $0x40] ss:$8 sps:$4 sm:$0xff]   ;;  %v843_v12 = vld [vmem:[%s977_s22 + $0x34] ss:$8 sps:$4 sm:$0xff]   ;;  %582 = vmatprep.subr.bf16.mxu1 %v852_v9 }
  0x1a   : > { %v858_v13 = vld [vmem:[%s977_s22 + $0x164] ss:$8 sps:$4 sm:$0xff]   ;;  %583 = vmatpush1.bf16.msra.mxu1 %v854_v10  ;;  %v860_v14 = vld [vmem:[%s977_s22 + $0x160] ss:$8 sps:$4 sm:$0xff]   ;;  %v845_v15 = vld [vmem:[%s977_s22 + $0x30] ss:$8 sps:$4 sm:$0xff]   ;;  %573 = vmatprep.mubr.bf16.mxu0 %v749_v36 }
  0x1b   : > { %584 = vmatprep.subr.bf16.mxu1 %v858_v13  ;;  %v864_v16 = vld [vmem:[%s977_s22 + $0x154] ss:$8 sps:$4 sm:$0xff]   ;;  %v846_v17 = vld [vmem:[%s977_s22 + $0x24] ss:$8 sps:$4 sm:$0xff]   ;;  %v866_v18 = vld [vmem:[%s977_s22 + $0x150] ss:$8 sps:$4 sm:$0xff]  }
  0x1c   : > { %544 = vmatpush1.bf16.msra.mxu0 %v836_v5  ;;  %v870_v19 = vld [vmem:[%s977_s22 + $0x144] ss:$8 sps:$4 sm:$0xff]   ;;  %v848_v20 = vld [vmem:[%s977_s22 + $0x20] ss:$8 sps:$4 sm:$0xff]   ;;  %v849_v21 = vld [vmem:[%s977_s22 + $0x14] ss:$8 sps:$4 sm:$0xff]  }
  0x1d   : > { %545 = vmatprep.subr.bf16.mxu0 %v837_v6  ;;  %v872_v22 = vld [vmem:[%s977_s22 + $0x140] ss:$8 sps:$4 sm:$0xff]   ;;  %v876_v23 = vld [vmem:[%s977_s22 + $0x134] ss:$8 sps:$4 sm:$0xff]   ;;  %v851_v24 = vld [vmem:[%s977_s22 + $0x10] ss:$8 sps:$4 sm:$0xff]  }
  0x1e   : > { %585 = vmatpush1.bf16.msra.mxu1 %v860_v14  ;;  %v855_v25 = vld [vmem:[%s977_s22 + $0x4] ss:$8 sps:$4 sm:$0xff]   ;;  %v878_v26 = vld [vmem:[%s977_s22 + $0x130] ss:$8 sps:$4 sm:$0xff]   ;;  %v857_v28 = vld [vmem:[%s977_s22] ss:$8 sps:$4 sm:$0xff]  }
  0x1f   : > { %586 = vmatprep.subr.bf16.mxu1 %v864_v16  ;;  %v882_v27 = vld [vmem:[%s977_s22 + $0x124] ss:$8 sps:$4 sm:$0xff]   ;;  %v861_v29 = vld [vmem:[%s977_s22 + $0xf4] ss:$8 sps:$4 sm:$0xff]   ;;  %v884_v30 = vld [vmem:[%s977_s22 + $0x120] ss:$8 sps:$4 sm:$0xff]  }
  0x20   : > { %546 = vmatpush1.bf16.msra.mxu0 %v839_v7  ;;  %v888_v31 = vld [vmem:[%s977_s22 + $0x114] ss:$8 sps:$4 sm:$0xff]   ;;  %v863_v32 = vld [vmem:[%s977_s22 + $0xf0] ss:$8 sps:$4 sm:$0xff]   ;;  %v867_v33 = vld [vmem:[%s977_s22 + $0xe4] ss:$8 sps:$4 sm:$0xff]  }
  0x21   : > { %547 = vmatprep.subr.bf16.mxu0 %v840_v8  ;;  %v890_v35 = vld [vmem:[%s977_s22 + $0x110] ss:$8 sps:$4 sm:$0xff]   ;;  %v894_v37 = vld [vmem:[%s977_s22 + $0x104] ss:$8 sps:$4 sm:$0xff]   ;;  %v869_v38 = vld [vmem:[%s977_s22 + $0xe0] ss:$8 sps:$4 sm:$0xff]  }
  0x22   : > { %587 = vmatpush1.bf16.msra.mxu1 %v866_v18  ;;  %v873_v39 = vld [vmem:[%s977_s22 + $0xd4] ss:$8 sps:$4 sm:$0xff]   ;;  %v896_v40 = vld [vmem:[%s977_s22 + $0x100] ss:$8 sps:$4 sm:$0xff]   ;;  %v875_v41 = vld [vmem:[%s977_s22 + $0xd0] ss:$8 sps:$4 sm:$0xff]  }
  0x23   : > { %588 = vmatprep.subr.bf16.mxu1 %v870_v19  ;;  %v879_v42 = vld [vmem:[%s977_s22 + $0xc4] ss:$8 sps:$4 sm:$0xff]   ;;  %v900_v43 = vld [vmem:[%s972_s18 + $0x8] ss:$0 sps:$4 sm:$0xff]   ;;  %v885_v45 = vld [vmem:[%s977_s22 + $0xb4] ss:$8 sps:$4 sm:$0xff]  }
  0x24   : > { %548 = vmatpush1.bf16.msra.mxu0 %v842_v11  ;;  %v881_v44 = vld [vmem:[%s977_s22 + $0xc0] ss:$8 sps:$4 sm:$0xff]   ;;  %v887_v46 = vld [vmem:[%s977_s22 + $0xb0] ss:$8 sps:$4 sm:$0xff]   ;;  %v891_v47 = vld [vmem:[%s977_s22 + $0xa4] ss:$8 sps:$4 sm:$0xff]  }
  0x25   : > { %549 = vmatprep.subr.bf16.mxu0 %v843_v12  ;;  %v893_v48 = vld [vmem:[%s977_s22 + $0xa0] ss:$8 sps:$4 sm:$0xff]   ;;  %v897_v49 = vld [vmem:[%s977_s22 + $0x94] ss:$8 sps:$4 sm:$0xff]   ;;  %v899_v50 = vld [vmem:[%s977_s22 + $0x90] ss:$8 sps:$4 sm:$0xff]  }
  0x26   : > { %589 = vmatpush1.bf16.msra.mxu1 %v872_v22  ;;  %v901_v51 = vld [vmem:[%s977_s22 + $0x84] ss:$8 sps:$4 sm:$0xff]   ;;  %v903_v52 = vld [vmem:[%s977_s22 + $0x80] ss:$8 sps:$4 sm:$0xff]   ;;  %p799_p7 = scmp.ne.s32.totalorder %s920_s9, 2 }
  0x27   : > { %590 = vmatprep.subr.bf16.mxu1 %v876_v23  ;;  %v238_v58 = vld [vmem:[#allocation2] sm:$0xff]  ;;  %v239_v61 = vld [vmem:[#allocation2 + $0x8] sm:$0xff] }
  0x28   : > { %550 = vmatpush1.bf16.msra.mxu0 %v845_v15 }
  0x29   : > { %551 = vmatprep.subr.bf16.mxu0 %v846_v17 }
  0x2a   : > { %591 = vmatpush1.bf16.msra.mxu1 %v878_v26 }
  0x2b   : > { %592 = vmatprep.subr.bf16.mxu1 %v882_v27 }
  0x2c   : > { %552 = vmatpush1.bf16.msra.mxu0 %v848_v20 }
  0x2d   : > { %553 = vmatprep.subr.bf16.mxu0 %v849_v21 }
  0x2e   : > { %593 = vmatpush1.bf16.msra.mxu1 %v884_v30 }
  0x2f   : > { %594 = vmatprep.subr.bf16.mxu1 %v888_v31 }
  0x30   : > { %554 = vmatpush1.bf16.msra.mxu0 %v851_v24 }
  0x31   : > { %555 = vmatprep.subr.bf16.mxu0 %v855_v25 }
  0x32   : > { %595 = vmatpush1.bf16.msra.mxu1 %v890_v35 }
  0x33   : > { %596 = vmatprep.subr.bf16.mxu1 %v894_v37 }
  0x34   : > { %556 = vmatpush1.bf16.msra.mxu0 %v857_v28 }
  0x35   : > { %557 = vmatprep.subr.bf16.mxu0 %v861_v29 }
  0x36   : > { %597 = vmatpush1.bf16.msra.mxu1 %v896_v40 }
  0x38   : > { %558 = vmatpush2.bf16.msra.mxu0 %v863_v32 }
  0x39   : > { %559 = vmatprep.subr.bf16.mxu0 %v867_v33  ;;  %615 = vmatmul.mubr.bf16.vlgmr.msra.gmra.mxu1 %v900_v43 }
  0x3c   : > { %560 = vmatpush2.bf16.msra.mxu0 %v869_v38 }
  0x3d   : > { %561 = vmatprep.subr.bf16.mxu0 %v873_v39 }
  0x40   : > { %562 = vmatpush2.bf16.msra.mxu0 %v875_v41 }
  0x41   : > { %563 = vmatprep.subr.bf16.mxu0 %v879_v42 }
  0x44   : > { %564 = vmatpush2.bf16.msra.mxu0 %v881_v44 }
  0x45   : > { %565 = vmatprep.subr.bf16.mxu0 %v885_v45 }
  0x48   : > { %566 = vmatpush2.bf16.msra.mxu0 %v887_v46 }
  0x49   : > { %567 = vmatprep.subr.bf16.mxu0 %v891_v47 }
  0x4c   : > { %568 = vmatpush2.bf16.msra.mxu0 %v893_v48 }
  0x4d   : > { %569 = vmatprep.subr.bf16.mxu0 %v897_v49 }
  0x50   : > { %570 = vmatpush2.bf16.msra.mxu0 %v899_v50 }
  0x51   : > { %571 = vmatprep.subr.bf16.mxu0 %v901_v51 }
  0x54   : > { %572 = vmatpush2.bf16.msra.mxu0 %v903_v52 }
  0x57   : > { %574 = vmatmul.mubr.bf16.vlgmr.msra.gmra.mxu0 %v748_v53 }
  0xf9   : > { %v616_v54 = vpop.f32.mrf.mxu1 }
  0xfb   : > { %v618_v55 = vpop.f32.mrf.mxu1 }
  0xfd   : > { %v620_v56 = vpop.f32.mrf.mxu1 }
  0xff   : > { %v621_v57 = vpop.f32.mrf.mxu1 }
 0x117   : > { %v575_v59 = vpop.f32.mrf.mxu0 }
 0x118   : > { %v617_v60 = vadd.f32 %v616_v54, %v575_v59 }
 0x119   : > { %v577_v62 = vpop.f32.mrf.mxu0 }
 0x11a   : > { %v623_v63 = vadd.f32 %v617_v60, %v238_v58  ;;  %v619_v0 = vadd.f32 %v618_v55, %v577_v62  ;;  %630 = sbr.rel (%p799_p7) target bundleno = 295 (0x127), region = 36 }
 0x11b   : > { %v579_v1 = vpop.f32.mrf.mxu0 }
 0x11c   : > { %625 = vst [vmem:[#allocation2] sm:$0xff] %v623_v63  ;;  %v624_v2 = vadd.f32 %v619_v0, %v239_v61 }
 0x11d   : > { %v580_v3 = vpop.f32.mrf.mxu0 }
 0x11e   : > { %626 = vst [vmem:[#allocation2 + $0x8] sm:$0xff] %v624_v2 }
 0x123   : > { %v631_v4 = vld [vmem:[#allocation2] sm:$0xff] }
 0x124   : > { %633 = vst [vmem:[%s1048_s2] sm:$0xff] %v631_v4 }
 0x125   : > { %v632_v5 = vld [vmem:[#allocation2 + $0x8] sm:$0xff] }
 0x126   : > { %634 = vst [vmem:[%s1048_s2 + $0x8] sm:$0xff] %v632_v5 }
 0x127 PF: > { %s12_s11 = sadd.s32 1, %s928_s11   ;;  %s1049_s9 = smov %s924_s10 }
 0x128   : > { %p9_p8 = scmp.ge.s32.totalorder %s12_s11, 5   ;;  %s1050_s10 = smov %s1052_s12 }
 0x12a   :  { %11 = sbr.rel (!%p9_p8) target bundleno = 2 (0x2), region = 69 }

// kernel: _lambda_.87
= control target key start
LH: loop header
LB: loop body
LE: loop exit
PB: predicated region body
PF: predicated region fallthrough
CT: control target
= control target key end

     0   :  { %v14_v0 = vlaneseq  ;;  %v104_v6 = vmov 0.0   ;;  %v105_v11 = vmov 1966171168   ;;  %s157_s0 = inlined_call_operand.vmem [shape: f32[8,256], index: 0, kind: input, shape index: {}]   ;;  %s158_s1 = inlined_call_operand.vmem [shape: f32[1,256], index: 1, kind: output, shape index: {0}]   ;;  %s159_s2 = inlined_call_operand.vmem [shape: f32[1,256], index: 2, kind: output, shape index: {1}]  }
   0x1   :  { %v20_v1 = vld [vmem:[%s157_s0] sm:$0xff]  ;;  %v21_v2 = vld [vmem:[%s157_s0 + $0x8] sm:$0xff]  ;;  %v39_v12 = vunpack.c.l.s4 %v105_v11 }
   0x2   :  { %vm127_vm0 = vcmp.lt.s32.totalorder %v14_v0, 256  ;;  %v23_v4 = vrot.slane %v20_v1, 4  ;;  %v29_v5 = vrot.slane %v21_v2, 4  ;;  %v60_v7 = vmul.f32 %v20_v1, %v20_v1 }
   0x3   :  { %18 = vst.msk [vmem:[%s158_s1] sm:$0x3] %vm127_vm0, %v104_v6  ;;  %19 = vst.msk [vmem:[%s159_s2] sm:$0x3] %vm127_vm0, %v104_v6  ;;  %v61_v8 = vmul.f32 %v21_v2, %v21_v2  ;;  %v40_v21 = vunpack.c.0.s8 %v39_v12  ;;  %v42_v22 = vshrl.u32 %v14_v0, 7 }
   0x4   :  { %v24_v9 = vadd.f32 %v23_v4, %v20_v1  ;;  %v30_v10 = vadd.f32 %v29_v5, %v21_v2  ;;  %v62_v13 = vrot.slane %v60_v7, 4 }
   0x5   :  { %v68_v14 = vrot.slane %v61_v8, 4  ;;  %v43_v31 = vsub.s32 %v40_v21, %v42_v22 }
   0x6   :  { %v25_v15 = vrot.slane %v24_v9, 2  ;;  %v31_v16 = vrot.slane %v30_v10, 2  ;;  %v63_v17 = vadd.f32 %v62_v13, %v60_v7 }
   0x7   :  { %v69_v18 = vadd.f32 %v68_v14, %v61_v8 }
   0x8   :  { %v26_v19 = vadd.f32 %v25_v15, %v24_v9  ;;  %v32_v20 = vadd.f32 %v31_v16, %v30_v10  ;;  %v64_v23 = vrot.slane %v63_v17, 2 }
   0x9   :  { %v70_v24 = vrot.slane %v69_v18, 2 }
   0xa   :  { %v27_v25 = vrot.slane %v26_v19, 1  ;;  %v33_v26 = vrot.slane %v32_v20, 1  ;;  %v65_v27 = vadd.f32 %v64_v23, %v63_v17  ;;  %v22_v38 = vld [vmem:[%s158_s1] sm:$0x3] }
   0xb   :  { %v71_v28 = vadd.f32 %v70_v24, %v69_v18  ;;  %v59_v43 = vld [vmem:[%s159_s2] sm:$0x3] }
   0xc   :  { %v28_v29 = vadd.f32 %v27_v25, %v26_v19  ;;  %v34_v30 = vadd.f32 %v33_v26, %v32_v20  ;;  %v66_v32 = vrot.slane %v65_v27, 1 }
   0xd   :  { %v72_v33 = vrot.slane %v71_v28, 1 }
   0xe   :  { %v37_v34 = vcombine.low %v28_v29, %v34_v30  ;;  %v67_v35 = vadd.f32 %v66_v32, %v65_v27 }
   0xf   :  { %v73_v36 = vadd.f32 %v72_v33, %v71_v28 }
  0x10   :  { %v44_v37 = vrot.slane %v37_v34, %v43_v31 }
  0x11   :  { %v76_v39 = vcombine.low %v67_v35, %v73_v36 }
  0x12   :  { %v51_v40 = vrot.slane %v44_v37, %v43_v31 }
  0x13   :  { %v83_v41 = vrot.slane %v76_v39, %v43_v31 }
  0x14   :  { %v53_v42 = vadd.f32 %v51_v40, %v22_v38 }
  0x15   :  { %v90_v44 = vrot.slane %v83_v41, %v43_v31 }
  0x16   :  { %58 = vst.msk [vmem:[%s158_s1] sm:$0x3] %vm127_vm0, %v53_v42 }
  0x17   :  { %v92_v45 = vadd.f32 %v90_v44, %v59_v43 }
  0x19   :  { %93 = vst.msk [vmem:[%s159_s2] sm:$0x3] %vm127_vm0, %v92_v45 }

// kernel: _lambda_.88
= control target key start
LH: loop header
LB: loop body
LE: loop exit
PB: predicated region body
PF: predicated region fallthrough
CT: control target
= control target key end

     0   :  { %v18_v0 = vlaneseq  ;;  %s90_s1 = inlined_call_operand.vmem [shape: f32[1,256], index: 1, kind: input, shape index: {}]   ;;  %s91_s2 = inlined_call_operand.vmem [shape: f32[1,256], index: 2, kind: input, shape index: {}]   ;;  %s92_s0 = inlined_call_operand.vmem [shape: f32[8,256], index: 0, kind: input, shape index: {}]   ;;  %s93_s3 = inlined_call_operand.vmem [shape: f32[8,256], index: 3, kind: output, shape index: {}]  }
   0x1   :  { %v16_v2 = vld [vmem:[%s90_s1] sm:$0x3]  ;;  %v15_v7 = vld [vmem:[%s92_s0 + $0x8] sm:$0xff] }
   0x2   :  { %v19_v1 = vshrl.u32 %v18_v0, 7  ;;  %v30_v3 = vld [vmem:[%s91_s2] sm:$0x3] }
   0x3   :  { %v14_v6 = vld [vmem:[%s92_s0] sm:$0xff] }
   0x4   :  { %v20_v4 = vsub.s32 0, %v19_v1  ;;  %v24_v5 = vsub.s32 1, %v19_v1 }
   0x6   :  { %v21_v8 = vrot.slane %v16_v2, %v20_v4  ;;  %v35_v9 = vrot.slane %v30_v3, %v20_v4  ;;  %v25_v10 = vrot.slane %v16_v2, %v24_v5  ;;  %v39_v11 = vrot.slane %v30_v3, %v24_v5 }
   0x8   :  { %v28_v12 = vmul.f32 %v21_v8, %v14_v6  ;;  %v29_v13 = vmul.f32 %v25_v10, %v15_v7 }
   0xa   :  { %v42_v14 = vadd.f32 %v35_v9, %v28_v12  ;;  %v43_v15 = vadd.f32 %v39_v11, %v29_v13 }
   0xc   :  { %v44_v16 = vmax.f32 %v42_v14, 0.0  ;;  %v45_v17 = vmax.f32 %v43_v15, 0.0 }
   0xe   :  { %46 = vst [vmem:[%s93_s3] sm:$0xff] %v44_v16  ;;  %47 = vst [vmem:[%s93_s3 + $0x8] sm:$0xff] %v45_v17 }

// kernel: _lambda_.92
= control target key start
LH: loop header
LB: loop body
LE: loop exit
PB: predicated region body
PF: predicated region fallthrough
CT: control target
= control target key end

     0   :  { %v21_v0 = vlaneseq  ;;  %s108_s1 = inlined_call_operand.vmem [shape: f32[1,256], index: 1, kind: input, shape index: {}]   ;;  %s109_s2 = inlined_call_operand.vmem [shape: f32[1,256], index: 2, kind: input, shape index: {}]   ;;  %s110_s0 = inlined_call_operand.vmem [shape: f32[8,256], index: 0, kind: input, shape index: {}]   ;;  %s111_s3 = inlined_call_operand.vmem [shape: f32[8,256], index: 3, kind: input, shape index: {}]   ;;  %s112_s4 = inlined_call_operand.vmem [shape: f32[8,256], index: 4, kind: output, shape index: {}]  }
   0x1   :  { %v19_v2 = vld [vmem:[%s108_s1] sm:$0x3]  ;;  %v18_v7 = vld [vmem:[%s110_s0 + $0x8] sm:$0xff] }
   0x2   :  { %v22_v1 = vshrl.u32 %v21_v0, 7  ;;  %v33_v3 = vld [vmem:[%s109_s2] sm:$0x3]  ;;  %v48_v15 = vld [vmem:[%s111_s3 + $0x8] sm:$0xff] }
   0x3   :  { %v17_v6 = vld [vmem:[%s110_s0] sm:$0xff] }
   0x4   :  { %v23_v4 = vsub.s32 0, %v22_v1  ;;  %v27_v5 = vsub.s32 1, %v22_v1  ;;  %v47_v14 = vld [vmem:[%s111_s3] sm:$0xff] }
   0x6   :  { %v24_v8 = vrot.slane %v19_v2, %v23_v4  ;;  %v38_v9 = vrot.slane %v33_v3, %v23_v4  ;;  %v28_v10 = vrot.slane %v19_v2, %v27_v5  ;;  %v42_v11 = vrot.slane %v33_v3, %v27_v5 }
   0x8   :  { %v31_v12 = vmul.f32 %v24_v8, %v17_v6  ;;  %v32_v13 = vmul.f32 %v28_v10, %v18_v7 }
   0xa   :  { %v45_v16 = vadd.f32 %v38_v9, %v31_v12  ;;  %v46_v17 = vadd.f32 %v42_v11, %v32_v13 }
   0xc   :  { %v49_v18 = vadd.f32 %v47_v14, %v45_v16  ;;  %v50_v19 = vadd.f32 %v48_v15, %v46_v17 }
   0xe   :  { %v51_v20 = vmax.f32 %v49_v18, 0.0  ;;  %v52_v21 = vmax.f32 %v50_v19, 0.0 }
  0x10   :  { %53 = vst [vmem:[%s112_s4] sm:$0xff] %v51_v20  ;;  %54 = vst [vmem:[%s112_s4 + $0x8] sm:$0xff] %v52_v21 }

// kernel: _lambda_.90
= control target key start
LH: loop header
LB: loop body
LE: loop exit
PB: predicated region body
PF: predicated region fallthrough
CT: control target
= control target key end

     0   :  { %s1025_s12 = smov 0   ;;  %s1027_s13 = smov 0   ;;  %s1127_s0 = inlined_call_operand.vmem [shape: bf16[8,1152], index: 0, kind: input, shape index: {}]   ;;  %s1128_s1 = inlined_call_operand.vmem [shape: bf16[1152,256], index: 1, kind: input, shape index: {}]   ;;  %s1129_s2 = inlined_call_operand.vmem [shape: f32[1,256], index: 2, kind: input, shape index: {}]   ;;  %s1130_s3 = inlined_call_operand.vmem [shape: f32[8,256], index: 3, kind: output, shape index: {}]  }
   0x1   :  { %s1029_s14 = smov 0  }
   0x2 LB: > { %s25_s15 = sadd.s32 1, %s997_s13  ;;  %p816_p0 = scmp.ge.s32.totalorder %s1001_s14, 1  ;;  %s1001_s14 = sphi %s1029_s14, %s13_s14   ;;  %s997_s13 = sphi %s1027_s13, %s1132_s13   ;;  %s993_s12 = sphi %s1025_s12, %s1131_s12  }
   0x3   : > { %p26_p1 = scmp.ge.s32.totalorder %s25_s15, 3  ;;  %p194_p2 = scmp.lt.s32.totalorder %s1001_s14, 4 }
   0x5   : > { %s1134_s15 = smov (%p26_p1, %s25_s15), 0  ;;  %p195_p3 = pnand %p816_p0, %p194_p2 }
   0x6   : > { %s240_s16 = smul.u32 (!%p195_p3), 3, %s993_s12  ;;  %p820_p6 = scmp.ne.s32.totalorder (!%p195_p3), %s993_s12, 0 }
   0x7   : > { %198 = sbr.rel (%p195_p3) target bundleno = 298 (0x12a), region = 32 }
   0x8   : > { %s250_s17 = smul.u32 (!%p195_p3), 48, %s993_s12  ;;  %p243_p4 = scmp.lt.s32.totalorder (!%p195_p3), %s240_s16, 8 }
   0xa   : > { %p252_p5 = scmp.lt.s32.totalorder (!%p195_p3), %s250_s17, 143 }
   0xc   : > { %s1136_s16 = smov (!%p243_p4, %s240_s16), 8  ;;  %s1138_s17 = smov (!%p252_p5, %s250_s17), 143 }
   0xd   : > { %s817_s18 = sshll.u32 %s1136_s16, 2  ;;  %s877_s22 = sshll.u32 %s1138_s17, 3 }
   0xe   : > { %s1050_s21 = scalar_lea.vmem %s1127_s0, %s817_s18  ;;  %s1055_s25 = scalar_lea.vmem %s1128_s1, %s877_s22 }
   0xf   : > { %281 = sbr.rel (%p820_p6) target bundleno = 22 (0x16), region = 36 }
  0x14   : > { %v1003_v0 = vmov 0.0  }
  0x15   : > { %282 = vst [vmem:[#allocation2] sm:$0xff] %v1003_v0  ;;  %283 = vst [vmem:[#allocation2 + $0x8] sm:$0xff] %v1003_v0 }
  0x16 PF: > { %v904_v1 = vld [vmem:[%s1055_s25 + $0x74] ss:$8 sps:$4 sm:$0xff]   ;;  %v906_v2 = vld [vmem:[%s1055_s25 + $0x70] ss:$8 sps:$4 sm:$0xff]   ;;  %v1004_v3 = vmov 0   ;;  %v286_v34 = vld [vmem:[%s1050_s21] sm:$0xff] }
  0x17   : > { %660 = vmatprep.mubr.bf16.mxu1 %v1004_v3  ;;  %587 = vmatprep.subr.bf16.mxu0 %v904_v1  ;;  %v907_v4 = vld [vmem:[%s1055_s25 + $0x64] ss:$8 sps:$4 sm:$0xff]   ;;  %v909_v5 = vld [vmem:[%s1055_s25 + $0x60] ss:$8 sps:$4 sm:$0xff]   ;;  %v910_v6 = vld [vmem:[%s1055_s25 + $0x54] ss:$8 sps:$4 sm:$0xff]   ;;  %v822_v36 = vcombine.high %v286_v34, %v286_v34  ;;  %v821_v53 = vcombine.low %v286_v34, %v286_v34 }
  0x18   : > { %588 = vmatpush1.bf16.msra.mxu0 %v906_v2  ;;  %v912_v7 = vld [vmem:[%s1055_s25 + $0x50] ss:$8 sps:$4 sm:$0xff]   ;;  %v913_v8 = vld [vmem:[%s1055_s25 + $0x44] ss:$8 sps:$4 sm:$0xff]   ;;  %v925_v9 = vld [vmem:[%s1055_s25 + $0x174] ss:$8 sps:$4 sm:$0xff]  }
  0x19   : > { %589 = vmatprep.subr.bf16.mxu0 %v907_v4  ;;  %v927_v10 = vld [vmem:[%s1055_s25 + $0x170] ss:$8 sps:$4 sm:$0xff]   ;;  %v915_v11 = vld [vmem:[%s1055_s25 + $0x40] ss:$8 sps:$4 sm:$0xff]   ;;  %v916_v12 = vld [vmem:[%s1055_s25 + $0x34] ss:$8 sps:$4 sm:$0xff]   ;;  %628 = vmatprep.subr.bf16.mxu1 %v925_v9 }
  0x1a   : > { %v931_v13 = vld [vmem:[%s1055_s25 + $0x164] ss:$8 sps:$4 sm:$0xff]   ;;  %629 = vmatpush1.bf16.msra.mxu1 %v927_v10  ;;  %v933_v14 = vld [vmem:[%s1055_s25 + $0x160] ss:$8 sps:$4 sm:$0xff]   ;;  %v918_v15 = vld [vmem:[%s1055_s25 + $0x30] ss:$8 sps:$4 sm:$0xff]   ;;  %619 = vmatprep.mubr.bf16.mxu0 %v822_v36 }
  0x1b   : > { %630 = vmatprep.subr.bf16.mxu1 %v931_v13  ;;  %v937_v16 = vld [vmem:[%s1055_s25 + $0x154] ss:$8 sps:$4 sm:$0xff]   ;;  %v919_v17 = vld [vmem:[%s1055_s25 + $0x24] ss:$8 sps:$4 sm:$0xff]   ;;  %v939_v18 = vld [vmem:[%s1055_s25 + $0x150] ss:$8 sps:$4 sm:$0xff]  }
  0x1c   : > { %590 = vmatpush1.bf16.msra.mxu0 %v909_v5  ;;  %v943_v19 = vld [vmem:[%s1055_s25 + $0x144] ss:$8 sps:$4 sm:$0xff]   ;;  %v921_v20 = vld [vmem:[%s1055_s25 + $0x20] ss:$8 sps:$4 sm:$0xff]   ;;  %v922_v21 = vld [vmem:[%s1055_s25 + $0x14] ss:$8 sps:$4 sm:$0xff]  }
  0x1d   : > { %591 = vmatprep.subr.bf16.mxu0 %v910_v6  ;;  %v945_v22 = vld [vmem:[%s1055_s25 + $0x140] ss:$8 sps:$4 sm:$0xff]   ;;  %v949_v23 = vld [vmem:[%s1055_s25 + $0x134] ss:$8 sps:$4 sm:$0xff]   ;;  %v924_v24 = vld [vmem:[%s1055_s25 + $0x10] ss:$8 sps:$4 sm:$0xff]  }
  0x1e   : > { %631 = vmatpush1.bf16.msra.mxu1 %v933_v14  ;;  %v928_v25 = vld [vmem:[%s1055_s25 + $0x4] ss:$8 sps:$4 sm:$0xff]   ;;  %v951_v26 = vld [vmem:[%s1055_s25 + $0x130] ss:$8 sps:$4 sm:$0xff]   ;;  %v930_v28 = vld [vmem:[%s1055_s25] ss:$8 sps:$4 sm:$0xff]  }
  0x1f   : > { %632 = vmatprep.subr.bf16.mxu1 %v937_v16  ;;  %v955_v27 = vld [vmem:[%s1055_s25 + $0x124] ss:$8 sps:$4 sm:$0xff]   ;;  %v934_v29 = vld [vmem:[%s1055_s25 + $0xf4] ss:$8 sps:$4 sm:$0xff]   ;;  %v957_v30 = vld [vmem:[%s1055_s25 + $0x120] ss:$8 sps:$4 sm:$0xff]  }
  0x20   : > { %592 = vmatpush1.bf16.msra.mxu0 %v912_v7  ;;  %v961_v31 = vld [vmem:[%s1055_s25 + $0x114] ss:$8 sps:$4 sm:$0xff]   ;;  %v936_v32 = vld [vmem:[%s1055_s25 + $0xf0] ss:$8 sps:$4 sm:$0xff]   ;;  %v940_v33 = vld [vmem:[%s1055_s25 + $0xe4] ss:$8 sps:$4 sm:$0xff]  }
  0x21   : > { %593 = vmatprep.subr.bf16.mxu0 %v913_v8  ;;  %v963_v35 = vld [vmem:[%s1055_s25 + $0x110] ss:$8 sps:$4 sm:$0xff]   ;;  %v967_v37 = vld [vmem:[%s1055_s25 + $0x104] ss:$8 sps:$4 sm:$0xff]   ;;  %v942_v38 = vld [vmem:[%s1055_s25 + $0xe0] ss:$8 sps:$4 sm:$0xff]  }
  0x22   : > { %633 = vmatpush1.bf16.msra.mxu1 %v939_v18  ;;  %v946_v39 = vld [vmem:[%s1055_s25 + $0xd4] ss:$8 sps:$4 sm:$0xff]   ;;  %v969_v40 = vld [vmem:[%s1055_s25 + $0x100] ss:$8 sps:$4 sm:$0xff]   ;;  %v948_v41 = vld [vmem:[%s1055_s25 + $0xd0] ss:$8 sps:$4 sm:$0xff]  }
  0x23   : > { %634 = vmatprep.subr.bf16.mxu1 %v943_v19  ;;  %v952_v42 = vld [vmem:[%s1055_s25 + $0xc4] ss:$8 sps:$4 sm:$0xff]   ;;  %v973_v43 = vld [vmem:[%s1050_s21 + $0x8] ss:$0 sps:$4 sm:$0xff]   ;;  %v958_v45 = vld [vmem:[%s1055_s25 + $0xb4] ss:$8 sps:$4 sm:$0xff]  }
  0x24   : > { %594 = vmatpush1.bf16.msra.mxu0 %v915_v11  ;;  %v954_v44 = vld [vmem:[%s1055_s25 + $0xc0] ss:$8 sps:$4 sm:$0xff]   ;;  %v960_v46 = vld [vmem:[%s1055_s25 + $0xb0] ss:$8 sps:$4 sm:$0xff]   ;;  %v964_v47 = vld [vmem:[%s1055_s25 + $0xa4] ss:$8 sps:$4 sm:$0xff]  }
  0x25   : > { %595 = vmatprep.subr.bf16.mxu0 %v916_v12  ;;  %v966_v48 = vld [vmem:[%s1055_s25 + $0xa0] ss:$8 sps:$4 sm:$0xff]   ;;  %v970_v49 = vld [vmem:[%s1055_s25 + $0x94] ss:$8 sps:$4 sm:$0xff]   ;;  %v972_v50 = vld [vmem:[%s1055_s25 + $0x90] ss:$8 sps:$4 sm:$0xff]  }
  0x26   : > { %635 = vmatpush1.bf16.msra.mxu1 %v945_v22  ;;  %v974_v51 = vld [vmem:[%s1055_s25 + $0x84] ss:$8 sps:$4 sm:$0xff]   ;;  %v976_v52 = vld [vmem:[%s1055_s25 + $0x80] ss:$8 sps:$4 sm:$0xff]   ;;  %p872_p7 = scmp.ne.s32.totalorder %s993_s12, 2 }
  0x27   : > { %636 = vmatprep.subr.bf16.mxu1 %v949_v23  ;;  %v284_v58 = vld [vmem:[#allocation2] sm:$0xff]  ;;  %v285_v61 = vld [vmem:[#allocation2 + $0x8] sm:$0xff] }
  0x28   : > { %596 = vmatpush1.bf16.msra.mxu0 %v918_v15 }
  0x29   : > { %597 = vmatprep.subr.bf16.mxu0 %v919_v17 }
  0x2a   : > { %637 = vmatpush1.bf16.msra.mxu1 %v951_v26 }
  0x2b   : > { %638 = vmatprep.subr.bf16.mxu1 %v955_v27 }
  0x2c   : > { %598 = vmatpush1.bf16.msra.mxu0 %v921_v20 }
  0x2d   : > { %599 = vmatprep.subr.bf16.mxu0 %v922_v21 }
  0x2e   : > { %639 = vmatpush1.bf16.msra.mxu1 %v957_v30 }
  0x2f   : > { %640 = vmatprep.subr.bf16.mxu1 %v961_v31 }
  0x30   : > { %600 = vmatpush1.bf16.msra.mxu0 %v924_v24 }
  0x31   : > { %601 = vmatprep.subr.bf16.mxu0 %v928_v25 }
  0x32   : > { %641 = vmatpush1.bf16.msra.mxu1 %v963_v35 }
  0x33   : > { %642 = vmatprep.subr.bf16.mxu1 %v967_v37 }
  0x34   : > { %602 = vmatpush1.bf16.msra.mxu0 %v930_v28 }
  0x35   : > { %603 = vmatprep.subr.bf16.mxu0 %v934_v29 }
  0x36   : > { %643 = vmatpush1.bf16.msra.mxu1 %v969_v40 }
  0x38   : > { %604 = vmatpush2.bf16.msra.mxu0 %v936_v32 }
  0x39   : > { %605 = vmatprep.subr.bf16.mxu0 %v940_v33  ;;  %661 = vmatmul.mubr.bf16.vlgmr.msra.gmra.mxu1 %v973_v43 }
  0x3c   : > { %606 = vmatpush2.bf16.msra.mxu0 %v942_v38 }
  0x3d   : > { %607 = vmatprep.subr.bf16.mxu0 %v946_v39 }
  0x40   : > { %608 = vmatpush2.bf16.msra.mxu0 %v948_v41 }
  0x41   : > { %609 = vmatprep.subr.bf16.mxu0 %v952_v42 }
  0x44   : > { %610 = vmatpush2.bf16.msra.mxu0 %v954_v44 }
  0x45   : > { %611 = vmatprep.subr.bf16.mxu0 %v958_v45 }
  0x48   : > { %612 = vmatpush2.bf16.msra.mxu0 %v960_v46 }
  0x49   : > { %613 = vmatprep.subr.bf16.mxu0 %v964_v47 }
  0x4c   : > { %614 = vmatpush2.bf16.msra.mxu0 %v966_v48 }
  0x4d   : > { %615 = vmatprep.subr.bf16.mxu0 %v970_v49 }
  0x50   : > { %616 = vmatpush2.bf16.msra.mxu0 %v972_v50 }
  0x51   : > { %617 = vmatprep.subr.bf16.mxu0 %v974_v51 }
  0x54   : > { %618 = vmatpush2.bf16.msra.mxu0 %v976_v52 }
  0x57   : > { %620 = vmatmul.mubr.bf16.vlgmr.msra.gmra.mxu0 %v821_v53 }
  0xf9   : > { %v662_v54 = vpop.f32.mrf.mxu1 }
  0xfb   : > { %v664_v55 = vpop.f32.mrf.mxu1 }
  0xfd   : > { %v666_v56 = vpop.f32.mrf.mxu1 }
  0xff   : > { %v667_v57 = vpop.f32.mrf.mxu1 }
 0x117   : > { %v621_v59 = vpop.f32.mrf.mxu0 }
 0x118   : > { %v663_v60 = vadd.f32 %v662_v54, %v621_v59 }
 0x119   : > { %v623_v62 = vpop.f32.mrf.mxu0 }
 0x11a   : > { %v669_v63 = vadd.f32 %v663_v60, %v284_v58  ;;  %v665_v0 = vadd.f32 %v664_v55, %v623_v62  ;;  %676 = sbr.rel (%p872_p7) target bundleno = 298 (0x12a), region = 40 }
 0x11b   : > { %v625_v1 = vpop.f32.mrf.mxu0 }
 0x11c   : > { %671 = vst [vmem:[#allocation2] sm:$0xff] %v669_v63  ;;  %v670_v2 = vadd.f32 %v665_v0, %v285_v61 }
 0x11d   : > { %v626_v3 = vpop.f32.mrf.mxu0 }
 0x11e   : > { %672 = vst [vmem:[#allocation2 + $0x8] sm:$0xff] %v670_v2 }
 0x11f   : > { %v681_v4 = vlaneseq  ;;  %v679_v6 = vld [vmem:[%s1129_s2] sm:$0x3] }
 0x121   : > { %v682_v5 = vshrl.u32 %v681_v4, 7 }
 0x123   : > { %v683_v7 = vsub.s32 0, %v682_v5  ;;  %v687_v8 = vsub.s32 1, %v682_v5  ;;  %v677_v9 = vld [vmem:[#allocation2] sm:$0xff] }
 0x125   : > { %v678_v10 = vld [vmem:[#allocation2 + $0x8] sm:$0xff]  ;;  %v684_v11 = vrot.slane %v679_v6, %v683_v7  ;;  %v688_v12 = vrot.slane %v679_v6, %v687_v8 }
 0x127   : > { %v691_v13 = vadd.f32 %v684_v11, %v677_v9  ;;  %v692_v14 = vadd.f32 %v688_v12, %v678_v10 }
 0x129   : > { %693 = vst [vmem:[%s1130_s3] sm:$0xff] %v691_v13  ;;  %694 = vst [vmem:[%s1130_s3 + $0x8] sm:$0xff] %v692_v14 }
 0x12a PF: > { %s13_s14 = sadd.s32 1, %s1001_s14   ;;  %s1131_s12 = smov %s997_s13 }
 0x12b   : > { %p10_p8 = scmp.ge.s32.totalorder %s13_s14, 5   ;;  %s1132_s13 = smov %s1134_s15 }
 0x12d   :  { %12 = sbr.rel (!%p10_p8) target bundleno = 2 (0x2), region = 76 }

// kernel: _lambda_.89
= control target key start
LH: loop header
LB: loop body
LE: loop exit
PB: predicated region body
PF: predicated region fallthrough
CT: control target
= control target key end

     0   :  { %s947_s9 = smov 0   ;;  %s949_s10 = smov 0   ;;  %s1046_s0 = inlined_call_operand.vmem [shape: bf16[8,2304], index: 0, kind: input, shape index: {}]   ;;  %s1047_s1 = inlined_call_operand.vmem [shape: bf16[2304,256], index: 1, kind: input, shape index: {}]   ;;  %s1048_s2 = inlined_call_operand.vmem [shape: f32[8,256], index: 2, kind: output, shape index: {}]  }
   0x1   :  { %s951_s11 = smov 0  }
   0x2 LB: > { %s24_s12 = sadd.s32 1, %s924_s10  ;;  %p743_p0 = scmp.ge.s32.totalorder %s928_s11, 1  ;;  %s928_s11 = sphi %s951_s11, %s12_s11   ;;  %s924_s10 = sphi %s949_s10, %s1050_s10   ;;  %s920_s9 = sphi %s947_s9, %s1049_s9  }
   0x3   : > { %p25_p1 = scmp.ge.s32.totalorder %s24_s12, 6  ;;  %p159_p2 = scmp.lt.s32.totalorder %s928_s11, 7 }
   0x5   : > { %s1052_s12 = smov (%p25_p1, %s24_s12), 0  ;;  %p160_p3 = pnand %p743_p0, %p159_p2 }
   0x6   : > { %s199_s13 = smul.u32 (!%p160_p3), 3, %s920_s9  ;;  %p747_p6 = scmp.ne.s32.totalorder (!%p160_p3), %s920_s9, 0 }
   0x7   : > { %163 = sbr.rel (%p160_p3) target bundleno = 295 (0x127), region = 28 }
   0x8   : > { %s209_s14 = smul.u32 (!%p160_p3), 48, %s920_s9  ;;  %p202_p4 = scmp.lt.s32.totalorder (!%p160_p3), %s199_s13, 17 }
   0xa   : > { %p211_p5 = scmp.lt.s32.totalorder (!%p160_p3), %s209_s14, 287 }
   0xc   : > { %s1054_s13 = smov (!%p202_p4, %s199_s13), 17  ;;  %s1056_s14 = smov (!%p211_p5, %s209_s14), 287 }
   0xd   : > { %s744_s15 = sshll.u32 %s1054_s13, 2  ;;  %s804_s19 = sshll.u32 %s1056_s14, 3 }
   0xe   : > { %s972_s18 = scalar_lea.vmem %s1046_s0, %s744_s15  ;;  %s977_s22 = scalar_lea.vmem %s1047_s1, %s804_s19 }
   0xf   : > { %235 = sbr.rel (%p747_p6) target bundleno = 22 (0x16), region = 32 }
  0x14   : > { %v930_v0 = vmov 0.0  }
  0x15   : > { %236 = vst [vmem:[#allocation2] sm:$0xff] %v930_v0  ;;  %237 = vst [vmem:[#allocation2 + $0x8] sm:$0xff] %v930_v0 }
  0x16 PF: > { %v831_v1 = vld [vmem:[%s977_s22 + $0x74] ss:$8 sps:$4 sm:$0xff]   ;;  %v833_v2 = vld [vmem:[%s977_s22 + $0x70] ss:$8 sps:$4 sm:$0xff]   ;;  %v931_v3 = vmov 0   ;;  %v240_v34 = vld [vmem:[%s972_s18] sm:$0xff] }
  0x17   : > { %614 = vmatprep.mubr.bf16.mxu1 %v931_v3  ;;  %541 = vmatprep.subr.bf16.mxu0 %v831_v1  ;;  %v834_v4 = vld [vmem:[%s977_s22 + $0x64] ss:$8 sps:$4 sm:$0xff]   ;;  %v836_v5 = vld [vmem:[%s977_s22 + $0x60] ss:$8 sps:$4 sm:$0xff]   ;;  %v837_v6 = vld [vmem:[%s977_s22 + $0x54] ss:$8 sps:$4 sm:$0xff]   ;;  %v749_v36 = vcombine.high %v240_v34, %v240_v34  ;;  %v748_v53 = vcombine.low %v240_v34, %v240_v34 }
  0x18   : > { %542 = vmatpush1.bf16.msra.mxu0 %v833_v2  ;;  %v839_v7 = vld [vmem:[%s977_s22 + $0x50] ss:$8 sps:$4 sm:$0xff]   ;;  %v840_v8 = vld [vmem:[%s977_s22 + $0x44] ss:$8 sps:$4 sm:$0xff]   ;;  %v852_v9 = vld [vmem:[%s977_s22 + $0x174] ss:$8 sps:$4 sm:$0xff]  }
  0x19   : > { %543 = vmatprep.subr.bf16.mxu0 %v834_v4  ;;  %v854_v10 = vld [vmem:[%s977_s22 + $0x170] ss:$8 sps:$4 sm:$0xff]   ;;  %v842_v11 = vld [vmem:[%s977_s22 + $0x40] ss:$8 sps:$4 sm:$0xff]   ;;  %v843_v12 = vld [vmem:[%s977_s22 + $0x34] ss:$8 sps:$4 sm:$0xff]   ;;  %582 = vmatprep.subr.bf16.mxu1 %v852_v9 }
  0x1a   : > { %v858_v13 = vld [vmem:[%s977_s22 + $0x164] ss:$8 sps:$4 sm:$0xff]   ;;  %583 = vmatpush1.bf16.msra.mxu1 %v854_v10  ;;  %v860_v14 = vld [vmem:[%s977_s22 + $0x160] ss:$8 sps:$4 sm:$0xff]   ;;  %v845_v15 = vld [vmem:[%s977_s22 + $0x30] ss:$8 sps:$4 sm:$0xff]   ;;  %573 = vmatprep.mubr.bf16.mxu0 %v749_v36 }
  0x1b   : > { %584 = vmatprep.subr.bf16.mxu1 %v858_v13  ;;  %v864_v16 = vld [vmem:[%s977_s22 + $0x154] ss:$8 sps:$4 sm:$0xff]   ;;  %v846_v17 = vld [vmem:[%s977_s22 + $0x24] ss:$8 sps:$4 sm:$0xff]   ;;  %v866_v18 = vld [vmem:[%s977_s22 + $0x150] ss:$8 sps:$4 sm:$0xff]  }
  0x1c   : > { %544 = vmatpush1.bf16.msra.mxu0 %v836_v5  ;;  %v870_v19 = vld [vmem:[%s977_s22 + $0x144] ss:$8 sps:$4 sm:$0xff]   ;;  %v848_v20 = vld [vmem:[%s977_s22 + $0x20] ss:$8 sps:$4 sm:$0xff]   ;;  %v849_v21 = vld [vmem:[%s977_s22 + $0x14] ss:$8 sps:$4 sm:$0xff]  }
  0x1d   : > { %545 = vmatprep.subr.bf16.mxu0 %v837_v6  ;;  %v872_v22 = vld [vmem:[%s977_s22 + $0x140] ss:$8 sps:$4 sm:$0xff]   ;;  %v876_v23 = vld [vmem:[%s977_s22 + $0x134] ss:$8 sps:$4 sm:$0xff]   ;;  %v851_v24 = vld [vmem:[%s977_s22 + $0x10] ss:$8 sps:$4 sm:$0xff]  }
  0x1e   : > { %585 = vmatpush1.bf16.msra.mxu1 %v860_v14  ;;  %v855_v25 = vld [vmem:[%s977_s22 + $0x4] ss:$8 sps:$4 sm:$0xff]   ;;  %v878_v26 = vld [vmem:[%s977_s22 + $0x130] ss:$8 sps:$4 sm:$0xff]   ;;  %v857_v28 = vld [vmem:[%s977_s22] ss:$8 sps:$4 sm:$0xff]  }
  0x1f   : > { %586 = vmatprep.subr.bf16.mxu1 %v864_v16  ;;  %v882_v27 = vld [vmem:[%s977_s22 + $0x124] ss:$8 sps:$4 sm:$0xff]   ;;  %v861_v29 = vld [vmem:[%s977_s22 + $0xf4] ss:$8 sps:$4 sm:$0xff]   ;;  %v884_v30 = vld [vmem:[%s977_s22 + $0x120] ss:$8 sps:$4 sm:$0xff]  }
  0x20   : > { %546 = vmatpush1.bf16.msra.mxu0 %v839_v7  ;;  %v888_v31 = vld [vmem:[%s977_s22 + $0x114] ss:$8 sps:$4 sm:$0xff]   ;;  %v863_v32 = vld [vmem:[%s977_s22 + $0xf0] ss:$8 sps:$4 sm:$0xff]   ;;  %v867_v33 = vld [vmem:[%s977_s22 + $0xe4] ss:$8 sps:$4 sm:$0xff]  }
  0x21   : > { %547 = vmatprep.subr.bf16.mxu0 %v840_v8  ;;  %v890_v35 = vld [vmem:[%s977_s22 + $0x110] ss:$8 sps:$4 sm:$0xff]   ;;  %v894_v37 = vld [vmem:[%s977_s22 + $0x104] ss:$8 sps:$4 sm:$0xff]   ;;  %v869_v38 = vld [vmem:[%s977_s22 + $0xe0] ss:$8 sps:$4 sm:$0xff]  }
  0x22   : > { %587 = vmatpush1.bf16.msra.mxu1 %v866_v18  ;;  %v873_v39 = vld [vmem:[%s977_s22 + $0xd4] ss:$8 sps:$4 sm:$0xff]   ;;  %v896_v40 = vld [vmem:[%s977_s22 + $0x100] ss:$8 sps:$4 sm:$0xff]   ;;  %v875_v41 = vld [vmem:[%s977_s22 + $0xd0] ss:$8 sps:$4 sm:$0xff]  }
  0x23   : > { %588 = vmatprep.subr.bf16.mxu1 %v870_v19  ;;  %v879_v42 = vld [vmem:[%s977_s22 + $0xc4] ss:$8 sps:$4 sm:$0xff]   ;;  %v900_v43 = vld [vmem:[%s972_s18 + $0x8] ss:$0 sps:$4 sm:$0xff]   ;;  %v885_v45 = vld [vmem:[%s977_s22 + $0xb4] ss:$8 sps:$4 sm:$0xff]  }
  0x24   : > { %548 = vmatpush1.bf16.msra.mxu0 %v842_v11  ;;  %v881_v44 = vld [vmem:[%s977_s22 + $0xc0] ss:$8 sps:$4 sm:$0xff]   ;;  %v887_v46 = vld [vmem:[%s977_s22 + $0xb0] ss:$8 sps:$4 sm:$0xff]   ;;  %v891_v47 = vld [vmem:[%s977_s22 + $0xa4] ss:$8 sps:$4 sm:$0xff]  }
  0x25   : > { %549 = vmatprep.subr.bf16.mxu0 %v843_v12  ;;  %v893_v48 = vld [vmem:[%s977_s22 + $0xa0] ss:$8 sps:$4 sm:$0xff]   ;;  %v897_v49 = vld [vmem:[%s977_s22 + $0x94] ss:$8 sps:$4 sm:$0xff]   ;;  %v899_v50 = vld [vmem:[%s977_s22 + $0x90] ss:$8 sps:$4 sm:$0xff]  }
  0x26   : > { %589 = vmatpush1.bf16.msra.mxu1 %v872_v22  ;;  %v901_v51 = vld [vmem:[%s977_s22 + $0x84] ss:$8 sps:$4 sm:$0xff]   ;;  %v903_v52 = vld [vmem:[%s977_s22 + $0x80] ss:$8 sps:$4 sm:$0xff]   ;;  %p799_p7 = scmp.ne.s32.totalorder %s920_s9, 5 }
  0x27   : > { %590 = vmatprep.subr.bf16.mxu1 %v876_v23  ;;  %v238_v58 = vld [vmem:[#allocation2] sm:$0xff]  ;;  %v239_v61 = vld [vmem:[#allocation2 + $0x8] sm:$0xff] }
  0x28   : > { %550 = vmatpush1.bf16.msra.mxu0 %v845_v15 }
  0x29   : > { %551 = vmatprep.subr.bf16.mxu0 %v846_v17 }
  0x2a   : > { %591 = vmatpush1.bf16.msra.mxu1 %v878_v26 }
  0x2b   : > { %592 = vmatprep.subr.bf16.mxu1 %v882_v27 }
  0x2c   : > { %552 = vmatpush1.bf16.msra.mxu0 %v848_v20 }
  0x2d   : > { %553 = vmatprep.subr.bf16.mxu0 %v849_v21 }
  0x2e   : > { %593 = vmatpush1.bf16.msra.mxu1 %v884_v30 }
  0x2f   : > { %594 = vmatprep.subr.bf16.mxu1 %v888_v31 }
  0x30   : > { %554 = vmatpush1.bf16.msra.mxu0 %v851_v24 }
  0x31   : > { %555 = vmatprep.subr.bf16.mxu0 %v855_v25 }
  0x32   : > { %595 = vmatpush1.bf16.msra.mxu1 %v890_v35 }
  0x33   : > { %596 = vmatprep.subr.bf16.mxu1 %v894_v37 }
  0x34   : > { %556 = vmatpush1.bf16.msra.mxu0 %v857_v28 }
  0x35   : > { %557 = vmatprep.subr.bf16.mxu0 %v861_v29 }
  0x36   : > { %597 = vmatpush1.bf16.msra.mxu1 %v896_v40 }
  0x38   : > { %558 = vmatpush2.bf16.msra.mxu0 %v863_v32 }
  0x39   : > { %559 = vmatprep.subr.bf16.mxu0 %v867_v33  ;;  %615 = vmatmul.mubr.bf16.vlgmr.msra.gmra.mxu1 %v900_v43 }
  0x3c   : > { %560 = vmatpush2.bf16.msra.mxu0 %v869_v38 }
  0x3d   : > { %561 = vmatprep.subr.bf16.mxu0 %v873_v39 }
  0x40   : > { %562 = vmatpush2.bf16.msra.mxu0 %v875_v41 }
  0x41   : > { %563 = vmatprep.subr.bf16.mxu0 %v879_v42 }
  0x44   : > { %564 = vmatpush2.bf16.msra.mxu0 %v881_v44 }
  0x45   : > { %565 = vmatprep.subr.bf16.mxu0 %v885_v45 }
  0x48   : > { %566 = vmatpush2.bf16.msra.mxu0 %v887_v46 }
  0x49   : > { %567 = vmatprep.subr.bf16.mxu0 %v891_v47 }
  0x4c   : > { %568 = vmatpush2.bf16.msra.mxu0 %v893_v48 }
  0x4d   : > { %569 = vmatprep.subr.bf16.mxu0 %v897_v49 }
  0x50   : > { %570 = vmatpush2.bf16.msra.mxu0 %v899_v50 }
  0x51   : > { %571 = vmatprep.subr.bf16.mxu0 %v901_v51 }
  0x54   : > { %572 = vmatpush2.bf16.msra.mxu0 %v903_v52 }
  0x57   : > { %574 = vmatmul.mubr.bf16.vlgmr.msra.gmra.mxu0 %v748_v53 }
  0xf9   : > { %v616_v54 = vpop.f32.mrf.mxu1 }
  0xfb   : > { %v618_v55 = vpop.f32.mrf.mxu1 }
  0xfd   : > { %v620_v56 = vpop.f32.mrf.mxu1 }
  0xff   : > { %v621_v57 = vpop.f32.mrf.mxu1 }
 0x117   : > { %v575_v59 = vpop.f32.mrf.mxu0 }
 0x118   : > { %v617_v60 = vadd.f32 %v616_v54, %v575_v59 }
 0x119   : > { %v577_v62 = vpop.f32.mrf.mxu0 }
 0x11a   : > { %v623_v63 = vadd.f32 %v617_v60, %v238_v58  ;;  %v619_v0 = vadd.f32 %v618_v55, %v577_v62  ;;  %630 = sbr.rel (%p799_p7) target bundleno = 295 (0x127), region = 36 }
 0x11b   : > { %v579_v1 = vpop.f32.mrf.mxu0 }
 0x11c   : > { %625 = vst [vmem:[#allocation2] sm:$0xff] %v623_v63  ;;  %v624_v2 = vadd.f32 %v619_v0, %v239_v61 }
 0x11d   : > { %v580_v3 = vpop.f32.mrf.mxu0 }
 0x11e   : > { %626 = vst [vmem:[#allocation2 + $0x8] sm:$0xff] %v624_v2 }
 0x123   : > { %v631_v4 = vld [vmem:[#allocation2] sm:$0xff] }
 0x124   : > { %633 = vst [vmem:[%s1048_s2] sm:$0xff] %v631_v4 }
 0x125   : > { %v632_v5 = vld [vmem:[#allocation2 + $0x8] sm:$0xff] }
 0x126   : > { %634 = vst [vmem:[%s1048_s2 + $0x8] sm:$0xff] %v632_v5 }
 0x127 PF: > { %s12_s11 = sadd.s32 1, %s928_s11   ;;  %s1049_s9 = smov %s924_s10 }
 0x128   : > { %p9_p8 = scmp.ge.s32.totalorder %s12_s11, 8   ;;  %s1050_s10 = smov %s1052_s12 }
 0x12a   :  { %11 = sbr.rel (!%p9_p8) target bundleno = 2 (0x2), region = 69 }

// kernel: _lambda_.99
= control target key start
LH: loop header
LB: loop body
LE: loop exit
PB: predicated region body
PF: predicated region fallthrough
CT: control target
= control target key end

     0   :  { %s1234_s9 = smov 0   ;;  %s1236_s10 = smov 0   ;;  %s1486_s0 = inlined_call_operand.vmem [shape: bf16[8,2304], index: 0, kind: input, shape index: {}]   ;;  %s1487_s1 = inlined_call_operand.vmem [shape: bf16[2304,512], index: 1, kind: input, shape index: {}]   ;;  %s1488_s2 = inlined_call_operand.vmem [shape: f32[8,512], index: 2, kind: output, shape index: {}]  }
   0x1   :  { %s1238_s11 = smov 0   ;;  %s1240_s12 = smov 0  }
   0x2   :  { %s1242_s13 = smov 0   ;;  %s1244_s14 = smov 0  }
   0x3   :  { %s1246_s15 = smov 0  }
   0x4 LB: > { %s24_s16 = sadd.s32 1, %s1207_s13  ;;  %s27_s17 = sadd.s32 1, %s1211_s14  ;;  %s1215_s15 = sphi %s1246_s15, %s12_s15   ;;  %s1211_s14 = sphi %s1244_s14, %s1494_s14   ;;  %s1207_s13 = sphi %s1242_s13, %s1493_s13   ;;  %s1203_s12 = sphi %s1240_s12, %s1492_s12   ;;  %s1199_s11 = sphi %s1238_s11, %s1491_s11   ;;  %s1195_s10 = sphi %s1236_s10, %s1490_s10   ;;  %s1191_s9 = sphi %s1234_s9, %s1489_s9  }
   0x5   : > { %p25_p0 = scmp.ge.s32.totalorder %s24_s16, 6  ;;  %p75_p1 = scmp.ne.s32.totalorder %s1195_s10, %s1191_s9 }
   0x6   : > { %p76_p2 = scmp.eq.s32.totalorder %s1215_s15, 0  ;;  %s68_s21 = sadd.s32 1, %s1195_s10 }
   0x7   : > { %s1496_s16 = smov (%p25_p0, %s24_s16), 0  ;;  %s1498_s17 = smov (!%p25_p0, %s27_s17), %s1211_s14 }
   0x8   : > { %p77_p3 = por %p76_p2, %p75_p1  ;;  %p29_p4 = scmp.ge.s32.totalorder %s1498_s17, 2 }
   0x9   : > { %s63_s18 = ssub.s32 %s1207_s13, %s1496_s16  ;;  %p962_p6 = scmp.ge.s32.totalorder %s1215_s15, 12 }
   0xa   : > { %s1500_s17 = smov (%p29_p4, %s1498_s17), 0 }
   0xb   : > { %s64_s19 = ssub.s32 %s1211_s14, %s1500_s17  ;;  %129 = sbr.rel (%p962_p6) target bundleno = 48 (0x30), region = 16 }
   0xc   : > { %s65_s20 = sor.u32 %s64_s19, %s63_s18 }
   0xd   : > { %p66_p5 = scmp.eq.s32.totalorder %s65_s20, 0 }
   0xf   : > { %s1285_s22 = scalar_select %p66_p5, %s1195_s10, %s68_s21  }
  0x10   : > { %145 = sbr.rel (!%p77_p3) target bundleno = 48 (0x30), region = 24  ;;  %s147_s23 = sand.u32 (%p77_p3), 1, %s1195_s10  }
  0x11   : > { %s1026_s24 = smul.u32 (%p77_p3), 384, %s147_s23  ;;  %s963_s25 = sshll.u32 (%p77_p3), %s1211_s14, 1 }
  0x12   : > { %s1025_s26 = smul.u32 (%p77_p3), 192, %s1207_s13 }
  0x13   : > { %s1299_s4 = scalar_lea.vmem (%p77_p3), [#allocation3], %s1026_s24 }
  0x14   : > { %s153_s27 = sadd.s32 (%p77_p3), %s1025_s26, %s963_s25 }
  0x15   : > { %s965_s28 = sshll.u32 %s153_s27, 2 }
  0x16   : > { %s1294_s3 = scalar_lea.vmem %s1487_s1, %s965_s28 }
  0x17   : > { %v278_v0 = vld [vmem:[%s1294_s3] sm:$0xff]  ;;  %v280_v1 = vld [vmem:[%s1294_s3 + $0x10] sm:$0xff] }
  0x18   : > { %v282_v2 = vld [vmem:[%s1294_s3 + $0x20] sm:$0xff]  ;;  %279 = vst [vmem:[%s1299_s4] sm:$0xff] %v278_v0  ;;  %281 = vst [vmem:[%s1299_s4 + $0x8] sm:$0xff] %v280_v1  ;;  %v284_v3 = vld [vmem:[%s1294_s3 + $0x30] sm:$0xff] }
  0x19   : > { %283 = vst [vmem:[%s1299_s4 + $0x10] sm:$0xff] %v282_v2  ;;  %v286_v4 = vld [vmem:[%s1294_s3 + $0x40] sm:$0xff]  ;;  %v288_v5 = vld [vmem:[%s1294_s3 + $0x50] sm:$0xff]  ;;  %285 = vst [vmem:[%s1299_s4 + $0x18] sm:$0xff] %v284_v3 }
  0x1a   : > { %287 = vst [vmem:[%s1299_s4 + $0x20] sm:$0xff] %v286_v4  ;;  %289 = vst [vmem:[%s1299_s4 + $0x28] sm:$0xff] %v288_v5  ;;  %v290_v6 = vld [vmem:[%s1294_s3 + $0x60] sm:$0xff]  ;;  %v292_v7 = vld [vmem:[%s1294_s3 + $0x70] sm:$0xff] }
  0x1b   : > { %v294_v8 = vld [vmem:[%s1294_s3 + $0x80] sm:$0xff]  ;;  %291 = vst [vmem:[%s1299_s4 + $0x30] sm:$0xff] %v290_v6  ;;  %293 = vst [vmem:[%s1299_s4 + $0x38] sm:$0xff] %v292_v7  ;;  %v296_v9 = vld [vmem:[%s1294_s3 + $0x90] sm:$0xff] }
  0x1c   : > { %295 = vst [vmem:[%s1299_s4 + $0x40] sm:$0xff] %v294_v8  ;;  %v298_v10 = vld [vmem:[%s1294_s3 + $0xa0] sm:$0xff]  ;;  %v300_v11 = vld [vmem:[%s1294_s3 + $0xb0] sm:$0xff]  ;;  %297 = vst [vmem:[%s1299_s4 + $0x48] sm:$0xff] %v296_v9 }
  0x1d   : > { %299 = vst [vmem:[%s1299_s4 + $0x50] sm:$0xff] %v298_v10  ;;  %301 = vst [vmem:[%s1299_s4 + $0x58] sm:$0xff] %v300_v11  ;;  %v302_v12 = vld [vmem:[%s1294_s3 + $0xc0] sm:$0xff]  ;;  %v304_v13 = vld [vmem:[%s1294_s3 + $0xd0] sm:$0xff] }
  0x1e   : > { %v306_v14 = vld [vmem:[%s1294_s3 + $0xe0] sm:$0xff]  ;;  %303 = vst [vmem:[%s1299_s4 + $0x60] sm:$0xff] %v302_v12  ;;  %305 = vst [vmem:[%s1299_s4 + $0x68] sm:$0xff] %v304_v13  ;;  %v308_v15 = vld [vmem:[%s1294_s3 + $0xf0] sm:$0xff] }
  0x1f   : > { %307 = vst [vmem:[%s1299_s4 + $0x70] sm:$0xff] %v306_v14  ;;  %v310_v16 = vld [vmem:[%s1294_s3 + $0x100] sm:$0xff]  ;;  %v312_v17 = vld [vmem:[%s1294_s3 + $0x110] sm:$0xff]  ;;  %309 = vst [vmem:[%s1299_s4 + $0x78] sm:$0xff] %v308_v15 }
  0x20   : > { %311 = vst [vmem:[%s1299_s4 + $0x80] sm:$0xff] %v310_v16  ;;  %313 = vst [vmem:[%s1299_s4 + $0x88] sm:$0xff] %v312_v17  ;;  %v314_v18 = vld [vmem:[%s1294_s3 + $0x120] sm:$0xff]  ;;  %v316_v19 = vld [vmem:[%s1294_s3 + $0x130] sm:$0xff] }
  0x21   : > { %v318_v20 = vld [vmem:[%s1294_s3 + $0x140] sm:$0xff]  ;;  %315 = vst [vmem:[%s1299_s4 + $0x90] sm:$0xff] %v314_v18  ;;  %317 = vst [vmem:[%s1299_s4 + $0x98] sm:$0xff] %v316_v19  ;;  %v320_v21 = vld [vmem:[%s1294_s3 + $0x150] sm:$0xff] }
  0x22   : > { %319 = vst [vmem:[%s1299_s4 + $0xa0] sm:$0xff] %v318_v20  ;;  %v322_v22 = vld [vmem:[%s1294_s3 + $0x160] sm:$0xff]  ;;  %v324_v23 = vld [vmem:[%s1294_s3 + $0x170] sm:$0xff]  ;;  %321 = vst [vmem:[%s1299_s4 + $0xa8] sm:$0xff] %v320_v21 }
  0x23   : > { %323 = vst [vmem:[%s1299_s4 + $0xb0] sm:$0xff] %v322_v22  ;;  %325 = vst [vmem:[%s1299_s4 + $0xb8] sm:$0xff] %v324_v23  ;;  %v326_v24 = vld [vmem:[%s1294_s3 + $0x180] sm:$0xff]  ;;  %v328_v25 = vld [vmem:[%s1294_s3 + $0x190] sm:$0xff] }
  0x24   : > { %v330_v26 = vld [vmem:[%s1294_s3 + $0x1a0] sm:$0xff]  ;;  %327 = vst [vmem:[%s1299_s4 + $0xc0] sm:$0xff] %v326_v24  ;;  %329 = vst [vmem:[%s1299_s4 + $0xc8] sm:$0xff] %v328_v25  ;;  %v332_v27 = vld [vmem:[%s1294_s3 + $0x1b0] sm:$0xff] }
  0x25   : > { %331 = vst [vmem:[%s1299_s4 + $0xd0] sm:$0xff] %v330_v26  ;;  %v334_v28 = vld [vmem:[%s1294_s3 + $0x1c0] sm:$0xff]  ;;  %v336_v29 = vld [vmem:[%s1294_s3 + $0x1d0] sm:$0xff]  ;;  %333 = vst [vmem:[%s1299_s4 + $0xd8] sm:$0xff] %v332_v27 }
  0x26   : > { %335 = vst [vmem:[%s1299_s4 + $0xe0] sm:$0xff] %v334_v28  ;;  %337 = vst [vmem:[%s1299_s4 + $0xe8] sm:$0xff] %v336_v29  ;;  %v338_v30 = vld [vmem:[%s1294_s3 + $0x1e0] sm:$0xff]  ;;  %v340_v31 = vld [vmem:[%s1294_s3 + $0x1f0] sm:$0xff] }
  0x27   : > { %v342_v32 = vld [vmem:[%s1294_s3 + $0x200] sm:$0xff]  ;;  %339 = vst [vmem:[%s1299_s4 + $0xf0] sm:$0xff] %v338_v30  ;;  %341 = vst [vmem:[%s1299_s4 + $0xf8] sm:$0xff] %v340_v31  ;;  %v344_v33 = vld [vmem:[%s1294_s3 + $0x210] sm:$0xff] }
  0x28   : > { %343 = vst [vmem:[%s1299_s4 + $0x100] sm:$0xff] %v342_v32  ;;  %v346_v34 = vld [vmem:[%s1294_s3 + $0x220] sm:$0xff]  ;;  %v348_v35 = vld [vmem:[%s1294_s3 + $0x230] sm:$0xff]  ;;  %345 = vst [vmem:[%s1299_s4 + $0x108] sm:$0xff] %v344_v33 }
  0x29   : > { %347 = vst [vmem:[%s1299_s4 + $0x110] sm:$0xff] %v346_v34  ;;  %349 = vst [vmem:[%s1299_s4 + $0x118] sm:$0xff] %v348_v35  ;;  %v350_v36 = vld [vmem:[%s1294_s3 + $0x240] sm:$0xff]  ;;  %v352_v37 = vld [vmem:[%s1294_s3 + $0x250] sm:$0xff] }
  0x2a   : > { %v354_v38 = vld [vmem:[%s1294_s3 + $0x260] sm:$0xff]  ;;  %351 = vst [vmem:[%s1299_s4 + $0x120] sm:$0xff] %v350_v36  ;;  %353 = vst [vmem:[%s1299_s4 + $0x128] sm:$0xff] %v352_v37  ;;  %v356_v39 = vld [vmem:[%s1294_s3 + $0x270] sm:$0xff] }
  0x2b   : > { %355 = vst [vmem:[%s1299_s4 + $0x130] sm:$0xff] %v354_v38  ;;  %v358_v40 = vld [vmem:[%s1294_s3 + $0x280] sm:$0xff]  ;;  %v360_v41 = vld [vmem:[%s1294_s3 + $0x290] sm:$0xff]  ;;  %357 = vst [vmem:[%s1299_s4 + $0x138] sm:$0xff] %v356_v39 }
  0x2c   : > { %359 = vst [vmem:[%s1299_s4 + $0x140] sm:$0xff] %v358_v40  ;;  %361 = vst [vmem:[%s1299_s4 + $0x148] sm:$0xff] %v360_v41  ;;  %v362_v42 = vld [vmem:[%s1294_s3 + $0x2a0] sm:$0xff]  ;;  %v364_v43 = vld [vmem:[%s1294_s3 + $0x2b0] sm:$0xff] }
  0x2d   : > { %v366_v44 = vld [vmem:[%s1294_s3 + $0x2c0] sm:$0xff]  ;;  %363 = vst [vmem:[%s1299_s4 + $0x150] sm:$0xff] %v362_v42  ;;  %365 = vst [vmem:[%s1299_s4 + $0x158] sm:$0xff] %v364_v43  ;;  %v368_v45 = vld [vmem:[%s1294_s3 + $0x2d0] sm:$0xff] }
  0x2e   : > { %367 = vst [vmem:[%s1299_s4 + $0x160] sm:$0xff] %v366_v44  ;;  %v370_v46 = vld [vmem:[%s1294_s3 + $0x2e0] sm:$0xff]  ;;  %v372_v47 = vld [vmem:[%s1294_s3 + $0x2f0] sm:$0xff]  ;;  %369 = vst [vmem:[%s1299_s4 + $0x168] sm:$0xff] %v368_v45 }
  0x2f   : > { %371 = vst [vmem:[%s1299_s4 + $0x170] sm:$0xff] %v370_v46  ;;  %373 = vst [vmem:[%s1299_s4 + $0x178] sm:$0xff] %v372_v47 }
  0x30 PF: > { %p966_p7 = scmp.ge.s32.totalorder %s1215_s15, 1  ;;  %p378_p8 = scmp.lt.s32.totalorder %s1215_s15, 13 }
  0x32   : > { %p379_p9 = pnand %p966_p7, %p378_p8 }
  0x33   : > { %s385_s5 = sand.u32 (!%p379_p9), 1, %s1191_s9   ;;  %s419_s6 = smul.u32 (!%p379_p9), 3, %s1199_s11 }
  0x34   : > { %382 = sbr.rel (%p379_p9) target bundleno = 340 (0x154), region = 62  ;;  %s968_s8 = sshll.u32 (!%p379_p9), %s1203_s12, 1 }
  0x35   : > { %s1027_s7 = smul.u32 (!%p379_p9), 384, %s385_s5  ;;  %p422_p10 = scmp.lt.s32.totalorder (!%p379_p9), %s419_s6, 17 }
  0x36   : > { %p434_p11 = scmp.lt.s32.totalorder (!%p379_p9), %s968_s8, 3  ;;  %p970_p12 = scmp.ne.s32.totalorder (!%p379_p9), %s1199_s11, 0 }
  0x37   : > { %s1409_s9 = scalar_lea.vmem (!%p379_p9), [#allocation3], %s1027_s7 }
  0x39   : > { %s1502_s6 = smov (!%p422_p10, %s419_s6), 17  ;;  %s1504_s8 = smov (!%p434_p11, %s968_s8), 3 }
  0x3a   : > { %s967_s18 = sshll.u32 %s1502_s6, 2  ;;  %s969_s23 = sshll.u32 %s1504_s8, 3 }
  0x3b   : > { %s1402_s21 = scalar_lea.vmem %s1486_s0, %s967_s18  ;;  %s1407_s26 = scalar_lea.vmem %s1488_s2, %s969_s23 }
  0x3c   : > { %445 = sbr.rel (%p970_p12) target bundleno = 67 (0x43), region = 70 }
  0x41   : > { %v1217_v48 = vmov 0.0  }
  0x42   : > { %446 = vst [vmem:[#allocation2] sm:$0xff] %v1217_v48  ;;  %447 = vst [vmem:[#allocation2 + $0x8] sm:$0xff] %v1217_v48 }
  0x43 PF: > { %v1086_v49 = vld [vmem:[%s1409_s9 + $0x74] ss:$8 sps:$4 sm:$0xff]   ;;  %v1088_v50 = vld [vmem:[%s1409_s9 + $0x70] ss:$8 sps:$4 sm:$0xff]   ;;  %v1218_v51 = vmov 0   ;;  %p1022_p13 = scmp.ne.s32.totalorder %s1199_s11, 5 }
  0x44   : > { %824 = vmatprep.mubr.bf16.mxu1 %v1218_v51  ;;  %751 = vmatprep.subr.bf16.mxu0 %v1086_v49  ;;  %v1089_v52 = vld [vmem:[%s1409_s9 + $0x64] ss:$8 sps:$4 sm:$0xff]   ;;  %v1091_v53 = vld [vmem:[%s1409_s9 + $0x60] ss:$8 sps:$4 sm:$0xff]   ;;  %v1092_v54 = vld [vmem:[%s1409_s9 + $0x54] ss:$8 sps:$4 sm:$0xff]  }
  0x45   : > { %752 = vmatpush1.bf16.msra.mxu0 %v1088_v50  ;;  %v1094_v55 = vld [vmem:[%s1409_s9 + $0x50] ss:$8 sps:$4 sm:$0xff]   ;;  %v1095_v56 = vld [vmem:[%s1409_s9 + $0x44] ss:$8 sps:$4 sm:$0xff]   ;;  %v1107_v57 = vld [vmem:[%s1409_s9 + $0x174] ss:$8 sps:$4 sm:$0xff]  }
  0x46   : > { %753 = vmatprep.subr.bf16.mxu0 %v1089_v52  ;;  %v1109_v58 = vld [vmem:[%s1409_s9 + $0x170] ss:$8 sps:$4 sm:$0xff]   ;;  %v1097_v59 = vld [vmem:[%s1409_s9 + $0x40] ss:$8 sps:$4 sm:$0xff]   ;;  %v1098_v60 = vld [vmem:[%s1409_s9 + $0x34] ss:$8 sps:$4 sm:$0xff]   ;;  %792 = vmatprep.subr.bf16.mxu1 %v1107_v57 }
  0x47   : > { %v1113_v61 = vld [vmem:[%s1409_s9 + $0x164] ss:$8 sps:$4 sm:$0xff]   ;;  %793 = vmatpush1.bf16.msra.mxu1 %v1109_v58  ;;  %v1115_v62 = vld [vmem:[%s1409_s9 + $0x160] ss:$8 sps:$4 sm:$0xff]   ;;  %v1100_v63 = vld [vmem:[%s1409_s9 + $0x30] ss:$8 sps:$4 sm:$0xff]  }
  0x48   : > { %794 = vmatprep.subr.bf16.mxu1 %v1113_v61  ;;  %v1119_v0 = vld [vmem:[%s1409_s9 + $0x154] ss:$8 sps:$4 sm:$0xff]   ;;  %v1101_v1 = vld [vmem:[%s1409_s9 + $0x24] ss:$8 sps:$4 sm:$0xff]   ;;  %v1121_v2 = vld [vmem:[%s1409_s9 + $0x150] ss:$8 sps:$4 sm:$0xff]  }
  0x49   : > { %754 = vmatpush1.bf16.msra.mxu0 %v1091_v53  ;;  %v1125_v3 = vld [vmem:[%s1409_s9 + $0x144] ss:$8 sps:$4 sm:$0xff]   ;;  %v1103_v4 = vld [vmem:[%s1409_s9 + $0x20] ss:$8 sps:$4 sm:$0xff]   ;;  %v1104_v5 = vld [vmem:[%s1409_s9 + $0x14] ss:$8 sps:$4 sm:$0xff]  }
  0x4a   : > { %755 = vmatprep.subr.bf16.mxu0 %v1092_v54  ;;  %v1127_v6 = vld [vmem:[%s1409_s9 + $0x140] ss:$8 sps:$4 sm:$0xff]   ;;  %v1131_v7 = vld [vmem:[%s1409_s9 + $0x134] ss:$8 sps:$4 sm:$0xff]   ;;  %v1106_v8 = vld [vmem:[%s1409_s9 + $0x10] ss:$8 sps:$4 sm:$0xff]  }
  0x4b   : > { %795 = vmatpush1.bf16.msra.mxu1 %v1115_v62  ;;  %v1110_v9 = vld [vmem:[%s1409_s9 + $0x4] ss:$8 sps:$4 sm:$0xff]   ;;  %v1133_v10 = vld [vmem:[%s1409_s9 + $0x130] ss:$8 sps:$4 sm:$0xff]   ;;  %v1112_v12 = vld [vmem:[%s1409_s9] ss:$8 sps:$4 sm:$0xff]  }
  0x4c   : > { %796 = vmatprep.subr.bf16.mxu1 %v1119_v0  ;;  %v1137_v11 = vld [vmem:[%s1409_s9 + $0x124] ss:$8 sps:$4 sm:$0xff]   ;;  %v1116_v13 = vld [vmem:[%s1409_s9 + $0xf4] ss:$8 sps:$4 sm:$0xff]   ;;  %v1139_v14 = vld [vmem:[%s1409_s9 + $0x120] ss:$8 sps:$4 sm:$0xff]  }
  0x4d   : > { %756 = vmatpush1.bf16.msra.mxu0 %v1094_v55  ;;  %v1143_v15 = vld [vmem:[%s1409_s9 + $0x114] ss:$8 sps:$4 sm:$0xff]   ;;  %v1118_v16 = vld [vmem:[%s1409_s9 + $0xf0] ss:$8 sps:$4 sm:$0xff]   ;;  %v1122_v17 = vld [vmem:[%s1409_s9 + $0xe4] ss:$8 sps:$4 sm:$0xff]  }
  0x4e   : > { %757 = vmatprep.subr.bf16.mxu0 %v1095_v56  ;;  %v450_v18 = vld [vmem:[%s1402_s21] sm:$0xff]  ;;  %v1149_v21 = vld [vmem:[%s1409_s9 + $0x104] ss:$8 sps:$4 sm:$0xff]   ;;  %v1124_v22 = vld [vmem:[%s1409_s9 + $0xe0] ss:$8 sps:$4 sm:$0xff]  }
  0x4f   : > { %797 = vmatpush1.bf16.msra.mxu1 %v1121_v2  ;;  %v1145_v19 = vld [vmem:[%s1409_s9 + $0x110] ss:$8 sps:$4 sm:$0xff]   ;;  %v972_v20 = vcombine.high %v450_v18, %v450_v18  ;;  %v1128_v23 = vld [vmem:[%s1409_s9 + $0xd4] ss:$8 sps:$4 sm:$0xff]   ;;  %v1151_v24 = vld [vmem:[%s1409_s9 + $0x100] ss:$8 sps:$4 sm:$0xff]   ;;  %v971_v37 = vcombine.low %v450_v18, %v450_v18 }
  0x50   : > { %798 = vmatprep.subr.bf16.mxu1 %v1125_v3  ;;  %v1130_v25 = vld [vmem:[%s1409_s9 + $0xd0] ss:$8 sps:$4 sm:$0xff]   ;;  %v1134_v26 = vld [vmem:[%s1409_s9 + $0xc4] ss:$8 sps:$4 sm:$0xff]   ;;  %v1136_v28 = vld [vmem:[%s1409_s9 + $0xc0] ss:$8 sps:$4 sm:$0xff]  }
  0x51   : > { %758 = vmatpush1.bf16.msra.mxu0 %v1097_v59  ;;  %783 = vmatprep.mubr.bf16.mxu0 %v972_v20  ;;  %v1155_v27 = vld [vmem:[%s1402_s21 + $0x8] ss:$0 sps:$4 sm:$0xff]   ;;  %v1140_v29 = vld [vmem:[%s1409_s9 + $0xb4] ss:$8 sps:$4 sm:$0xff]   ;;  %v1146_v31 = vld [vmem:[%s1409_s9 + $0xa4] ss:$8 sps:$4 sm:$0xff]  }
  0x52   : > { %759 = vmatprep.subr.bf16.mxu0 %v1098_v60  ;;  %v1142_v30 = vld [vmem:[%s1409_s9 + $0xb0] ss:$8 sps:$4 sm:$0xff]   ;;  %v1148_v32 = vld [vmem:[%s1409_s9 + $0xa0] ss:$8 sps:$4 sm:$0xff]   ;;  %v1152_v33 = vld [vmem:[%s1409_s9 + $0x94] ss:$8 sps:$4 sm:$0xff]  }
  0x53   : > { %799 = vmatpush1.bf16.msra.mxu1 %v1127_v6  ;;  %v1154_v34 = vld [vmem:[%s1409_s9 + $0x90] ss:$8 sps:$4 sm:$0xff]   ;;  %v1156_v35 = vld [vmem:[%s1409_s9 + $0x84] ss:$8 sps:$4 sm:$0xff]   ;;  %v1158_v36 = vld [vmem:[%s1409_s9 + $0x80] ss:$8 sps:$4 sm:$0xff]  }
  0x54   : > { %800 = vmatprep.subr.bf16.mxu1 %v1131_v7  ;;  %v448_v42 = vld [vmem:[#allocation2] sm:$0xff]  ;;  %v449_v45 = vld [vmem:[#allocation2 + $0x8] sm:$0xff] }
  0x55   : > { %760 = vmatpush1.bf16.msra.mxu0 %v1100_v63 }
  0x56   : > { %761 = vmatprep.subr.bf16.mxu0 %v1101_v1 }
  0x57   : > { %801 = vmatpush1.bf16.msra.mxu1 %v1133_v10 }
  0x58   : > { %802 = vmatprep.subr.bf16.mxu1 %v1137_v11 }
  0x59   : > { %762 = vmatpush1.bf16.msra.mxu0 %v1103_v4 }
  0x5a   : > { %763 = vmatprep.subr.bf16.mxu0 %v1104_v5 }
  0x5b   : > { %803 = vmatpush1.bf16.msra.mxu1 %v1139_v14 }
  0x5c   : > { %804 = vmatprep.subr.bf16.mxu1 %v1143_v15 }
  0x5d   : > { %764 = vmatpush1.bf16.msra.mxu0 %v1106_v8 }
  0x5e   : > { %765 = vmatprep.subr.bf16.mxu0 %v1110_v9 }
  0x5f   : > { %805 = vmatpush1.bf16.msra.mxu1 %v1145_v19 }
  0x60   : > { %806 = vmatprep.subr.bf16.mxu1 %v1149_v21 }
  0x61   : > { %766 = vmatpush1.bf16.msra.mxu0 %v1112_v12 }
  0x62   : > { %767 = vmatprep.subr.bf16.mxu0 %v1116_v13 }
  0x63   : > { %807 = vmatpush1.bf16.msra.mxu1 %v1151_v24 }
  0x65   : > { %768 = vmatpush2.bf16.msra.mxu0 %v1118_v16 }
  0x66   : > { %769 = vmatprep.subr.bf16.mxu0 %v1122_v17  ;;  %825 = vmatmul.mubr.bf16.vlgmr.msra.gmra.mxu1 %v1155_v27 }
  0x69   : > { %770 = vmatpush2.bf16.msra.mxu0 %v1124_v22 }
  0x6a   : > { %771 = vmatprep.subr.bf16.mxu0 %v1128_v23 }
  0x6d   : > { %772 = vmatpush2.bf16.msra.mxu0 %v1130_v25 }
  0x6e   : > { %773 = vmatprep.subr.bf16.mxu0 %v1134_v26 }
  0x71   : > { %774 = vmatpush2.bf16.msra.mxu0 %v1136_v28 }
  0x72   : > { %775 = vmatprep.subr.bf16.mxu0 %v1140_v29 }
  0x75   : > { %776 = vmatpush2.bf16.msra.mxu0 %v1142_v30 }
  0x76   : > { %777 = vmatprep.subr.bf16.mxu0 %v1146_v31 }
  0x79   : > { %778 = vmatpush2.bf16.msra.mxu0 %v1148_v32 }
  0x7a   : > { %779 = vmatprep.subr.bf16.mxu0 %v1152_v33 }
  0x7d   : > { %780 = vmatpush2.bf16.msra.mxu0 %v1154_v34 }
  0x7e   : > { %781 = vmatprep.subr.bf16.mxu0 %v1156_v35 }
  0x81   : > { %782 = vmatpush2.bf16.msra.mxu0 %v1158_v36 }
  0x84   : > { %784 = vmatmul.mubr.bf16.vlgmr.msra.gmra.mxu0 %v971_v37 }
 0x126   : > { %v826_v38 = vpop.f32.mrf.mxu1 }
 0x128   : > { %v828_v39 = vpop.f32.mrf.mxu1 }
 0x12a   : > { %v830_v40 = vpop.f32.mrf.mxu1 }
 0x12c   : > { %v831_v41 = vpop.f32.mrf.mxu1 }
 0x144   : > { %v785_v43 = vpop.f32.mrf.mxu0 }
 0x145   : > { %v827_v44 = vadd.f32 %v826_v38, %v785_v43 }
 0x146   : > { %v787_v46 = vpop.f32.mrf.mxu0 }
 0x147   : > { %v833_v47 = vadd.f32 %v827_v44, %v448_v42  ;;  %v829_v48 = vadd.f32 %v828_v39, %v787_v46  ;;  %840 = sbr.rel (%p1022_p13) target bundleno = 340 (0x154), region = 74 }
 0x148   : > { %v789_v49 = vpop.f32.mrf.mxu0 }
 0x149   : > { %835 = vst [vmem:[#allocation2] sm:$0xff] %v833_v47  ;;  %v834_v50 = vadd.f32 %v829_v48, %v449_v45 }
 0x14a   : > { %v790_v51 = vpop.f32.mrf.mxu0 }
 0x14b   : > { %836 = vst [vmem:[#allocation2 + $0x8] sm:$0xff] %v834_v50 }
 0x150   : > { %v841_v52 = vld [vmem:[#allocation2] sm:$0xff] }
 0x151   : > { %843 = vst [vmem:[%s1407_s26] sm:$0xff] %v841_v52 }
 0x152   : > { %v842_v53 = vld [vmem:[#allocation2 + $0x8] sm:$0xff] }
 0x153   : > { %844 = vst [vmem:[%s1407_s26 + $0x8] sm:$0xff] %v842_v53 }
 0x154 PF: > { %s12_s15 = sadd.s32 1, %s1215_s15   ;;  %s1489_s9 = smov %s1195_s10 }
 0x155   : > { %p9_p0 = scmp.ge.s32.totalorder %s12_s15, 14   ;;  %s1490_s10 = smov %s1285_s22 }
 0x156   : > { %s1491_s11 = smov %s1207_s13  ;;  %s1492_s12 = smov %s1211_s14 }
 0x157   : > { %s1493_s13 = smov %s1496_s16  ;;  %s1494_s14 = smov %s1500_s17 }
 0x158   :  { %11 = sbr.rel (!%p9_p0) target bundleno = 4 (0x4), region = 112 }

// kernel: _lambda_.100
= control target key start
LH: loop header
LB: loop body
LE: loop exit
PB: predicated region body
PF: predicated region fallthrough
CT: control target
= control target key end

     0   :  { %v14_v0 = vlaneseq  ;;  %v154_v4 = vmov 1966171168   ;;  %v155_v11 = vmov 0.0   ;;  %s213_s0 = inlined_call_operand.vmem [shape: f32[8,512], index: 0, kind: input, shape index: {}]   ;;  %s214_s1 = inlined_call_operand.vmem [shape: f32[1,512], index: 1, kind: output, shape index: {0}]   ;;  %s215_s2 = inlined_call_operand.vmem [shape: f32[1,512], index: 2, kind: output, shape index: {1}]  }
   0x1   :  { %v20_v1 = vld [vmem:[%s213_s0] sm:$0xff]  ;;  %v21_v2 = vld [vmem:[%s213_s0 + $0x8] sm:$0xff]  ;;  %v22_v3 = vld [vmem:[%s213_s0 + $0x10] sm:$0xff]  ;;  %v56_v5 = vunpack.c.l.s4 %v154_v4 }
   0x2   :  { %vm180_vm0 = vcmp.lt.s32.totalorder %v14_v0, 512  ;;  %v23_v7 = vld [vmem:[%s213_s0 + $0x18] sm:$0xff]  ;;  %v25_v8 = vrot.slane %v20_v1, 4  ;;  %v31_v9 = vrot.slane %v21_v2, 4  ;;  %v37_v10 = vrot.slane %v22_v3, 4 }
   0x3   :  { %18 = vst.msk [vmem:[%s214_s1] sm:$0xf] %vm180_vm0, %v155_v11  ;;  %v43_v12 = vrot.slane %v23_v7, 4  ;;  %v57_v13 = vunpack.c.0.s8 %v56_v5  ;;  %v59_v14 = vshrl.u32 %v14_v0, 7  ;;  %19 = vst.msk [vmem:[%s215_s2] sm:$0xf] %vm180_vm0, %v155_v11  ;;  %v85_v15 = vmul.f32 %v20_v1, %v20_v1 }
   0x4   :  { %v26_v16 = vadd.f32 %v25_v8, %v20_v1  ;;  %v32_v17 = vadd.f32 %v31_v9, %v21_v2  ;;  %v38_v18 = vadd.f32 %v37_v10, %v22_v3  ;;  %v86_v19 = vmul.f32 %v21_v2, %v21_v2 }
   0x5   :  { %v44_v20 = vadd.f32 %v43_v12, %v23_v7  ;;  %v60_v21 = vsub.s32 %v57_v13, %v59_v14  ;;  %v87_v22 = vmul.f32 %v22_v3, %v22_v3  ;;  %v88_v23 = vmul.f32 %v23_v7, %v23_v7 }
   0x6   :  { %v27_v24 = vrot.slane %v26_v16, 2  ;;  %v33_v25 = vrot.slane %v32_v17, 2  ;;  %v39_v26 = vrot.slane %v38_v18, 2  ;;  %v89_v27 = vrot.slane %v85_v15, 4 }
   0x7   :  { %v45_v28 = vrot.slane %v44_v20, 2  ;;  %v95_v29 = vrot.slane %v86_v19, 4  ;;  %v101_v30 = vrot.slane %v87_v22, 4  ;;  %v107_v31 = vrot.slane %v88_v23, 4 }
   0x8   :  { %v28_v32 = vadd.f32 %v27_v24, %v26_v16  ;;  %v34_v33 = vadd.f32 %v33_v25, %v32_v17  ;;  %v40_v34 = vadd.f32 %v39_v26, %v38_v18  ;;  %v90_v35 = vadd.f32 %v89_v27, %v85_v15 }
   0x9   :  { %v46_v36 = vadd.f32 %v45_v28, %v44_v20  ;;  %v96_v37 = vadd.f32 %v95_v29, %v86_v19  ;;  %v102_v38 = vadd.f32 %v101_v30, %v87_v22  ;;  %v108_v39 = vadd.f32 %v107_v31, %v88_v23 }
   0xa   :  { %v29_v40 = vrot.slane %v28_v32, 1  ;;  %v35_v41 = vrot.slane %v34_v33, 1  ;;  %v41_v42 = vrot.slane %v40_v34, 1  ;;  %v91_v43 = vrot.slane %v90_v35, 2  ;;  %v24_v8 = vld [vmem:[%s214_s1] sm:$0xf] }
   0xb   :  { %v47_v44 = vrot.slane %v46_v36, 1  ;;  %v97_v45 = vrot.slane %v96_v37, 2  ;;  %v103_v46 = vrot.slane %v102_v38, 2  ;;  %v109_v47 = vrot.slane %v108_v39, 2  ;;  %v84_v14 = vld [vmem:[%s215_s2] sm:$0xf] }
   0xc   :  { %v30_v48 = vadd.f32 %v29_v40, %v28_v32  ;;  %v36_v49 = vadd.f32 %v35_v41, %v34_v33  ;;  %v42_v50 = vadd.f32 %v41_v42, %v40_v34  ;;  %v92_v51 = vadd.f32 %v91_v43, %v90_v35 }
   0xd   :  { %v48_v52 = vadd.f32 %v47_v44, %v46_v36  ;;  %v98_v53 = vadd.f32 %v97_v45, %v96_v37  ;;  %v104_v54 = vadd.f32 %v103_v46, %v102_v38  ;;  %v110_v55 = vadd.f32 %v109_v47, %v108_v39 }
   0xe   :  { %v53_v56 = vcombine.low %v30_v48, %v36_v49  ;;  %v93_v57 = vrot.slane %v92_v51, 1 }
   0xf   :  { %v54_v58 = vcombine.low %v42_v50, %v48_v52  ;;  %v99_v59 = vrot.slane %v98_v53, 1  ;;  %v105_v60 = vrot.slane %v104_v54, 1  ;;  %v111_v61 = vrot.slane %v110_v55, 1 }
  0x10   :  { %v61_v62 = vrot.slane %v53_v56, %v60_v21  ;;  %v94_v63 = vadd.f32 %v93_v57, %v92_v51 }
  0x11   :  { %v68_v0 = vrot.slane %v54_v58, %v60_v21  ;;  %v100_v1 = vadd.f32 %v99_v59, %v98_v53  ;;  %v106_v2 = vadd.f32 %v105_v60, %v104_v54  ;;  %v112_v3 = vadd.f32 %v111_v61, %v110_v55 }
  0x13   :  { %v69_v4 = vcombine.low %v61_v62, %v68_v0  ;;  %v117_v5 = vcombine.low %v94_v63, %v100_v1  ;;  %v118_v7 = vcombine.low %v106_v2, %v112_v3 }
  0x15   :  { %v76_v9 = vrot.slane %v69_v4, %v60_v21  ;;  %v125_v10 = vrot.slane %v117_v5, %v60_v21  ;;  %v132_v11 = vrot.slane %v118_v7, %v60_v21 }
  0x17   :  { %v78_v12 = vadd.f32 %v76_v9, %v24_v8  ;;  %v133_v13 = vcombine.low %v125_v10, %v132_v11 }
  0x19   :  { %83 = vst.msk [vmem:[%s214_s1] sm:$0xf] %vm180_vm0, %v78_v12  ;;  %v140_v15 = vrot.slane %v133_v13, %v60_v21 }
  0x1b   :  { %v142_v16 = vadd.f32 %v140_v15, %v84_v14 }
  0x1d   :  { %143 = vst.msk [vmem:[%s215_s2] sm:$0xf] %vm180_vm0, %v142_v16 }

// kernel: _lambda_.101
= control target key start
LH: loop header
LB: loop body
LE: loop exit
PB: predicated region body
PF: predicated region fallthrough
CT: control target
= control target key end

     0   :  { %v20_v0 = vlaneseq  ;;  %s132_s1 = inlined_call_operand.vmem [shape: f32[1,512], index: 1, kind: input, shape index: {}]   ;;  %s133_s2 = inlined_call_operand.vmem [shape: f32[1,512], index: 2, kind: input, shape index: {}]   ;;  %s134_s0 = inlined_call_operand.vmem [shape: f32[8,512], index: 0, kind: input, shape index: {}]   ;;  %s135_s3 = inlined_call_operand.vmem [shape: f32[8,512], index: 3, kind: output, shape index: {}]  }
   0x1   :  { %v18_v2 = vld [vmem:[%s132_s1] sm:$0xf]  ;;  %v15_v9 = vld [vmem:[%s134_s0 + $0x8] sm:$0xff]  ;;  %v16_v14 = vld [vmem:[%s134_s0 + $0x10] sm:$0xff] }
   0x2   :  { %v21_v1 = vshrl.u32 %v20_v0, 7  ;;  %v44_v3 = vld [vmem:[%s133_s2] sm:$0xf]  ;;  %v17_v15 = vld [vmem:[%s134_s0 + $0x18] sm:$0xff] }
   0x3   :  { %v14_v8 = vld [vmem:[%s134_s0] sm:$0xff] }
   0x4   :  { %v22_v4 = vsub.s32 0, %v21_v1  ;;  %v26_v5 = vsub.s32 1, %v21_v1  ;;  %v30_v6 = vsub.s32 2, %v21_v1  ;;  %v34_v7 = vsub.s32 3, %v21_v1 }
   0x6   :  { %v23_v10 = vrot.slane %v18_v2, %v22_v4  ;;  %v49_v11 = vrot.slane %v44_v3, %v22_v4  ;;  %v27_v12 = vrot.slane %v18_v2, %v26_v5  ;;  %v53_v13 = vrot.slane %v44_v3, %v26_v5 }
   0x7   :  { %v31_v16 = vrot.slane %v18_v2, %v30_v6  ;;  %v57_v17 = vrot.slane %v44_v3, %v30_v6  ;;  %v35_v18 = vrot.slane %v18_v2, %v34_v7  ;;  %v61_v19 = vrot.slane %v44_v3, %v34_v7 }
   0x8   :  { %v40_v20 = vmul.f32 %v23_v10, %v14_v8  ;;  %v41_v21 = vmul.f32 %v27_v12, %v15_v9 }
   0x9   :  { %v42_v22 = vmul.f32 %v31_v16, %v16_v14  ;;  %v43_v23 = vmul.f32 %v35_v18, %v17_v15 }
   0xa   :  { %v66_v24 = vadd.f32 %v49_v11, %v40_v20  ;;  %v67_v25 = vadd.f32 %v53_v13, %v41_v21 }
   0xb   :  { %v68_v26 = vadd.f32 %v57_v17, %v42_v22  ;;  %v69_v27 = vadd.f32 %v61_v19, %v43_v23 }
   0xc   :  { %v70_v28 = vmax.f32 %v66_v24, 0.0  ;;  %v71_v29 = vmax.f32 %v67_v25, 0.0 }
   0xd   :  { %v72_v30 = vmax.f32 %v68_v26, 0.0  ;;  %v73_v31 = vmax.f32 %v69_v27, 0.0 }
   0xe   :  { %74 = vst [vmem:[%s135_s3] sm:$0xff] %v70_v28  ;;  %75 = vst [vmem:[%s135_s3 + $0x8] sm:$0xff] %v71_v29 }
   0xf   :  { %76 = vst [vmem:[%s135_s3 + $0x10] sm:$0xff] %v72_v30  ;;  %77 = vst [vmem:[%s135_s3 + $0x18] sm:$0xff] %v73_v31 }

// kernel: _lambda_.105
= control target key start
LH: loop header
LB: loop body
LE: loop exit
PB: predicated region body
PF: predicated region fallthrough
CT: control target
= control target key end

     0   :  { %v23_v0 = vlaneseq  ;;  %s160_s1 = inlined_call_operand.vmem [shape: f32[1,512], index: 1, kind: input, shape index: {}]   ;;  %s161_s2 = inlined_call_operand.vmem [shape: f32[1,512], index: 2, kind: input, shape index: {}]   ;;  %s162_s0 = inlined_call_operand.vmem [shape: f32[8,512], index: 0, kind: input, shape index: {}]   ;;  %s163_s3 = inlined_call_operand.vmem [shape: f32[8,512], index: 3, kind: input, shape index: {}]   ;;  %s164_s4 = inlined_call_operand.vmem [shape: f32[8,512], index: 4, kind: output, shape index: {}]  }
   0x1   :  { %v21_v2 = vld [vmem:[%s160_s1] sm:$0xf]  ;;  %v18_v9 = vld [vmem:[%s162_s0 + $0x8] sm:$0xff]  ;;  %v19_v14 = vld [vmem:[%s162_s0 + $0x10] sm:$0xff] }
   0x2   :  { %v24_v1 = vshrl.u32 %v23_v0, 7  ;;  %v47_v3 = vld [vmem:[%s161_s2] sm:$0xf]  ;;  %v20_v15 = vld [vmem:[%s162_s0 + $0x18] sm:$0xff]  ;;  %v74_v23 = vld [vmem:[%s163_s3 + $0x8] sm:$0xff] }
   0x3   :  { %v17_v8 = vld [vmem:[%s162_s0] sm:$0xff]  ;;  %v75_v28 = vld [vmem:[%s163_s3 + $0x10] sm:$0xff]  ;;  %v76_v29 = vld [vmem:[%s163_s3 + $0x18] sm:$0xff] }
   0x4   :  { %v25_v4 = vsub.s32 0, %v24_v1  ;;  %v29_v5 = vsub.s32 1, %v24_v1  ;;  %v33_v6 = vsub.s32 2, %v24_v1  ;;  %v37_v7 = vsub.s32 3, %v24_v1  ;;  %v73_v22 = vld [vmem:[%s163_s3] sm:$0xff] }
   0x6   :  { %v26_v10 = vrot.slane %v21_v2, %v25_v4  ;;  %v52_v11 = vrot.slane %v47_v3, %v25_v4  ;;  %v30_v12 = vrot.slane %v21_v2, %v29_v5  ;;  %v56_v13 = vrot.slane %v47_v3, %v29_v5 }
   0x7   :  { %v34_v16 = vrot.slane %v21_v2, %v33_v6  ;;  %v60_v17 = vrot.slane %v47_v3, %v33_v6  ;;  %v38_v18 = vrot.slane %v21_v2, %v37_v7  ;;  %v64_v19 = vrot.slane %v47_v3, %v37_v7 }
   0x8   :  { %v43_v20 = vmul.f32 %v26_v10, %v17_v8  ;;  %v44_v21 = vmul.f32 %v30_v12, %v18_v9 }
   0x9   :  { %v45_v24 = vmul.f32 %v34_v16, %v19_v14  ;;  %v46_v25 = vmul.f32 %v38_v18, %v20_v15 }
   0xa   :  { %v69_v26 = vadd.f32 %v52_v11, %v43_v20  ;;  %v70_v27 = vadd.f32 %v56_v13, %v44_v21 }
   0xb   :  { %v71_v30 = vadd.f32 %v60_v17, %v45_v24  ;;  %v72_v31 = vadd.f32 %v64_v19, %v46_v25 }
   0xc   :  { %v77_v32 = vadd.f32 %v73_v22, %v69_v26  ;;  %v78_v33 = vadd.f32 %v74_v23, %v70_v27 }
   0xd   :  { %v79_v34 = vadd.f32 %v75_v28, %v71_v30  ;;  %v80_v35 = vadd.f32 %v76_v29, %v72_v31 }
   0xe   :  { %v81_v36 = vmax.f32 %v77_v32, 0.0  ;;  %v82_v37 = vmax.f32 %v78_v33, 0.0 }
   0xf   :  { %v83_v38 = vmax.f32 %v79_v34, 0.0  ;;  %v84_v39 = vmax.f32 %v80_v35, 0.0 }
  0x10   :  { %85 = vst [vmem:[%s164_s4] sm:$0xff] %v81_v36  ;;  %86 = vst [vmem:[%s164_s4 + $0x8] sm:$0xff] %v82_v37 }
  0x11   :  { %87 = vst [vmem:[%s164_s4 + $0x10] sm:$0xff] %v83_v38  ;;  %88 = vst [vmem:[%s164_s4 + $0x18] sm:$0xff] %v84_v39 }

// kernel: _lambda_.102
= control target key start
LH: loop header
LB: loop body
LE: loop exit
PB: predicated region body
PF: predicated region fallthrough
CT: control target
= control target key end

     0   :  { %s1438_s9 = smov 0   ;;  %s1440_s10 = smov 0   ;;  %s1738_s0 = inlined_call_operand.vmem [shape: bf16[8,4608], index: 0, kind: input, shape index: {}]   ;;  %s1739_s1 = inlined_call_operand.vmem [shape: bf16[4608,512], index: 1, kind: input, shape index: {}]   ;;  %s1740_s2 = inlined_call_operand.vmem [shape: f32[8,512], index: 2, kind: output, shape index: {}]  }
   0x1   :  { %s1442_s11 = smov 0   ;;  %s1444_s12 = smov 0  }
   0x2   :  { %s1446_s13 = smov 0   ;;  %s1448_s14 = smov 0  }
   0x3   :  { %s1450_s15 = smov 0  }
   0x4 LB: > { %s24_s16 = sadd.s32 1, %s1412_s13  ;;  %s27_s17 = sadd.s32 1, %s1416_s14  ;;  %s1420_s15 = sphi %s1450_s15, %s12_s15   ;;  %s1416_s14 = sphi %s1448_s14, %s1746_s14   ;;  %s1412_s13 = sphi %s1446_s13, %s1745_s13   ;;  %s1408_s12 = sphi %s1444_s12, %s1744_s12   ;;  %s1404_s11 = sphi %s1442_s11, %s1743_s11   ;;  %s1400_s10 = sphi %s1440_s10, %s1742_s10   ;;  %s1396_s9 = sphi %s1438_s9, %s1741_s9  }
   0x5   : > { %p25_p0 = scmp.ge.s32.totalorder %s24_s16, 9  ;;  %p75_p1 = scmp.ne.s32.totalorder %s1400_s10, %s1396_s9 }
   0x6   : > { %p76_p2 = scmp.eq.s32.totalorder %s1420_s15, 0  ;;  %s68_s21 = sadd.s32 1, %s1400_s10 }
   0x7   : > { %s1748_s16 = smov (%p25_p0, %s24_s16), 0  ;;  %s1750_s17 = smov (!%p25_p0, %s27_s17), %s1416_s14 }
   0x8   : > { %p77_p3 = por %p76_p2, %p75_p1  ;;  %p29_p4 = scmp.ge.s32.totalorder %s1750_s17, 2 }
   0x9   : > { %s63_s18 = ssub.s32 %s1412_s13, %s1748_s16  ;;  %p1124_p6 = scmp.ge.s32.totalorder %s1420_s15, 18 }
   0xa   : > { %s1752_s17 = smov (%p29_p4, %s1750_s17), 0 }
   0xb   : > { %s64_s19 = ssub.s32 %s1416_s14, %s1752_s17  ;;  %129 = sbr.rel (%p1124_p6) target bundleno = 55 (0x37), region = 16 }
   0xc   : > { %s65_s20 = sor.u32 %s64_s19, %s63_s18 }
   0xd   : > { %p66_p5 = scmp.eq.s32.totalorder %s65_s20, 0 }
   0xf   : > { %s1489_s22 = scalar_select %p66_p5, %s1400_s10, %s68_s21  }
  0x10   : > { %145 = sbr.rel (!%p77_p3) target bundleno = 55 (0x37), region = 24  ;;  %s147_s23 = sand.u32 (%p77_p3), 1, %s1400_s10  }
  0x11   : > { %s1127_s24 = sshll.u32 (%p77_p3), %s1416_s14, 1  ;;  %s1125_s25 = sshll.u32 (%p77_p3), %s147_s23, 9 }
  0x12   : > { %s1208_s26 = sshll.u32 (%p77_p3), %s1412_s13, 8  ;;  %s1503_s4 = scalar_lea.vmem (%p77_p3), [#allocation3], %s1125_s25 }
  0x13   : > { %s153_s27 = sadd.s32 (%p77_p3), %s1208_s26, %s1127_s24 }
  0x14   : > { %s1129_s28 = sshll.u32 (%p77_p3), %s153_s27, 2 }
  0x15   : > { %s1498_s3 = scalar_lea.vmem %s1739_s1, %s1129_s28 }
  0x16   : > { %v310_v0 = vld [vmem:[%s1498_s3] sm:$0xff]  ;;  %v312_v1 = vld [vmem:[%s1498_s3 + $0x10] sm:$0xff] }
  0x17   : > { %v314_v2 = vld [vmem:[%s1498_s3 + $0x20] sm:$0xff]  ;;  %311 = vst [vmem:[%s1503_s4] sm:$0xff] %v310_v0  ;;  %313 = vst [vmem:[%s1503_s4 + $0x8] sm:$0xff] %v312_v1  ;;  %v316_v3 = vld [vmem:[%s1498_s3 + $0x30] sm:$0xff] }
  0x18   : > { %315 = vst [vmem:[%s1503_s4 + $0x10] sm:$0xff] %v314_v2  ;;  %v318_v4 = vld [vmem:[%s1498_s3 + $0x40] sm:$0xff]  ;;  %v320_v5 = vld [vmem:[%s1498_s3 + $0x50] sm:$0xff]  ;;  %317 = vst [vmem:[%s1503_s4 + $0x18] sm:$0xff] %v316_v3 }
  0x19   : > { %319 = vst [vmem:[%s1503_s4 + $0x20] sm:$0xff] %v318_v4  ;;  %321 = vst [vmem:[%s1503_s4 + $0x28] sm:$0xff] %v320_v5  ;;  %v322_v6 = vld [vmem:[%s1498_s3 + $0x60] sm:$0xff]  ;;  %v324_v7 = vld [vmem:[%s1498_s3 + $0x70] sm:$0xff] }
  0x1a   : > { %v326_v8 = vld [vmem:[%s1498_s3 + $0x80] sm:$0xff]  ;;  %323 = vst [vmem:[%s1503_s4 + $0x30] sm:$0xff] %v322_v6  ;;  %325 = vst [vmem:[%s1503_s4 + $0x38] sm:$0xff] %v324_v7  ;;  %v328_v9 = vld [vmem:[%s1498_s3 + $0x90] sm:$0xff] }
  0x1b   : > { %327 = vst [vmem:[%s1503_s4 + $0x40] sm:$0xff] %v326_v8  ;;  %v330_v10 = vld [vmem:[%s1498_s3 + $0xa0] sm:$0xff]  ;;  %v332_v11 = vld [vmem:[%s1498_s3 + $0xb0] sm:$0xff]  ;;  %329 = vst [vmem:[%s1503_s4 + $0x48] sm:$0xff] %v328_v9 }
  0x1c   : > { %331 = vst [vmem:[%s1503_s4 + $0x50] sm:$0xff] %v330_v10  ;;  %333 = vst [vmem:[%s1503_s4 + $0x58] sm:$0xff] %v332_v11  ;;  %v334_v12 = vld [vmem:[%s1498_s3 + $0xc0] sm:$0xff]  ;;  %v336_v13 = vld [vmem:[%s1498_s3 + $0xd0] sm:$0xff] }
  0x1d   : > { %v338_v14 = vld [vmem:[%s1498_s3 + $0xe0] sm:$0xff]  ;;  %335 = vst [vmem:[%s1503_s4 + $0x60] sm:$0xff] %v334_v12  ;;  %337 = vst [vmem:[%s1503_s4 + $0x68] sm:$0xff] %v336_v13  ;;  %v340_v15 = vld [vmem:[%s1498_s3 + $0xf0] sm:$0xff] }
  0x1e   : > { %339 = vst [vmem:[%s1503_s4 + $0x70] sm:$0xff] %v338_v14  ;;  %v342_v16 = vld [vmem:[%s1498_s3 + $0x100] sm:$0xff]  ;;  %v344_v17 = vld [vmem:[%s1498_s3 + $0x110] sm:$0xff]  ;;  %341 = vst [vmem:[%s1503_s4 + $0x78] sm:$0xff] %v340_v15 }
  0x1f   : > { %343 = vst [vmem:[%s1503_s4 + $0x80] sm:$0xff] %v342_v16  ;;  %345 = vst [vmem:[%s1503_s4 + $0x88] sm:$0xff] %v344_v17  ;;  %v346_v18 = vld [vmem:[%s1498_s3 + $0x120] sm:$0xff]  ;;  %v348_v19 = vld [vmem:[%s1498_s3 + $0x130] sm:$0xff] }
  0x20   : > { %v350_v20 = vld [vmem:[%s1498_s3 + $0x140] sm:$0xff]  ;;  %347 = vst [vmem:[%s1503_s4 + $0x90] sm:$0xff] %v346_v18  ;;  %349 = vst [vmem:[%s1503_s4 + $0x98] sm:$0xff] %v348_v19  ;;  %v352_v21 = vld [vmem:[%s1498_s3 + $0x150] sm:$0xff] }
  0x21   : > { %351 = vst [vmem:[%s1503_s4 + $0xa0] sm:$0xff] %v350_v20  ;;  %v354_v22 = vld [vmem:[%s1498_s3 + $0x160] sm:$0xff]  ;;  %v356_v23 = vld [vmem:[%s1498_s3 + $0x170] sm:$0xff]  ;;  %353 = vst [vmem:[%s1503_s4 + $0xa8] sm:$0xff] %v352_v21 }
  0x22   : > { %355 = vst [vmem:[%s1503_s4 + $0xb0] sm:$0xff] %v354_v22  ;;  %357 = vst [vmem:[%s1503_s4 + $0xb8] sm:$0xff] %v356_v23  ;;  %v358_v24 = vld [vmem:[%s1498_s3 + $0x180] sm:$0xff]  ;;  %v360_v25 = vld [vmem:[%s1498_s3 + $0x190] sm:$0xff] }
  0x23   : > { %v362_v26 = vld [vmem:[%s1498_s3 + $0x1a0] sm:$0xff]  ;;  %359 = vst [vmem:[%s1503_s4 + $0xc0] sm:$0xff] %v358_v24  ;;  %361 = vst [vmem:[%s1503_s4 + $0xc8] sm:$0xff] %v360_v25  ;;  %v364_v27 = vld [vmem:[%s1498_s3 + $0x1b0] sm:$0xff] }
  0x24   : > { %363 = vst [vmem:[%s1503_s4 + $0xd0] sm:$0xff] %v362_v26  ;;  %v366_v28 = vld [vmem:[%s1498_s3 + $0x1c0] sm:$0xff]  ;;  %v368_v29 = vld [vmem:[%s1498_s3 + $0x1d0] sm:$0xff]  ;;  %365 = vst [vmem:[%s1503_s4 + $0xd8] sm:$0xff] %v364_v27 }
  0x25   : > { %367 = vst [vmem:[%s1503_s4 + $0xe0] sm:$0xff] %v366_v28  ;;  %369 = vst [vmem:[%s1503_s4 + $0xe8] sm:$0xff] %v368_v29  ;;  %v370_v30 = vld [vmem:[%s1498_s3 + $0x1e0] sm:$0xff]  ;;  %v372_v31 = vld [vmem:[%s1498_s3 + $0x1f0] sm:$0xff] }
  0x26   : > { %v374_v32 = vld [vmem:[%s1498_s3 + $0x200] sm:$0xff]  ;;  %371 = vst [vmem:[%s1503_s4 + $0xf0] sm:$0xff] %v370_v30  ;;  %373 = vst [vmem:[%s1503_s4 + $0xf8] sm:$0xff] %v372_v31  ;;  %v376_v33 = vld [vmem:[%s1498_s3 + $0x210] sm:$0xff] }
  0x27   : > { %375 = vst [vmem:[%s1503_s4 + $0x100] sm:$0xff] %v374_v32  ;;  %v378_v34 = vld [vmem:[%s1498_s3 + $0x220] sm:$0xff]  ;;  %v380_v35 = vld [vmem:[%s1498_s3 + $0x230] sm:$0xff]  ;;  %377 = vst [vmem:[%s1503_s4 + $0x108] sm:$0xff] %v376_v33 }
  0x28   : > { %379 = vst [vmem:[%s1503_s4 + $0x110] sm:$0xff] %v378_v34  ;;  %381 = vst [vmem:[%s1503_s4 + $0x118] sm:$0xff] %v380_v35  ;;  %v382_v36 = vld [vmem:[%s1498_s3 + $0x240] sm:$0xff]  ;;  %v384_v37 = vld [vmem:[%s1498_s3 + $0x250] sm:$0xff] }
  0x29   : > { %v386_v38 = vld [vmem:[%s1498_s3 + $0x260] sm:$0xff]  ;;  %383 = vst [vmem:[%s1503_s4 + $0x120] sm:$0xff] %v382_v36  ;;  %385 = vst [vmem:[%s1503_s4 + $0x128] sm:$0xff] %v384_v37  ;;  %v388_v39 = vld [vmem:[%s1498_s3 + $0x270] sm:$0xff] }
  0x2a   : > { %387 = vst [vmem:[%s1503_s4 + $0x130] sm:$0xff] %v386_v38  ;;  %v390_v40 = vld [vmem:[%s1498_s3 + $0x280] sm:$0xff]  ;;  %v392_v41 = vld [vmem:[%s1498_s3 + $0x290] sm:$0xff]  ;;  %389 = vst [vmem:[%s1503_s4 + $0x138] sm:$0xff] %v388_v39 }
  0x2b   : > { %391 = vst [vmem:[%s1503_s4 + $0x140] sm:$0xff] %v390_v40  ;;  %393 = vst [vmem:[%s1503_s4 + $0x148] sm:$0xff] %v392_v41  ;;  %v394_v42 = vld [vmem:[%s1498_s3 + $0x2a0] sm:$0xff]  ;;  %v396_v43 = vld [vmem:[%s1498_s3 + $0x2b0] sm:$0xff] }
  0x2c   : > { %v398_v44 = vld [vmem:[%s1498_s3 + $0x2c0] sm:$0xff]  ;;  %395 = vst [vmem:[%s1503_s4 + $0x150] sm:$0xff] %v394_v42  ;;  %397 = vst [vmem:[%s1503_s4 + $0x158] sm:$0xff] %v396_v43  ;;  %v400_v45 = vld [vmem:[%s1498_s3 + $0x2d0] sm:$0xff] }
  0x2d   : > { %399 = vst [vmem:[%s1503_s4 + $0x160] sm:$0xff] %v398_v44  ;;  %v402_v46 = vld [vmem:[%s1498_s3 + $0x2e0] sm:$0xff]  ;;  %v404_v47 = vld [vmem:[%s1498_s3 + $0x2f0] sm:$0xff]  ;;  %401 = vst [vmem:[%s1503_s4 + $0x168] sm:$0xff] %v400_v45 }
  0x2e   : > { %403 = vst [vmem:[%s1503_s4 + $0x170] sm:$0xff] %v402_v46  ;;  %405 = vst [vmem:[%s1503_s4 + $0x178] sm:$0xff] %v404_v47  ;;  %v406_v48 = vld [vmem:[%s1498_s3 + $0x300] sm:$0xff]  ;;  %v408_v49 = vld [vmem:[%s1498_s3 + $0x310] sm:$0xff] }
  0x2f   : > { %v410_v50 = vld [vmem:[%s1498_s3 + $0x320] sm:$0xff]  ;;  %407 = vst [vmem:[%s1503_s4 + $0x180] sm:$0xff] %v406_v48  ;;  %409 = vst [vmem:[%s1503_s4 + $0x188] sm:$0xff] %v408_v49  ;;  %v412_v51 = vld [vmem:[%s1498_s3 + $0x330] sm:$0xff] }
  0x30   : > { %411 = vst [vmem:[%s1503_s4 + $0x190] sm:$0xff] %v410_v50  ;;  %v414_v52 = vld [vmem:[%s1498_s3 + $0x340] sm:$0xff]  ;;  %v416_v53 = vld [vmem:[%s1498_s3 + $0x350] sm:$0xff]  ;;  %413 = vst [vmem:[%s1503_s4 + $0x198] sm:$0xff] %v412_v51 }
  0x31   : > { %415 = vst [vmem:[%s1503_s4 + $0x1a0] sm:$0xff] %v414_v52  ;;  %417 = vst [vmem:[%s1503_s4 + $0x1a8] sm:$0xff] %v416_v53  ;;  %v418_v54 = vld [vmem:[%s1498_s3 + $0x360] sm:$0xff]  ;;  %v420_v55 = vld [vmem:[%s1498_s3 + $0x370] sm:$0xff] }
  0x32   : > { %v422_v56 = vld [vmem:[%s1498_s3 + $0x380] sm:$0xff]  ;;  %419 = vst [vmem:[%s1503_s4 + $0x1b0] sm:$0xff] %v418_v54  ;;  %421 = vst [vmem:[%s1503_s4 + $0x1b8] sm:$0xff] %v420_v55  ;;  %v424_v57 = vld [vmem:[%s1498_s3 + $0x390] sm:$0xff] }
  0x33   : > { %423 = vst [vmem:[%s1503_s4 + $0x1c0] sm:$0xff] %v422_v56  ;;  %v426_v58 = vld [vmem:[%s1498_s3 + $0x3a0] sm:$0xff]  ;;  %v428_v59 = vld [vmem:[%s1498_s3 + $0x3b0] sm:$0xff]  ;;  %425 = vst [vmem:[%s1503_s4 + $0x1c8] sm:$0xff] %v424_v57 }
  0x34   : > { %427 = vst [vmem:[%s1503_s4 + $0x1d0] sm:$0xff] %v426_v58  ;;  %429 = vst [vmem:[%s1503_s4 + $0x1d8] sm:$0xff] %v428_v59  ;;  %v430_v60 = vld [vmem:[%s1498_s3 + $0x3c0] sm:$0xff]  ;;  %v432_v61 = vld [vmem:[%s1498_s3 + $0x3d0] sm:$0xff] }
  0x35   : > { %v434_v62 = vld [vmem:[%s1498_s3 + $0x3e0] sm:$0xff]  ;;  %431 = vst [vmem:[%s1503_s4 + $0x1e0] sm:$0xff] %v430_v60  ;;  %433 = vst [vmem:[%s1503_s4 + $0x1e8] sm:$0xff] %v432_v61  ;;  %v436_v63 = vld [vmem:[%s1498_s3 + $0x3f0] sm:$0xff] }
  0x36   : > { %435 = vst [vmem:[%s1503_s4 + $0x1f0] sm:$0xff] %v434_v62  ;;  %437 = vst [vmem:[%s1503_s4 + $0x1f8] sm:$0xff] %v436_v63 }
  0x37 PF: > { %p1130_p7 = scmp.ge.s32.totalorder %s1420_s15, 1  ;;  %p442_p8 = scmp.lt.s32.totalorder %s1420_s15, 19 }
  0x39   : > { %p443_p9 = pnand %p1130_p7, %p442_p8 }
  0x3a   : > { %s449_s5 = sand.u32 (!%p443_p9), 1, %s1396_s9   ;;  %s1132_s6 = sshll.u32 (!%p443_p9), %s1404_s11, 2 }
  0x3b   : > { %446 = sbr.rel (%p443_p9) target bundleno = 348 (0x15c), region = 62  ;;  %s1131_s7 = sshll.u32 (!%p443_p9), %s449_s5, 9 }
  0x3c   : > { %p486_p10 = scmp.lt.s32.totalorder (!%p443_p9), %s1132_s6, 35  ;;  %s1134_s8 = sshll.u32 (!%p443_p9), %s1408_s12, 1 }
  0x3d   : > { %p498_p11 = scmp.lt.s32.totalorder (!%p443_p9), %s1134_s8, 3  ;;  %s1645_s9 = scalar_lea.vmem (!%p443_p9), [#allocation3], %s1131_s7 }
  0x3e   : > { %p1136_p12 = scmp.ne.s32.totalorder (!%p443_p9), %s1404_s11, 0 }
  0x40   : > { %s1754_s6 = smov (!%p486_p10, %s1132_s6), 35  ;;  %s1756_s8 = smov (!%p498_p11, %s1134_s8), 3 }
  0x41   : > { %s1133_s18 = sshll.u32 %s1754_s6, 2  ;;  %s1135_s23 = sshll.u32 %s1756_s8, 3 }
  0x42   : > { %s1638_s21 = scalar_lea.vmem %s1738_s0, %s1133_s18  ;;  %s1643_s26 = scalar_lea.vmem %s1740_s2, %s1135_s23 }
  0x43   : > { %508 = sbr.rel (%p1136_p12) target bundleno = 74 (0x4a), region = 70 }
  0x48   : > { %v1422_v0 = vmov 0.0  }
  0x49   : > { %509 = vst [vmem:[#allocation2] sm:$0xff] %v1422_v0  ;;  %510 = vst [vmem:[#allocation2 + $0x8] sm:$0xff] %v1422_v0 }
  0x4a PF: > { %v1266_v1 = vld [vmem:[%s1645_s9 + $0x74] ss:$8 sps:$4 sm:$0xff]   ;;  %v1270_v3 = vld [vmem:[%s1645_s9 + $0x70] ss:$8 sps:$4 sm:$0xff]   ;;  %v1272_v5 = vld [vmem:[%s1645_s9 + $0x64] ss:$8 sps:$4 sm:$0xff]  }
  0x4b   : > { %v1268_v2 = vld [vmem:[%s1645_s9 + $0x174] ss:$8 sps:$4 sm:$0xff]   ;;  %913 = vmatprep.subr.bf16.mxu0 %v1266_v1  ;;  %v1271_v4 = vld [vmem:[%s1645_s9 + $0x170] ss:$8 sps:$4 sm:$0xff]   ;;  %v1274_v6 = vld [vmem:[%s1645_s9 + $0x164] ss:$8 sps:$4 sm:$0xff]  }
  0x4c   : > { %954 = vmatprep.subr.bf16.mxu1 %v1268_v2  ;;  %914 = vmatpush1.bf16.msra.mxu0 %v1270_v3  ;;  %v1276_v7 = vld [vmem:[%s1645_s9 + $0x60] ss:$8 sps:$4 sm:$0xff]   ;;  %v1278_v9 = vld [vmem:[%s1645_s9 + $0x54] ss:$8 sps:$4 sm:$0xff]   ;;  %v1282_v11 = vld [vmem:[%s1645_s9 + $0x50] ss:$8 sps:$4 sm:$0xff]  }
  0x4d   : > { %955 = vmatpush1.bf16.msra.mxu1 %v1271_v4  ;;  %915 = vmatprep.subr.bf16.mxu0 %v1272_v5  ;;  %v1277_v8 = vld [vmem:[%s1645_s9 + $0x160] ss:$8 sps:$4 sm:$0xff]   ;;  %v1280_v10 = vld [vmem:[%s1645_s9 + $0x154] ss:$8 sps:$4 sm:$0xff]   ;;  %v1283_v12 = vld [vmem:[%s1645_s9 + $0x150] ss:$8 sps:$4 sm:$0xff]  }
  0x4e   : > { %956 = vmatprep.subr.bf16.mxu1 %v1274_v6  ;;  %v1284_v13 = vld [vmem:[%s1645_s9 + $0x44] ss:$8 sps:$4 sm:$0xff]   ;;  %v1288_v15 = vld [vmem:[%s1645_s9 + $0x40] ss:$8 sps:$4 sm:$0xff]   ;;  %v1290_v17 = vld [vmem:[%s1645_s9 + $0x34] ss:$8 sps:$4 sm:$0xff]  }
  0x4f   : > { %v1286_v14 = vld [vmem:[%s1645_s9 + $0x144] ss:$8 sps:$4 sm:$0xff]   ;;  %v1289_v16 = vld [vmem:[%s1645_s9 + $0x140] ss:$8 sps:$4 sm:$0xff]   ;;  %v1292_v18 = vld [vmem:[%s1645_s9 + $0x134] ss:$8 sps:$4 sm:$0xff]  }
  0x50   : > { %916 = vmatpush1.bf16.msra.mxu0 %v1276_v7  ;;  %v1294_v19 = vld [vmem:[%s1645_s9 + $0x30] ss:$8 sps:$4 sm:$0xff]   ;;  %v1296_v21 = vld [vmem:[%s1645_s9 + $0x24] ss:$8 sps:$4 sm:$0xff]   ;;  %v1300_v23 = vld [vmem:[%s1645_s9 + $0x20] ss:$8 sps:$4 sm:$0xff]  }
  0x51   : > { %957 = vmatpush1.bf16.msra.mxu1 %v1277_v8  ;;  %917 = vmatprep.subr.bf16.mxu0 %v1278_v9  ;;  %v1295_v20 = vld [vmem:[%s1645_s9 + $0x130] ss:$8 sps:$4 sm:$0xff]   ;;  %v1298_v22 = vld [vmem:[%s1645_s9 + $0x124] ss:$8 sps:$4 sm:$0xff]   ;;  %v1301_v24 = vld [vmem:[%s1645_s9 + $0x120] ss:$8 sps:$4 sm:$0xff]  }
  0x52   : > { %958 = vmatprep.subr.bf16.mxu1 %v1280_v10  ;;  %v1302_v25 = vld [vmem:[%s1645_s9 + $0x14] ss:$8 sps:$4 sm:$0xff]   ;;  %v1306_v27 = vld [vmem:[%s1645_s9 + $0x10] ss:$8 sps:$4 sm:$0xff]   ;;  %v1308_v29 = vld [vmem:[%s1645_s9 + $0x4] ss:$8 sps:$4 sm:$0xff]  }
  0x53   : > { %v1304_v26 = vld [vmem:[%s1645_s9 + $0x114] ss:$8 sps:$4 sm:$0xff]   ;;  %v1307_v28 = vld [vmem:[%s1645_s9 + $0x110] ss:$8 sps:$4 sm:$0xff]   ;;  %v1310_v30 = vld [vmem:[%s1645_s9 + $0x104] ss:$8 sps:$4 sm:$0xff]  }
  0x54   : > { %918 = vmatpush1.bf16.msra.mxu0 %v1282_v11  ;;  %v1312_v31 = vld [vmem:[%s1645_s9] ss:$8 sps:$4 sm:$0xff]   ;;  %v1314_v33 = vld [vmem:[%s1645_s9 + $0xf4] ss:$8 sps:$4 sm:$0xff]   ;;  %v1318_v35 = vld [vmem:[%s1645_s9 + $0xf0] ss:$8 sps:$4 sm:$0xff]  }
  0x55   : > { %959 = vmatpush1.bf16.msra.mxu1 %v1283_v12  ;;  %919 = vmatprep.subr.bf16.mxu0 %v1284_v13  ;;  %v1313_v32 = vld [vmem:[%s1645_s9 + $0x100] ss:$8 sps:$4 sm:$0xff]   ;;  %v1316_v34 = vld [vmem:[%s1645_s9 + $0x1f4] ss:$8 sps:$4 sm:$0xff]   ;;  %v1319_v36 = vld [vmem:[%s1645_s9 + $0x1f0] ss:$8 sps:$4 sm:$0xff]  }
  0x56   : > { %960 = vmatprep.subr.bf16.mxu1 %v1286_v14  ;;  %v1320_v37 = vld [vmem:[%s1645_s9 + $0xe4] ss:$8 sps:$4 sm:$0xff]   ;;  %v1324_v39 = vld [vmem:[%s1645_s9 + $0xe0] ss:$8 sps:$4 sm:$0xff]   ;;  %v1326_v41 = vld [vmem:[%s1645_s9 + $0xd4] ss:$8 sps:$4 sm:$0xff]  }
  0x57   : > { %v1322_v38 = vld [vmem:[%s1645_s9 + $0x1e4] ss:$8 sps:$4 sm:$0xff]   ;;  %v1325_v40 = vld [vmem:[%s1645_s9 + $0x1e0] ss:$8 sps:$4 sm:$0xff]   ;;  %v1328_v42 = vld [vmem:[%s1645_s9 + $0x1d4] ss:$8 sps:$4 sm:$0xff]  }
  0x58   : > { %920 = vmatpush1.bf16.msra.mxu0 %v1288_v15  ;;  %v1330_v43 = vld [vmem:[%s1645_s9 + $0xd0] ss:$8 sps:$4 sm:$0xff]   ;;  %v1332_v45 = vld [vmem:[%s1645_s9 + $0xc4] ss:$8 sps:$4 sm:$0xff]   ;;  %v1336_v50 = vld [vmem:[%s1645_s9 + $0xc0] ss:$8 sps:$4 sm:$0xff]  }
  0x59   : > { %961 = vmatpush1.bf16.msra.mxu1 %v1289_v16  ;;  %921 = vmatprep.subr.bf16.mxu0 %v1290_v17  ;;  %v1331_v44 = vld [vmem:[%s1645_s9 + $0x1d0] ss:$8 sps:$4 sm:$0xff]   ;;  %v1334_v46 = vld [vmem:[%s1645_s9 + $0x1c4] ss:$8 sps:$4 sm:$0xff]   ;;  %v1337_v51 = vld [vmem:[%s1645_s9 + $0x1c0] ss:$8 sps:$4 sm:$0xff]  }
  0x5a   : > { %962 = vmatprep.subr.bf16.mxu1 %v1292_v18  ;;  %v513_v47 = vld [vmem:[%s1638_s21] sm:$0xff]  ;;  %v514_v49 = vld [vmem:[%s1638_s21 + $0x8] sm:$0xff]  ;;  %v1344_v57 = vld [vmem:[%s1645_s9 + $0xa4] ss:$8 sps:$4 sm:$0xff]   ;;  %p1205_p13 = scmp.ne.s32.totalorder %s1404_s11, 8 }
  0x5b   : > { %v1138_v48 = vcombine.high %v513_v47, %v513_v47  ;;  %v1140_v52 = vcombine.high %v514_v49, %v514_v49  ;;  %v1338_v53 = vld [vmem:[%s1645_s9 + $0xb4] ss:$8 sps:$4 sm:$0xff]   ;;  %v1342_v55 = vld [vmem:[%s1645_s9 + $0xb0] ss:$8 sps:$4 sm:$0xff]   ;;  %v1346_v58 = vld [vmem:[%s1645_s9 + $0x1a4] ss:$8 sps:$4 sm:$0xff]   ;;  %v1137_v5 = vcombine.low %v513_v47, %v513_v47  ;;  %v1139_v6 = vcombine.low %v514_v49, %v514_v49 }
  0x5c   : > { %922 = vmatpush1.bf16.msra.mxu0 %v1294_v19  ;;  %v1340_v54 = vld [vmem:[%s1645_s9 + $0x1b4] ss:$8 sps:$4 sm:$0xff]   ;;  %v1343_v56 = vld [vmem:[%s1645_s9 + $0x1b0] ss:$8 sps:$4 sm:$0xff]   ;;  %v1348_v59 = vld [vmem:[%s1645_s9 + $0xa0] ss:$8 sps:$4 sm:$0xff]  }
  0x5d   : > { %963 = vmatpush1.bf16.msra.mxu1 %v1295_v20  ;;  %923 = vmatprep.subr.bf16.mxu0 %v1296_v21  ;;  %v1349_v60 = vld [vmem:[%s1645_s9 + $0x1a0] ss:$8 sps:$4 sm:$0xff]   ;;  %v1350_v61 = vld [vmem:[%s1645_s9 + $0x94] ss:$8 sps:$4 sm:$0xff]   ;;  %v1354_v63 = vld [vmem:[%s1645_s9 + $0x90] ss:$8 sps:$4 sm:$0xff]  }
  0x5e   : > { %964 = vmatprep.subr.bf16.mxu1 %v1298_v22  ;;  %945 = vmatprep.mubr.bf16.mxu0 %v1138_v48  ;;  %v1352_v62 = vld [vmem:[%s1645_s9 + $0x194] ss:$8 sps:$4 sm:$0xff]   ;;  %v1355_v0 = vld [vmem:[%s1645_s9 + $0x190] ss:$8 sps:$4 sm:$0xff]   ;;  %v1356_v1 = vld [vmem:[%s1645_s9 + $0x84] ss:$8 sps:$4 sm:$0xff]  }
  0x5f   : > { %986 = vmatprep.mubr.bf16.mxu1 %v1140_v52  ;;  %v1358_v2 = vld [vmem:[%s1645_s9 + $0x184] ss:$8 sps:$4 sm:$0xff]   ;;  %v1360_v3 = vld [vmem:[%s1645_s9 + $0x80] ss:$8 sps:$4 sm:$0xff]   ;;  %v511_v8 = vld [vmem:[#allocation2] sm:$0xff] }
  0x60   : > { %924 = vmatpush1.bf16.msra.mxu0 %v1300_v23  ;;  %v1361_v4 = vld [vmem:[%s1645_s9 + $0x180] ss:$8 sps:$4 sm:$0xff]   ;;  %v512_v12 = vld [vmem:[#allocation2 + $0x8] sm:$0xff] }
  0x61   : > { %965 = vmatpush1.bf16.msra.mxu1 %v1301_v24  ;;  %925 = vmatprep.subr.bf16.mxu0 %v1302_v25 }
  0x62   : > { %966 = vmatprep.subr.bf16.mxu1 %v1304_v26 }
  0x64   : > { %926 = vmatpush1.bf16.msra.mxu0 %v1306_v27 }
  0x65   : > { %967 = vmatpush1.bf16.msra.mxu1 %v1307_v28  ;;  %927 = vmatprep.subr.bf16.mxu0 %v1308_v29 }
  0x66   : > { %968 = vmatprep.subr.bf16.mxu1 %v1310_v30 }
  0x68   : > { %928 = vmatpush1.bf16.msra.mxu0 %v1312_v31 }
  0x69   : > { %969 = vmatpush1.bf16.msra.mxu1 %v1313_v32  ;;  %929 = vmatprep.subr.bf16.mxu0 %v1314_v33 }
  0x6a   : > { %970 = vmatprep.subr.bf16.mxu1 %v1316_v34 }
  0x6c   : > { %930 = vmatpush2.bf16.msra.mxu0 %v1318_v35 }
  0x6d   : > { %971 = vmatpush2.bf16.msra.mxu1 %v1319_v36  ;;  %931 = vmatprep.subr.bf16.mxu0 %v1320_v37 }
  0x6e   : > { %972 = vmatprep.subr.bf16.mxu1 %v1322_v38 }
  0x70   : > { %932 = vmatpush2.bf16.msra.mxu0 %v1324_v39 }
  0x71   : > { %973 = vmatpush2.bf16.msra.mxu1 %v1325_v40  ;;  %933 = vmatprep.subr.bf16.mxu0 %v1326_v41 }
  0x72   : > { %974 = vmatprep.subr.bf16.mxu1 %v1328_v42 }
  0x74   : > { %934 = vmatpush2.bf16.msra.mxu0 %v1330_v43 }
  0x75   : > { %975 = vmatpush2.bf16.msra.mxu1 %v1331_v44  ;;  %935 = vmatprep.subr.bf16.mxu0 %v1332_v45 }
  0x76   : > { %976 = vmatprep.subr.bf16.mxu1 %v1334_v46 }
  0x78   : > { %936 = vmatpush2.bf16.msra.mxu0 %v1336_v50 }
  0x79   : > { %977 = vmatpush2.bf16.msra.mxu1 %v1337_v51  ;;  %937 = vmatprep.subr.bf16.mxu0 %v1338_v53 }
  0x7a   : > { %978 = vmatprep.subr.bf16.mxu1 %v1340_v54 }
  0x7c   : > { %938 = vmatpush2.bf16.msra.mxu0 %v1342_v55 }
  0x7d   : > { %979 = vmatpush2.bf16.msra.mxu1 %v1343_v56  ;;  %939 = vmatprep.subr.bf16.mxu0 %v1344_v57 }
  0x7e   : > { %980 = vmatprep.subr.bf16.mxu1 %v1346_v58 }
  0x80   : > { %940 = vmatpush2.bf16.msra.mxu0 %v1348_v59 }
  0x81   : > { %981 = vmatpush2.bf16.msra.mxu1 %v1349_v60  ;;  %941 = vmatprep.subr.bf16.mxu0 %v1350_v61 }
  0x82   : > { %982 = vmatprep.subr.bf16.mxu1 %v1352_v62 }
  0x84   : > { %942 = vmatpush2.bf16.msra.mxu0 %v1354_v63 }
  0x85   : > { %983 = vmatpush2.bf16.msra.mxu1 %v1355_v0  ;;  %943 = vmatprep.subr.bf16.mxu0 %v1356_v1 }
  0x86   : > { %984 = vmatprep.subr.bf16.mxu1 %v1358_v2 }
  0x88   : > { %944 = vmatpush2.bf16.msra.mxu0 %v1360_v3 }
  0x89   : > { %985 = vmatpush2.bf16.msra.mxu1 %v1361_v4 }
  0x8b   : > { %946 = vmatmul.mubr.bf16.vlgmr.msra.gmra.mxu0 %v1137_v5 }
  0x8c   : > { %987 = vmatmul.mubr.bf16.vlgmr.msra.gmra.mxu1 %v1139_v6 }
 0x14b   : > { %v947_v7 = vpop.f32.mrf.mxu0 }
 0x14c   : > { %v988_v9 = vpop.f32.mrf.mxu1 }
 0x14d   : > { %v989_v10 = vadd.f32 %v988_v9, %v947_v7  ;;  %v949_v11 = vpop.f32.mrf.mxu0 }
 0x14e   : > { %v990_v13 = vpop.f32.mrf.mxu1 }
 0x14f   : > { %v995_v14 = vadd.f32 %v989_v10, %v511_v8  ;;  %v991_v15 = vadd.f32 %v990_v13, %v949_v11  ;;  %v951_v16 = vpop.f32.mrf.mxu0  ;;  %1002 = sbr.rel (%p1205_p13) target bundleno = 348 (0x15c), region = 74 }
 0x150   : > { %v992_v17 = vpop.f32.mrf.mxu1 }
 0x151   : > { %997 = vst [vmem:[#allocation2] sm:$0xff] %v995_v14  ;;  %v996_v18 = vadd.f32 %v991_v15, %v512_v12  ;;  %v952_v19 = vpop.f32.mrf.mxu0 }
 0x152   : > { %v993_v20 = vpop.f32.mrf.mxu1 }
 0x153   : > { %998 = vst [vmem:[#allocation2 + $0x8] sm:$0xff] %v996_v18 }
 0x158   : > { %v1003_v21 = vld [vmem:[#allocation2] sm:$0xff] }
 0x159   : > { %1005 = vst [vmem:[%s1643_s26] sm:$0xff] %v1003_v21 }
 0x15a   : > { %v1004_v22 = vld [vmem:[#allocation2 + $0x8] sm:$0xff] }
 0x15b   : > { %1006 = vst [vmem:[%s1643_s26 + $0x8] sm:$0xff] %v1004_v22 }
 0x15c PF: > { %s12_s15 = sadd.s32 1, %s1420_s15   ;;  %s1741_s9 = smov %s1400_s10 }
 0x15d   : > { %p9_p0 = scmp.ge.s32.totalorder %s12_s15, 20   ;;  %s1742_s10 = smov %s1489_s22 }
 0x15e   : > { %s1743_s11 = smov %s1412_s13  ;;  %s1744_s12 = smov %s1416_s14 }
 0x15f   : > { %s1745_s13 = smov %s1748_s16  ;;  %s1746_s14 = smov %s1752_s17 }
 0x160   :  { %11 = sbr.rel (!%p9_p0) target bundleno = 4 (0x4), region = 112 }

// kernel: _lambda_.112
= control target key start
LH: loop header
LB: loop body
LE: loop exit
PB: predicated region body
PF: predicated region fallthrough
CT: control target
= control target key end

     0   :  { %s46_s0 = inlined_call_operand.vmem [shape: f32[2,1,512], index: 0, kind: input, shape index: {}]   ;;  %s47_s1 = inlined_call_operand.vmem [shape: f32[2,512], index: 1, kind: output, shape index: {}]  }
   0x1   :  { %v29_v0 = vld [vmem:[%s46_s0] sm:$0xff]  }
   0x2   :  { %28 = vst.sshfl [vmem:[%s47_s1] sm:$0xff pattern:$0x75316420] %v29_v0 }

// kernel: _lambda_.103
= control target key start
LH: loop header
LB: loop body
LE: loop exit
PB: predicated region body
PF: predicated region fallthrough
CT: control target
= control target key end

     0   :  { %s1309_s12 = smov 0   ;;  %s1311_s13 = smov 0   ;;  %s1573_s0 = inlined_call_operand.vmem [shape: bf16[8,2304], index: 0, kind: input, shape index: {}]   ;;  %s1574_s1 = inlined_call_operand.vmem [shape: bf16[2304,512], index: 1, kind: input, shape index: {}]   ;;  %s1575_s2 = inlined_call_operand.vmem [shape: f32[1,512], index: 2, kind: input, shape index: {}]   ;;  %s1576_s3 = inlined_call_operand.vmem [shape: f32[8,512], index: 3, kind: output, shape index: {}]  }
   0x1   :  { %s1313_s14 = smov 0   ;;  %s1315_s15 = smov 0  }
   0x2   :  { %s1317_s16 = smov 0   ;;  %s1319_s17 = smov 0  }
   0x3   :  { %s1321_s18 = smov 0  }
   0x4 LB: > { %s25_s19 = sadd.s32 1, %s1277_s16  ;;  %s28_s20 = sadd.s32 1, %s1281_s17  ;;  %s1285_s18 = sphi %s1321_s18, %s13_s18   ;;  %s1281_s17 = sphi %s1319_s17, %s1582_s17   ;;  %s1277_s16 = sphi %s1317_s16, %s1581_s16   ;;  %s1273_s15 = sphi %s1315_s15, %s1580_s15   ;;  %s1269_s14 = sphi %s1313_s14, %s1579_s14   ;;  %s1265_s13 = sphi %s1311_s13, %s1578_s13   ;;  %s1261_s12 = sphi %s1309_s12, %s1577_s12  }
   0x5   : > { %p26_p0 = scmp.ge.s32.totalorder %s25_s19, 6  ;;  %p76_p1 = scmp.ne.s32.totalorder %s1265_s13, %s1261_s12 }
   0x6   : > { %p77_p2 = scmp.eq.s32.totalorder %s1285_s18, 0  ;;  %s69_s24 = sadd.s32 1, %s1265_s13 }
   0x7   : > { %s1584_s19 = smov (%p26_p0, %s25_s19), 0  ;;  %s1586_s20 = smov (!%p26_p0, %s28_s20), %s1281_s17 }
   0x8   : > { %p78_p3 = por %p77_p2, %p76_p1  ;;  %p30_p4 = scmp.ge.s32.totalorder %s1586_s20, 2 }
   0x9   : > { %s64_s21 = ssub.s32 %s1277_s16, %s1584_s19  ;;  %p1031_p6 = scmp.ge.s32.totalorder %s1285_s18, 12 }
   0xa   : > { %s1588_s20 = smov (%p30_p4, %s1586_s20), 0 }
   0xb   : > { %s65_s22 = ssub.s32 %s1281_s17, %s1588_s20  ;;  %156 = sbr.rel (%p1031_p6) target bundleno = 48 (0x30), region = 16 }
   0xc   : > { %s66_s23 = sor.u32 %s65_s22, %s64_s21 }
   0xd   : > { %p67_p5 = scmp.eq.s32.totalorder %s66_s23, 0 }
   0xf   : > { %s1360_s25 = scalar_select %p67_p5, %s1265_s13, %s69_s24  }
  0x10   : > { %172 = sbr.rel (!%p78_p3) target bundleno = 48 (0x30), region = 24  ;;  %s174_s26 = sand.u32 (%p78_p3), 1, %s1265_s13  }
  0x11   : > { %s1096_s27 = smul.u32 (%p78_p3), 384, %s174_s26  ;;  %s1032_s28 = sshll.u32 (%p78_p3), %s1281_s17, 1 }
  0x12   : > { %s1095_s29 = smul.u32 (%p78_p3), 192, %s1277_s16 }
  0x13   : > { %s1374_s8 = scalar_lea.vmem (%p78_p3), [#allocation3], %s1096_s27 }
  0x14   : > { %s180_s30 = sadd.s32 (%p78_p3), %s1095_s29, %s1032_s28 }
  0x15   : > { %s1034_s4 = sshll.u32 %s180_s30, 2 }
  0x16   : > { %s1369_s7 = scalar_lea.vmem %s1574_s1, %s1034_s4 }
  0x17   : > { %v305_v0 = vld [vmem:[%s1369_s7] sm:$0xff]  ;;  %v307_v1 = vld [vmem:[%s1369_s7 + $0x10] sm:$0xff] }
  0x18   : > { %v309_v2 = vld [vmem:[%s1369_s7 + $0x20] sm:$0xff]  ;;  %306 = vst [vmem:[%s1374_s8] sm:$0xff] %v305_v0  ;;  %308 = vst [vmem:[%s1374_s8 + $0x8] sm:$0xff] %v307_v1  ;;  %v311_v3 = vld [vmem:[%s1369_s7 + $0x30] sm:$0xff] }
  0x19   : > { %310 = vst [vmem:[%s1374_s8 + $0x10] sm:$0xff] %v309_v2  ;;  %v313_v4 = vld [vmem:[%s1369_s7 + $0x40] sm:$0xff]  ;;  %v315_v5 = vld [vmem:[%s1369_s7 + $0x50] sm:$0xff]  ;;  %312 = vst [vmem:[%s1374_s8 + $0x18] sm:$0xff] %v311_v3 }
  0x1a   : > { %314 = vst [vmem:[%s1374_s8 + $0x20] sm:$0xff] %v313_v4  ;;  %316 = vst [vmem:[%s1374_s8 + $0x28] sm:$0xff] %v315_v5  ;;  %v317_v6 = vld [vmem:[%s1369_s7 + $0x60] sm:$0xff]  ;;  %v319_v7 = vld [vmem:[%s1369_s7 + $0x70] sm:$0xff] }
  0x1b   : > { %v321_v8 = vld [vmem:[%s1369_s7 + $0x80] sm:$0xff]  ;;  %318 = vst [vmem:[%s1374_s8 + $0x30] sm:$0xff] %v317_v6  ;;  %320 = vst [vmem:[%s1374_s8 + $0x38] sm:$0xff] %v319_v7  ;;  %v323_v9 = vld [vmem:[%s1369_s7 + $0x90] sm:$0xff] }
  0x1c   : > { %322 = vst [vmem:[%s1374_s8 + $0x40] sm:$0xff] %v321_v8  ;;  %v325_v10 = vld [vmem:[%s1369_s7 + $0xa0] sm:$0xff]  ;;  %v327_v11 = vld [vmem:[%s1369_s7 + $0xb0] sm:$0xff]  ;;  %324 = vst [vmem:[%s1374_s8 + $0x48] sm:$0xff] %v323_v9 }
  0x1d   : > { %326 = vst [vmem:[%s1374_s8 + $0x50] sm:$0xff] %v325_v10  ;;  %328 = vst [vmem:[%s1374_s8 + $0x58] sm:$0xff] %v327_v11  ;;  %v329_v12 = vld [vmem:[%s1369_s7 + $0xc0] sm:$0xff]  ;;  %v331_v13 = vld [vmem:[%s1369_s7 + $0xd0] sm:$0xff] }
  0x1e   : > { %v333_v14 = vld [vmem:[%s1369_s7 + $0xe0] sm:$0xff]  ;;  %330 = vst [vmem:[%s1374_s8 + $0x60] sm:$0xff] %v329_v12  ;;  %332 = vst [vmem:[%s1374_s8 + $0x68] sm:$0xff] %v331_v13  ;;  %v335_v15 = vld [vmem:[%s1369_s7 + $0xf0] sm:$0xff] }
  0x1f   : > { %334 = vst [vmem:[%s1374_s8 + $0x70] sm:$0xff] %v333_v14  ;;  %v337_v16 = vld [vmem:[%s1369_s7 + $0x100] sm:$0xff]  ;;  %v339_v17 = vld [vmem:[%s1369_s7 + $0x110] sm:$0xff]  ;;  %336 = vst [vmem:[%s1374_s8 + $0x78] sm:$0xff] %v335_v15 }
  0x20   : > { %338 = vst [vmem:[%s1374_s8 + $0x80] sm:$0xff] %v337_v16  ;;  %340 = vst [vmem:[%s1374_s8 + $0x88] sm:$0xff] %v339_v17  ;;  %v341_v18 = vld [vmem:[%s1369_s7 + $0x120] sm:$0xff]  ;;  %v343_v19 = vld [vmem:[%s1369_s7 + $0x130] sm:$0xff] }
  0x21   : > { %v345_v20 = vld [vmem:[%s1369_s7 + $0x140] sm:$0xff]  ;;  %342 = vst [vmem:[%s1374_s8 + $0x90] sm:$0xff] %v341_v18  ;;  %344 = vst [vmem:[%s1374_s8 + $0x98] sm:$0xff] %v343_v19  ;;  %v347_v21 = vld [vmem:[%s1369_s7 + $0x150] sm:$0xff] }
  0x22   : > { %346 = vst [vmem:[%s1374_s8 + $0xa0] sm:$0xff] %v345_v20  ;;  %v349_v22 = vld [vmem:[%s1369_s7 + $0x160] sm:$0xff]  ;;  %v351_v23 = vld [vmem:[%s1369_s7 + $0x170] sm:$0xff]  ;;  %348 = vst [vmem:[%s1374_s8 + $0xa8] sm:$0xff] %v347_v21 }
  0x23   : > { %350 = vst [vmem:[%s1374_s8 + $0xb0] sm:$0xff] %v349_v22  ;;  %352 = vst [vmem:[%s1374_s8 + $0xb8] sm:$0xff] %v351_v23  ;;  %v353_v24 = vld [vmem:[%s1369_s7 + $0x180] sm:$0xff]  ;;  %v355_v25 = vld [vmem:[%s1369_s7 + $0x190] sm:$0xff] }
  0x24   : > { %v357_v26 = vld [vmem:[%s1369_s7 + $0x1a0] sm:$0xff]  ;;  %354 = vst [vmem:[%s1374_s8 + $0xc0] sm:$0xff] %v353_v24  ;;  %356 = vst [vmem:[%s1374_s8 + $0xc8] sm:$0xff] %v355_v25  ;;  %v359_v27 = vld [vmem:[%s1369_s7 + $0x1b0] sm:$0xff] }
  0x25   : > { %358 = vst [vmem:[%s1374_s8 + $0xd0] sm:$0xff] %v357_v26  ;;  %v361_v28 = vld [vmem:[%s1369_s7 + $0x1c0] sm:$0xff]  ;;  %v363_v29 = vld [vmem:[%s1369_s7 + $0x1d0] sm:$0xff]  ;;  %360 = vst [vmem:[%s1374_s8 + $0xd8] sm:$0xff] %v359_v27 }
  0x26   : > { %362 = vst [vmem:[%s1374_s8 + $0xe0] sm:$0xff] %v361_v28  ;;  %364 = vst [vmem:[%s1374_s8 + $0xe8] sm:$0xff] %v363_v29  ;;  %v365_v30 = vld [vmem:[%s1369_s7 + $0x1e0] sm:$0xff]  ;;  %v367_v31 = vld [vmem:[%s1369_s7 + $0x1f0] sm:$0xff] }
  0x27   : > { %v369_v32 = vld [vmem:[%s1369_s7 + $0x200] sm:$0xff]  ;;  %366 = vst [vmem:[%s1374_s8 + $0xf0] sm:$0xff] %v365_v30  ;;  %368 = vst [vmem:[%s1374_s8 + $0xf8] sm:$0xff] %v367_v31  ;;  %v371_v33 = vld [vmem:[%s1369_s7 + $0x210] sm:$0xff] }
  0x28   : > { %370 = vst [vmem:[%s1374_s8 + $0x100] sm:$0xff] %v369_v32  ;;  %v373_v34 = vld [vmem:[%s1369_s7 + $0x220] sm:$0xff]  ;;  %v375_v35 = vld [vmem:[%s1369_s7 + $0x230] sm:$0xff]  ;;  %372 = vst [vmem:[%s1374_s8 + $0x108] sm:$0xff] %v371_v33 }
  0x29   : > { %374 = vst [vmem:[%s1374_s8 + $0x110] sm:$0xff] %v373_v34  ;;  %376 = vst [vmem:[%s1374_s8 + $0x118] sm:$0xff] %v375_v35  ;;  %v377_v36 = vld [vmem:[%s1369_s7 + $0x240] sm:$0xff]  ;;  %v379_v37 = vld [vmem:[%s1369_s7 + $0x250] sm:$0xff] }
  0x2a   : > { %v381_v38 = vld [vmem:[%s1369_s7 + $0x260] sm:$0xff]  ;;  %378 = vst [vmem:[%s1374_s8 + $0x120] sm:$0xff] %v377_v36  ;;  %380 = vst [vmem:[%s1374_s8 + $0x128] sm:$0xff] %v379_v37  ;;  %v383_v39 = vld [vmem:[%s1369_s7 + $0x270] sm:$0xff] }
  0x2b   : > { %382 = vst [vmem:[%s1374_s8 + $0x130] sm:$0xff] %v381_v38  ;;  %v385_v40 = vld [vmem:[%s1369_s7 + $0x280] sm:$0xff]  ;;  %v387_v41 = vld [vmem:[%s1369_s7 + $0x290] sm:$0xff]  ;;  %384 = vst [vmem:[%s1374_s8 + $0x138] sm:$0xff] %v383_v39 }
  0x2c   : > { %386 = vst [vmem:[%s1374_s8 + $0x140] sm:$0xff] %v385_v40  ;;  %388 = vst [vmem:[%s1374_s8 + $0x148] sm:$0xff] %v387_v41  ;;  %v389_v42 = vld [vmem:[%s1369_s7 + $0x2a0] sm:$0xff]  ;;  %v391_v43 = vld [vmem:[%s1369_s7 + $0x2b0] sm:$0xff] }
  0x2d   : > { %v393_v44 = vld [vmem:[%s1369_s7 + $0x2c0] sm:$0xff]  ;;  %390 = vst [vmem:[%s1374_s8 + $0x150] sm:$0xff] %v389_v42  ;;  %392 = vst [vmem:[%s1374_s8 + $0x158] sm:$0xff] %v391_v43  ;;  %v395_v45 = vld [vmem:[%s1369_s7 + $0x2d0] sm:$0xff] }
  0x2e   : > { %394 = vst [vmem:[%s1374_s8 + $0x160] sm:$0xff] %v393_v44  ;;  %v397_v46 = vld [vmem:[%s1369_s7 + $0x2e0] sm:$0xff]  ;;  %v399_v47 = vld [vmem:[%s1369_s7 + $0x2f0] sm:$0xff]  ;;  %396 = vst [vmem:[%s1374_s8 + $0x168] sm:$0xff] %v395_v45 }
  0x2f   : > { %398 = vst [vmem:[%s1374_s8 + $0x170] sm:$0xff] %v397_v46  ;;  %400 = vst [vmem:[%s1374_s8 + $0x178] sm:$0xff] %v399_v47 }
  0x30 PF: > { %p1035_p7 = scmp.ge.s32.totalorder %s1285_s18, 1  ;;  %p413_p8 = scmp.lt.s32.totalorder %s1285_s18, 13 }
  0x32   : > { %p414_p9 = pnand %p1035_p7, %p413_p8 }
  0x33   : > { %s420_s9 = sand.u32 (!%p414_p9), 1, %s1261_s12   ;;  %s460_s10 = smul.u32 (!%p414_p9), 3, %s1269_s14 }
  0x34   : > { %417 = sbr.rel (%p414_p9) target bundleno = 343 (0x157), region = 66  ;;  %s1037_s21 = sshll.u32 (!%p414_p9), %s1273_s15, 1 }
  0x35   : > { %s1097_s11 = smul.u32 (!%p414_p9), 384, %s420_s9  ;;  %p463_p10 = scmp.lt.s32.totalorder (!%p414_p9), %s460_s10, 17 }
  0x36   : > { %p473_p11 = scmp.lt.s32.totalorder (!%p414_p9), %s1037_s21, 3  ;;  %p1040_p12 = scmp.ne.s32.totalorder (!%p414_p9), %s1269_s14, 0 }
  0x37   : > { %s1491_s5 = scalar_lea.vmem (!%p414_p9), [#allocation3], %s1097_s11 }
  0x39   : > { %s1590_s10 = smov (!%p463_p10, %s460_s10), 17  ;;  %s1592_s21 = smov (!%p473_p11, %s1037_s21), 3 }
  0x3a   : > { %s1036_s22 = sshll.u32 %s1590_s10, 2  ;;  %s475_s12 = scalar_lea.vmem %s1575_s2, %s1592_s21 }
  0x3b   : > { %s1479_s26 = scalar_lea.vmem %s1573_s0, %s1036_s22  ;;  %s1039_s29 = sshll.u32 %s1592_s21, 3 }
  0x3c   : > { %s1489_s4 = scalar_lea.vmem %s1576_s3, %s1039_s29  ;;  %491 = sbr.rel (%p1040_p12) target bundleno = 67 (0x43), region = 74 }
  0x41   : > { %v1287_v48 = vmov 0.0  }
  0x42   : > { %492 = vst [vmem:[#allocation2] sm:$0xff] %v1287_v48  ;;  %493 = vst [vmem:[#allocation2 + $0x8] sm:$0xff] %v1287_v48 }
  0x43 PF: > { %v1156_v49 = vld [vmem:[%s1491_s5 + $0x74] ss:$8 sps:$4 sm:$0xff]   ;;  %v1158_v50 = vld [vmem:[%s1491_s5 + $0x70] ss:$8 sps:$4 sm:$0xff]   ;;  %v1288_v51 = vmov 0   ;;  %p1092_p13 = scmp.ne.s32.totalorder %s1269_s14, 5 }
  0x44   : > { %870 = vmatprep.mubr.bf16.mxu1 %v1288_v51  ;;  %797 = vmatprep.subr.bf16.mxu0 %v1156_v49  ;;  %v1159_v52 = vld [vmem:[%s1491_s5 + $0x64] ss:$8 sps:$4 sm:$0xff]   ;;  %v1161_v53 = vld [vmem:[%s1491_s5 + $0x60] ss:$8 sps:$4 sm:$0xff]   ;;  %v1162_v54 = vld [vmem:[%s1491_s5 + $0x54] ss:$8 sps:$4 sm:$0xff]  }
  0x45   : > { %798 = vmatpush1.bf16.msra.mxu0 %v1158_v50  ;;  %v1164_v55 = vld [vmem:[%s1491_s5 + $0x50] ss:$8 sps:$4 sm:$0xff]   ;;  %v1165_v56 = vld [vmem:[%s1491_s5 + $0x44] ss:$8 sps:$4 sm:$0xff]   ;;  %v1177_v57 = vld [vmem:[%s1491_s5 + $0x174] ss:$8 sps:$4 sm:$0xff]  }
  0x46   : > { %799 = vmatprep.subr.bf16.mxu0 %v1159_v52  ;;  %v1179_v58 = vld [vmem:[%s1491_s5 + $0x170] ss:$8 sps:$4 sm:$0xff]   ;;  %v1167_v59 = vld [vmem:[%s1491_s5 + $0x40] ss:$8 sps:$4 sm:$0xff]   ;;  %v1168_v60 = vld [vmem:[%s1491_s5 + $0x34] ss:$8 sps:$4 sm:$0xff]   ;;  %838 = vmatprep.subr.bf16.mxu1 %v1177_v57 }
  0x47   : > { %v1183_v61 = vld [vmem:[%s1491_s5 + $0x164] ss:$8 sps:$4 sm:$0xff]   ;;  %839 = vmatpush1.bf16.msra.mxu1 %v1179_v58  ;;  %v1185_v62 = vld [vmem:[%s1491_s5 + $0x160] ss:$8 sps:$4 sm:$0xff]   ;;  %v1170_v63 = vld [vmem:[%s1491_s5 + $0x30] ss:$8 sps:$4 sm:$0xff]  }
  0x48   : > { %840 = vmatprep.subr.bf16.mxu1 %v1183_v61  ;;  %v1189_v0 = vld [vmem:[%s1491_s5 + $0x154] ss:$8 sps:$4 sm:$0xff]   ;;  %v1171_v1 = vld [vmem:[%s1491_s5 + $0x24] ss:$8 sps:$4 sm:$0xff]   ;;  %v1191_v2 = vld [vmem:[%s1491_s5 + $0x150] ss:$8 sps:$4 sm:$0xff]  }
  0x49   : > { %800 = vmatpush1.bf16.msra.mxu0 %v1161_v53  ;;  %v1195_v3 = vld [vmem:[%s1491_s5 + $0x144] ss:$8 sps:$4 sm:$0xff]   ;;  %v1173_v4 = vld [vmem:[%s1491_s5 + $0x20] ss:$8 sps:$4 sm:$0xff]   ;;  %v1174_v5 = vld [vmem:[%s1491_s5 + $0x14] ss:$8 sps:$4 sm:$0xff]  }
  0x4a   : > { %801 = vmatprep.subr.bf16.mxu0 %v1162_v54  ;;  %v1197_v6 = vld [vmem:[%s1491_s5 + $0x140] ss:$8 sps:$4 sm:$0xff]   ;;  %v1201_v7 = vld [vmem:[%s1491_s5 + $0x134] ss:$8 sps:$4 sm:$0xff]   ;;  %v1176_v8 = vld [vmem:[%s1491_s5 + $0x10] ss:$8 sps:$4 sm:$0xff]  }
  0x4b   : > { %841 = vmatpush1.bf16.msra.mxu1 %v1185_v62  ;;  %v1180_v9 = vld [vmem:[%s1491_s5 + $0x4] ss:$8 sps:$4 sm:$0xff]   ;;  %v1203_v10 = vld [vmem:[%s1491_s5 + $0x130] ss:$8 sps:$4 sm:$0xff]   ;;  %v1182_v12 = vld [vmem:[%s1491_s5] ss:$8 sps:$4 sm:$0xff]  }
  0x4c   : > { %842 = vmatprep.subr.bf16.mxu1 %v1189_v0  ;;  %v1207_v11 = vld [vmem:[%s1491_s5 + $0x124] ss:$8 sps:$4 sm:$0xff]   ;;  %v1186_v13 = vld [vmem:[%s1491_s5 + $0xf4] ss:$8 sps:$4 sm:$0xff]   ;;  %v1209_v14 = vld [vmem:[%s1491_s5 + $0x120] ss:$8 sps:$4 sm:$0xff]  }
  0x4d   : > { %802 = vmatpush1.bf16.msra.mxu0 %v1164_v55  ;;  %v1213_v15 = vld [vmem:[%s1491_s5 + $0x114] ss:$8 sps:$4 sm:$0xff]   ;;  %v1188_v16 = vld [vmem:[%s1491_s5 + $0xf0] ss:$8 sps:$4 sm:$0xff]   ;;  %v1192_v17 = vld [vmem:[%s1491_s5 + $0xe4] ss:$8 sps:$4 sm:$0xff]  }
  0x4e   : > { %803 = vmatprep.subr.bf16.mxu0 %v1165_v56  ;;  %v496_v18 = vld [vmem:[%s1479_s26] sm:$0xff]  ;;  %v1219_v21 = vld [vmem:[%s1491_s5 + $0x104] ss:$8 sps:$4 sm:$0xff]   ;;  %v1194_v22 = vld [vmem:[%s1491_s5 + $0xe0] ss:$8 sps:$4 sm:$0xff]  }
  0x4f   : > { %843 = vmatpush1.bf16.msra.mxu1 %v1191_v2  ;;  %v1215_v19 = vld [vmem:[%s1491_s5 + $0x110] ss:$8 sps:$4 sm:$0xff]   ;;  %v1042_v20 = vcombine.high %v496_v18, %v496_v18  ;;  %v1198_v23 = vld [vmem:[%s1491_s5 + $0xd4] ss:$8 sps:$4 sm:$0xff]   ;;  %v1221_v24 = vld [vmem:[%s1491_s5 + $0x100] ss:$8 sps:$4 sm:$0xff]   ;;  %v1041_v37 = vcombine.low %v496_v18, %v496_v18 }
  0x50   : > { %844 = vmatprep.subr.bf16.mxu1 %v1195_v3  ;;  %v1200_v25 = vld [vmem:[%s1491_s5 + $0xd0] ss:$8 sps:$4 sm:$0xff]   ;;  %v1204_v26 = vld [vmem:[%s1491_s5 + $0xc4] ss:$8 sps:$4 sm:$0xff]   ;;  %v1206_v28 = vld [vmem:[%s1491_s5 + $0xc0] ss:$8 sps:$4 sm:$0xff]  }
  0x51   : > { %804 = vmatpush1.bf16.msra.mxu0 %v1167_v59  ;;  %829 = vmatprep.mubr.bf16.mxu0 %v1042_v20  ;;  %v1225_v27 = vld [vmem:[%s1479_s26 + $0x8] ss:$0 sps:$4 sm:$0xff]   ;;  %v1210_v29 = vld [vmem:[%s1491_s5 + $0xb4] ss:$8 sps:$4 sm:$0xff]   ;;  %v1216_v31 = vld [vmem:[%s1491_s5 + $0xa4] ss:$8 sps:$4 sm:$0xff]  }
  0x52   : > { %805 = vmatprep.subr.bf16.mxu0 %v1168_v60  ;;  %v1212_v30 = vld [vmem:[%s1491_s5 + $0xb0] ss:$8 sps:$4 sm:$0xff]   ;;  %v1218_v32 = vld [vmem:[%s1491_s5 + $0xa0] ss:$8 sps:$4 sm:$0xff]   ;;  %v1222_v33 = vld [vmem:[%s1491_s5 + $0x94] ss:$8 sps:$4 sm:$0xff]  }
  0x53   : > { %845 = vmatpush1.bf16.msra.mxu1 %v1197_v6  ;;  %v1224_v34 = vld [vmem:[%s1491_s5 + $0x90] ss:$8 sps:$4 sm:$0xff]   ;;  %v1226_v35 = vld [vmem:[%s1491_s5 + $0x84] ss:$8 sps:$4 sm:$0xff]   ;;  %v1228_v36 = vld [vmem:[%s1491_s5 + $0x80] ss:$8 sps:$4 sm:$0xff]  }
  0x54   : > { %846 = vmatprep.subr.bf16.mxu1 %v1201_v7  ;;  %v494_v42 = vld [vmem:[#allocation2] sm:$0xff]  ;;  %v495_v45 = vld [vmem:[#allocation2 + $0x8] sm:$0xff] }
  0x55   : > { %806 = vmatpush1.bf16.msra.mxu0 %v1170_v63 }
  0x56   : > { %807 = vmatprep.subr.bf16.mxu0 %v1171_v1 }
  0x57   : > { %847 = vmatpush1.bf16.msra.mxu1 %v1203_v10 }
  0x58   : > { %848 = vmatprep.subr.bf16.mxu1 %v1207_v11 }
  0x59   : > { %808 = vmatpush1.bf16.msra.mxu0 %v1173_v4 }
  0x5a   : > { %809 = vmatprep.subr.bf16.mxu0 %v1174_v5 }
  0x5b   : > { %849 = vmatpush1.bf16.msra.mxu1 %v1209_v14 }
  0x5c   : > { %850 = vmatprep.subr.bf16.mxu1 %v1213_v15 }
  0x5d   : > { %810 = vmatpush1.bf16.msra.mxu0 %v1176_v8 }
  0x5e   : > { %811 = vmatprep.subr.bf16.mxu0 %v1180_v9 }
  0x5f   : > { %851 = vmatpush1.bf16.msra.mxu1 %v1215_v19 }
  0x60   : > { %852 = vmatprep.subr.bf16.mxu1 %v1219_v21 }
  0x61   : > { %812 = vmatpush1.bf16.msra.mxu0 %v1182_v12 }
  0x62   : > { %813 = vmatprep.subr.bf16.mxu0 %v1186_v13 }
  0x63   : > { %853 = vmatpush1.bf16.msra.mxu1 %v1221_v24 }
  0x65   : > { %814 = vmatpush2.bf16.msra.mxu0 %v1188_v16 }
  0x66   : > { %815 = vmatprep.subr.bf16.mxu0 %v1192_v17  ;;  %871 = vmatmul.mubr.bf16.vlgmr.msra.gmra.mxu1 %v1225_v27 }
  0x69   : > { %816 = vmatpush2.bf16.msra.mxu0 %v1194_v22 }
  0x6a   : > { %817 = vmatprep.subr.bf16.mxu0 %v1198_v23 }
  0x6d   : > { %818 = vmatpush2.bf16.msra.mxu0 %v1200_v25 }
  0x6e   : > { %819 = vmatprep.subr.bf16.mxu0 %v1204_v26 }
  0x71   : > { %820 = vmatpush2.bf16.msra.mxu0 %v1206_v28 }
  0x72   : > { %821 = vmatprep.subr.bf16.mxu0 %v1210_v29 }
  0x75   : > { %822 = vmatpush2.bf16.msra.mxu0 %v1212_v30 }
  0x76   : > { %823 = vmatprep.subr.bf16.mxu0 %v1216_v31 }
  0x79   : > { %824 = vmatpush2.bf16.msra.mxu0 %v1218_v32 }
  0x7a   : > { %825 = vmatprep.subr.bf16.mxu0 %v1222_v33 }
  0x7d   : > { %826 = vmatpush2.bf16.msra.mxu0 %v1224_v34 }
  0x7e   : > { %827 = vmatprep.subr.bf16.mxu0 %v1226_v35 }
  0x81   : > { %828 = vmatpush2.bf16.msra.mxu0 %v1228_v36 }
  0x84   : > { %830 = vmatmul.mubr.bf16.vlgmr.msra.gmra.mxu0 %v1041_v37 }
 0x126   : > { %v872_v38 = vpop.f32.mrf.mxu1 }
 0x128   : > { %v874_v39 = vpop.f32.mrf.mxu1 }
 0x12a   : > { %v876_v40 = vpop.f32.mrf.mxu1 }
 0x12c   : > { %v877_v41 = vpop.f32.mrf.mxu1 }
 0x144   : > { %v831_v43 = vpop.f32.mrf.mxu0 }
 0x145   : > { %v873_v44 = vadd.f32 %v872_v38, %v831_v43 }
 0x146   : > { %v833_v46 = vpop.f32.mrf.mxu0 }
 0x147   : > { %v879_v47 = vadd.f32 %v873_v44, %v494_v42  ;;  %v875_v48 = vadd.f32 %v874_v39, %v833_v46  ;;  %886 = sbr.rel (%p1092_p13) target bundleno = 343 (0x157), region = 78 }
 0x148   : > { %v835_v49 = vpop.f32.mrf.mxu0 }
 0x149   : > { %881 = vst [vmem:[#allocation2] sm:$0xff] %v879_v47  ;;  %v880_v50 = vadd.f32 %v875_v48, %v495_v45 }
 0x14a   : > { %v836_v51 = vpop.f32.mrf.mxu0 }
 0x14b   : > { %882 = vst [vmem:[#allocation2 + $0x8] sm:$0xff] %v880_v50 }
 0x14c   : > { %v891_v52 = vlaneseq  ;;  %v889_v54 = vld [vmem:[%s475_s12] sm:$0x3] }
 0x14e   : > { %v892_v53 = vshrl.u32 %v891_v52, 7 }
 0x150   : > { %v893_v55 = vsub.s32 0, %v892_v53  ;;  %v897_v56 = vsub.s32 1, %v892_v53  ;;  %v887_v57 = vld [vmem:[#allocation2] sm:$0xff] }
 0x152   : > { %v888_v58 = vld [vmem:[#allocation2 + $0x8] sm:$0xff]  ;;  %v894_v59 = vrot.slane %v889_v54, %v893_v55  ;;  %v898_v60 = vrot.slane %v889_v54, %v897_v56 }
 0x154   : > { %v901_v61 = vadd.f32 %v894_v59, %v887_v57  ;;  %v902_v62 = vadd.f32 %v898_v60, %v888_v58 }
 0x156   : > { %903 = vst [vmem:[%s1489_s4] sm:$0xff] %v901_v61  ;;  %904 = vst [vmem:[%s1489_s4 + $0x8] sm:$0xff] %v902_v62 }
 0x157 PF: > { %s13_s18 = sadd.s32 1, %s1285_s18   ;;  %s1577_s12 = smov %s1265_s13 }
 0x158   : > { %p10_p0 = scmp.ge.s32.totalorder %s13_s18, 14   ;;  %s1578_s13 = smov %s1360_s25 }
 0x159   : > { %s1579_s14 = smov %s1277_s16  ;;  %s1580_s15 = smov %s1281_s17 }
 0x15a   : > { %s1581_s16 = smov %s1584_s19  ;;  %s1582_s17 = smov %s1588_s20 }
 0x15b   :  { %12 = sbr.rel (!%p10_p0) target bundleno = 4 (0x4), region = 119 }

// kernel: _lambda_.113
= control target key start
LH: loop header
LB: loop body
LE: loop exit
PB: predicated region body
PF: predicated region fallthrough
CT: control target
= control target key end

     0   :  { %s637_s1 = inlined_call_operand.vmem [shape: bf16[512,128], index: 1, kind: input, shape index: {}]   ;;  %s638_s0 = inlined_call_operand.vmem [shape: bf16[8,512], index: 0, kind: input, shape index: {}]   ;;  %s639_s2 = inlined_call_operand.vmem [shape: f32[1,128], index: 2, kind: input, shape index: {}]   ;;  %s640_s3 = inlined_call_operand.vmem [shape: f32[8,128], index: 3, kind: output, shape index: {}]  }
   0x1   :  { %v473_v0 = vld [vmem:[%s637_s1 + $0x78] sm:$0xff]   ;;  %v477_v4 = vld [vmem:[%s637_s1 + $0x70] sm:$0xff]   ;;  %v481_v8 = vld [vmem:[%s637_s1 + $0x68] sm:$0xff]  }
   0x2   :  { %v474_v1 = vld [vmem:[%s637_s1 + $0xf8] sm:$0xff]   ;;  %429 = vmatprep.subr.bf16.mxu0 %v473_v0  ;;  %v478_v5 = vld [vmem:[%s637_s1 + $0xf0] sm:$0xff]   ;;  %v482_v9 = vld [vmem:[%s637_s1 + $0xe8] sm:$0xff]  }
   0x3   :  { %v475_v2 = vld [vmem:[%s637_s1 + $0x38] sm:$0xff]   ;;  %451 = vmatprep.subr.bf16.mxu1 %v474_v1  ;;  %v479_v6 = vld [vmem:[%s637_s1 + $0x30] sm:$0xff]   ;;  %v483_v10 = vld [vmem:[%s637_s1 + $0x28] sm:$0xff]  }
   0x4   :  { %v476_v3 = vld [vmem:[%s637_s1 + $0xb8] sm:$0xff]   ;;  %430 = vmatpush3.bf16.msra.mxu0 %v475_v2  ;;  %v480_v7 = vld [vmem:[%s637_s1 + $0xb0] sm:$0xff]   ;;  %v484_v11 = vld [vmem:[%s637_s1 + $0xa8] sm:$0xff]  }
   0x5   :  { %452 = vmatpush3.bf16.msra.mxu1 %v476_v3  ;;  %431 = vmatprep.subr.bf16.mxu0 %v477_v4  ;;  %v485_v12 = vld [vmem:[%s637_s1 + $0x60] sm:$0xff]   ;;  %v489_v16 = vld [vmem:[%s637_s1 + $0x58] sm:$0xff]   ;;  %v493_v20 = vld [vmem:[%s637_s1 + $0x50] sm:$0xff]  }
   0x6   :  { %453 = vmatprep.subr.bf16.mxu1 %v478_v5  ;;  %v486_v13 = vld [vmem:[%s637_s1 + $0xe0] sm:$0xff]   ;;  %v490_v17 = vld [vmem:[%s637_s1 + $0xd8] sm:$0xff]   ;;  %v494_v21 = vld [vmem:[%s637_s1 + $0xd0] sm:$0xff]  }
   0x7   :  { %v487_v14 = vld [vmem:[%s637_s1 + $0x20] sm:$0xff]   ;;  %v491_v18 = vld [vmem:[%s637_s1 + $0x18] sm:$0xff]   ;;  %v495_v22 = vld [vmem:[%s637_s1 + $0x10] sm:$0xff]  }
   0x8   :  { %432 = vmatpush3.bf16.msra.mxu0 %v479_v6  ;;  %v488_v15 = vld [vmem:[%s637_s1 + $0xa0] sm:$0xff]   ;;  %v492_v19 = vld [vmem:[%s637_s1 + $0x98] sm:$0xff]   ;;  %v496_v23 = vld [vmem:[%s637_s1 + $0x90] sm:$0xff]  }
   0x9   :  { %454 = vmatpush3.bf16.msra.mxu1 %v480_v7  ;;  %433 = vmatprep.subr.bf16.mxu0 %v481_v8  ;;  %v497_v24 = vld [vmem:[%s637_s1 + $0x48] sm:$0xff]   ;;  %v501_v28 = vld [vmem:[%s637_s1 + $0x40] sm:$0xff]  }
   0xa   :  { %455 = vmatprep.subr.bf16.mxu1 %v482_v9  ;;  %v498_v25 = vld [vmem:[%s637_s1 + $0xc8] sm:$0xff]   ;;  %v502_v29 = vld [vmem:[%s637_s1 + $0xc0] sm:$0xff]  }
   0xb   :  { %v499_v26 = vld [vmem:[%s637_s1 + $0x8] sm:$0xff]   ;;  %v503_v30 = vld [vmem:[%s637_s1] sm:$0xff]  }
   0xc   :  { %434 = vmatpush3.bf16.msra.mxu0 %v483_v10  ;;  %v500_v27 = vld [vmem:[%s637_s1 + $0x88] sm:$0xff]   ;;  %v504_v31 = vld [vmem:[%s637_s1 + $0x80] sm:$0xff]  }
   0xd   :  { %456 = vmatpush3.bf16.msra.mxu1 %v484_v11  ;;  %435 = vmatprep.subr.bf16.mxu0 %v485_v12  ;;  %v21_v32 = vld [vmem:[%s638_s0] sm:$0xff]  ;;  %v22_v33 = vld [vmem:[%s638_s0 + $0x8] sm:$0xff] }
   0xe   :  { %457 = vmatprep.subr.bf16.mxu1 %v486_v13  ;;  %v392_v34 = vcombine.low %v21_v32, %v21_v32  ;;  %v393_v35 = vcombine.high %v21_v32, %v21_v32  ;;  %v394_v36 = vcombine.low %v22_v33, %v22_v33  ;;  %v395_v37 = vcombine.high %v22_v33, %v22_v33  ;;  %v428_v44 = vld [vmem:[%s639_s2] ss:$0 sm:$0xff] }
  0x10   :  { %436 = vmatpush3.bf16.msra.mxu0 %v487_v14  ;;  %325 = vmatprep.mubr.bf16.mxu0 %v393_v35 }
  0x11   :  { %458 = vmatpush3.bf16.msra.mxu1 %v488_v15  ;;  %437 = vmatprep.subr.bf16.mxu0 %v489_v16 }
  0x12   :  { %459 = vmatprep.subr.bf16.mxu1 %v490_v17  ;;  %365 = vmatprep.mubr.bf16.mxu1 %v395_v37 }
  0x14   :  { %438 = vmatpush3.bf16.msra.mxu0 %v491_v18 }
  0x15   :  { %460 = vmatpush3.bf16.msra.mxu1 %v492_v19  ;;  %439 = vmatprep.subr.bf16.mxu0 %v493_v20 }
  0x16   :  { %461 = vmatprep.subr.bf16.mxu1 %v494_v21 }
  0x18   :  { %440 = vmatpush3.bf16.msra.mxu0 %v495_v22 }
  0x19   :  { %462 = vmatpush3.bf16.msra.mxu1 %v496_v23  ;;  %441 = vmatprep.subr.bf16.mxu0 %v497_v24 }
  0x1a   :  { %463 = vmatprep.subr.bf16.mxu1 %v498_v25 }
  0x1c   :  { %442 = vmatpush3.bf16.msra.mxu0 %v499_v26 }
  0x1d   :  { %464 = vmatpush3.bf16.msra.mxu1 %v500_v27  ;;  %443 = vmatprep.subr.bf16.mxu0 %v501_v28 }
  0x1e   :  { %465 = vmatprep.subr.bf16.mxu1 %v502_v29 }
  0x20   :  { %444 = vmatpush3.bf16.msra.mxu0 %v503_v30 }
  0x21   :  { %466 = vmatpush3.bf16.msra.mxu1 %v504_v31 }
  0x23   :  { %326 = vmatmul.mubr.bf16.vlgmr.msra.gmra.mxu0 %v392_v34 }
  0x24   :  { %366 = vmatmul.mubr.bf16.vlgmr.msra.gmra.mxu1 %v394_v36 }
  0xe3   :  { %v445_v38 = vpop.f32.mrf.mxu0 }
  0xe4   :  { %v467_v39 = vpop.f32.mrf.mxu1 }
  0xe5   :  { %v446_v40 = vpop.f32.mrf.mxu0 }
  0xe6   :  { %v468_v41 = vpop.f32.mrf.mxu1  ;;  %v447_v42 = vadd.f32 %v446_v40, %v445_v38 }
  0xe7   :  { %v469_v43 = vadd.f32 %v468_v41, %v467_v39  ;;  %v448_v45 = vpop.f32.mrf.mxu0 }
  0xe8   :  { %v470_v46 = vpop.f32.mrf.mxu1 }
  0xe9   :  { %v368_v47 = vadd.f32 %v469_v43, %v447_v42  ;;  %v449_v48 = vpop.f32.mrf.mxu0 }
  0xea   :  { %v471_v49 = vpop.f32.mrf.mxu1 }
  0xeb   :  { %v386_v50 = vadd.f32 %v428_v44, %v368_v47 }
  0xed   :  { %387 = vst [vmem:[%s640_s3] sm:$0xff] %v386_v50 }

</bundles_post_ra>
